<compile_context>
chip_gen: v5e
topology: v5e:2x2
jax: 0.10.0
libtpu: 0.0.40
codegen_flags: <defaults>
</compile_context>

<pallas_src>
import jax
import jax.numpy as jnp
from jax.experimental import pallas as pl
from jax.experimental.pallas import tpu as pltpu

IN_FEATURES = 49152
HIDDEN = 256
OUT = 2


def _vmem_limit_bytes():
    """Generation-aware VMEM request: ~75% of physical, capped at 64 MiB.

    v5e/v6e (128 MiB physical) -> 64 MiB; v7x (64 MiB physical) -> 48 MiB.
    Floored at 32 MiB (our working set at tk=8192 is ~17 MiB double-buffered).
    """
    cap = 128 << 20
    try:
        info = pltpu.get_tpu_info()
        cap = int(getattr(info, "vmem_capacity_bytes", cap) or cap)
    except Exception:
        pass
    return max(32 << 20, min(64 << 20, (cap * 3) // 4))


def _linear1_partial_kernel(x_ref, w1_ref, o_ref, acc_ref):
    """Partial (pre-bias) linear1 for one K-split: acc += x_tile @ W1_tile."""
    k = pl.program_id(1)

    @pl.when(k == 0)
    def _():
        acc_ref[...] = jnp.zeros_like(acc_ref)

    # Default matmul precision (matches the pure-JAX reference below).  For
    # bit-level parity with a strict f32 PyTorch reference, pass
    # precision=jax.lax.Precision.HIGHEST here and in the reference.
    acc_ref[...] += jnp.dot(x_ref[...], w1_ref[...],
                            preferred_element_type=jnp.float32)

    @pl.when(k == pl.num_programs(1) - 1)
    def _():
        o_ref[...] = acc_ref[...]


def _epilogue_kernel(p_ref, b1_ref, w2_ref, b2_ref, w3_ref, b3_ref, o_ref):
    """Combine K-split partials, bias+ReLU, linear2+ReLU, linear3, softmax."""
    nsplit = p_ref.shape[0]          # static
    h1 = p_ref[0]
    for s in range(1, nsplit):
        h1 = h1 + p_ref[s]
    h1 = jnp.maximum(h1 + b1_ref[...], 0.0)

    h2 = jnp.dot(h1, w2_ref[...], preferred_element_type=jnp.float32)
    h2 = jnp.maximum(h2 + b2_ref[...], 0.0)

    logits = jnp.dot(h2, w3_ref[...],
                     preferred_element_type=jnp.float32) + b3_ref[...]
    m = jnp.max(logits, axis=1, keepdims=True)
    e = jnp.exp(logits - m)
    o_ref[...] = (e / jnp.sum(e, axis=1, keepdims=True)).astype(o_ref.dtype)


def fan_regression(x, w1, b1, w2, b2, w3, b3, *, tk=8192, nsplit=2,
                   stream_dtype=None):
    """Forward pass of FANRegression.

    x  : (B, 49152)
    w1 : (49152, 256), w2 : (256, 256), w3 : (256, 2)  (pre-transposed (in,out))
    b* : (1, out)
    tk          : K tile of the linear1 reduction (nsplit*tk must divide 49152)
    nsplit      : parallel K partitions (shards the W1 stream across the 2
                  TensorCores on v7x; harmless on single-TC v5e/v6e)
    stream_dtype: e.g. jnp.bfloat16 to halve the dominant W1 HBM traffic
                  (accumulation stays f32); None keeps f32 parity.
    """
    B, K = x.shape
    assert K == IN_FEATURES
    assert K % (nsplit * tk) == 0, "nsplit * tk must divide 49152"
    nk = K // (nsplit * tk)          # K tiles per split

    if stream_dtype is not None:
        x = x.astype(stream_dtype)
        w1 = w1.astype(stream_dtype)

    # --- kernel 1: HBM-bound streaming of W1 / x, K-tiled + K-split ---------
    partial = pl.pallas_call(
        _linear1_partial_kernel,
        out_shape=jax.ShapeDtypeStruct((nsplit, B, HIDDEN), jnp.float32),
        grid_spec=pltpu.PrefetchScalarGridSpec(
            num_scalar_prefetch=0,
            grid=(nsplit, nk),
            in_specs=[
                pl.BlockSpec((B, tk),      lambda s, k: (0, s * nk + k)),  # x
                pl.BlockSpec((tk, HIDDEN), lambda s, k: (s * nk + k, 0)),  # W1
            ],
            out_specs=pl.BlockSpec((None, B, HIDDEN), lambda s, k: (s, 0, 0)),
            scratch_shapes=[pltpu.VMEM((B, HIDDEN), jnp.float32)],
        ),
        compiler_params=pltpu.CompilerParams(
            dimension_semantics=("parallel", "arbitrary"),
            vmem_limit_bytes=_vmem_limit_bytes(),
        ),
    )(x, w1)

    # --- kernel 2: tiny fused epilogue (everything fits in VMEM, no grid) ---
    # If B ever grows large (>=128), tile the batch with a second "parallel"
    # grid axis in kernel 1 and block the epilogue over batch as well.
    return pl.pallas_call(
        _epilogue_kernel,
        out_shape=jax.ShapeDtypeStruct((B, OUT), jnp.float32),
    )(partial, b1, w2, b2, w3, b3)


def init_params(key):
    """Deterministic init mimicking nn.Linear default U(-1/sqrt(fan_in), +)."""
    ks = jax.random.split(key, 6)

    def lin(kw, kb, fan_in, fan_out):
        bound = 1.0 / jnp.sqrt(fan_in)
        w = jax.random.uniform(kw, (fan_in, fan_out), jnp.float32, -bound, bound)
        b = jax.random.uniform(kb, (1, fan_out), jnp.float32, -bound, bound)
        return w, b

    w1, b1 = lin(ks[0], ks[1], IN_FEATURES, HIDDEN)
    w2, b2 = lin(ks[2], ks[3], HIDDEN, HIDDEN)
    w3, b3 = lin(ks[4], ks[5], HIDDEN, OUT)
    return w1, b1, w2, b2, w3, b3


def fan_reference(x, w1, b1, w2, b2, w3, b3):
    a = jnp.maximum(x @ w1 + b1, 0.0)
    a = jnp.maximum(a @ w2 + b2, 0.0)
    logits = a @ w3 + b3
    return jax.nn.softmax(logits, axis=1)


if __name__ == "__main__":
    key = jax.random.PRNGKey(0)
    k_x, k_p = jax.random.split(key)

    B = 8
    x = jax.random.normal(k_x, (B, IN_FEATURES), dtype=jnp.float32)
    params = init_params(k_p)

    ref = fan_reference(x, *params)

    # f32 streaming path (default)
    out = jax.block_until_ready(fan_regression(x, *params))
    assert out.shape == (B, OUT)
    assert jnp.allclose(out, ref, atol=1e-4, rtol=1e-4), "f32 mismatch vs reference"

    # optional bf16-streaming path (halves HBM traffic of the 48 MiB W1 stream)
    out_bf16 = jax.block_until_ready(
        fan_regression(x, *params, stream_dtype=jnp.bfloat16))
    assert out_bf16.shape == (B, OUT)
    assert jnp.allclose(out_bf16, ref, atol=2e-2, rtol=2e-2), "bf16 mismatch vs reference"

    print("KERNEL_OK")
</pallas_src>

<mosaic_0001>
module attributes {stable_mosaic.version = 11 : i64} {
  func.func @_linear1_partial_kernel(%arg0: i32, %arg1: i32, %arg2: memref<8x8192xf32, #tpu.memory_space<vmem>>, %arg3: memref<8192x256xf32, #tpu.memory_space<vmem>>, %arg4: memref<1x8x256xf32, #tpu.memory_space<vmem>>, %arg5: memref<8x256xf32, #tpu.memory_space<vmem>>) attributes {dimension_semantics = [#tpu.dimension_semantics<parallel>, #tpu.dimension_semantics<arbitrary>], iteration_bounds = array<i64: 2, 3>, scalar_prefetch = 0 : i64, scratch_operands = 1 : i64, tpu.core_type = #tpu.core_type<tc>, window_params = [{transform_indices = @transform_0, window_bounds = array<i64: 8, 8192>}, {transform_indices = @transform_1, window_bounds = array<i64: 8192, 256>}, {transform_indices = @transform_2, window_bounds = array<i64: 1, 8, 256>}]} {
    %c0_i32 = arith.constant 0 : i32
    %0 = arith.cmpi eq, %arg1, %c0_i32 : i32
    %1 = arith.extui %0 : i1 to i32
    %c0_i32_0 = arith.constant 0 : i32
    %2 = arith.cmpi ne, %1, %c0_i32_0 : i32
    scf.if %2 {
      %cst_9 = arith.constant 0.000000e+00 : f32
      %12 = vector.broadcast %cst_9 : f32 to vector<8x256xf32>
      %c0_10 = arith.constant 0 : index
      %c0_11 = arith.constant 0 : index
      %13 = vector.load %arg5[%c0_10, %c0_11] : memref<8x256xf32, #tpu.memory_space<vmem>>, vector<8x256xf32>
      tpu.vector_store %arg5[%c0_10, %c0_11], %12 {strides = array<i32>} : memref<8x256xf32, #tpu.memory_space<vmem>>, vector<8x256xf32>,
    } else {
    }
    %c0 = arith.constant 0 : index
    %c0_1 = arith.constant 0 : index
    %3 = vector.load %arg5[%c0, %c0_1] : memref<8x256xf32, #tpu.memory_space<vmem>>, vector<8x256xf32>
    %c0_2 = arith.constant 0 : index
    %c0_3 = arith.constant 0 : index
    %4 = vector.load %arg2[%c0_2, %c0_3] : memref<8x8192xf32, #tpu.memory_space<vmem>>, vector<8x8192xf32>
    %c0_4 = arith.constant 0 : index
    %c0_5 = arith.constant 0 : index
    %5 = vector.load %arg3[%c0_4, %c0_5] : memref<8192x256xf32, #tpu.memory_space<vmem>>, vector<8192x256xf32>
    %cst = arith.constant dense<0.000000e+00> : vector<8x256xf32>
    %6 = tpu.matmul %4, %5, %cst {dimension_numbers = #tpu.dot_dimension_numbers<[1], [0], [0], [1], [0, 0, 1, 1], [], []>} : vector<8x8192xf32>, vector<8192x256xf32>, vector<8x256xf32> -> vector<8x256xf32>
    %7 = arith.addf %3, %6 : vector<8x256xf32>
    %c0_6 = arith.constant 0 : index
    %c0_7 = arith.constant 0 : index
    %8 = vector.load %arg5[%c0_6, %c0_7] : memref<8x256xf32, #tpu.memory_space<vmem>>, vector<8x256xf32>
    tpu.vector_store %arg5[%c0_6, %c0_7], %7 {strides = array<i32>} : memref<8x256xf32, #tpu.memory_space<vmem>>, vector<8x256xf32>,
    %c2_i32 = arith.constant 2 : i32
    %9 = arith.cmpi eq, %arg1, %c2_i32 : i32
    %10 = arith.extui %9 : i1 to i32
    %c0_i32_8 = arith.constant 0 : i32
    %11 = arith.cmpi ne, %10, %c0_i32_8 : i32
    scf.if %11 {
      %c0_9 = arith.constant 0 : index
      %c0_10 = arith.constant 0 : index
      %12 = vector.load %arg5[%c0_9, %c0_10] : memref<8x256xf32, #tpu.memory_space<vmem>>, vector<8x256xf32>
      %c0_11 = arith.constant 0 : index
      %c0_12 = arith.constant 0 : index
      %c0_13 = arith.constant 0 : index
      %13 = vector.load %arg4[%c0_11, %c0_12, %c0_13] : memref<1x8x256xf32, #tpu.memory_space<vmem>>, vector<1x8x256xf32>
      %14 = vector.shape_cast %13 : vector<1x8x256xf32> to vector<8x256xf32>
      %15 = vector.shape_cast %12 : vector<8x256xf32> to vector<1x8x256xf32>
      tpu.vector_store %arg4[%c0_11, %c0_12, %c0_13], %15 {strides = array<i32>} : memref<1x8x256xf32, #tpu.memory_space<vmem>>, vector<1x8x256xf32>,
    } else {
    }
    return
  }
  func.func @transform_0(%arg0: i32, %arg1: i32) -> (i32, i32) {
    %c3_i32 = arith.constant 3 : i32
    %0 = arith.muli %arg0, %c3_i32 : i32
    %1 = arith.addi %0, %arg1 : i32
    %c0_i32 = arith.constant 0 : i32
    %c0_i32_0 = arith.constant 0 : i32
    return %c0_i32, %1 : i32, i32
  }
  func.func @transform_1(%arg0: i32, %arg1: i32) -> (i32, i32) {
    %c3_i32 = arith.constant 3 : i32
    %0 = arith.muli %arg0, %c3_i32 : i32
    %1 = arith.addi %0, %arg1 : i32
    %c0_i32 = arith.constant 0 : i32
    %c0_i32_0 = arith.constant 0 : i32
    return %1, %c0_i32 : i32, i32
  }
  func.func @transform_2(%arg0: i32, %arg1: i32) -> (i32, i32, i32) {
    %c0_i32 = arith.constant 0 : i32
    %c0_i32_0 = arith.constant 0 : i32
    %c0_i32_1 = arith.constant 0 : i32
    return %arg0, %c0_i32, %c0_i32_0 : i32, i32, i32
  }
}

</mosaic_0001>

<bundles_post_ra>
// kernel: tpu_custom_call.1
= control target key start
LH: loop header
LB: loop body
LE: loop exit
PB: predicated region body
PF: predicated region fallthrough
CT: control target
= control target key end

     0   :  { %s7843_s0 = inlined_call_operand.hbm [shape: f32[8,49152], index: 0, kind: input, shape index: {}]   ;;  %s7844_s1 = inlined_call_operand.hbm [shape: f32[49152,256], index: 1, kind: input, shape index: {}]   ;;  %s7845_s2 = inlined_call_operand.hbm [shape: f32[2,8,256], index: 2, kind: output, shape index: {}]  }
   0x1   :  { %7850 = sst [smem:[#allocation17_spill]] %s7843_s0 }
   0x2   :  { %7 = vsyncpa [#allocation4], 0 }
   0x3   :  { %9 = vsyncpa [#allocation4 + $0x1], 0 }
   0x4   :  { %10 = vsyncpa [#allocation7], 0 }
   0x5   :  { %12 = vsyncpa [#allocation7 + $0x1], 0 }
   0x6   :  { %13 = vsyncpa [#allocation5], 0 }
   0x7   :  { %15 = vsyncpa [#allocation5 + $0x1], 0  ;;  %s5458_s9 = smov 0   ;;  %s5460_s10 = smov 0  }
   0x8   :  { %s5462_s11 = smov 0   ;;  %s5464_s12 = smov 0  }
   0x9   :  { %s5466_s13 = smov 0   ;;  %s5468_s14 = smov 0  }
   0xa   :  { %s5470_s15 = smov 0   ;;  %s5472_s16 = smov 0  }
   0xb   :  { %s5474_s17 = smov 0   ;;  %s5476_s18 = smov 0  }
   0xc   :  { %s5478_s19 = smov 0  }
   0xd LB: > { %7851 = sst [smem:[#allocation12_spill]] %s5430_s17  ;;  %s5052_s20 = sadd.s32 4294967295, %s5438_s19   ;;  %s5438_s19 = sphi %s5478_s19, %s21_s19   ;;  %s5434_s18 = sphi %s5476_s18, %s7866_s18   ;;  %s5430_s17 = sphi %s5474_s17, %s7865_s17   ;;  %s5426_s16 = sphi %s5472_s16, %s7864_s16   ;;  %s5422_s15 = sphi %s5470_s15, %s7863_s15   ;;  %s5418_s14 = sphi %s5468_s14, %s7872_s14   ;;  %s5414_s13 = sphi %s5466_s13, %s7871_s13   ;;  %s5410_s12 = sphi %s5464_s12, %s7870_s12   ;;  %s5406_s11 = sphi %s5462_s11, %s7869_s11   ;;  %s5402_s10 = sphi %s5460_s10, %s7868_s10   ;;  %s5398_s9 = sphi %s5458_s9, %s7867_s9  }
   0xe   : > { %7852 = sst [smem:[#allocation13_spill]] %s5434_s18  ;;  %s5053_s21 = sadd.s32 4294967294, %s5438_s19  }
   0xf   : > { %s30_s22 = sadd.s32 1, %s5430_s17  ;;  %s33_s23 = sadd.s32 1, %s5434_s18 }
  0x10   : > { %p31_p0 = scmp.ge.s32.totalorder %s30_s22, 3  ;;  %s37_s24 = smul.u32 3, %s5434_s18 }
  0x11   : > { %s44_s25 = sadd.s32 1, %s5418_s14  ;;  %p51_p1 = scmp.ne.s32.totalorder %s5418_s14, %s5414_s13 }
  0x12   : > { %s7874_s22 = smov (%p31_p0, %s30_s22), 0  ;;  %s7876_s23 = smov (!%p31_p0, %s33_s23), %s5434_s18 }
  0x13   : > { %7853 = sst [smem:[#allocation14_spill]] %s7874_s22  ;;  %s5523_s26 = sadd.s32 %s5430_s17, %s37_s24 }
  0x14   : > { %p52_p2 = scmp.eq.s32.totalorder %s5438_s19, 0  ;;  %p35_p3 = scmp.ge.s32.totalorder %s7876_s23, 2 }
  0x15   : > { %p57_p4 = scmp.ne.s32.totalorder %s5414_s13, %s5410_s12  ;;  %p58_p6 = scmp.eq.s32.totalorder %s5052_s20, 0 }
  0x16   : > { %p5527_p5 = por %p52_p2, %p51_p1  ;;  %s7878_s23 = smov (%p35_p3, %s7876_s23), 0 }
  0x17   : > { %7855 = sst [smem:[#allocation15_spill]] %s7878_s23  ;;  %p5533_p7 = por %p58_p6, %p57_p4 }
  0x18   : > { %s100_s29 = sadd.s32 1, %s5406_s11  ;;  %s39_s30 = smul.u32 3, %s7878_s23 }
  0x19   : > { %s97_s3 = ssub.s32 %s5434_s18, %s7878_s23  ;;  %p110_p9 = scmp.ne.s32.totalorder %s5406_s11, %s5402_s10 }
  0x1a   : > { %p98_p8 = scmp.eq.s32.totalorder %s97_s3, 0  ;;  %s40_s4 = sadd.s32 %s39_s30, %s7874_s22 }
  0x1b   : > { %p111_p10 = scmp.eq.s32.totalorder %s5052_s20, 5  ;;  %s41_s5 = ssub.s32 %s5523_s26, %s40_s4 }
  0x1c   : > { %p116_p11 = scmp.ne.s32.totalorder %s5402_s10, %s5398_s9  ;;  %p42_p12 = scmp.eq.s32.totalorder %s41_s5, 0 }
  0x1d   : > { %p5547_p13 = por %p111_p10, %p110_p9  ;;  %p117_p0 = scmp.eq.s32.totalorder %s5053_s21, 5 }
  0x1e   : > { %s5552_s7 = scalar_select %p98_p8, %s5406_s11, %s100_s29  }
  0x1f   : > { %s5555_s8 = scalar_select %p42_p12, %s5418_s14, %s44_s25  }
  0x20   : > { %p5095_p1 = scmp.lt.s32.totalorder %s5438_s19, 6  ;;  %s5561_s12 = sand.u32 1, %s5418_s14  }
  0x21   : > { %7858 = sst [smem:[#allocation16_spill]] %s5555_s8  ;;  %p5563_p2 = por %p117_p0, %p116_p11 }
  0x22   : > { %s5056_s24 = sshll.u32 %s5561_s12, 9  ;;  %s5074_s30 = sshll.u32 %s5523_s26, 9 }
  0x23   : > { %s7860_s0 = sld [smem:[#allocation17_spill]]  ;;  %s141_s5 = scalar_lea.vmem [#allocation3], %s5056_s24 }
  0x24   : > { %s152_s23 = sshll.u32 %s141_s5, 4  ;;  %p5574_p3 = pnand %p5095_p1, %p5527_p5  ;;  %s153_s23 = int_to_ptr.vmem [resolvable:$true] %s152_s23 }
  0x25   : > { %s5076_s22 = sshll.u32 %s5523_s26, 14  ;;  %p5063_p4 = scmp.ge.s32.totalorder %s5438_s19, 1 }
  0x26   : > { %p182_p6 = scmp.lt.s32.totalorder %s5438_s19, 7  ;;  %s138_s18 = scalar_lea.sflag [#allocation4], %s5561_s12 }
  0x27   : > { %s171_s3 = scalar_lea.hbm %s7844_s1, %s5076_s22  ;;  %s5440_s17 = smov 256  }
  0x28   : > { %p183_p8 = pnand %p5063_p4, %p182_p6  ;;  %s5441_s26 = smov 16  }
  0x29   : > { %s148_s25 = scalar_lea.hbm %s7860_s0, %s5074_s30  ;;  %s5059_s30 = sshll.u32 %s5561_s12, 14 }
  0x2a   : > { %s150_s4 = sshll.u32 %s148_s25, 4  ;;  %s172_s25 = sshll.u32 %s171_s3, 4  ;;  %s151_s4 = int_to_ptr.hbm [resolvable:$true] %s150_s4  ;;  %s173_s25 = int_to_ptr.hbm [resolvable:$true] %s172_s25 }
  0x2b   : > { %5087 = dma.hbm_to_vmem [thread:$0]  (!%p5574_p3), %s151_s4, 8192, %s153_s23, %s138_s18  }
  0x2c   : > { %s163_s27 = scalar_lea.vmem [#allocation6], %s5059_s30  ;;  %s160_s0 = scalar_lea.sflag [#allocation7], %s5561_s12 }
  0x2d   : > { %s174_s5 = sshll.u32 %s163_s27, 4  ;;  %186 = sbr.rel (%p183_p8) target bundleno = 1313 (0x521), region = 28  ;;  %s175_s5 = int_to_ptr.vmem [resolvable:$true] %s174_s5 }
  0x2e   : > { %5090 = dma.hbm_to_vmem [thread:$0]  (!%p5574_p3), %s173_s25, 262144, %s175_s5, %s160_s0, %s5440_s17, %s5440_s17, %s5441_s26  }
  0x2f   : > { %s188_s18 = sand.u32 (!%p183_p8), 1, %s5414_s13  }
  0x30   : > { %s5064_s23 = sshll.u32 (!%p183_p8), %s188_s18, 9  ;;  %s189_s4 = scalar_lea.sflag (!%p183_p8), [#allocation4], %s188_s18 }
  0x31   : > { %s5592_s8 = scalar_lea.vmem (!%p183_p8), [#allocation3], %s5064_s23 }
  0x32   : > { %5385 = dma.done.wait (%p5533_p7), %s189_s4, 8192  }
  0x33   : > { %5387 = vsyncadd (%p5533_p7), %s189_s4, 4294959104  ;;  %s5065_s22 = sshll.u32 %s188_s18, 14  ;;  %s199_s12 = scalar_lea.sflag [#allocation7], %s188_s18 }
  0x34   : > { %s5598_s30 = scalar_lea.vmem [#allocation6], %s5065_s22 }
  0x35   : > { %5389 = dma.done.wait (%p5533_p7), %s199_s12, 262144  }
  0x36   : > { %5391 = vsyncadd (%p5533_p7), %s199_s12, 4294705152  ;;  %s226_s0 = sand.u32 1, %s5402_s10   ;;  %p5067_p5 = scmp.ne.s32.totalorder %s5422_s15, 0 }
  0x37   : > { %s5066_s17 = sshll.u32 %s226_s0, 4 }
  0x38   : > { %s5607_s21 = scalar_lea.vmem [#allocation8], %s5066_s17  ;;  %238 = sbr.rel (%p5067_p5) target bundleno = 64 (0x40), region = 40 }
  0x3d   : > { %v5442_v0 = vmov 0.0  }
  0x3e   : > { %239 = vst [vmem:[#allocation2] sm:$0xff] %v5442_v0 }
  0x3f   : > { %240 = vst [vmem:[#allocation2 + $0x8] sm:$0xff] %v5442_v0 }
  0x40 PF: > { %v337_v1 = vld [vmem:[%s5598_s30 + $0xf0] sm:$0xff]  ;;  %v335_v3 = vld [vmem:[%s5598_s30 + $0xe0] sm:$0xff]  ;;  %p5068_p7 = scmp.ne.s32.totalorder %s5422_s15, 2 }
  0x41   : > { %v401_v2 = vld [vmem:[%s5598_s30 + $0x2f0] sm:$0xff]  ;;  %2355 = vmatpush.msra.mxu0 %v337_v1  ;;  %v399_v5 = vld [vmem:[%s5598_s30 + $0x2e0] sm:$0xff] }
  0x42   : > { %2395 = vmatpush.msra.mxu2 %v401_v2  ;;  %v369_v4 = vld [vmem:[%s5598_s30 + $0x1f0] sm:$0xff]  ;;  %v367_v8 = vld [vmem:[%s5598_s30 + $0x1e0] sm:$0xff] }
  0x43   : > { %v433_v6 = vld [vmem:[%s5598_s30 + $0x3f0] sm:$0xff]  ;;  %2375 = vmatpush.msra.mxu1 %v369_v4  ;;  %2356 = vmatpush.msra.mxu0 %v335_v3  ;;  %v431_v10 = vld [vmem:[%s5598_s30 + $0x3e0] sm:$0xff] }
  0x44   : > { %2415 = vmatpush.msra.mxu3 %v433_v6  ;;  %v333_v7 = vld [vmem:[%s5598_s30 + $0xd0] sm:$0xff]  ;;  %2396 = vmatpush.msra.mxu2 %v399_v5  ;;  %v331_v12 = vld [vmem:[%s5598_s30 + $0xc0] sm:$0xff] }
  0x45   : > { %v397_v9 = vld [vmem:[%s5598_s30 + $0x2d0] sm:$0xff]  ;;  %2376 = vmatpush.msra.mxu1 %v367_v8  ;;  %v395_v13 = vld [vmem:[%s5598_s30 + $0x2c0] sm:$0xff]  ;;  %2357 = vmatpush.msra.mxu0 %v333_v7 }
  0x46   : > { %v365_v11 = vld [vmem:[%s5598_s30 + $0x1d0] sm:$0xff]  ;;  %2416 = vmatpush.msra.mxu3 %v431_v10  ;;  %2397 = vmatpush.msra.mxu2 %v397_v9  ;;  %v363_v15 = vld [vmem:[%s5598_s30 + $0x1c0] sm:$0xff] }
  0x47   : > { %v429_v14 = vld [vmem:[%s5598_s30 + $0x3d0] sm:$0xff]  ;;  %v427_v16 = vld [vmem:[%s5598_s30 + $0x3c0] sm:$0xff]  ;;  %2377 = vmatpush.msra.mxu1 %v365_v11  ;;  %2358 = vmatpush.msra.mxu0 %v331_v12 }
  0x48   : > { %2417 = vmatpush.msra.mxu3 %v429_v14  ;;  %v329_v17 = vld [vmem:[%s5598_s30 + $0xb0] sm:$0xff]  ;;  %2398 = vmatpush.msra.mxu2 %v395_v13  ;;  %v327_v21 = vld [vmem:[%s5598_s30 + $0xa0] sm:$0xff] }
  0x49   : > { %v393_v18 = vld [vmem:[%s5598_s30 + $0x2b0] sm:$0xff]  ;;  %2378 = vmatpush.msra.mxu1 %v363_v15  ;;  %v391_v22 = vld [vmem:[%s5598_s30 + $0x2a0] sm:$0xff]  ;;  %2359 = vmatpush.msra.mxu0 %v329_v17 }
  0x4a   : > { %v361_v19 = vld [vmem:[%s5598_s30 + $0x1b0] sm:$0xff]  ;;  %2418 = vmatpush.msra.mxu3 %v427_v16  ;;  %2399 = vmatpush.msra.mxu2 %v393_v18  ;;  %v359_v23 = vld [vmem:[%s5598_s30 + $0x1a0] sm:$0xff] }
  0x4b   : > { %v425_v20 = vld [vmem:[%s5598_s30 + $0x3b0] sm:$0xff]  ;;  %v423_v24 = vld [vmem:[%s5598_s30 + $0x3a0] sm:$0xff]  ;;  %2379 = vmatpush.msra.mxu1 %v361_v19  ;;  %2360 = vmatpush.msra.mxu0 %v327_v21 }
  0x4c   : > { %2419 = vmatpush.msra.mxu3 %v425_v20  ;;  %v325_v25 = vld [vmem:[%s5598_s30 + $0x90] sm:$0xff]  ;;  %2400 = vmatpush.msra.mxu2 %v391_v22  ;;  %v323_v29 = vld [vmem:[%s5598_s30 + $0x80] sm:$0xff] }
  0x4d   : > { %v389_v26 = vld [vmem:[%s5598_s30 + $0x290] sm:$0xff]  ;;  %2380 = vmatpush.msra.mxu1 %v359_v23  ;;  %v387_v30 = vld [vmem:[%s5598_s30 + $0x280] sm:$0xff]  ;;  %2361 = vmatpush.msra.mxu0 %v325_v25 }
  0x4e   : > { %v357_v27 = vld [vmem:[%s5598_s30 + $0x190] sm:$0xff]  ;;  %2420 = vmatpush.msra.mxu3 %v423_v24  ;;  %2401 = vmatpush.msra.mxu2 %v389_v26  ;;  %v355_v31 = vld [vmem:[%s5598_s30 + $0x180] sm:$0xff] }
  0x4f   : > { %v421_v28 = vld [vmem:[%s5598_s30 + $0x390] sm:$0xff]  ;;  %v419_v32 = vld [vmem:[%s5598_s30 + $0x380] sm:$0xff]  ;;  %2381 = vmatpush.msra.mxu1 %v357_v27  ;;  %2362 = vmatpush.msra.mxu0 %v323_v29 }
  0x50   : > { %2421 = vmatpush.msra.mxu3 %v421_v28  ;;  %v321_v33 = vld [vmem:[%s5598_s30 + $0x70] sm:$0xff]  ;;  %2402 = vmatpush.msra.mxu2 %v387_v30  ;;  %v319_v37 = vld [vmem:[%s5598_s30 + $0x60] sm:$0xff] }
  0x51   : > { %v385_v34 = vld [vmem:[%s5598_s30 + $0x270] sm:$0xff]  ;;  %2382 = vmatpush.msra.mxu1 %v355_v31  ;;  %v383_v38 = vld [vmem:[%s5598_s30 + $0x260] sm:$0xff]  ;;  %2363 = vmatpush.msra.mxu0 %v321_v33 }
  0x52   : > { %v353_v35 = vld [vmem:[%s5598_s30 + $0x170] sm:$0xff]  ;;  %2422 = vmatpush.msra.mxu3 %v419_v32  ;;  %2403 = vmatpush.msra.mxu2 %v385_v34  ;;  %v351_v39 = vld [vmem:[%s5598_s30 + $0x160] sm:$0xff] }
  0x53   : > { %v417_v36 = vld [vmem:[%s5598_s30 + $0x370] sm:$0xff]  ;;  %v415_v40 = vld [vmem:[%s5598_s30 + $0x360] sm:$0xff]  ;;  %2383 = vmatpush.msra.mxu1 %v353_v35  ;;  %2364 = vmatpush.msra.mxu0 %v319_v37 }
  0x54   : > { %2423 = vmatpush.msra.mxu3 %v417_v36  ;;  %v317_v41 = vld [vmem:[%s5598_s30 + $0x50] sm:$0xff]  ;;  %2404 = vmatpush.msra.mxu2 %v383_v38  ;;  %v315_v45 = vld [vmem:[%s5598_s30 + $0x40] sm:$0xff] }
  0x55   : > { %v381_v42 = vld [vmem:[%s5598_s30 + $0x250] sm:$0xff]  ;;  %2384 = vmatpush.msra.mxu1 %v351_v39  ;;  %v379_v46 = vld [vmem:[%s5598_s30 + $0x240] sm:$0xff]  ;;  %2365 = vmatpush.msra.mxu0 %v317_v41 }
  0x56   : > { %v349_v43 = vld [vmem:[%s5598_s30 + $0x150] sm:$0xff]  ;;  %2424 = vmatpush.msra.mxu3 %v415_v40  ;;  %2405 = vmatpush.msra.mxu2 %v381_v42  ;;  %v347_v47 = vld [vmem:[%s5598_s30 + $0x140] sm:$0xff] }
  0x57   : > { %v413_v44 = vld [vmem:[%s5598_s30 + $0x350] sm:$0xff]  ;;  %v411_v48 = vld [vmem:[%s5598_s30 + $0x340] sm:$0xff]  ;;  %2385 = vmatpush.msra.mxu1 %v349_v43  ;;  %2366 = vmatpush.msra.mxu0 %v315_v45 }
  0x58   : > { %2425 = vmatpush.msra.mxu3 %v413_v44  ;;  %v313_v49 = vld [vmem:[%s5598_s30 + $0x30] sm:$0xff]  ;;  %2406 = vmatpush.msra.mxu2 %v379_v46  ;;  %v311_v53 = vld [vmem:[%s5598_s30 + $0x20] sm:$0xff] }
  0x59   : > { %v377_v50 = vld [vmem:[%s5598_s30 + $0x230] sm:$0xff]  ;;  %2386 = vmatpush.msra.mxu1 %v347_v47  ;;  %v375_v54 = vld [vmem:[%s5598_s30 + $0x220] sm:$0xff]  ;;  %2367 = vmatpush.msra.mxu0 %v313_v49 }
  0x5a   : > { %v345_v51 = vld [vmem:[%s5598_s30 + $0x130] sm:$0xff]  ;;  %2426 = vmatpush.msra.mxu3 %v411_v48  ;;  %2407 = vmatpush.msra.mxu2 %v377_v50  ;;  %v343_v55 = vld [vmem:[%s5598_s30 + $0x120] sm:$0xff] }
  0x5b   : > { %v409_v52 = vld [vmem:[%s5598_s30 + $0x330] sm:$0xff]  ;;  %v407_v56 = vld [vmem:[%s5598_s30 + $0x320] sm:$0xff]  ;;  %2387 = vmatpush.msra.mxu1 %v345_v51  ;;  %2368 = vmatpush.msra.mxu0 %v311_v53 }
  0x5c   : > { %2427 = vmatpush.msra.mxu3 %v409_v52  ;;  %v309_v57 = vld [vmem:[%s5598_s30 + $0x10] sm:$0xff]  ;;  %2408 = vmatpush.msra.mxu2 %v375_v54  ;;  %v307_v61 = vld [vmem:[%s5598_s30] sm:$0xff] }
  0x5d   : > { %v373_v58 = vld [vmem:[%s5598_s30 + $0x210] sm:$0xff]  ;;  %2388 = vmatpush.msra.mxu1 %v343_v55  ;;  %v371_v62 = vld [vmem:[%s5598_s30 + $0x200] sm:$0xff]  ;;  %2369 = vmatpush.msra.mxu0 %v309_v57 }
  0x5e   : > { %v341_v59 = vld [vmem:[%s5598_s30 + $0x110] sm:$0xff]  ;;  %2428 = vmatpush.msra.mxu3 %v407_v56  ;;  %2409 = vmatpush.msra.mxu2 %v373_v58  ;;  %v339_v1 = vld [vmem:[%s5598_s30 + $0x100] sm:$0xff] }
  0x5f   : > { %v405_v60 = vld [vmem:[%s5598_s30 + $0x310] sm:$0xff]  ;;  %2389 = vmatpush.msra.mxu1 %v341_v59  ;;  %v403_v2 = vld [vmem:[%s5598_s30 + $0x300] sm:$0xff]  ;;  %2370 = vmatpush.msra.mxu0 %v307_v61 }
  0x60   : > { %v465_v63 = vld [vmem:[%s5598_s30 + $0x4f0] sm:$0xff]  ;;  %2429 = vmatpush.msra.mxu3 %v405_v60  ;;  %2410 = vmatpush.msra.mxu2 %v371_v62  ;;  %v463_v3 = vld [vmem:[%s5598_s30 + $0x4e0] sm:$0xff] }
  0x61   : > { %v529_v0 = vld [vmem:[%s5598_s30 + $0x6f0] sm:$0xff]  ;;  %2435 = vmatpush.msrb.mxu0 %v465_v63  ;;  %v527_v5 = vld [vmem:[%s5598_s30 + $0x6e0] sm:$0xff]  ;;  %2390 = vmatpush.msra.mxu1 %v339_v1  ;;  %v246_v1 = vld [vmem:[%s5592_s8 + $0x18] sm:$0xff] }
  0x62   : > { %v497_v4 = vld [vmem:[%s5598_s30 + $0x5f0] sm:$0xff]  ;;  %2475 = vmatpush.msrb.mxu2 %v529_v0  ;;  %2430 = vmatpush.msra.mxu3 %v403_v2  ;;  %v495_v8 = vld [vmem:[%s5598_s30 + $0x5e0] sm:$0xff] }
  0x63   : > { %v561_v6 = vld [vmem:[%s5598_s30 + $0x7f0] sm:$0xff]  ;;  %2436 = vmatpush.msrb.mxu0 %v463_v3  ;;  %2455 = vmatpush.msrb.mxu1 %v497_v4  ;;  %v559_v10 = vld [vmem:[%s5598_s30 + $0x7e0] sm:$0xff] }
  0x64   : > { %v461_v7 = vld [vmem:[%s5598_s30 + $0x4d0] sm:$0xff]  ;;  %2476 = vmatpush.msrb.mxu2 %v527_v5  ;;  %2495 = vmatpush.msrb.mxu3 %v561_v6  ;;  %v459_v11 = vld [vmem:[%s5598_s30 + $0x4c0] sm:$0xff]  ;;  %v244_v6 = vld [vmem:[%s5592_s8 + $0x8] sm:$0xff] }
  0x65   : > { %v525_v9 = vld [vmem:[%s5598_s30 + $0x6d0] sm:$0xff]  ;;  %2437 = vmatpush.msrb.mxu0 %v461_v7  ;;  %2456 = vmatpush.msrb.mxu1 %v495_v8  ;;  %v523_v13 = vld [vmem:[%s5598_s30 + $0x6c0] sm:$0xff] }
  0x66   : > { %v493_v12 = vld [vmem:[%s5598_s30 + $0x5d0] sm:$0xff]  ;;  %2477 = vmatpush.msrb.mxu2 %v525_v9  ;;  %2496 = vmatpush.msrb.mxu3 %v559_v10  ;;  %v491_v16 = vld [vmem:[%s5598_s30 + $0x5c0] sm:$0xff] }
  0x67   : > { %v557_v14 = vld [vmem:[%s5598_s30 + $0x7d0] sm:$0xff]  ;;  %2438 = vmatpush.msrb.mxu0 %v459_v11  ;;  %2457 = vmatpush.msrb.mxu1 %v493_v12  ;;  %v555_v18 = vld [vmem:[%s5598_s30 + $0x7c0] sm:$0xff] }
  0x68   : > { %v457_v15 = vld [vmem:[%s5598_s30 + $0x4b0] sm:$0xff]  ;;  %2478 = vmatpush.msrb.mxu2 %v523_v13  ;;  %2497 = vmatpush.msrb.mxu3 %v557_v14  ;;  %v455_v19 = vld [vmem:[%s5598_s30 + $0x4a0] sm:$0xff] }
  0x69   : > { %v521_v17 = vld [vmem:[%s5598_s30 + $0x6b0] sm:$0xff]  ;;  %2439 = vmatpush.msrb.mxu0 %v457_v15  ;;  %2458 = vmatpush.msrb.mxu1 %v491_v16  ;;  %v519_v21 = vld [vmem:[%s5598_s30 + $0x6a0] sm:$0xff] }
  0x6a   : > { %v489_v20 = vld [vmem:[%s5598_s30 + $0x5b0] sm:$0xff]  ;;  %2479 = vmatpush.msrb.mxu2 %v521_v17  ;;  %2498 = vmatpush.msrb.mxu3 %v555_v18  ;;  %v487_v24 = vld [vmem:[%s5598_s30 + $0x5a0] sm:$0xff] }
  0x6b   : > { %v553_v22 = vld [vmem:[%s5598_s30 + $0x7b0] sm:$0xff]  ;;  %2440 = vmatpush.msrb.mxu0 %v455_v19  ;;  %2459 = vmatpush.msrb.mxu1 %v489_v20  ;;  %v551_v26 = vld [vmem:[%s5598_s30 + $0x7a0] sm:$0xff] }
  0x6c   : > { %v453_v23 = vld [vmem:[%s5598_s30 + $0x490] sm:$0xff]  ;;  %2480 = vmatpush.msrb.mxu2 %v519_v21  ;;  %2499 = vmatpush.msrb.mxu3 %v553_v22  ;;  %v451_v27 = vld [vmem:[%s5598_s30 + $0x480] sm:$0xff]  ;;  %v250_v21 = vld [vmem:[%s5592_s8 + $0x38] sm:$0xff] }
  0x6d   : > { %v517_v25 = vld [vmem:[%s5598_s30 + $0x690] sm:$0xff]  ;;  %2441 = vmatpush.msrb.mxu0 %v453_v23  ;;  %2460 = vmatpush.msrb.mxu1 %v487_v24  ;;  %v515_v29 = vld [vmem:[%s5598_s30 + $0x680] sm:$0xff] }
  0x6e   : > { %v485_v28 = vld [vmem:[%s5598_s30 + $0x590] sm:$0xff]  ;;  %2481 = vmatpush.msrb.mxu2 %v517_v25  ;;  %2500 = vmatpush.msrb.mxu3 %v551_v26  ;;  %v483_v32 = vld [vmem:[%s5598_s30 + $0x580] sm:$0xff]  ;;  %v248_v26 = vld [vmem:[%s5592_s8 + $0x28] sm:$0xff] }
  0x6f   : > { %v549_v30 = vld [vmem:[%s5598_s30 + $0x790] sm:$0xff]  ;;  %2442 = vmatpush.msrb.mxu0 %v451_v27  ;;  %2461 = vmatpush.msrb.mxu1 %v485_v28  ;;  %v547_v34 = vld [vmem:[%s5598_s30 + $0x780] sm:$0xff] }
  0x70   : > { %v449_v31 = vld [vmem:[%s5598_s30 + $0x470] sm:$0xff]  ;;  %2482 = vmatpush.msrb.mxu2 %v515_v29  ;;  %2501 = vmatpush.msrb.mxu3 %v549_v30  ;;  %v447_v35 = vld [vmem:[%s5598_s30 + $0x460] sm:$0xff] }
  0x71   : > { %v513_v33 = vld [vmem:[%s5598_s30 + $0x670] sm:$0xff]  ;;  %2443 = vmatpush.msrb.mxu0 %v449_v31  ;;  %2462 = vmatpush.msrb.mxu1 %v483_v32  ;;  %v511_v37 = vld [vmem:[%s5598_s30 + $0x660] sm:$0xff] }
  0x72   : > { %v481_v36 = vld [vmem:[%s5598_s30 + $0x570] sm:$0xff]  ;;  %2483 = vmatpush.msrb.mxu2 %v513_v33  ;;  %2502 = vmatpush.msrb.mxu3 %v547_v34  ;;  %v479_v40 = vld [vmem:[%s5598_s30 + $0x560] sm:$0xff] }
  0x73   : > { %v545_v38 = vld [vmem:[%s5598_s30 + $0x770] sm:$0xff]  ;;  %2444 = vmatpush.msrb.mxu0 %v447_v35  ;;  %2463 = vmatpush.msrb.mxu1 %v481_v36  ;;  %v543_v42 = vld [vmem:[%s5598_s30 + $0x760] sm:$0xff] }
  0x74   : > { %v445_v39 = vld [vmem:[%s5598_s30 + $0x450] sm:$0xff]  ;;  %2484 = vmatpush.msrb.mxu2 %v511_v37  ;;  %2503 = vmatpush.msrb.mxu3 %v545_v38  ;;  %v443_v43 = vld [vmem:[%s5598_s30 + $0x440] sm:$0xff] }
  0x75   : > { %v509_v41 = vld [vmem:[%s5598_s30 + $0x650] sm:$0xff]  ;;  %2445 = vmatpush.msrb.mxu0 %v445_v39  ;;  %2464 = vmatpush.msrb.mxu1 %v479_v40  ;;  %v507_v45 = vld [vmem:[%s5598_s30 + $0x640] sm:$0xff] }
  0x76   : > { %v477_v44 = vld [vmem:[%s5598_s30 + $0x550] sm:$0xff]  ;;  %2485 = vmatpush.msrb.mxu2 %v509_v41  ;;  %2504 = vmatpush.msrb.mxu3 %v543_v42  ;;  %v475_v48 = vld [vmem:[%s5598_s30 + $0x540] sm:$0xff] }
  0x77   : > { %v541_v46 = vld [vmem:[%s5598_s30 + $0x750] sm:$0xff]  ;;  %2446 = vmatpush.msrb.mxu0 %v443_v43  ;;  %2465 = vmatpush.msrb.mxu1 %v477_v44  ;;  %v539_v50 = vld [vmem:[%s5598_s30 + $0x740] sm:$0xff] }
  0x78   : > { %v441_v47 = vld [vmem:[%s5598_s30 + $0x430] sm:$0xff]  ;;  %2486 = vmatpush.msrb.mxu2 %v507_v45  ;;  %2505 = vmatpush.msrb.mxu3 %v541_v46  ;;  %v439_v51 = vld [vmem:[%s5598_s30 + $0x420] sm:$0xff] }
  0x79   : > { %v505_v49 = vld [vmem:[%s5598_s30 + $0x630] sm:$0xff]  ;;  %2447 = vmatpush.msrb.mxu0 %v441_v47  ;;  %2466 = vmatpush.msrb.mxu1 %v475_v48  ;;  %v503_v53 = vld [vmem:[%s5598_s30 + $0x620] sm:$0xff] }
  0x7a   : > { %v473_v52 = vld [vmem:[%s5598_s30 + $0x530] sm:$0xff]  ;;  %2487 = vmatpush.msrb.mxu2 %v505_v49  ;;  %2506 = vmatpush.msrb.mxu3 %v539_v50  ;;  %v471_v56 = vld [vmem:[%s5598_s30 + $0x520] sm:$0xff] }
  0x7b   : > { %v537_v54 = vld [vmem:[%s5598_s30 + $0x730] sm:$0xff]  ;;  %2448 = vmatpush.msrb.mxu0 %v439_v51  ;;  %2467 = vmatpush.msrb.mxu1 %v473_v52  ;;  %v535_v58 = vld [vmem:[%s5598_s30 + $0x720] sm:$0xff] }
  0x7c   : > { %v437_v55 = vld [vmem:[%s5598_s30 + $0x410] sm:$0xff]  ;;  %2488 = vmatpush.msrb.mxu2 %v503_v53  ;;  %2507 = vmatpush.msrb.mxu3 %v537_v54  ;;  %v435_v60 = vld [vmem:[%s5598_s30 + $0x400] sm:$0xff] }
  0x7d   : > { %v501_v57 = vld [vmem:[%s5598_s30 + $0x610] sm:$0xff]  ;;  %2449 = vmatpush.msrb.mxu0 %v437_v55  ;;  %2468 = vmatpush.msrb.mxu1 %v471_v56  ;;  %v499_v62 = vld [vmem:[%s5598_s30 + $0x600] sm:$0xff] }
  0x7e   : > { %v245_v59 = vld [vmem:[%s5592_s8 + $0x10] sm:$0xff]  ;;  %2489 = vmatpush.msrb.mxu2 %v501_v57  ;;  %2508 = vmatpush.msrb.mxu3 %v535_v58  ;;  %v243_v0 = vld [vmem:[%s5592_s8] sm:$0xff] }
  0x7f   : > { %v469_v61 = vld [vmem:[%s5598_s30 + $0x510] sm:$0xff]  ;;  %2411 = vmatmul.f32.vlgmr.msra.gmra.mxu2 %v245_v59  ;;  %2450 = vmatpush.msrb.mxu0 %v435_v60  ;;  %v467_v4 = vld [vmem:[%s5598_s30 + $0x500] sm:$0xff] }
  0x80   : > { %v533_v63 = vld [vmem:[%s5598_s30 + $0x710] sm:$0xff]  ;;  %2469 = vmatpush.msrb.mxu1 %v469_v61  ;;  %2490 = vmatpush.msrb.mxu2 %v499_v62  ;;  %v531_v5 = vld [vmem:[%s5598_s30 + $0x700] sm:$0xff] }
  0x81   : > { %v593_v2 = vld [vmem:[%s5598_s30 + $0x8f0] sm:$0xff]  ;;  %2509 = vmatpush.msrb.mxu3 %v533_v63  ;;  %2371 = vmatmul.f32.vlgmr.msra.gmra.mxu0 %v243_v0  ;;  %v591_v7 = vld [vmem:[%s5598_s30 + $0x8e0] sm:$0xff] }
  0x82   : > { %v657_v3 = vld [vmem:[%s5598_s30 + $0xaf0] sm:$0xff]  ;;  %2431 = vmatmul.f32.vlgmr.msra.gmra.mxu3 %v246_v1  ;;  %2515 = vmatpush.msra.mxu0 %v593_v2  ;;  %v655_v9 = vld [vmem:[%s5598_s30 + $0xae0] sm:$0xff] }
  0x83   : > { %v625_v8 = vld [vmem:[%s5598_s30 + $0x9f0] sm:$0xff]  ;;  %2555 = vmatpush.msra.mxu2 %v657_v3  ;;  %2470 = vmatpush.msrb.mxu1 %v467_v4  ;;  %v623_v12 = vld [vmem:[%s5598_s30 + $0x9e0] sm:$0xff] }
  0x84   : > { %v689_v10 = vld [vmem:[%s5598_s30 + $0xbf0] sm:$0xff]  ;;  %2510 = vmatpush.msrb.mxu3 %v531_v5  ;;  %2391 = vmatmul.f32.vlgmr.msra.gmra.mxu1 %v244_v6  ;;  %v687_v14 = vld [vmem:[%s5598_s30 + $0xbe0] sm:$0xff] }
  0x85   : > { %v589_v11 = vld [vmem:[%s5598_s30 + $0x8d0] sm:$0xff]  ;;  %2516 = vmatpush.msra.mxu0 %v591_v7  ;;  %2535 = vmatpush.msra.mxu1 %v625_v8  ;;  %v587_v16 = vld [vmem:[%s5598_s30 + $0x8c0] sm:$0xff] }
  0x86   : > { %v653_v13 = vld [vmem:[%s5598_s30 + $0xad0] sm:$0xff]  ;;  %2556 = vmatpush.msra.mxu2 %v655_v9  ;;  %2575 = vmatpush.msra.mxu3 %v689_v10  ;;  %v651_v18 = vld [vmem:[%s5598_s30 + $0xac0] sm:$0xff] }
  0x87   : > { %v249_v15 = vld [vmem:[%s5592_s8 + $0x30] sm:$0xff]  ;;  %2517 = vmatpush.msra.mxu0 %v589_v11  ;;  %2536 = vmatpush.msra.mxu1 %v623_v12  ;;  %v247_v20 = vld [vmem:[%s5592_s8 + $0x20] sm:$0xff] }
  0x88   : > { %v621_v17 = vld [vmem:[%s5598_s30 + $0x9d0] sm:$0xff]  ;;  %2557 = vmatpush.msra.mxu2 %v653_v13  ;;  %2576 = vmatpush.msra.mxu3 %v687_v14  ;;  %v619_v23 = vld [vmem:[%s5598_s30 + $0x9c0] sm:$0xff]  ;;  %v252_v13 = vld [vmem:[%s5592_s8 + $0x48] sm:$0xff] }
  0x89   : > { %v685_v19 = vld [vmem:[%s5598_s30 + $0xbd0] sm:$0xff]  ;;  %2491 = vmatmul.f32.vlgmr.msrb.gmra.mxu2 %v249_v15  ;;  %2518 = vmatpush.msra.mxu0 %v587_v16  ;;  %v683_v25 = vld [vmem:[%s5598_s30 + $0xbc0] sm:$0xff]  ;;  %v254_v14 = vld [vmem:[%s5592_s8 + $0x58] sm:$0xff] }
  0x8a   : > { %v585_v22 = vld [vmem:[%s5598_s30 + $0x8b0] sm:$0xff]  ;;  %2537 = vmatpush.msra.mxu1 %v621_v17  ;;  %2558 = vmatpush.msra.mxu2 %v651_v18  ;;  %v583_v27 = vld [vmem:[%s5598_s30 + $0x8a0] sm:$0xff] }
  0x8b   : > { %v649_v24 = vld [vmem:[%s5598_s30 + $0xab0] sm:$0xff]  ;;  %2577 = vmatpush.msra.mxu3 %v685_v19  ;;  %2451 = vmatmul.f32.vlgmr.msrb.gmra.mxu0 %v247_v20  ;;  %v647_v29 = vld [vmem:[%s5598_s30 + $0xaa0] sm:$0xff] }
  0x8c   : > { %2511 = vmatmul.f32.vlgmr.msrb.gmra.mxu3 %v250_v21  ;;  %2519 = vmatpush.msra.mxu0 %v585_v22  ;;  %v617_v28 = vld [vmem:[%s5598_s30 + $0x9b0] sm:$0xff]  ;;  %v615_v32 = vld [vmem:[%s5598_s30 + $0x9a0] sm:$0xff] }
  0x8d   : > { %2538 = vmatpush.msra.mxu1 %v619_v23  ;;  %2559 = vmatpush.msra.mxu2 %v649_v24  ;;  %v681_v30 = vld [vmem:[%s5598_s30 + $0xbb0] sm:$0xff]  ;;  %v679_v34 = vld [vmem:[%s5598_s30 + $0xba0] sm:$0xff] }
  0x8e   : > { %2578 = vmatpush.msra.mxu3 %v683_v25  ;;  %2471 = vmatmul.f32.vlgmr.msrb.gmra.mxu1 %v248_v26  ;;  %v581_v31 = vld [vmem:[%s5598_s30 + $0x890] sm:$0xff]  ;;  %v579_v35 = vld [vmem:[%s5598_s30 + $0x880] sm:$0xff] }
  0x8f   : > { %2520 = vmatpush.msra.mxu0 %v583_v27  ;;  %2539 = vmatpush.msra.mxu1 %v617_v28  ;;  %v645_v33 = vld [vmem:[%s5598_s30 + $0xa90] sm:$0xff]  ;;  %v643_v37 = vld [vmem:[%s5598_s30 + $0xa80] sm:$0xff] }
  0x90   : > { %2560 = vmatpush.msra.mxu2 %v647_v29  ;;  %2579 = vmatpush.msra.mxu3 %v681_v30  ;;  %v613_v36 = vld [vmem:[%s5598_s30 + $0x990] sm:$0xff]  ;;  %v611_v40 = vld [vmem:[%s5598_s30 + $0x980] sm:$0xff] }
  0x91   : > { %2521 = vmatpush.msra.mxu0 %v581_v31  ;;  %2540 = vmatpush.msra.mxu1 %v615_v32  ;;  %v677_v38 = vld [vmem:[%s5598_s30 + $0xb90] sm:$0xff]  ;;  %v675_v42 = vld [vmem:[%s5598_s30 + $0xb80] sm:$0xff] }
  0x92   : > { %2561 = vmatpush.msra.mxu2 %v645_v33  ;;  %2580 = vmatpush.msra.mxu3 %v679_v34  ;;  %v577_v39 = vld [vmem:[%s5598_s30 + $0x870] sm:$0xff]  ;;  %v575_v43 = vld [vmem:[%s5598_s30 + $0x860] sm:$0xff] }
  0x93   : > { %2522 = vmatpush.msra.mxu0 %v579_v35  ;;  %2541 = vmatpush.msra.mxu1 %v613_v36  ;;  %v641_v41 = vld [vmem:[%s5598_s30 + $0xa70] sm:$0xff]  ;;  %v639_v45 = vld [vmem:[%s5598_s30 + $0xa60] sm:$0xff] }
  0x94   : > { %2562 = vmatpush.msra.mxu2 %v643_v37  ;;  %2581 = vmatpush.msra.mxu3 %v677_v38  ;;  %v609_v44 = vld [vmem:[%s5598_s30 + $0x970] sm:$0xff]  ;;  %v607_v48 = vld [vmem:[%s5598_s30 + $0x960] sm:$0xff] }
  0x95   : > { %2523 = vmatpush.msra.mxu0 %v577_v39  ;;  %2542 = vmatpush.msra.mxu1 %v611_v40  ;;  %v673_v46 = vld [vmem:[%s5598_s30 + $0xb70] sm:$0xff]  ;;  %v671_v50 = vld [vmem:[%s5598_s30 + $0xb60] sm:$0xff] }
  0x96   : > { %2563 = vmatpush.msra.mxu2 %v641_v41  ;;  %2582 = vmatpush.msra.mxu3 %v675_v42  ;;  %v573_v47 = vld [vmem:[%s5598_s30 + $0x850] sm:$0xff]  ;;  %v571_v51 = vld [vmem:[%s5598_s30 + $0x840] sm:$0xff] }
  0x97   : > { %2524 = vmatpush.msra.mxu0 %v575_v43  ;;  %2543 = vmatpush.msra.mxu1 %v609_v44  ;;  %v637_v49 = vld [vmem:[%s5598_s30 + $0xa50] sm:$0xff]  ;;  %v635_v53 = vld [vmem:[%s5598_s30 + $0xa40] sm:$0xff] }
  0x98   : > { %2564 = vmatpush.msra.mxu2 %v639_v45  ;;  %2583 = vmatpush.msra.mxu3 %v673_v46  ;;  %v605_v52 = vld [vmem:[%s5598_s30 + $0x950] sm:$0xff]  ;;  %v603_v56 = vld [vmem:[%s5598_s30 + $0x940] sm:$0xff] }
  0x99   : > { %2525 = vmatpush.msra.mxu0 %v573_v47  ;;  %2544 = vmatpush.msra.mxu1 %v607_v48  ;;  %v669_v54 = vld [vmem:[%s5598_s30 + $0xb50] sm:$0xff]  ;;  %v667_v58 = vld [vmem:[%s5598_s30 + $0xb40] sm:$0xff] }
  0x9a   : > { %2565 = vmatpush.msra.mxu2 %v637_v49  ;;  %2584 = vmatpush.msra.mxu3 %v671_v50  ;;  %v569_v55 = vld [vmem:[%s5598_s30 + $0x830] sm:$0xff]  ;;  %v567_v59 = vld [vmem:[%s5598_s30 + $0x820] sm:$0xff] }
  0x9b   : > { %2526 = vmatpush.msra.mxu0 %v571_v51  ;;  %2545 = vmatpush.msra.mxu1 %v605_v52  ;;  %v633_v57 = vld [vmem:[%s5598_s30 + $0xa30] sm:$0xff]  ;;  %v631_v61 = vld [vmem:[%s5598_s30 + $0xa20] sm:$0xff] }
  0x9c   : > { %2566 = vmatpush.msra.mxu2 %v635_v53  ;;  %2585 = vmatpush.msra.mxu3 %v669_v54  ;;  %v601_v60 = vld [vmem:[%s5598_s30 + $0x930] sm:$0xff]  ;;  %v599_v0 = vld [vmem:[%s5598_s30 + $0x920] sm:$0xff] }
  0x9d   : > { %2527 = vmatpush.msra.mxu0 %v569_v55  ;;  %2546 = vmatpush.msra.mxu1 %v603_v56  ;;  %v665_v62 = vld [vmem:[%s5598_s30 + $0xb30] sm:$0xff]  ;;  %v663_v2 = vld [vmem:[%s5598_s30 + $0xb20] sm:$0xff] }
  0x9e   : > { %2567 = vmatpush.msra.mxu2 %v633_v57  ;;  %2586 = vmatpush.msra.mxu3 %v667_v58  ;;  %v565_v63 = vld [vmem:[%s5598_s30 + $0x810] sm:$0xff]  ;;  %v563_v3 = vld [vmem:[%s5598_s30 + $0x800] sm:$0xff] }
  0x9f   : > { %2528 = vmatpush.msra.mxu0 %v567_v59  ;;  %2547 = vmatpush.msra.mxu1 %v601_v60  ;;  %v629_v1 = vld [vmem:[%s5598_s30 + $0xa10] sm:$0xff]  ;;  %v627_v5 = vld [vmem:[%s5598_s30 + $0xa00] sm:$0xff] }
  0xa0   : > { %2568 = vmatpush.msra.mxu2 %v631_v61  ;;  %2587 = vmatpush.msra.mxu3 %v665_v62  ;;  %v597_v4 = vld [vmem:[%s5598_s30 + $0x910] sm:$0xff]  ;;  %v251_v7 = vld [vmem:[%s5592_s8 + $0x40] sm:$0xff] }
  0xa1   : > { %2529 = vmatpush.msra.mxu0 %v565_v63  ;;  %2548 = vmatpush.msra.mxu1 %v599_v0  ;;  %v661_v6 = vld [vmem:[%s5598_s30 + $0xb10] sm:$0xff]  ;;  %v595_v11 = vld [vmem:[%s5598_s30 + $0x900] sm:$0xff] }
  0xa2   : > { %2569 = vmatpush.msra.mxu2 %v629_v1  ;;  %2588 = vmatpush.msra.mxu3 %v663_v2  ;;  %v253_v8 = vld [vmem:[%s5592_s8 + $0x50] sm:$0xff]  ;;  %v659_v12 = vld [vmem:[%s5598_s30 + $0xb00] sm:$0xff] }
  0xa3   : > { %2530 = vmatpush.msra.mxu0 %v563_v3  ;;  %2549 = vmatpush.msra.mxu1 %v597_v4  ;;  %v721_v9 = vld [vmem:[%s5598_s30 + $0xcf0] sm:$0xff]  ;;  %v719_v15 = vld [vmem:[%s5598_s30 + $0xce0] sm:$0xff] }
  0xa4   : > { %v785_v10 = vld [vmem:[%s5598_s30 + $0xef0] sm:$0xff]  ;;  %2570 = vmatpush.msra.mxu2 %v627_v5  ;;  %2589 = vmatpush.msra.mxu3 %v661_v6  ;;  %v783_v17 = vld [vmem:[%s5598_s30 + $0xee0] sm:$0xff] }
  0xa5   : > { %2531 = vmatmul.f32.vlgmr.msra.gmra.mxu0 %v251_v7  ;;  %2571 = vmatmul.f32.vlgmr.msra.gmra.mxu2 %v253_v8  ;;  %v753_v16 = vld [vmem:[%s5598_s30 + $0xdf0] sm:$0xff]  ;;  %v751_v20 = vld [vmem:[%s5598_s30 + $0xde0] sm:$0xff] }
  0xa6   : > { %2595 = vmatpush.msrb.mxu0 %v721_v9  ;;  %2635 = vmatpush.msrb.mxu2 %v785_v10  ;;  %v817_v18 = vld [vmem:[%s5598_s30 + $0xff0] sm:$0xff]  ;;  %v815_v22 = vld [vmem:[%s5598_s30 + $0xfe0] sm:$0xff] }
  0xa7   : > { %2550 = vmatpush.msra.mxu1 %v595_v11  ;;  %2590 = vmatpush.msra.mxu3 %v659_v12  ;;  %v717_v19 = vld [vmem:[%s5598_s30 + $0xcd0] sm:$0xff]  ;;  %v715_v23 = vld [vmem:[%s5598_s30 + $0xcc0] sm:$0xff] }
  0xa8   : > { %2551 = vmatmul.f32.vlgmr.msra.gmra.mxu1 %v252_v13  ;;  %2591 = vmatmul.f32.vlgmr.msra.gmra.mxu3 %v254_v14  ;;  %v781_v21 = vld [vmem:[%s5598_s30 + $0xed0] sm:$0xff]  ;;  %v779_v25 = vld [vmem:[%s5598_s30 + $0xec0] sm:$0xff] }
  0xa9   : > { %2596 = vmatpush.msrb.mxu0 %v719_v15  ;;  %2615 = vmatpush.msrb.mxu1 %v753_v16  ;;  %v749_v24 = vld [vmem:[%s5598_s30 + $0xdd0] sm:$0xff]  ;;  %v747_v28 = vld [vmem:[%s5598_s30 + $0xdc0] sm:$0xff] }
  0xaa   : > { %2636 = vmatpush.msrb.mxu2 %v783_v17  ;;  %2655 = vmatpush.msrb.mxu3 %v817_v18  ;;  %v813_v26 = vld [vmem:[%s5598_s30 + $0xfd0] sm:$0xff]  ;;  %v811_v30 = vld [vmem:[%s5598_s30 + $0xfc0] sm:$0xff]  ;;  %v256_v17 = vld [vmem:[%s5592_s8 + $0x68] sm:$0xff] }
  0xab   : > { %2597 = vmatpush.msrb.mxu0 %v717_v19  ;;  %2616 = vmatpush.msrb.mxu1 %v751_v20  ;;  %v713_v27 = vld [vmem:[%s5598_s30 + $0xcb0] sm:$0xff]  ;;  %v711_v31 = vld [vmem:[%s5598_s30 + $0xca0] sm:$0xff]  ;;  %v258_v18 = vld [vmem:[%s5592_s8 + $0x78] sm:$0xff] }
  0xac   : > { %2637 = vmatpush.msrb.mxu2 %v781_v21  ;;  %2656 = vmatpush.msrb.mxu3 %v815_v22  ;;  %v777_v29 = vld [vmem:[%s5598_s30 + $0xeb0] sm:$0xff]  ;;  %v775_v33 = vld [vmem:[%s5598_s30 + $0xea0] sm:$0xff] }
  0xad   : > { %2598 = vmatpush.msrb.mxu0 %v715_v23  ;;  %2617 = vmatpush.msrb.mxu1 %v749_v24  ;;  %v745_v32 = vld [vmem:[%s5598_s30 + $0xdb0] sm:$0xff]  ;;  %v743_v36 = vld [vmem:[%s5598_s30 + $0xda0] sm:$0xff] }
  0xae   : > { %2638 = vmatpush.msrb.mxu2 %v779_v25  ;;  %2657 = vmatpush.msrb.mxu3 %v813_v26  ;;  %v809_v34 = vld [vmem:[%s5598_s30 + $0xfb0] sm:$0xff]  ;;  %v807_v38 = vld [vmem:[%s5598_s30 + $0xfa0] sm:$0xff] }
  0xaf   : > { %2599 = vmatpush.msrb.mxu0 %v713_v27  ;;  %2618 = vmatpush.msrb.mxu1 %v747_v28  ;;  %v709_v35 = vld [vmem:[%s5598_s30 + $0xc90] sm:$0xff]  ;;  %v707_v39 = vld [vmem:[%s5598_s30 + $0xc80] sm:$0xff] }
  0xb0   : > { %2639 = vmatpush.msrb.mxu2 %v777_v29  ;;  %2658 = vmatpush.msrb.mxu3 %v811_v30  ;;  %v773_v37 = vld [vmem:[%s5598_s30 + $0xe90] sm:$0xff]  ;;  %v771_v41 = vld [vmem:[%s5598_s30 + $0xe80] sm:$0xff] }
  0xb1   : > { %2600 = vmatpush.msrb.mxu0 %v711_v31  ;;  %2619 = vmatpush.msrb.mxu1 %v745_v32  ;;  %v741_v40 = vld [vmem:[%s5598_s30 + $0xd90] sm:$0xff]  ;;  %v739_v44 = vld [vmem:[%s5598_s30 + $0xd80] sm:$0xff] }
  0xb2   : > { %2640 = vmatpush.msrb.mxu2 %v775_v33  ;;  %2659 = vmatpush.msrb.mxu3 %v809_v34  ;;  %v805_v42 = vld [vmem:[%s5598_s30 + $0xf90] sm:$0xff]  ;;  %v803_v46 = vld [vmem:[%s5598_s30 + $0xf80] sm:$0xff] }
  0xb3   : > { %2601 = vmatpush.msrb.mxu0 %v709_v35  ;;  %2620 = vmatpush.msrb.mxu1 %v743_v36  ;;  %v705_v43 = vld [vmem:[%s5598_s30 + $0xc70] sm:$0xff]  ;;  %v703_v47 = vld [vmem:[%s5598_s30 + $0xc60] sm:$0xff] }
  0xb4   : > { %2641 = vmatpush.msrb.mxu2 %v773_v37  ;;  %2660 = vmatpush.msrb.mxu3 %v807_v38  ;;  %v769_v45 = vld [vmem:[%s5598_s30 + $0xe70] sm:$0xff]  ;;  %v767_v49 = vld [vmem:[%s5598_s30 + $0xe60] sm:$0xff] }
  0xb5   : > { %2602 = vmatpush.msrb.mxu0 %v707_v39  ;;  %2621 = vmatpush.msrb.mxu1 %v741_v40  ;;  %v737_v48 = vld [vmem:[%s5598_s30 + $0xd70] sm:$0xff]  ;;  %v735_v52 = vld [vmem:[%s5598_s30 + $0xd60] sm:$0xff] }
  0xb6   : > { %2642 = vmatpush.msrb.mxu2 %v771_v41  ;;  %2661 = vmatpush.msrb.mxu3 %v805_v42  ;;  %v801_v50 = vld [vmem:[%s5598_s30 + $0xf70] sm:$0xff]  ;;  %v799_v54 = vld [vmem:[%s5598_s30 + $0xf60] sm:$0xff] }
  0xb7   : > { %2603 = vmatpush.msrb.mxu0 %v705_v43  ;;  %2622 = vmatpush.msrb.mxu1 %v739_v44  ;;  %v701_v51 = vld [vmem:[%s5598_s30 + $0xc50] sm:$0xff]  ;;  %v699_v55 = vld [vmem:[%s5598_s30 + $0xc40] sm:$0xff] }
  0xb8   : > { %2643 = vmatpush.msrb.mxu2 %v769_v45  ;;  %2662 = vmatpush.msrb.mxu3 %v803_v46  ;;  %v765_v53 = vld [vmem:[%s5598_s30 + $0xe50] sm:$0xff]  ;;  %v763_v57 = vld [vmem:[%s5598_s30 + $0xe40] sm:$0xff] }
  0xb9   : > { %2604 = vmatpush.msrb.mxu0 %v703_v47  ;;  %2623 = vmatpush.msrb.mxu1 %v737_v48  ;;  %v733_v56 = vld [vmem:[%s5598_s30 + $0xd50] sm:$0xff]  ;;  %v731_v60 = vld [vmem:[%s5598_s30 + $0xd40] sm:$0xff] }
  0xba   : > { %2644 = vmatpush.msrb.mxu2 %v767_v49  ;;  %2663 = vmatpush.msrb.mxu3 %v801_v50  ;;  %v797_v58 = vld [vmem:[%s5598_s30 + $0xf50] sm:$0xff]  ;;  %v795_v62 = vld [vmem:[%s5598_s30 + $0xf40] sm:$0xff] }
  0xbb   : > { %2605 = vmatpush.msrb.mxu0 %v701_v51  ;;  %2624 = vmatpush.msrb.mxu1 %v735_v52  ;;  %v697_v59 = vld [vmem:[%s5598_s30 + $0xc30] sm:$0xff]  ;;  %v695_v63 = vld [vmem:[%s5598_s30 + $0xc20] sm:$0xff] }
  0xbc   : > { %2645 = vmatpush.msrb.mxu2 %v765_v53  ;;  %2664 = vmatpush.msrb.mxu3 %v799_v54  ;;  %v761_v61 = vld [vmem:[%s5598_s30 + $0xe30] sm:$0xff]  ;;  %v759_v1 = vld [vmem:[%s5598_s30 + $0xe20] sm:$0xff] }
  0xbd   : > { %2606 = vmatpush.msrb.mxu0 %v699_v55  ;;  %2625 = vmatpush.msrb.mxu1 %v733_v56  ;;  %v729_v0 = vld [vmem:[%s5598_s30 + $0xd30] sm:$0xff]  ;;  %v727_v4 = vld [vmem:[%s5598_s30 + $0xd20] sm:$0xff] }
  0xbe   : > { %2646 = vmatpush.msrb.mxu2 %v763_v57  ;;  %2665 = vmatpush.msrb.mxu3 %v797_v58  ;;  %v793_v2 = vld [vmem:[%s5598_s30 + $0xf30] sm:$0xff]  ;;  %v791_v6 = vld [vmem:[%s5598_s30 + $0xf20] sm:$0xff] }
  0xbf   : > { %2607 = vmatpush.msrb.mxu0 %v697_v59  ;;  %2626 = vmatpush.msrb.mxu1 %v731_v60  ;;  %v693_v3 = vld [vmem:[%s5598_s30 + $0xc10] sm:$0xff]  ;;  %v691_v7 = vld [vmem:[%s5598_s30 + $0xc00] sm:$0xff] }
  0xc0   : > { %2647 = vmatpush.msrb.mxu2 %v761_v61  ;;  %2666 = vmatpush.msrb.mxu3 %v795_v62  ;;  %v757_v5 = vld [vmem:[%s5598_s30 + $0xe10] sm:$0xff]  ;;  %v755_v9 = vld [vmem:[%s5598_s30 + $0xe00] sm:$0xff] }
  0xc1   : > { %2608 = vmatpush.msrb.mxu0 %v695_v63  ;;  %2627 = vmatpush.msrb.mxu1 %v729_v0  ;;  %v725_v8 = vld [vmem:[%s5598_s30 + $0xd10] sm:$0xff]  ;;  %v255_v11 = vld [vmem:[%s5592_s8 + $0x60] sm:$0xff] }
  0xc2   : > { %2648 = vmatpush.msrb.mxu2 %v759_v1  ;;  %2667 = vmatpush.msrb.mxu3 %v793_v2  ;;  %v789_v10 = vld [vmem:[%s5598_s30 + $0xf10] sm:$0xff]  ;;  %v723_v15 = vld [vmem:[%s5598_s30 + $0xd00] sm:$0xff] }
  0xc3   : > { %2609 = vmatpush.msrb.mxu0 %v693_v3  ;;  %2628 = vmatpush.msrb.mxu1 %v727_v4  ;;  %v257_v12 = vld [vmem:[%s5592_s8 + $0x70] sm:$0xff]  ;;  %v787_v16 = vld [vmem:[%s5598_s30 + $0xf00] sm:$0xff] }
  0xc4   : > { %2649 = vmatpush.msrb.mxu2 %v757_v5  ;;  %2668 = vmatpush.msrb.mxu3 %v791_v6  ;;  %v849_v13 = vld [vmem:[%s5598_s30 + $0x10f0] sm:$0xff]  ;;  %v847_v19 = vld [vmem:[%s5598_s30 + $0x10e0] sm:$0xff] }
  0xc5   : > { %2610 = vmatpush.msrb.mxu0 %v691_v7  ;;  %2629 = vmatpush.msrb.mxu1 %v725_v8  ;;  %v913_v14 = vld [vmem:[%s5598_s30 + $0x12f0] sm:$0xff]  ;;  %v911_v21 = vld [vmem:[%s5598_s30 + $0x12e0] sm:$0xff] }
  0xc6   : > { %2650 = vmatpush.msrb.mxu2 %v755_v9  ;;  %2669 = vmatpush.msrb.mxu3 %v789_v10  ;;  %v881_v20 = vld [vmem:[%s5598_s30 + $0x11f0] sm:$0xff]  ;;  %v879_v24 = vld [vmem:[%s5598_s30 + $0x11e0] sm:$0xff] }
  0xc7   : > { %2611 = vmatmul.f32.vlgmr.msrb.gmra.mxu0 %v255_v11  ;;  %2651 = vmatmul.f32.vlgmr.msrb.gmra.mxu2 %v257_v12  ;;  %v945_v22 = vld [vmem:[%s5598_s30 + $0x13f0] sm:$0xff]  ;;  %v943_v26 = vld [vmem:[%s5598_s30 + $0x13e0] sm:$0xff] }
  0xc8   : > { %2675 = vmatpush.msra.mxu0 %v849_v13  ;;  %2715 = vmatpush.msra.mxu2 %v913_v14  ;;  %v845_v23 = vld [vmem:[%s5598_s30 + $0x10d0] sm:$0xff]  ;;  %v843_v27 = vld [vmem:[%s5598_s30 + $0x10c0] sm:$0xff] }
  0xc9   : > { %2630 = vmatpush.msrb.mxu1 %v723_v15  ;;  %2670 = vmatpush.msrb.mxu3 %v787_v16  ;;  %v909_v25 = vld [vmem:[%s5598_s30 + $0x12d0] sm:$0xff]  ;;  %v907_v29 = vld [vmem:[%s5598_s30 + $0x12c0] sm:$0xff] }
  0xca   : > { %2631 = vmatmul.f32.vlgmr.msrb.gmra.mxu1 %v256_v17  ;;  %2671 = vmatmul.f32.vlgmr.msrb.gmra.mxu3 %v258_v18  ;;  %v877_v28 = vld [vmem:[%s5598_s30 + $0x11d0] sm:$0xff]  ;;  %v875_v32 = vld [vmem:[%s5598_s30 + $0x11c0] sm:$0xff] }
  0xcb   : > { %2676 = vmatpush.msra.mxu0 %v847_v19  ;;  %2695 = vmatpush.msra.mxu1 %v881_v20  ;;  %v941_v30 = vld [vmem:[%s5598_s30 + $0x13d0] sm:$0xff]  ;;  %v939_v34 = vld [vmem:[%s5598_s30 + $0x13c0] sm:$0xff] }
  0xcc   : > { %2716 = vmatpush.msra.mxu2 %v911_v21  ;;  %2735 = vmatpush.msra.mxu3 %v945_v22  ;;  %v841_v31 = vld [vmem:[%s5598_s30 + $0x10b0] sm:$0xff]  ;;  %v839_v35 = vld [vmem:[%s5598_s30 + $0x10a0] sm:$0xff]  ;;  %v260_v21 = vld [vmem:[%s5592_s8 + $0x88] sm:$0xff] }
  0xcd   : > { %2677 = vmatpush.msra.mxu0 %v845_v23  ;;  %2696 = vmatpush.msra.mxu1 %v879_v24  ;;  %v905_v33 = vld [vmem:[%s5598_s30 + $0x12b0] sm:$0xff]  ;;  %v903_v37 = vld [vmem:[%s5598_s30 + $0x12a0] sm:$0xff]  ;;  %v262_v22 = vld [vmem:[%s5592_s8 + $0x98] sm:$0xff] }
  0xce   : > { %2717 = vmatpush.msra.mxu2 %v909_v25  ;;  %2736 = vmatpush.msra.mxu3 %v943_v26  ;;  %v873_v36 = vld [vmem:[%s5598_s30 + $0x11b0] sm:$0xff]  ;;  %v871_v40 = vld [vmem:[%s5598_s30 + $0x11a0] sm:$0xff] }
  0xcf   : > { %2678 = vmatpush.msra.mxu0 %v843_v27  ;;  %2697 = vmatpush.msra.mxu1 %v877_v28  ;;  %v937_v38 = vld [vmem:[%s5598_s30 + $0x13b0] sm:$0xff]  ;;  %v935_v42 = vld [vmem:[%s5598_s30 + $0x13a0] sm:$0xff] }
  0xd0   : > { %2718 = vmatpush.msra.mxu2 %v907_v29  ;;  %2737 = vmatpush.msra.mxu3 %v941_v30  ;;  %v837_v39 = vld [vmem:[%s5598_s30 + $0x1090] sm:$0xff]  ;;  %v835_v43 = vld [vmem:[%s5598_s30 + $0x1080] sm:$0xff] }
  0xd1   : > { %2679 = vmatpush.msra.mxu0 %v841_v31  ;;  %2698 = vmatpush.msra.mxu1 %v875_v32  ;;  %v901_v41 = vld [vmem:[%s5598_s30 + $0x1290] sm:$0xff]  ;;  %v899_v45 = vld [vmem:[%s5598_s30 + $0x1280] sm:$0xff] }
  0xd2   : > { %2719 = vmatpush.msra.mxu2 %v905_v33  ;;  %2738 = vmatpush.msra.mxu3 %v939_v34  ;;  %v869_v44 = vld [vmem:[%s5598_s30 + $0x1190] sm:$0xff]  ;;  %v867_v48 = vld [vmem:[%s5598_s30 + $0x1180] sm:$0xff] }
  0xd3   : > { %2680 = vmatpush.msra.mxu0 %v839_v35  ;;  %2699 = vmatpush.msra.mxu1 %v873_v36  ;;  %v933_v46 = vld [vmem:[%s5598_s30 + $0x1390] sm:$0xff]  ;;  %v931_v50 = vld [vmem:[%s5598_s30 + $0x1380] sm:$0xff] }
  0xd4   : > { %2720 = vmatpush.msra.mxu2 %v903_v37  ;;  %2739 = vmatpush.msra.mxu3 %v937_v38  ;;  %v833_v47 = vld [vmem:[%s5598_s30 + $0x1070] sm:$0xff]  ;;  %v831_v51 = vld [vmem:[%s5598_s30 + $0x1060] sm:$0xff] }
  0xd5   : > { %2681 = vmatpush.msra.mxu0 %v837_v39  ;;  %2700 = vmatpush.msra.mxu1 %v871_v40  ;;  %v897_v49 = vld [vmem:[%s5598_s30 + $0x1270] sm:$0xff]  ;;  %v895_v53 = vld [vmem:[%s5598_s30 + $0x1260] sm:$0xff] }
  0xd6   : > { %2721 = vmatpush.msra.mxu2 %v901_v41  ;;  %2740 = vmatpush.msra.mxu3 %v935_v42  ;;  %v865_v52 = vld [vmem:[%s5598_s30 + $0x1170] sm:$0xff]  ;;  %v863_v56 = vld [vmem:[%s5598_s30 + $0x1160] sm:$0xff] }
  0xd7   : > { %2682 = vmatpush.msra.mxu0 %v835_v43  ;;  %2701 = vmatpush.msra.mxu1 %v869_v44  ;;  %v929_v54 = vld [vmem:[%s5598_s30 + $0x1370] sm:$0xff]  ;;  %v927_v58 = vld [vmem:[%s5598_s30 + $0x1360] sm:$0xff] }
  0xd8   : > { %2722 = vmatpush.msra.mxu2 %v899_v45  ;;  %2741 = vmatpush.msra.mxu3 %v933_v46  ;;  %v829_v55 = vld [vmem:[%s5598_s30 + $0x1050] sm:$0xff]  ;;  %v827_v59 = vld [vmem:[%s5598_s30 + $0x1040] sm:$0xff] }
  0xd9   : > { %2683 = vmatpush.msra.mxu0 %v833_v47  ;;  %2702 = vmatpush.msra.mxu1 %v867_v48  ;;  %v893_v57 = vld [vmem:[%s5598_s30 + $0x1250] sm:$0xff]  ;;  %v891_v61 = vld [vmem:[%s5598_s30 + $0x1240] sm:$0xff] }
  0xda   : > { %2723 = vmatpush.msra.mxu2 %v897_v49  ;;  %2742 = vmatpush.msra.mxu3 %v931_v50  ;;  %v861_v60 = vld [vmem:[%s5598_s30 + $0x1150] sm:$0xff]  ;;  %v859_v0 = vld [vmem:[%s5598_s30 + $0x1140] sm:$0xff] }
  0xdb   : > { %2684 = vmatpush.msra.mxu0 %v831_v51  ;;  %2703 = vmatpush.msra.mxu1 %v865_v52  ;;  %v925_v62 = vld [vmem:[%s5598_s30 + $0x1350] sm:$0xff]  ;;  %v923_v2 = vld [vmem:[%s5598_s30 + $0x1340] sm:$0xff] }
  0xdc   : > { %2724 = vmatpush.msra.mxu2 %v895_v53  ;;  %2743 = vmatpush.msra.mxu3 %v929_v54  ;;  %v825_v63 = vld [vmem:[%s5598_s30 + $0x1030] sm:$0xff]  ;;  %v823_v3 = vld [vmem:[%s5598_s30 + $0x1020] sm:$0xff] }
  0xdd   : > { %2685 = vmatpush.msra.mxu0 %v829_v55  ;;  %2704 = vmatpush.msra.mxu1 %v863_v56  ;;  %v889_v1 = vld [vmem:[%s5598_s30 + $0x1230] sm:$0xff]  ;;  %v887_v5 = vld [vmem:[%s5598_s30 + $0x1220] sm:$0xff] }
  0xde   : > { %2725 = vmatpush.msra.mxu2 %v893_v57  ;;  %2744 = vmatpush.msra.mxu3 %v927_v58  ;;  %v857_v4 = vld [vmem:[%s5598_s30 + $0x1130] sm:$0xff]  ;;  %v855_v8 = vld [vmem:[%s5598_s30 + $0x1120] sm:$0xff] }
  0xdf   : > { %2686 = vmatpush.msra.mxu0 %v827_v59  ;;  %2705 = vmatpush.msra.mxu1 %v861_v60  ;;  %v921_v6 = vld [vmem:[%s5598_s30 + $0x1330] sm:$0xff]  ;;  %v919_v10 = vld [vmem:[%s5598_s30 + $0x1320] sm:$0xff] }
  0xe0   : > { %2726 = vmatpush.msra.mxu2 %v891_v61  ;;  %2745 = vmatpush.msra.mxu3 %v925_v62  ;;  %v821_v7 = vld [vmem:[%s5598_s30 + $0x1010] sm:$0xff]  ;;  %v819_v11 = vld [vmem:[%s5598_s30 + $0x1000] sm:$0xff] }
  0xe1   : > { %2687 = vmatpush.msra.mxu0 %v825_v63  ;;  %2706 = vmatpush.msra.mxu1 %v859_v0  ;;  %v885_v9 = vld [vmem:[%s5598_s30 + $0x1210] sm:$0xff]  ;;  %v883_v13 = vld [vmem:[%s5598_s30 + $0x1200] sm:$0xff] }
  0xe2   : > { %2727 = vmatpush.msra.mxu2 %v889_v1  ;;  %2746 = vmatpush.msra.mxu3 %v923_v2  ;;  %v853_v12 = vld [vmem:[%s5598_s30 + $0x1110] sm:$0xff]  ;;  %v259_v15 = vld [vmem:[%s5592_s8 + $0x80] sm:$0xff] }
  0xe3   : > { %2688 = vmatpush.msra.mxu0 %v823_v3  ;;  %2707 = vmatpush.msra.mxu1 %v857_v4  ;;  %v917_v14 = vld [vmem:[%s5598_s30 + $0x1310] sm:$0xff]  ;;  %v851_v19 = vld [vmem:[%s5598_s30 + $0x1100] sm:$0xff] }
  0xe4   : > { %2728 = vmatpush.msra.mxu2 %v887_v5  ;;  %2747 = vmatpush.msra.mxu3 %v921_v6  ;;  %v261_v16 = vld [vmem:[%s5592_s8 + $0x90] sm:$0xff]  ;;  %v915_v20 = vld [vmem:[%s5598_s30 + $0x1300] sm:$0xff] }
  0xe5   : > { %2689 = vmatpush.msra.mxu0 %v821_v7  ;;  %2708 = vmatpush.msra.mxu1 %v855_v8  ;;  %v977_v17 = vld [vmem:[%s5598_s30 + $0x14f0] sm:$0xff]  ;;  %v975_v23 = vld [vmem:[%s5598_s30 + $0x14e0] sm:$0xff] }
  0xe6   : > { %2729 = vmatpush.msra.mxu2 %v885_v9  ;;  %2748 = vmatpush.msra.mxu3 %v919_v10  ;;  %v1041_v18 = vld [vmem:[%s5598_s30 + $0x16f0] sm:$0xff]  ;;  %v1039_v25 = vld [vmem:[%s5598_s30 + $0x16e0] sm:$0xff] }
  0xe7   : > { %2690 = vmatpush.msra.mxu0 %v819_v11  ;;  %2709 = vmatpush.msra.mxu1 %v853_v12  ;;  %v1009_v24 = vld [vmem:[%s5598_s30 + $0x15f0] sm:$0xff]  ;;  %v1007_v28 = vld [vmem:[%s5598_s30 + $0x15e0] sm:$0xff] }
  0xe8   : > { %2730 = vmatpush.msra.mxu2 %v883_v13  ;;  %2749 = vmatpush.msra.mxu3 %v917_v14  ;;  %v1073_v26 = vld [vmem:[%s5598_s30 + $0x17f0] sm:$0xff]  ;;  %v1071_v30 = vld [vmem:[%s5598_s30 + $0x17e0] sm:$0xff] }
  0xe9   : > { %2691 = vmatmul.f32.vlgmr.msra.gmra.mxu0 %v259_v15  ;;  %2731 = vmatmul.f32.vlgmr.msra.gmra.mxu2 %v261_v16  ;;  %v973_v27 = vld [vmem:[%s5598_s30 + $0x14d0] sm:$0xff]  ;;  %v971_v31 = vld [vmem:[%s5598_s30 + $0x14c0] sm:$0xff] }
  0xea   : > { %2755 = vmatpush.msrb.mxu0 %v977_v17  ;;  %2795 = vmatpush.msrb.mxu2 %v1041_v18  ;;  %v1037_v29 = vld [vmem:[%s5598_s30 + $0x16d0] sm:$0xff]  ;;  %v1035_v33 = vld [vmem:[%s5598_s30 + $0x16c0] sm:$0xff] }
  0xeb   : > { %2710 = vmatpush.msra.mxu1 %v851_v19  ;;  %2750 = vmatpush.msra.mxu3 %v915_v20  ;;  %v1005_v32 = vld [vmem:[%s5598_s30 + $0x15d0] sm:$0xff]  ;;  %v1003_v36 = vld [vmem:[%s5598_s30 + $0x15c0] sm:$0xff] }
  0xec   : > { %2711 = vmatmul.f32.vlgmr.msra.gmra.mxu1 %v260_v21  ;;  %2751 = vmatmul.f32.vlgmr.msra.gmra.mxu3 %v262_v22  ;;  %v1069_v34 = vld [vmem:[%s5598_s30 + $0x17d0] sm:$0xff]  ;;  %v1067_v38 = vld [vmem:[%s5598_s30 + $0x17c0] sm:$0xff] }
  0xed   : > { %2756 = vmatpush.msrb.mxu0 %v975_v23  ;;  %2775 = vmatpush.msrb.mxu1 %v1009_v24  ;;  %v969_v35 = vld [vmem:[%s5598_s30 + $0x14b0] sm:$0xff]  ;;  %v967_v39 = vld [vmem:[%s5598_s30 + $0x14a0] sm:$0xff] }
  0xee   : > { %2796 = vmatpush.msrb.mxu2 %v1039_v25  ;;  %2815 = vmatpush.msrb.mxu3 %v1073_v26  ;;  %v1033_v37 = vld [vmem:[%s5598_s30 + $0x16b0] sm:$0xff]  ;;  %v1031_v41 = vld [vmem:[%s5598_s30 + $0x16a0] sm:$0xff]  ;;  %v264_v25 = vld [vmem:[%s5592_s8 + $0xa8] sm:$0xff] }
  0xef   : > { %2757 = vmatpush.msrb.mxu0 %v973_v27  ;;  %2776 = vmatpush.msrb.mxu1 %v1007_v28  ;;  %v1001_v40 = vld [vmem:[%s5598_s30 + $0x15b0] sm:$0xff]  ;;  %v999_v44 = vld [vmem:[%s5598_s30 + $0x15a0] sm:$0xff]  ;;  %v266_v26 = vld [vmem:[%s5592_s8 + $0xb8] sm:$0xff] }
  0xf0   : > { %2797 = vmatpush.msrb.mxu2 %v1037_v29  ;;  %2816 = vmatpush.msrb.mxu3 %v1071_v30  ;;  %v1065_v42 = vld [vmem:[%s5598_s30 + $0x17b0] sm:$0xff]  ;;  %v1063_v46 = vld [vmem:[%s5598_s30 + $0x17a0] sm:$0xff] }
  0xf1   : > { %2758 = vmatpush.msrb.mxu0 %v971_v31  ;;  %2777 = vmatpush.msrb.mxu1 %v1005_v32  ;;  %v965_v43 = vld [vmem:[%s5598_s30 + $0x1490] sm:$0xff]  ;;  %v963_v47 = vld [vmem:[%s5598_s30 + $0x1480] sm:$0xff] }
  0xf2   : > { %2798 = vmatpush.msrb.mxu2 %v1035_v33  ;;  %2817 = vmatpush.msrb.mxu3 %v1069_v34  ;;  %v1029_v45 = vld [vmem:[%s5598_s30 + $0x1690] sm:$0xff]  ;;  %v1027_v49 = vld [vmem:[%s5598_s30 + $0x1680] sm:$0xff] }
  0xf3   : > { %2759 = vmatpush.msrb.mxu0 %v969_v35  ;;  %2778 = vmatpush.msrb.mxu1 %v1003_v36  ;;  %v997_v48 = vld [vmem:[%s5598_s30 + $0x1590] sm:$0xff]  ;;  %v995_v52 = vld [vmem:[%s5598_s30 + $0x1580] sm:$0xff] }
  0xf4   : > { %2799 = vmatpush.msrb.mxu2 %v1033_v37  ;;  %2818 = vmatpush.msrb.mxu3 %v1067_v38  ;;  %v1061_v50 = vld [vmem:[%s5598_s30 + $0x1790] sm:$0xff]  ;;  %v1059_v54 = vld [vmem:[%s5598_s30 + $0x1780] sm:$0xff] }
  0xf5   : > { %2760 = vmatpush.msrb.mxu0 %v967_v39  ;;  %2779 = vmatpush.msrb.mxu1 %v1001_v40  ;;  %v961_v51 = vld [vmem:[%s5598_s30 + $0x1470] sm:$0xff]  ;;  %v959_v55 = vld [vmem:[%s5598_s30 + $0x1460] sm:$0xff] }
  0xf6   : > { %2800 = vmatpush.msrb.mxu2 %v1031_v41  ;;  %2819 = vmatpush.msrb.mxu3 %v1065_v42  ;;  %v1025_v53 = vld [vmem:[%s5598_s30 + $0x1670] sm:$0xff]  ;;  %v1023_v57 = vld [vmem:[%s5598_s30 + $0x1660] sm:$0xff] }
  0xf7   : > { %2761 = vmatpush.msrb.mxu0 %v965_v43  ;;  %2780 = vmatpush.msrb.mxu1 %v999_v44  ;;  %v993_v56 = vld [vmem:[%s5598_s30 + $0x1570] sm:$0xff]  ;;  %v991_v60 = vld [vmem:[%s5598_s30 + $0x1560] sm:$0xff] }
  0xf8   : > { %2801 = vmatpush.msrb.mxu2 %v1029_v45  ;;  %2820 = vmatpush.msrb.mxu3 %v1063_v46  ;;  %v1057_v58 = vld [vmem:[%s5598_s30 + $0x1770] sm:$0xff]  ;;  %v1055_v62 = vld [vmem:[%s5598_s30 + $0x1760] sm:$0xff] }
  0xf9   : > { %2762 = vmatpush.msrb.mxu0 %v963_v47  ;;  %2781 = vmatpush.msrb.mxu1 %v997_v48  ;;  %v957_v59 = vld [vmem:[%s5598_s30 + $0x1450] sm:$0xff]  ;;  %v955_v63 = vld [vmem:[%s5598_s30 + $0x1440] sm:$0xff] }
  0xfa   : > { %2802 = vmatpush.msrb.mxu2 %v1027_v49  ;;  %2821 = vmatpush.msrb.mxu3 %v1061_v50  ;;  %v1021_v61 = vld [vmem:[%s5598_s30 + $0x1650] sm:$0xff]  ;;  %v1019_v1 = vld [vmem:[%s5598_s30 + $0x1640] sm:$0xff] }
  0xfb   : > { %2763 = vmatpush.msrb.mxu0 %v961_v51  ;;  %2782 = vmatpush.msrb.mxu1 %v995_v52  ;;  %v989_v0 = vld [vmem:[%s5598_s30 + $0x1550] sm:$0xff]  ;;  %v987_v4 = vld [vmem:[%s5598_s30 + $0x1540] sm:$0xff] }
  0xfc   : > { %2803 = vmatpush.msrb.mxu2 %v1025_v53  ;;  %2822 = vmatpush.msrb.mxu3 %v1059_v54  ;;  %v1053_v2 = vld [vmem:[%s5598_s30 + $0x1750] sm:$0xff]  ;;  %v1051_v6 = vld [vmem:[%s5598_s30 + $0x1740] sm:$0xff] }
  0xfd   : > { %2764 = vmatpush.msrb.mxu0 %v959_v55  ;;  %2783 = vmatpush.msrb.mxu1 %v993_v56  ;;  %v953_v3 = vld [vmem:[%s5598_s30 + $0x1430] sm:$0xff]  ;;  %v951_v7 = vld [vmem:[%s5598_s30 + $0x1420] sm:$0xff] }
  0xfe   : > { %2804 = vmatpush.msrb.mxu2 %v1023_v57  ;;  %2823 = vmatpush.msrb.mxu3 %v1057_v58  ;;  %v1017_v5 = vld [vmem:[%s5598_s30 + $0x1630] sm:$0xff]  ;;  %v1015_v9 = vld [vmem:[%s5598_s30 + $0x1620] sm:$0xff] }
  0xff   : > { %2765 = vmatpush.msrb.mxu0 %v957_v59  ;;  %2784 = vmatpush.msrb.mxu1 %v991_v60  ;;  %v985_v8 = vld [vmem:[%s5598_s30 + $0x1530] sm:$0xff]  ;;  %v983_v12 = vld [vmem:[%s5598_s30 + $0x1520] sm:$0xff] }
 0x100   : > { %2805 = vmatpush.msrb.mxu2 %v1021_v61  ;;  %2824 = vmatpush.msrb.mxu3 %v1055_v62  ;;  %v1049_v10 = vld [vmem:[%s5598_s30 + $0x1730] sm:$0xff]  ;;  %v1047_v14 = vld [vmem:[%s5598_s30 + $0x1720] sm:$0xff] }
 0x101   : > { %2766 = vmatpush.msrb.mxu0 %v955_v63  ;;  %2785 = vmatpush.msrb.mxu1 %v989_v0  ;;  %v949_v11 = vld [vmem:[%s5598_s30 + $0x1410] sm:$0xff]  ;;  %v947_v15 = vld [vmem:[%s5598_s30 + $0x1400] sm:$0xff] }
 0x102   : > { %2806 = vmatpush.msrb.mxu2 %v1019_v1  ;;  %2825 = vmatpush.msrb.mxu3 %v1053_v2  ;;  %v1013_v13 = vld [vmem:[%s5598_s30 + $0x1610] sm:$0xff]  ;;  %v1011_v17 = vld [vmem:[%s5598_s30 + $0x1600] sm:$0xff] }
 0x103   : > { %2767 = vmatpush.msrb.mxu0 %v953_v3  ;;  %2786 = vmatpush.msrb.mxu1 %v987_v4  ;;  %v981_v16 = vld [vmem:[%s5598_s30 + $0x1510] sm:$0xff]  ;;  %v263_v19 = vld [vmem:[%s5592_s8 + $0xa0] sm:$0xff] }
 0x104   : > { %2807 = vmatpush.msrb.mxu2 %v1017_v5  ;;  %2826 = vmatpush.msrb.mxu3 %v1051_v6  ;;  %v1045_v18 = vld [vmem:[%s5598_s30 + $0x1710] sm:$0xff]  ;;  %v979_v23 = vld [vmem:[%s5598_s30 + $0x1500] sm:$0xff] }
 0x105   : > { %2768 = vmatpush.msrb.mxu0 %v951_v7  ;;  %2787 = vmatpush.msrb.mxu1 %v985_v8  ;;  %v265_v20 = vld [vmem:[%s5592_s8 + $0xb0] sm:$0xff]  ;;  %v1043_v24 = vld [vmem:[%s5598_s30 + $0x1700] sm:$0xff] }
 0x106   : > { %2808 = vmatpush.msrb.mxu2 %v1015_v9  ;;  %2827 = vmatpush.msrb.mxu3 %v1049_v10  ;;  %v1105_v21 = vld [vmem:[%s5598_s30 + $0x18f0] sm:$0xff]  ;;  %v1103_v27 = vld [vmem:[%s5598_s30 + $0x18e0] sm:$0xff] }
 0x107   : > { %2769 = vmatpush.msrb.mxu0 %v949_v11  ;;  %2788 = vmatpush.msrb.mxu1 %v983_v12  ;;  %v1169_v22 = vld [vmem:[%s5598_s30 + $0x1af0] sm:$0xff]  ;;  %v1167_v29 = vld [vmem:[%s5598_s30 + $0x1ae0] sm:$0xff] }
 0x108   : > { %2809 = vmatpush.msrb.mxu2 %v1013_v13  ;;  %2828 = vmatpush.msrb.mxu3 %v1047_v14  ;;  %v1137_v28 = vld [vmem:[%s5598_s30 + $0x19f0] sm:$0xff]  ;;  %v1135_v32 = vld [vmem:[%s5598_s30 + $0x19e0] sm:$0xff] }
 0x109   : > { %2770 = vmatpush.msrb.mxu0 %v947_v15  ;;  %2789 = vmatpush.msrb.mxu1 %v981_v16  ;;  %v1201_v30 = vld [vmem:[%s5598_s30 + $0x1bf0] sm:$0xff]  ;;  %v1199_v34 = vld [vmem:[%s5598_s30 + $0x1be0] sm:$0xff] }
 0x10a   : > { %2810 = vmatpush.msrb.mxu2 %v1011_v17  ;;  %2829 = vmatpush.msrb.mxu3 %v1045_v18  ;;  %v1101_v31 = vld [vmem:[%s5598_s30 + $0x18d0] sm:$0xff]  ;;  %v1099_v35 = vld [vmem:[%s5598_s30 + $0x18c0] sm:$0xff] }
 0x10b   : > { %2771 = vmatmul.f32.vlgmr.msrb.gmra.mxu0 %v263_v19  ;;  %2811 = vmatmul.f32.vlgmr.msrb.gmra.mxu2 %v265_v20  ;;  %v1165_v33 = vld [vmem:[%s5598_s30 + $0x1ad0] sm:$0xff]  ;;  %v1163_v37 = vld [vmem:[%s5598_s30 + $0x1ac0] sm:$0xff] }
 0x10c   : > { %2835 = vmatpush.msra.mxu0 %v1105_v21  ;;  %2875 = vmatpush.msra.mxu2 %v1169_v22  ;;  %v1133_v36 = vld [vmem:[%s5598_s30 + $0x19d0] sm:$0xff]  ;;  %v1131_v40 = vld [vmem:[%s5598_s30 + $0x19c0] sm:$0xff] }
 0x10d   : > { %2790 = vmatpush.msrb.mxu1 %v979_v23  ;;  %2830 = vmatpush.msrb.mxu3 %v1043_v24  ;;  %v1197_v38 = vld [vmem:[%s5598_s30 + $0x1bd0] sm:$0xff]  ;;  %v1195_v42 = vld [vmem:[%s5598_s30 + $0x1bc0] sm:$0xff] }
 0x10e   : > { %2791 = vmatmul.f32.vlgmr.msrb.gmra.mxu1 %v264_v25  ;;  %2831 = vmatmul.f32.vlgmr.msrb.gmra.mxu3 %v266_v26  ;;  %v1097_v39 = vld [vmem:[%s5598_s30 + $0x18b0] sm:$0xff]  ;;  %v1095_v43 = vld [vmem:[%s5598_s30 + $0x18a0] sm:$0xff] }
 0x10f   : > { %2836 = vmatpush.msra.mxu0 %v1103_v27  ;;  %2855 = vmatpush.msra.mxu1 %v1137_v28  ;;  %v1161_v41 = vld [vmem:[%s5598_s30 + $0x1ab0] sm:$0xff]  ;;  %v1159_v45 = vld [vmem:[%s5598_s30 + $0x1aa0] sm:$0xff] }
 0x110   : > { %2876 = vmatpush.msra.mxu2 %v1167_v29  ;;  %2895 = vmatpush.msra.mxu3 %v1201_v30  ;;  %v1129_v44 = vld [vmem:[%s5598_s30 + $0x19b0] sm:$0xff]  ;;  %v1127_v48 = vld [vmem:[%s5598_s30 + $0x19a0] sm:$0xff]  ;;  %v268_v29 = vld [vmem:[%s5592_s8 + $0xc8] sm:$0xff] }
 0x111   : > { %2837 = vmatpush.msra.mxu0 %v1101_v31  ;;  %2856 = vmatpush.msra.mxu1 %v1135_v32  ;;  %v1193_v46 = vld [vmem:[%s5598_s30 + $0x1bb0] sm:$0xff]  ;;  %v1191_v50 = vld [vmem:[%s5598_s30 + $0x1ba0] sm:$0xff]  ;;  %v270_v30 = vld [vmem:[%s5592_s8 + $0xd8] sm:$0xff] }
 0x112   : > { %2877 = vmatpush.msra.mxu2 %v1165_v33  ;;  %2896 = vmatpush.msra.mxu3 %v1199_v34  ;;  %v1093_v47 = vld [vmem:[%s5598_s30 + $0x1890] sm:$0xff]  ;;  %v1091_v51 = vld [vmem:[%s5598_s30 + $0x1880] sm:$0xff] }
 0x113   : > { %2838 = vmatpush.msra.mxu0 %v1099_v35  ;;  %2857 = vmatpush.msra.mxu1 %v1133_v36  ;;  %v1157_v49 = vld [vmem:[%s5598_s30 + $0x1a90] sm:$0xff]  ;;  %v1155_v53 = vld [vmem:[%s5598_s30 + $0x1a80] sm:$0xff] }
 0x114   : > { %2878 = vmatpush.msra.mxu2 %v1163_v37  ;;  %2897 = vmatpush.msra.mxu3 %v1197_v38  ;;  %v1125_v52 = vld [vmem:[%s5598_s30 + $0x1990] sm:$0xff]  ;;  %v1123_v56 = vld [vmem:[%s5598_s30 + $0x1980] sm:$0xff] }
 0x115   : > { %2839 = vmatpush.msra.mxu0 %v1097_v39  ;;  %2858 = vmatpush.msra.mxu1 %v1131_v40  ;;  %v1189_v54 = vld [vmem:[%s5598_s30 + $0x1b90] sm:$0xff]  ;;  %v1187_v58 = vld [vmem:[%s5598_s30 + $0x1b80] sm:$0xff] }
 0x116   : > { %2879 = vmatpush.msra.mxu2 %v1161_v41  ;;  %2898 = vmatpush.msra.mxu3 %v1195_v42  ;;  %v1089_v55 = vld [vmem:[%s5598_s30 + $0x1870] sm:$0xff]  ;;  %v1087_v59 = vld [vmem:[%s5598_s30 + $0x1860] sm:$0xff] }
 0x117   : > { %2840 = vmatpush.msra.mxu0 %v1095_v43  ;;  %2859 = vmatpush.msra.mxu1 %v1129_v44  ;;  %v1153_v57 = vld [vmem:[%s5598_s30 + $0x1a70] sm:$0xff]  ;;  %v1151_v61 = vld [vmem:[%s5598_s30 + $0x1a60] sm:$0xff] }
 0x118   : > { %2880 = vmatpush.msra.mxu2 %v1159_v45  ;;  %2899 = vmatpush.msra.mxu3 %v1193_v46  ;;  %v1121_v60 = vld [vmem:[%s5598_s30 + $0x1970] sm:$0xff]  ;;  %v1119_v0 = vld [vmem:[%s5598_s30 + $0x1960] sm:$0xff] }
 0x119   : > { %2841 = vmatpush.msra.mxu0 %v1093_v47  ;;  %2860 = vmatpush.msra.mxu1 %v1127_v48  ;;  %v1185_v62 = vld [vmem:[%s5598_s30 + $0x1b70] sm:$0xff]  ;;  %v1183_v2 = vld [vmem:[%s5598_s30 + $0x1b60] sm:$0xff] }
 0x11a   : > { %2881 = vmatpush.msra.mxu2 %v1157_v49  ;;  %2900 = vmatpush.msra.mxu3 %v1191_v50  ;;  %v1085_v63 = vld [vmem:[%s5598_s30 + $0x1850] sm:$0xff]  ;;  %v1083_v3 = vld [vmem:[%s5598_s30 + $0x1840] sm:$0xff] }
 0x11b   : > { %2842 = vmatpush.msra.mxu0 %v1091_v51  ;;  %2861 = vmatpush.msra.mxu1 %v1125_v52  ;;  %v1149_v1 = vld [vmem:[%s5598_s30 + $0x1a50] sm:$0xff]  ;;  %v1147_v5 = vld [vmem:[%s5598_s30 + $0x1a40] sm:$0xff] }
 0x11c   : > { %2882 = vmatpush.msra.mxu2 %v1155_v53  ;;  %2901 = vmatpush.msra.mxu3 %v1189_v54  ;;  %v1117_v4 = vld [vmem:[%s5598_s30 + $0x1950] sm:$0xff]  ;;  %v1115_v8 = vld [vmem:[%s5598_s30 + $0x1940] sm:$0xff] }
 0x11d   : > { %2843 = vmatpush.msra.mxu0 %v1089_v55  ;;  %2862 = vmatpush.msra.mxu1 %v1123_v56  ;;  %v1181_v6 = vld [vmem:[%s5598_s30 + $0x1b50] sm:$0xff]  ;;  %v1179_v10 = vld [vmem:[%s5598_s30 + $0x1b40] sm:$0xff] }
 0x11e   : > { %2883 = vmatpush.msra.mxu2 %v1153_v57  ;;  %2902 = vmatpush.msra.mxu3 %v1187_v58  ;;  %v1081_v7 = vld [vmem:[%s5598_s30 + $0x1830] sm:$0xff]  ;;  %v1079_v11 = vld [vmem:[%s5598_s30 + $0x1820] sm:$0xff] }
 0x11f   : > { %2844 = vmatpush.msra.mxu0 %v1087_v59  ;;  %2863 = vmatpush.msra.mxu1 %v1121_v60  ;;  %v1145_v9 = vld [vmem:[%s5598_s30 + $0x1a30] sm:$0xff]  ;;  %v1143_v13 = vld [vmem:[%s5598_s30 + $0x1a20] sm:$0xff] }
 0x120   : > { %2884 = vmatpush.msra.mxu2 %v1151_v61  ;;  %2903 = vmatpush.msra.mxu3 %v1185_v62  ;;  %v1113_v12 = vld [vmem:[%s5598_s30 + $0x1930] sm:$0xff]  ;;  %v1111_v16 = vld [vmem:[%s5598_s30 + $0x1920] sm:$0xff] }
 0x121   : > { %2845 = vmatpush.msra.mxu0 %v1085_v63  ;;  %2864 = vmatpush.msra.mxu1 %v1119_v0  ;;  %v1177_v14 = vld [vmem:[%s5598_s30 + $0x1b30] sm:$0xff]  ;;  %v1175_v18 = vld [vmem:[%s5598_s30 + $0x1b20] sm:$0xff] }
 0x122   : > { %2885 = vmatpush.msra.mxu2 %v1149_v1  ;;  %2904 = vmatpush.msra.mxu3 %v1183_v2  ;;  %v1077_v15 = vld [vmem:[%s5598_s30 + $0x1810] sm:$0xff]  ;;  %v1075_v19 = vld [vmem:[%s5598_s30 + $0x1800] sm:$0xff] }
 0x123   : > { %2846 = vmatpush.msra.mxu0 %v1083_v3  ;;  %2865 = vmatpush.msra.mxu1 %v1117_v4  ;;  %v1141_v17 = vld [vmem:[%s5598_s30 + $0x1a10] sm:$0xff]  ;;  %v1139_v21 = vld [vmem:[%s5598_s30 + $0x1a00] sm:$0xff] }
 0x124   : > { %2886 = vmatpush.msra.mxu2 %v1147_v5  ;;  %2905 = vmatpush.msra.mxu3 %v1181_v6  ;;  %v1109_v20 = vld [vmem:[%s5598_s30 + $0x1910] sm:$0xff]  ;;  %v267_v23 = vld [vmem:[%s5592_s8 + $0xc0] sm:$0xff] }
 0x125   : > { %2847 = vmatpush.msra.mxu0 %v1081_v7  ;;  %2866 = vmatpush.msra.mxu1 %v1115_v8  ;;  %v1173_v22 = vld [vmem:[%s5598_s30 + $0x1b10] sm:$0xff]  ;;  %v1107_v27 = vld [vmem:[%s5598_s30 + $0x1900] sm:$0xff] }
 0x126   : > { %2887 = vmatpush.msra.mxu2 %v1145_v9  ;;  %2906 = vmatpush.msra.mxu3 %v1179_v10  ;;  %v269_v24 = vld [vmem:[%s5592_s8 + $0xd0] sm:$0xff]  ;;  %v1171_v28 = vld [vmem:[%s5598_s30 + $0x1b00] sm:$0xff] }
 0x127   : > { %2848 = vmatpush.msra.mxu0 %v1079_v11  ;;  %2867 = vmatpush.msra.mxu1 %v1113_v12  ;;  %v1233_v25 = vld [vmem:[%s5598_s30 + $0x1cf0] sm:$0xff]  ;;  %v1231_v31 = vld [vmem:[%s5598_s30 + $0x1ce0] sm:$0xff] }
 0x128   : > { %2888 = vmatpush.msra.mxu2 %v1143_v13  ;;  %2907 = vmatpush.msra.mxu3 %v1177_v14  ;;  %v1297_v26 = vld [vmem:[%s5598_s30 + $0x1ef0] sm:$0xff]  ;;  %v1295_v33 = vld [vmem:[%s5598_s30 + $0x1ee0] sm:$0xff] }
 0x129   : > { %2849 = vmatpush.msra.mxu0 %v1077_v15  ;;  %2868 = vmatpush.msra.mxu1 %v1111_v16  ;;  %v1265_v32 = vld [vmem:[%s5598_s30 + $0x1df0] sm:$0xff]  ;;  %v1263_v36 = vld [vmem:[%s5598_s30 + $0x1de0] sm:$0xff] }
 0x12a   : > { %2889 = vmatpush.msra.mxu2 %v1141_v17  ;;  %2908 = vmatpush.msra.mxu3 %v1175_v18  ;;  %v1329_v34 = vld [vmem:[%s5598_s30 + $0x1ff0] sm:$0xff]  ;;  %v1327_v38 = vld [vmem:[%s5598_s30 + $0x1fe0] sm:$0xff] }
 0x12b   : > { %2850 = vmatpush.msra.mxu0 %v1075_v19  ;;  %2869 = vmatpush.msra.mxu1 %v1109_v20  ;;  %v1229_v35 = vld [vmem:[%s5598_s30 + $0x1cd0] sm:$0xff]  ;;  %v1227_v39 = vld [vmem:[%s5598_s30 + $0x1cc0] sm:$0xff] }
 0x12c   : > { %2890 = vmatpush.msra.mxu2 %v1139_v21  ;;  %2909 = vmatpush.msra.mxu3 %v1173_v22  ;;  %v1293_v37 = vld [vmem:[%s5598_s30 + $0x1ed0] sm:$0xff]  ;;  %v1291_v41 = vld [vmem:[%s5598_s30 + $0x1ec0] sm:$0xff] }
 0x12d   : > { %2851 = vmatmul.f32.vlgmr.msra.gmra.mxu0 %v267_v23  ;;  %2891 = vmatmul.f32.vlgmr.msra.gmra.mxu2 %v269_v24  ;;  %v1261_v40 = vld [vmem:[%s5598_s30 + $0x1dd0] sm:$0xff]  ;;  %v1259_v44 = vld [vmem:[%s5598_s30 + $0x1dc0] sm:$0xff] }
 0x12e   : > { %2915 = vmatpush.msrb.mxu0 %v1233_v25  ;;  %2955 = vmatpush.msrb.mxu2 %v1297_v26  ;;  %v1325_v42 = vld [vmem:[%s5598_s30 + $0x1fd0] sm:$0xff]  ;;  %v1323_v46 = vld [vmem:[%s5598_s30 + $0x1fc0] sm:$0xff] }
 0x12f   : > { %2870 = vmatpush.msra.mxu1 %v1107_v27  ;;  %2910 = vmatpush.msra.mxu3 %v1171_v28  ;;  %v1225_v43 = vld [vmem:[%s5598_s30 + $0x1cb0] sm:$0xff]  ;;  %v1223_v47 = vld [vmem:[%s5598_s30 + $0x1ca0] sm:$0xff] }
 0x130   : > { %2871 = vmatmul.f32.vlgmr.msra.gmra.mxu1 %v268_v29  ;;  %2911 = vmatmul.f32.vlgmr.msra.gmra.mxu3 %v270_v30  ;;  %v1289_v45 = vld [vmem:[%s5598_s30 + $0x1eb0] sm:$0xff]  ;;  %v1287_v49 = vld [vmem:[%s5598_s30 + $0x1ea0] sm:$0xff] }
 0x131   : > { %2916 = vmatpush.msrb.mxu0 %v1231_v31  ;;  %2935 = vmatpush.msrb.mxu1 %v1265_v32  ;;  %v1257_v48 = vld [vmem:[%s5598_s30 + $0x1db0] sm:$0xff]  ;;  %v1255_v52 = vld [vmem:[%s5598_s30 + $0x1da0] sm:$0xff] }
 0x132   : > { %2956 = vmatpush.msrb.mxu2 %v1295_v33  ;;  %2975 = vmatpush.msrb.mxu3 %v1329_v34  ;;  %v1321_v50 = vld [vmem:[%s5598_s30 + $0x1fb0] sm:$0xff]  ;;  %v1319_v54 = vld [vmem:[%s5598_s30 + $0x1fa0] sm:$0xff]  ;;  %v272_v33 = vld [vmem:[%s5592_s8 + $0xe8] sm:$0xff] }
 0x133   : > { %2917 = vmatpush.msrb.mxu0 %v1229_v35  ;;  %2936 = vmatpush.msrb.mxu1 %v1263_v36  ;;  %v1221_v51 = vld [vmem:[%s5598_s30 + $0x1c90] sm:$0xff]  ;;  %v1219_v55 = vld [vmem:[%s5598_s30 + $0x1c80] sm:$0xff]  ;;  %v274_v34 = vld [vmem:[%s5592_s8 + $0xf8] sm:$0xff] }
 0x134   : > { %2957 = vmatpush.msrb.mxu2 %v1293_v37  ;;  %2976 = vmatpush.msrb.mxu3 %v1327_v38  ;;  %v1285_v53 = vld [vmem:[%s5598_s30 + $0x1e90] sm:$0xff]  ;;  %v1283_v57 = vld [vmem:[%s5598_s30 + $0x1e80] sm:$0xff] }
 0x135   : > { %2918 = vmatpush.msrb.mxu0 %v1227_v39  ;;  %2937 = vmatpush.msrb.mxu1 %v1261_v40  ;;  %v1253_v56 = vld [vmem:[%s5598_s30 + $0x1d90] sm:$0xff]  ;;  %v1251_v60 = vld [vmem:[%s5598_s30 + $0x1d80] sm:$0xff] }
 0x136   : > { %2958 = vmatpush.msrb.mxu2 %v1291_v41  ;;  %2977 = vmatpush.msrb.mxu3 %v1325_v42  ;;  %v1317_v58 = vld [vmem:[%s5598_s30 + $0x1f90] sm:$0xff]  ;;  %v1315_v62 = vld [vmem:[%s5598_s30 + $0x1f80] sm:$0xff] }
 0x137   : > { %2919 = vmatpush.msrb.mxu0 %v1225_v43  ;;  %2938 = vmatpush.msrb.mxu1 %v1259_v44  ;;  %v1217_v59 = vld [vmem:[%s5598_s30 + $0x1c70] sm:$0xff]  ;;  %v1215_v63 = vld [vmem:[%s5598_s30 + $0x1c60] sm:$0xff] }
 0x138   : > { %2959 = vmatpush.msrb.mxu2 %v1289_v45  ;;  %2978 = vmatpush.msrb.mxu3 %v1323_v46  ;;  %v1281_v61 = vld [vmem:[%s5598_s30 + $0x1e70] sm:$0xff]  ;;  %v1279_v1 = vld [vmem:[%s5598_s30 + $0x1e60] sm:$0xff] }
 0x139   : > { %2920 = vmatpush.msrb.mxu0 %v1223_v47  ;;  %2939 = vmatpush.msrb.mxu1 %v1257_v48  ;;  %v1249_v0 = vld [vmem:[%s5598_s30 + $0x1d70] sm:$0xff]  ;;  %v1247_v4 = vld [vmem:[%s5598_s30 + $0x1d60] sm:$0xff] }
 0x13a   : > { %2960 = vmatpush.msrb.mxu2 %v1287_v49  ;;  %2979 = vmatpush.msrb.mxu3 %v1321_v50  ;;  %v1313_v2 = vld [vmem:[%s5598_s30 + $0x1f70] sm:$0xff]  ;;  %v1311_v6 = vld [vmem:[%s5598_s30 + $0x1f60] sm:$0xff] }
 0x13b   : > { %2921 = vmatpush.msrb.mxu0 %v1221_v51  ;;  %2940 = vmatpush.msrb.mxu1 %v1255_v52  ;;  %v1213_v3 = vld [vmem:[%s5598_s30 + $0x1c50] sm:$0xff]  ;;  %v1211_v7 = vld [vmem:[%s5598_s30 + $0x1c40] sm:$0xff] }
 0x13c   : > { %2961 = vmatpush.msrb.mxu2 %v1285_v53  ;;  %2980 = vmatpush.msrb.mxu3 %v1319_v54  ;;  %v1277_v5 = vld [vmem:[%s5598_s30 + $0x1e50] sm:$0xff]  ;;  %v1275_v9 = vld [vmem:[%s5598_s30 + $0x1e40] sm:$0xff] }
 0x13d   : > { %2922 = vmatpush.msrb.mxu0 %v1219_v55  ;;  %2941 = vmatpush.msrb.mxu1 %v1253_v56  ;;  %v1245_v8 = vld [vmem:[%s5598_s30 + $0x1d50] sm:$0xff]  ;;  %v1243_v12 = vld [vmem:[%s5598_s30 + $0x1d40] sm:$0xff] }
 0x13e   : > { %2962 = vmatpush.msrb.mxu2 %v1283_v57  ;;  %2981 = vmatpush.msrb.mxu3 %v1317_v58  ;;  %v1309_v10 = vld [vmem:[%s5598_s30 + $0x1f50] sm:$0xff]  ;;  %v1307_v14 = vld [vmem:[%s5598_s30 + $0x1f40] sm:$0xff] }
 0x13f   : > { %2923 = vmatpush.msrb.mxu0 %v1217_v59  ;;  %2942 = vmatpush.msrb.mxu1 %v1251_v60  ;;  %v1209_v11 = vld [vmem:[%s5598_s30 + $0x1c30] sm:$0xff]  ;;  %v1207_v15 = vld [vmem:[%s5598_s30 + $0x1c20] sm:$0xff] }
 0x140   : > { %2963 = vmatpush.msrb.mxu2 %v1281_v61  ;;  %2982 = vmatpush.msrb.mxu3 %v1315_v62  ;;  %v1273_v13 = vld [vmem:[%s5598_s30 + $0x1e30] sm:$0xff]  ;;  %v1271_v17 = vld [vmem:[%s5598_s30 + $0x1e20] sm:$0xff] }
 0x141   : > { %2924 = vmatpush.msrb.mxu0 %v1215_v63  ;;  %2943 = vmatpush.msrb.mxu1 %v1249_v0  ;;  %v1241_v16 = vld [vmem:[%s5598_s30 + $0x1d30] sm:$0xff]  ;;  %v1239_v20 = vld [vmem:[%s5598_s30 + $0x1d20] sm:$0xff] }
 0x142   : > { %2964 = vmatpush.msrb.mxu2 %v1279_v1  ;;  %2983 = vmatpush.msrb.mxu3 %v1313_v2  ;;  %v1305_v18 = vld [vmem:[%s5598_s30 + $0x1f30] sm:$0xff]  ;;  %v1303_v22 = vld [vmem:[%s5598_s30 + $0x1f20] sm:$0xff] }
 0x143   : > { %2925 = vmatpush.msrb.mxu0 %v1213_v3  ;;  %2944 = vmatpush.msrb.mxu1 %v1247_v4  ;;  %v1205_v19 = vld [vmem:[%s5598_s30 + $0x1c10] sm:$0xff]  ;;  %v1203_v23 = vld [vmem:[%s5598_s30 + $0x1c00] sm:$0xff] }
 0x144   : > { %2965 = vmatpush.msrb.mxu2 %v1277_v5  ;;  %2984 = vmatpush.msrb.mxu3 %v1311_v6  ;;  %v1269_v21 = vld [vmem:[%s5598_s30 + $0x1e10] sm:$0xff]  ;;  %v1267_v25 = vld [vmem:[%s5598_s30 + $0x1e00] sm:$0xff] }
 0x145   : > { %2926 = vmatpush.msrb.mxu0 %v1211_v7  ;;  %2945 = vmatpush.msrb.mxu1 %v1245_v8  ;;  %v1237_v24 = vld [vmem:[%s5598_s30 + $0x1d10] sm:$0xff]  ;;  %v271_v27 = vld [vmem:[%s5592_s8 + $0xe0] sm:$0xff] }
 0x146   : > { %2966 = vmatpush.msrb.mxu2 %v1275_v9  ;;  %2985 = vmatpush.msrb.mxu3 %v1309_v10  ;;  %v1301_v26 = vld [vmem:[%s5598_s30 + $0x1f10] sm:$0xff]  ;;  %v1235_v31 = vld [vmem:[%s5598_s30 + $0x1d00] sm:$0xff] }
 0x147   : > { %2927 = vmatpush.msrb.mxu0 %v1209_v11  ;;  %2946 = vmatpush.msrb.mxu1 %v1243_v12  ;;  %v273_v28 = vld [vmem:[%s5592_s8 + $0xf0] sm:$0xff]  ;;  %v1299_v32 = vld [vmem:[%s5598_s30 + $0x1f00] sm:$0xff] }
 0x148   : > { %2967 = vmatpush.msrb.mxu2 %v1273_v13  ;;  %2986 = vmatpush.msrb.mxu3 %v1307_v14  ;;  %v1361_v29 = vld [vmem:[%s5598_s30 + $0x20f0] sm:$0xff]  ;;  %v1359_v35 = vld [vmem:[%s5598_s30 + $0x20e0] sm:$0xff] }
 0x149   : > { %2928 = vmatpush.msrb.mxu0 %v1207_v15  ;;  %2947 = vmatpush.msrb.mxu1 %v1241_v16  ;;  %v1425_v30 = vld [vmem:[%s5598_s30 + $0x22f0] sm:$0xff]  ;;  %v1423_v37 = vld [vmem:[%s5598_s30 + $0x22e0] sm:$0xff] }
 0x14a   : > { %2968 = vmatpush.msrb.mxu2 %v1271_v17  ;;  %2987 = vmatpush.msrb.mxu3 %v1305_v18  ;;  %v1393_v36 = vld [vmem:[%s5598_s30 + $0x21f0] sm:$0xff]  ;;  %v1391_v40 = vld [vmem:[%s5598_s30 + $0x21e0] sm:$0xff] }
 0x14b   : > { %2929 = vmatpush.msrb.mxu0 %v1205_v19  ;;  %2948 = vmatpush.msrb.mxu1 %v1239_v20  ;;  %v1457_v38 = vld [vmem:[%s5598_s30 + $0x23f0] sm:$0xff]  ;;  %v1455_v42 = vld [vmem:[%s5598_s30 + $0x23e0] sm:$0xff] }
 0x14c   : > { %2969 = vmatpush.msrb.mxu2 %v1269_v21  ;;  %2988 = vmatpush.msrb.mxu3 %v1303_v22  ;;  %v1357_v39 = vld [vmem:[%s5598_s30 + $0x20d0] sm:$0xff]  ;;  %v1355_v43 = vld [vmem:[%s5598_s30 + $0x20c0] sm:$0xff] }
 0x14d   : > { %2930 = vmatpush.msrb.mxu0 %v1203_v23  ;;  %2949 = vmatpush.msrb.mxu1 %v1237_v24  ;;  %v1421_v41 = vld [vmem:[%s5598_s30 + $0x22d0] sm:$0xff]  ;;  %v1419_v45 = vld [vmem:[%s5598_s30 + $0x22c0] sm:$0xff] }
 0x14e   : > { %2970 = vmatpush.msrb.mxu2 %v1267_v25  ;;  %2989 = vmatpush.msrb.mxu3 %v1301_v26  ;;  %v1389_v44 = vld [vmem:[%s5598_s30 + $0x21d0] sm:$0xff]  ;;  %v1387_v48 = vld [vmem:[%s5598_s30 + $0x21c0] sm:$0xff] }
 0x14f   : > { %2931 = vmatmul.f32.vlgmr.msrb.gmra.mxu0 %v271_v27  ;;  %2971 = vmatmul.f32.vlgmr.msrb.gmra.mxu2 %v273_v28  ;;  %v1453_v46 = vld [vmem:[%s5598_s30 + $0x23d0] sm:$0xff]  ;;  %v1451_v50 = vld [vmem:[%s5598_s30 + $0x23c0] sm:$0xff] }
 0x150   : > { %2995 = vmatpush.msra.mxu0 %v1361_v29  ;;  %3035 = vmatpush.msra.mxu2 %v1425_v30  ;;  %v1353_v47 = vld [vmem:[%s5598_s30 + $0x20b0] sm:$0xff]  ;;  %v1351_v51 = vld [vmem:[%s5598_s30 + $0x20a0] sm:$0xff] }
 0x151   : > { %2950 = vmatpush.msrb.mxu1 %v1235_v31  ;;  %2990 = vmatpush.msrb.mxu3 %v1299_v32  ;;  %v1417_v49 = vld [vmem:[%s5598_s30 + $0x22b0] sm:$0xff]  ;;  %v1415_v53 = vld [vmem:[%s5598_s30 + $0x22a0] sm:$0xff] }
 0x152   : > { %2951 = vmatmul.f32.vlgmr.msrb.gmra.mxu1 %v272_v33  ;;  %2991 = vmatmul.f32.vlgmr.msrb.gmra.mxu3 %v274_v34  ;;  %v1385_v52 = vld [vmem:[%s5598_s30 + $0x21b0] sm:$0xff]  ;;  %v1383_v56 = vld [vmem:[%s5598_s30 + $0x21a0] sm:$0xff] }
 0x153   : > { %2996 = vmatpush.msra.mxu0 %v1359_v35  ;;  %3015 = vmatpush.msra.mxu1 %v1393_v36  ;;  %v1449_v54 = vld [vmem:[%s5598_s30 + $0x23b0] sm:$0xff]  ;;  %v1447_v58 = vld [vmem:[%s5598_s30 + $0x23a0] sm:$0xff] }
 0x154   : > { %3036 = vmatpush.msra.mxu2 %v1423_v37  ;;  %3055 = vmatpush.msra.mxu3 %v1457_v38  ;;  %v1349_v55 = vld [vmem:[%s5598_s30 + $0x2090] sm:$0xff]  ;;  %v1347_v59 = vld [vmem:[%s5598_s30 + $0x2080] sm:$0xff]  ;;  %v276_v37 = vld [vmem:[%s5592_s8 + $0x108] sm:$0xff] }
 0x155   : > { %2997 = vmatpush.msra.mxu0 %v1357_v39  ;;  %3016 = vmatpush.msra.mxu1 %v1391_v40  ;;  %v1413_v57 = vld [vmem:[%s5598_s30 + $0x2290] sm:$0xff]  ;;  %v1411_v61 = vld [vmem:[%s5598_s30 + $0x2280] sm:$0xff]  ;;  %v278_v38 = vld [vmem:[%s5592_s8 + $0x118] sm:$0xff] }
 0x156   : > { %3037 = vmatpush.msra.mxu2 %v1421_v41  ;;  %3056 = vmatpush.msra.mxu3 %v1455_v42  ;;  %v1381_v60 = vld [vmem:[%s5598_s30 + $0x2190] sm:$0xff]  ;;  %v1379_v0 = vld [vmem:[%s5598_s30 + $0x2180] sm:$0xff] }
 0x157   : > { %2998 = vmatpush.msra.mxu0 %v1355_v43  ;;  %3017 = vmatpush.msra.mxu1 %v1389_v44  ;;  %v1445_v62 = vld [vmem:[%s5598_s30 + $0x2390] sm:$0xff]  ;;  %v1443_v2 = vld [vmem:[%s5598_s30 + $0x2380] sm:$0xff] }
 0x158   : > { %3038 = vmatpush.msra.mxu2 %v1419_v45  ;;  %3057 = vmatpush.msra.mxu3 %v1453_v46  ;;  %v1345_v63 = vld [vmem:[%s5598_s30 + $0x2070] sm:$0xff]  ;;  %v1343_v3 = vld [vmem:[%s5598_s30 + $0x2060] sm:$0xff] }
 0x159   : > { %2999 = vmatpush.msra.mxu0 %v1353_v47  ;;  %3018 = vmatpush.msra.mxu1 %v1387_v48  ;;  %v1409_v1 = vld [vmem:[%s5598_s30 + $0x2270] sm:$0xff]  ;;  %v1407_v5 = vld [vmem:[%s5598_s30 + $0x2260] sm:$0xff] }
 0x15a   : > { %3039 = vmatpush.msra.mxu2 %v1417_v49  ;;  %3058 = vmatpush.msra.mxu3 %v1451_v50  ;;  %v1377_v4 = vld [vmem:[%s5598_s30 + $0x2170] sm:$0xff]  ;;  %v1375_v8 = vld [vmem:[%s5598_s30 + $0x2160] sm:$0xff] }
 0x15b   : > { %3000 = vmatpush.msra.mxu0 %v1351_v51  ;;  %3019 = vmatpush.msra.mxu1 %v1385_v52  ;;  %v1441_v6 = vld [vmem:[%s5598_s30 + $0x2370] sm:$0xff]  ;;  %v1439_v10 = vld [vmem:[%s5598_s30 + $0x2360] sm:$0xff] }
 0x15c   : > { %3040 = vmatpush.msra.mxu2 %v1415_v53  ;;  %3059 = vmatpush.msra.mxu3 %v1449_v54  ;;  %v1341_v7 = vld [vmem:[%s5598_s30 + $0x2050] sm:$0xff]  ;;  %v1339_v11 = vld [vmem:[%s5598_s30 + $0x2040] sm:$0xff] }
 0x15d   : > { %3001 = vmatpush.msra.mxu0 %v1349_v55  ;;  %3020 = vmatpush.msra.mxu1 %v1383_v56  ;;  %v1405_v9 = vld [vmem:[%s5598_s30 + $0x2250] sm:$0xff]  ;;  %v1403_v13 = vld [vmem:[%s5598_s30 + $0x2240] sm:$0xff] }
 0x15e   : > { %3041 = vmatpush.msra.mxu2 %v1413_v57  ;;  %3060 = vmatpush.msra.mxu3 %v1447_v58  ;;  %v1373_v12 = vld [vmem:[%s5598_s30 + $0x2150] sm:$0xff]  ;;  %v1371_v16 = vld [vmem:[%s5598_s30 + $0x2140] sm:$0xff] }
 0x15f   : > { %3002 = vmatpush.msra.mxu0 %v1347_v59  ;;  %3021 = vmatpush.msra.mxu1 %v1381_v60  ;;  %v1437_v14 = vld [vmem:[%s5598_s30 + $0x2350] sm:$0xff]  ;;  %v1435_v18 = vld [vmem:[%s5598_s30 + $0x2340] sm:$0xff] }
 0x160   : > { %3042 = vmatpush.msra.mxu2 %v1411_v61  ;;  %3061 = vmatpush.msra.mxu3 %v1445_v62  ;;  %v1337_v15 = vld [vmem:[%s5598_s30 + $0x2030] sm:$0xff]  ;;  %v1335_v19 = vld [vmem:[%s5598_s30 + $0x2020] sm:$0xff] }
 0x161   : > { %3003 = vmatpush.msra.mxu0 %v1345_v63  ;;  %3022 = vmatpush.msra.mxu1 %v1379_v0  ;;  %v1401_v17 = vld [vmem:[%s5598_s30 + $0x2230] sm:$0xff]  ;;  %v1399_v21 = vld [vmem:[%s5598_s30 + $0x2220] sm:$0xff] }
 0x162   : > { %3043 = vmatpush.msra.mxu2 %v1409_v1  ;;  %3062 = vmatpush.msra.mxu3 %v1443_v2  ;;  %v1369_v20 = vld [vmem:[%s5598_s30 + $0x2130] sm:$0xff]  ;;  %v1367_v24 = vld [vmem:[%s5598_s30 + $0x2120] sm:$0xff] }
 0x163   : > { %3004 = vmatpush.msra.mxu0 %v1343_v3  ;;  %3023 = vmatpush.msra.mxu1 %v1377_v4  ;;  %v1433_v22 = vld [vmem:[%s5598_s30 + $0x2330] sm:$0xff]  ;;  %v1431_v26 = vld [vmem:[%s5598_s30 + $0x2320] sm:$0xff] }
 0x164   : > { %3044 = vmatpush.msra.mxu2 %v1407_v5  ;;  %3063 = vmatpush.msra.mxu3 %v1441_v6  ;;  %v1333_v23 = vld [vmem:[%s5598_s30 + $0x2010] sm:$0xff]  ;;  %v1331_v27 = vld [vmem:[%s5598_s30 + $0x2000] sm:$0xff] }
 0x165   : > { %3005 = vmatpush.msra.mxu0 %v1341_v7  ;;  %3024 = vmatpush.msra.mxu1 %v1375_v8  ;;  %v1397_v25 = vld [vmem:[%s5598_s30 + $0x2210] sm:$0xff]  ;;  %v1395_v29 = vld [vmem:[%s5598_s30 + $0x2200] sm:$0xff] }
 0x166   : > { %3045 = vmatpush.msra.mxu2 %v1405_v9  ;;  %3064 = vmatpush.msra.mxu3 %v1439_v10  ;;  %v1365_v28 = vld [vmem:[%s5598_s30 + $0x2110] sm:$0xff]  ;;  %v275_v31 = vld [vmem:[%s5592_s8 + $0x100] sm:$0xff] }
 0x167   : > { %3006 = vmatpush.msra.mxu0 %v1339_v11  ;;  %3025 = vmatpush.msra.mxu1 %v1373_v12  ;;  %v1429_v30 = vld [vmem:[%s5598_s30 + $0x2310] sm:$0xff]  ;;  %v1363_v35 = vld [vmem:[%s5598_s30 + $0x2100] sm:$0xff] }
 0x168   : > { %3046 = vmatpush.msra.mxu2 %v1403_v13  ;;  %3065 = vmatpush.msra.mxu3 %v1437_v14  ;;  %v277_v32 = vld [vmem:[%s5592_s8 + $0x110] sm:$0xff]  ;;  %v1427_v36 = vld [vmem:[%s5598_s30 + $0x2300] sm:$0xff] }
 0x169   : > { %3007 = vmatpush.msra.mxu0 %v1337_v15  ;;  %3026 = vmatpush.msra.mxu1 %v1371_v16  ;;  %v1489_v33 = vld [vmem:[%s5598_s30 + $0x24f0] sm:$0xff]  ;;  %v1487_v39 = vld [vmem:[%s5598_s30 + $0x24e0] sm:$0xff] }
 0x16a   : > { %3047 = vmatpush.msra.mxu2 %v1401_v17  ;;  %3066 = vmatpush.msra.mxu3 %v1435_v18  ;;  %v1553_v34 = vld [vmem:[%s5598_s30 + $0x26f0] sm:$0xff]  ;;  %v1551_v41 = vld [vmem:[%s5598_s30 + $0x26e0] sm:$0xff] }
 0x16b   : > { %3008 = vmatpush.msra.mxu0 %v1335_v19  ;;  %3027 = vmatpush.msra.mxu1 %v1369_v20  ;;  %v1521_v40 = vld [vmem:[%s5598_s30 + $0x25f0] sm:$0xff]  ;;  %v1519_v44 = vld [vmem:[%s5598_s30 + $0x25e0] sm:$0xff] }
 0x16c   : > { %3048 = vmatpush.msra.mxu2 %v1399_v21  ;;  %3067 = vmatpush.msra.mxu3 %v1433_v22  ;;  %v1585_v42 = vld [vmem:[%s5598_s30 + $0x27f0] sm:$0xff]  ;;  %v1583_v46 = vld [vmem:[%s5598_s30 + $0x27e0] sm:$0xff] }
 0x16d   : > { %3009 = vmatpush.msra.mxu0 %v1333_v23  ;;  %3028 = vmatpush.msra.mxu1 %v1367_v24  ;;  %v1485_v43 = vld [vmem:[%s5598_s30 + $0x24d0] sm:$0xff]  ;;  %v1483_v47 = vld [vmem:[%s5598_s30 + $0x24c0] sm:$0xff] }
 0x16e   : > { %3049 = vmatpush.msra.mxu2 %v1397_v25  ;;  %3068 = vmatpush.msra.mxu3 %v1431_v26  ;;  %v1549_v45 = vld [vmem:[%s5598_s30 + $0x26d0] sm:$0xff]  ;;  %v1547_v49 = vld [vmem:[%s5598_s30 + $0x26c0] sm:$0xff] }
 0x16f   : > { %3010 = vmatpush.msra.mxu0 %v1331_v27  ;;  %3029 = vmatpush.msra.mxu1 %v1365_v28  ;;  %v1517_v48 = vld [vmem:[%s5598_s30 + $0x25d0] sm:$0xff]  ;;  %v1515_v52 = vld [vmem:[%s5598_s30 + $0x25c0] sm:$0xff] }
 0x170   : > { %3050 = vmatpush.msra.mxu2 %v1395_v29  ;;  %3069 = vmatpush.msra.mxu3 %v1429_v30  ;;  %v1581_v50 = vld [vmem:[%s5598_s30 + $0x27d0] sm:$0xff]  ;;  %v1579_v54 = vld [vmem:[%s5598_s30 + $0x27c0] sm:$0xff] }
 0x171   : > { %3011 = vmatmul.f32.vlgmr.msra.gmra.mxu0 %v275_v31  ;;  %3051 = vmatmul.f32.vlgmr.msra.gmra.mxu2 %v277_v32  ;;  %v1481_v51 = vld [vmem:[%s5598_s30 + $0x24b0] sm:$0xff]  ;;  %v1479_v55 = vld [vmem:[%s5598_s30 + $0x24a0] sm:$0xff] }
 0x172   : > { %3075 = vmatpush.msrb.mxu0 %v1489_v33  ;;  %3115 = vmatpush.msrb.mxu2 %v1553_v34  ;;  %v1545_v53 = vld [vmem:[%s5598_s30 + $0x26b0] sm:$0xff]  ;;  %v1543_v57 = vld [vmem:[%s5598_s30 + $0x26a0] sm:$0xff] }
 0x173   : > { %3030 = vmatpush.msra.mxu1 %v1363_v35  ;;  %3070 = vmatpush.msra.mxu3 %v1427_v36  ;;  %v1513_v56 = vld [vmem:[%s5598_s30 + $0x25b0] sm:$0xff]  ;;  %v1511_v60 = vld [vmem:[%s5598_s30 + $0x25a0] sm:$0xff] }
 0x174   : > { %3031 = vmatmul.f32.vlgmr.msra.gmra.mxu1 %v276_v37  ;;  %3071 = vmatmul.f32.vlgmr.msra.gmra.mxu3 %v278_v38  ;;  %v1577_v58 = vld [vmem:[%s5598_s30 + $0x27b0] sm:$0xff]  ;;  %v1575_v62 = vld [vmem:[%s5598_s30 + $0x27a0] sm:$0xff] }
 0x175   : > { %3076 = vmatpush.msrb.mxu0 %v1487_v39  ;;  %3095 = vmatpush.msrb.mxu1 %v1521_v40  ;;  %v1477_v59 = vld [vmem:[%s5598_s30 + $0x2490] sm:$0xff]  ;;  %v1475_v63 = vld [vmem:[%s5598_s30 + $0x2480] sm:$0xff] }
 0x176   : > { %3116 = vmatpush.msrb.mxu2 %v1551_v41  ;;  %3135 = vmatpush.msrb.mxu3 %v1585_v42  ;;  %v1541_v61 = vld [vmem:[%s5598_s30 + $0x2690] sm:$0xff]  ;;  %v1539_v1 = vld [vmem:[%s5598_s30 + $0x2680] sm:$0xff]  ;;  %v280_v41 = vld [vmem:[%s5592_s8 + $0x128] sm:$0xff] }
 0x177   : > { %3077 = vmatpush.msrb.mxu0 %v1485_v43  ;;  %3096 = vmatpush.msrb.mxu1 %v1519_v44  ;;  %v1509_v0 = vld [vmem:[%s5598_s30 + $0x2590] sm:$0xff]  ;;  %v1507_v4 = vld [vmem:[%s5598_s30 + $0x2580] sm:$0xff]  ;;  %v282_v42 = vld [vmem:[%s5592_s8 + $0x138] sm:$0xff] }
 0x178   : > { %3117 = vmatpush.msrb.mxu2 %v1549_v45  ;;  %3136 = vmatpush.msrb.mxu3 %v1583_v46  ;;  %v1573_v2 = vld [vmem:[%s5598_s30 + $0x2790] sm:$0xff]  ;;  %v1571_v6 = vld [vmem:[%s5598_s30 + $0x2780] sm:$0xff] }
 0x179   : > { %3078 = vmatpush.msrb.mxu0 %v1483_v47  ;;  %3097 = vmatpush.msrb.mxu1 %v1517_v48  ;;  %v1473_v3 = vld [vmem:[%s5598_s30 + $0x2470] sm:$0xff]  ;;  %v1471_v7 = vld [vmem:[%s5598_s30 + $0x2460] sm:$0xff] }
 0x17a   : > { %3118 = vmatpush.msrb.mxu2 %v1547_v49  ;;  %3137 = vmatpush.msrb.mxu3 %v1581_v50  ;;  %v1537_v5 = vld [vmem:[%s5598_s30 + $0x2670] sm:$0xff]  ;;  %v1535_v9 = vld [vmem:[%s5598_s30 + $0x2660] sm:$0xff] }
 0x17b   : > { %3079 = vmatpush.msrb.mxu0 %v1481_v51  ;;  %3098 = vmatpush.msrb.mxu1 %v1515_v52  ;;  %v1505_v8 = vld [vmem:[%s5598_s30 + $0x2570] sm:$0xff]  ;;  %v1503_v12 = vld [vmem:[%s5598_s30 + $0x2560] sm:$0xff] }
 0x17c   : > { %3119 = vmatpush.msrb.mxu2 %v1545_v53  ;;  %3138 = vmatpush.msrb.mxu3 %v1579_v54  ;;  %v1569_v10 = vld [vmem:[%s5598_s30 + $0x2770] sm:$0xff]  ;;  %v1567_v14 = vld [vmem:[%s5598_s30 + $0x2760] sm:$0xff] }
 0x17d   : > { %3080 = vmatpush.msrb.mxu0 %v1479_v55  ;;  %3099 = vmatpush.msrb.mxu1 %v1513_v56  ;;  %v1469_v11 = vld [vmem:[%s5598_s30 + $0x2450] sm:$0xff]  ;;  %v1467_v15 = vld [vmem:[%s5598_s30 + $0x2440] sm:$0xff] }
 0x17e   : > { %3120 = vmatpush.msrb.mxu2 %v1543_v57  ;;  %3139 = vmatpush.msrb.mxu3 %v1577_v58  ;;  %v1533_v13 = vld [vmem:[%s5598_s30 + $0x2650] sm:$0xff]  ;;  %v1531_v17 = vld [vmem:[%s5598_s30 + $0x2640] sm:$0xff] }
 0x17f   : > { %3081 = vmatpush.msrb.mxu0 %v1477_v59  ;;  %3100 = vmatpush.msrb.mxu1 %v1511_v60  ;;  %v1501_v16 = vld [vmem:[%s5598_s30 + $0x2550] sm:$0xff]  ;;  %v1499_v20 = vld [vmem:[%s5598_s30 + $0x2540] sm:$0xff] }
 0x180   : > { %3121 = vmatpush.msrb.mxu2 %v1541_v61  ;;  %3140 = vmatpush.msrb.mxu3 %v1575_v62  ;;  %v1565_v18 = vld [vmem:[%s5598_s30 + $0x2750] sm:$0xff]  ;;  %v1563_v22 = vld [vmem:[%s5598_s30 + $0x2740] sm:$0xff] }
 0x181   : > { %3082 = vmatpush.msrb.mxu0 %v1475_v63  ;;  %3101 = vmatpush.msrb.mxu1 %v1509_v0  ;;  %v1465_v19 = vld [vmem:[%s5598_s30 + $0x2430] sm:$0xff]  ;;  %v1463_v23 = vld [vmem:[%s5598_s30 + $0x2420] sm:$0xff] }
 0x182   : > { %3122 = vmatpush.msrb.mxu2 %v1539_v1  ;;  %3141 = vmatpush.msrb.mxu3 %v1573_v2  ;;  %v1529_v21 = vld [vmem:[%s5598_s30 + $0x2630] sm:$0xff]  ;;  %v1527_v25 = vld [vmem:[%s5598_s30 + $0x2620] sm:$0xff] }
 0x183   : > { %3083 = vmatpush.msrb.mxu0 %v1473_v3  ;;  %3102 = vmatpush.msrb.mxu1 %v1507_v4  ;;  %v1497_v24 = vld [vmem:[%s5598_s30 + $0x2530] sm:$0xff]  ;;  %v1495_v28 = vld [vmem:[%s5598_s30 + $0x2520] sm:$0xff] }
 0x184   : > { %3123 = vmatpush.msrb.mxu2 %v1537_v5  ;;  %3142 = vmatpush.msrb.mxu3 %v1571_v6  ;;  %v1561_v26 = vld [vmem:[%s5598_s30 + $0x2730] sm:$0xff]  ;;  %v1559_v30 = vld [vmem:[%s5598_s30 + $0x2720] sm:$0xff] }
 0x185   : > { %3084 = vmatpush.msrb.mxu0 %v1471_v7  ;;  %3103 = vmatpush.msrb.mxu1 %v1505_v8  ;;  %v1461_v27 = vld [vmem:[%s5598_s30 + $0x2410] sm:$0xff]  ;;  %v1459_v31 = vld [vmem:[%s5598_s30 + $0x2400] sm:$0xff] }
 0x186   : > { %3124 = vmatpush.msrb.mxu2 %v1535_v9  ;;  %3143 = vmatpush.msrb.mxu3 %v1569_v10  ;;  %v1525_v29 = vld [vmem:[%s5598_s30 + $0x2610] sm:$0xff]  ;;  %v1523_v33 = vld [vmem:[%s5598_s30 + $0x2600] sm:$0xff] }
 0x187   : > { %3085 = vmatpush.msrb.mxu0 %v1469_v11  ;;  %3104 = vmatpush.msrb.mxu1 %v1503_v12  ;;  %v1493_v32 = vld [vmem:[%s5598_s30 + $0x2510] sm:$0xff]  ;;  %v279_v35 = vld [vmem:[%s5592_s8 + $0x120] sm:$0xff] }
 0x188   : > { %3125 = vmatpush.msrb.mxu2 %v1533_v13  ;;  %3144 = vmatpush.msrb.mxu3 %v1567_v14  ;;  %v1557_v34 = vld [vmem:[%s5598_s30 + $0x2710] sm:$0xff]  ;;  %v1491_v39 = vld [vmem:[%s5598_s30 + $0x2500] sm:$0xff] }
 0x189   : > { %3086 = vmatpush.msrb.mxu0 %v1467_v15  ;;  %3105 = vmatpush.msrb.mxu1 %v1501_v16  ;;  %v281_v36 = vld [vmem:[%s5592_s8 + $0x130] sm:$0xff]  ;;  %v1555_v40 = vld [vmem:[%s5598_s30 + $0x2700] sm:$0xff] }
 0x18a   : > { %3126 = vmatpush.msrb.mxu2 %v1531_v17  ;;  %3145 = vmatpush.msrb.mxu3 %v1565_v18  ;;  %v1617_v37 = vld [vmem:[%s5598_s30 + $0x28f0] sm:$0xff]  ;;  %v1615_v43 = vld [vmem:[%s5598_s30 + $0x28e0] sm:$0xff] }
 0x18b   : > { %3087 = vmatpush.msrb.mxu0 %v1465_v19  ;;  %3106 = vmatpush.msrb.mxu1 %v1499_v20  ;;  %v1681_v38 = vld [vmem:[%s5598_s30 + $0x2af0] sm:$0xff]  ;;  %v1679_v45 = vld [vmem:[%s5598_s30 + $0x2ae0] sm:$0xff] }
 0x18c   : > { %3127 = vmatpush.msrb.mxu2 %v1529_v21  ;;  %3146 = vmatpush.msrb.mxu3 %v1563_v22  ;;  %v1649_v44 = vld [vmem:[%s5598_s30 + $0x29f0] sm:$0xff]  ;;  %v1647_v48 = vld [vmem:[%s5598_s30 + $0x29e0] sm:$0xff] }
 0x18d   : > { %3088 = vmatpush.msrb.mxu0 %v1463_v23  ;;  %3107 = vmatpush.msrb.mxu1 %v1497_v24  ;;  %v1713_v46 = vld [vmem:[%s5598_s30 + $0x2bf0] sm:$0xff]  ;;  %v1711_v50 = vld [vmem:[%s5598_s30 + $0x2be0] sm:$0xff] }
 0x18e   : > { %3128 = vmatpush.msrb.mxu2 %v1527_v25  ;;  %3147 = vmatpush.msrb.mxu3 %v1561_v26  ;;  %v1613_v47 = vld [vmem:[%s5598_s30 + $0x28d0] sm:$0xff]  ;;  %v1611_v51 = vld [vmem:[%s5598_s30 + $0x28c0] sm:$0xff] }
 0x18f   : > { %3089 = vmatpush.msrb.mxu0 %v1461_v27  ;;  %3108 = vmatpush.msrb.mxu1 %v1495_v28  ;;  %v1677_v49 = vld [vmem:[%s5598_s30 + $0x2ad0] sm:$0xff]  ;;  %v1675_v53 = vld [vmem:[%s5598_s30 + $0x2ac0] sm:$0xff] }
 0x190   : > { %3129 = vmatpush.msrb.mxu2 %v1525_v29  ;;  %3148 = vmatpush.msrb.mxu3 %v1559_v30  ;;  %v1645_v52 = vld [vmem:[%s5598_s30 + $0x29d0] sm:$0xff]  ;;  %v1643_v56 = vld [vmem:[%s5598_s30 + $0x29c0] sm:$0xff] }
 0x191   : > { %3090 = vmatpush.msrb.mxu0 %v1459_v31  ;;  %3109 = vmatpush.msrb.mxu1 %v1493_v32  ;;  %v1709_v54 = vld [vmem:[%s5598_s30 + $0x2bd0] sm:$0xff]  ;;  %v1707_v58 = vld [vmem:[%s5598_s30 + $0x2bc0] sm:$0xff] }
 0x192   : > { %3130 = vmatpush.msrb.mxu2 %v1523_v33  ;;  %3149 = vmatpush.msrb.mxu3 %v1557_v34  ;;  %v1609_v55 = vld [vmem:[%s5598_s30 + $0x28b0] sm:$0xff]  ;;  %v1607_v59 = vld [vmem:[%s5598_s30 + $0x28a0] sm:$0xff] }
 0x193   : > { %3091 = vmatmul.f32.vlgmr.msrb.gmra.mxu0 %v279_v35  ;;  %3131 = vmatmul.f32.vlgmr.msrb.gmra.mxu2 %v281_v36  ;;  %v1673_v57 = vld [vmem:[%s5598_s30 + $0x2ab0] sm:$0xff]  ;;  %v1671_v61 = vld [vmem:[%s5598_s30 + $0x2aa0] sm:$0xff] }
 0x194   : > { %3155 = vmatpush.msra.mxu0 %v1617_v37  ;;  %3195 = vmatpush.msra.mxu2 %v1681_v38  ;;  %v1641_v60 = vld [vmem:[%s5598_s30 + $0x29b0] sm:$0xff]  ;;  %v1639_v0 = vld [vmem:[%s5598_s30 + $0x29a0] sm:$0xff] }
 0x195   : > { %3110 = vmatpush.msrb.mxu1 %v1491_v39  ;;  %3150 = vmatpush.msrb.mxu3 %v1555_v40  ;;  %v1705_v62 = vld [vmem:[%s5598_s30 + $0x2bb0] sm:$0xff]  ;;  %v1703_v2 = vld [vmem:[%s5598_s30 + $0x2ba0] sm:$0xff] }
 0x196   : > { %3111 = vmatmul.f32.vlgmr.msrb.gmra.mxu1 %v280_v41  ;;  %3151 = vmatmul.f32.vlgmr.msrb.gmra.mxu3 %v282_v42  ;;  %v1605_v63 = vld [vmem:[%s5598_s30 + $0x2890] sm:$0xff]  ;;  %v1603_v3 = vld [vmem:[%s5598_s30 + $0x2880] sm:$0xff] }
 0x197   : > { %3156 = vmatpush.msra.mxu0 %v1615_v43  ;;  %3175 = vmatpush.msra.mxu1 %v1649_v44  ;;  %v1669_v1 = vld [vmem:[%s5598_s30 + $0x2a90] sm:$0xff]  ;;  %v1667_v5 = vld [vmem:[%s5598_s30 + $0x2a80] sm:$0xff] }
 0x198   : > { %3196 = vmatpush.msra.mxu2 %v1679_v45  ;;  %3215 = vmatpush.msra.mxu3 %v1713_v46  ;;  %v1637_v4 = vld [vmem:[%s5598_s30 + $0x2990] sm:$0xff]  ;;  %v1635_v8 = vld [vmem:[%s5598_s30 + $0x2980] sm:$0xff]  ;;  %v284_v45 = vld [vmem:[%s5592_s8 + $0x148] sm:$0xff] }
 0x199   : > { %3157 = vmatpush.msra.mxu0 %v1613_v47  ;;  %3176 = vmatpush.msra.mxu1 %v1647_v48  ;;  %v1701_v6 = vld [vmem:[%s5598_s30 + $0x2b90] sm:$0xff]  ;;  %v1699_v10 = vld [vmem:[%s5598_s30 + $0x2b80] sm:$0xff]  ;;  %v286_v46 = vld [vmem:[%s5592_s8 + $0x158] sm:$0xff] }
 0x19a   : > { %3197 = vmatpush.msra.mxu2 %v1677_v49  ;;  %3216 = vmatpush.msra.mxu3 %v1711_v50  ;;  %v1601_v7 = vld [vmem:[%s5598_s30 + $0x2870] sm:$0xff]  ;;  %v1599_v11 = vld [vmem:[%s5598_s30 + $0x2860] sm:$0xff] }
 0x19b   : > { %3158 = vmatpush.msra.mxu0 %v1611_v51  ;;  %3177 = vmatpush.msra.mxu1 %v1645_v52  ;;  %v1665_v9 = vld [vmem:[%s5598_s30 + $0x2a70] sm:$0xff]  ;;  %v1663_v13 = vld [vmem:[%s5598_s30 + $0x2a60] sm:$0xff] }
 0x19c   : > { %3198 = vmatpush.msra.mxu2 %v1675_v53  ;;  %3217 = vmatpush.msra.mxu3 %v1709_v54  ;;  %v1633_v12 = vld [vmem:[%s5598_s30 + $0x2970] sm:$0xff]  ;;  %v1631_v16 = vld [vmem:[%s5598_s30 + $0x2960] sm:$0xff] }
 0x19d   : > { %3159 = vmatpush.msra.mxu0 %v1609_v55  ;;  %3178 = vmatpush.msra.mxu1 %v1643_v56  ;;  %v1697_v14 = vld [vmem:[%s5598_s30 + $0x2b70] sm:$0xff]  ;;  %v1695_v18 = vld [vmem:[%s5598_s30 + $0x2b60] sm:$0xff] }
 0x19e   : > { %3199 = vmatpush.msra.mxu2 %v1673_v57  ;;  %3218 = vmatpush.msra.mxu3 %v1707_v58  ;;  %v1597_v15 = vld [vmem:[%s5598_s30 + $0x2850] sm:$0xff]  ;;  %v1595_v19 = vld [vmem:[%s5598_s30 + $0x2840] sm:$0xff] }
 0x19f   : > { %3160 = vmatpush.msra.mxu0 %v1607_v59  ;;  %3179 = vmatpush.msra.mxu1 %v1641_v60  ;;  %v1661_v17 = vld [vmem:[%s5598_s30 + $0x2a50] sm:$0xff]  ;;  %v1659_v21 = vld [vmem:[%s5598_s30 + $0x2a40] sm:$0xff] }
 0x1a0   : > { %3200 = vmatpush.msra.mxu2 %v1671_v61  ;;  %3219 = vmatpush.msra.mxu3 %v1705_v62  ;;  %v1629_v20 = vld [vmem:[%s5598_s30 + $0x2950] sm:$0xff]  ;;  %v1627_v24 = vld [vmem:[%s5598_s30 + $0x2940] sm:$0xff] }
 0x1a1   : > { %3161 = vmatpush.msra.mxu0 %v1605_v63  ;;  %3180 = vmatpush.msra.mxu1 %v1639_v0  ;;  %v1693_v22 = vld [vmem:[%s5598_s30 + $0x2b50] sm:$0xff]  ;;  %v1691_v26 = vld [vmem:[%s5598_s30 + $0x2b40] sm:$0xff] }
 0x1a2   : > { %3201 = vmatpush.msra.mxu2 %v1669_v1  ;;  %3220 = vmatpush.msra.mxu3 %v1703_v2  ;;  %v1593_v23 = vld [vmem:[%s5598_s30 + $0x2830] sm:$0xff]  ;;  %v1591_v27 = vld [vmem:[%s5598_s30 + $0x2820] sm:$0xff] }
 0x1a3   : > { %3162 = vmatpush.msra.mxu0 %v1603_v3  ;;  %3181 = vmatpush.msra.mxu1 %v1637_v4  ;;  %v1657_v25 = vld [vmem:[%s5598_s30 + $0x2a30] sm:$0xff]  ;;  %v1655_v29 = vld [vmem:[%s5598_s30 + $0x2a20] sm:$0xff] }
 0x1a4   : > { %3202 = vmatpush.msra.mxu2 %v1667_v5  ;;  %3221 = vmatpush.msra.mxu3 %v1701_v6  ;;  %v1625_v28 = vld [vmem:[%s5598_s30 + $0x2930] sm:$0xff]  ;;  %v1623_v32 = vld [vmem:[%s5598_s30 + $0x2920] sm:$0xff] }
 0x1a5   : > { %3163 = vmatpush.msra.mxu0 %v1601_v7  ;;  %3182 = vmatpush.msra.mxu1 %v1635_v8  ;;  %v1689_v30 = vld [vmem:[%s5598_s30 + $0x2b30] sm:$0xff]  ;;  %v1687_v34 = vld [vmem:[%s5598_s30 + $0x2b20] sm:$0xff] }
 0x1a6   : > { %3203 = vmatpush.msra.mxu2 %v1665_v9  ;;  %3222 = vmatpush.msra.mxu3 %v1699_v10  ;;  %v1589_v31 = vld [vmem:[%s5598_s30 + $0x2810] sm:$0xff]  ;;  %v1587_v35 = vld [vmem:[%s5598_s30 + $0x2800] sm:$0xff] }
 0x1a7   : > { %3164 = vmatpush.msra.mxu0 %v1599_v11  ;;  %3183 = vmatpush.msra.mxu1 %v1633_v12  ;;  %v1653_v33 = vld [vmem:[%s5598_s30 + $0x2a10] sm:$0xff]  ;;  %v1651_v37 = vld [vmem:[%s5598_s30 + $0x2a00] sm:$0xff] }
 0x1a8   : > { %3204 = vmatpush.msra.mxu2 %v1663_v13  ;;  %3223 = vmatpush.msra.mxu3 %v1697_v14  ;;  %v1621_v36 = vld [vmem:[%s5598_s30 + $0x2910] sm:$0xff]  ;;  %v283_v39 = vld [vmem:[%s5592_s8 + $0x140] sm:$0xff] }
 0x1a9   : > { %3165 = vmatpush.msra.mxu0 %v1597_v15  ;;  %3184 = vmatpush.msra.mxu1 %v1631_v16  ;;  %v1685_v38 = vld [vmem:[%s5598_s30 + $0x2b10] sm:$0xff]  ;;  %v1619_v43 = vld [vmem:[%s5598_s30 + $0x2900] sm:$0xff] }
 0x1aa   : > { %3205 = vmatpush.msra.mxu2 %v1661_v17  ;;  %3224 = vmatpush.msra.mxu3 %v1695_v18  ;;  %v285_v40 = vld [vmem:[%s5592_s8 + $0x150] sm:$0xff]  ;;  %v1683_v44 = vld [vmem:[%s5598_s30 + $0x2b00] sm:$0xff] }
 0x1ab   : > { %3166 = vmatpush.msra.mxu0 %v1595_v19  ;;  %3185 = vmatpush.msra.mxu1 %v1629_v20  ;;  %v1745_v41 = vld [vmem:[%s5598_s30 + $0x2cf0] sm:$0xff]  ;;  %v1743_v47 = vld [vmem:[%s5598_s30 + $0x2ce0] sm:$0xff] }
 0x1ac   : > { %3206 = vmatpush.msra.mxu2 %v1659_v21  ;;  %3225 = vmatpush.msra.mxu3 %v1693_v22  ;;  %v1809_v42 = vld [vmem:[%s5598_s30 + $0x2ef0] sm:$0xff]  ;;  %v1807_v49 = vld [vmem:[%s5598_s30 + $0x2ee0] sm:$0xff] }
 0x1ad   : > { %3167 = vmatpush.msra.mxu0 %v1593_v23  ;;  %3186 = vmatpush.msra.mxu1 %v1627_v24  ;;  %v1777_v48 = vld [vmem:[%s5598_s30 + $0x2df0] sm:$0xff]  ;;  %v1775_v52 = vld [vmem:[%s5598_s30 + $0x2de0] sm:$0xff] }
 0x1ae   : > { %3207 = vmatpush.msra.mxu2 %v1657_v25  ;;  %3226 = vmatpush.msra.mxu3 %v1691_v26  ;;  %v1841_v50 = vld [vmem:[%s5598_s30 + $0x2ff0] sm:$0xff]  ;;  %v1839_v54 = vld [vmem:[%s5598_s30 + $0x2fe0] sm:$0xff] }
 0x1af   : > { %3168 = vmatpush.msra.mxu0 %v1591_v27  ;;  %3187 = vmatpush.msra.mxu1 %v1625_v28  ;;  %v1741_v51 = vld [vmem:[%s5598_s30 + $0x2cd0] sm:$0xff]  ;;  %v1739_v55 = vld [vmem:[%s5598_s30 + $0x2cc0] sm:$0xff] }
 0x1b0   : > { %3208 = vmatpush.msra.mxu2 %v1655_v29  ;;  %3227 = vmatpush.msra.mxu3 %v1689_v30  ;;  %v1805_v53 = vld [vmem:[%s5598_s30 + $0x2ed0] sm:$0xff]  ;;  %v1803_v57 = vld [vmem:[%s5598_s30 + $0x2ec0] sm:$0xff] }
 0x1b1   : > { %3169 = vmatpush.msra.mxu0 %v1589_v31  ;;  %3188 = vmatpush.msra.mxu1 %v1623_v32  ;;  %v1773_v56 = vld [vmem:[%s5598_s30 + $0x2dd0] sm:$0xff]  ;;  %v1771_v60 = vld [vmem:[%s5598_s30 + $0x2dc0] sm:$0xff] }
 0x1b2   : > { %3209 = vmatpush.msra.mxu2 %v1653_v33  ;;  %3228 = vmatpush.msra.mxu3 %v1687_v34  ;;  %v1837_v58 = vld [vmem:[%s5598_s30 + $0x2fd0] sm:$0xff]  ;;  %v1835_v62 = vld [vmem:[%s5598_s30 + $0x2fc0] sm:$0xff] }
 0x1b3   : > { %3170 = vmatpush.msra.mxu0 %v1587_v35  ;;  %3189 = vmatpush.msra.mxu1 %v1621_v36  ;;  %v1737_v59 = vld [vmem:[%s5598_s30 + $0x2cb0] sm:$0xff]  ;;  %v1735_v63 = vld [vmem:[%s5598_s30 + $0x2ca0] sm:$0xff] }
 0x1b4   : > { %3210 = vmatpush.msra.mxu2 %v1651_v37  ;;  %3229 = vmatpush.msra.mxu3 %v1685_v38  ;;  %v1801_v61 = vld [vmem:[%s5598_s30 + $0x2eb0] sm:$0xff]  ;;  %v1799_v1 = vld [vmem:[%s5598_s30 + $0x2ea0] sm:$0xff] }
 0x1b5   : > { %3171 = vmatmul.f32.vlgmr.msra.gmra.mxu0 %v283_v39  ;;  %3211 = vmatmul.f32.vlgmr.msra.gmra.mxu2 %v285_v40  ;;  %v1769_v0 = vld [vmem:[%s5598_s30 + $0x2db0] sm:$0xff]  ;;  %v1767_v4 = vld [vmem:[%s5598_s30 + $0x2da0] sm:$0xff] }
 0x1b6   : > { %3235 = vmatpush.msrb.mxu0 %v1745_v41  ;;  %3275 = vmatpush.msrb.mxu2 %v1809_v42  ;;  %v1833_v2 = vld [vmem:[%s5598_s30 + $0x2fb0] sm:$0xff]  ;;  %v1831_v6 = vld [vmem:[%s5598_s30 + $0x2fa0] sm:$0xff] }
 0x1b7   : > { %3190 = vmatpush.msra.mxu1 %v1619_v43  ;;  %3230 = vmatpush.msra.mxu3 %v1683_v44  ;;  %v1733_v3 = vld [vmem:[%s5598_s30 + $0x2c90] sm:$0xff]  ;;  %v1731_v7 = vld [vmem:[%s5598_s30 + $0x2c80] sm:$0xff] }
 0x1b8   : > { %3191 = vmatmul.f32.vlgmr.msra.gmra.mxu1 %v284_v45  ;;  %3231 = vmatmul.f32.vlgmr.msra.gmra.mxu3 %v286_v46  ;;  %v1797_v5 = vld [vmem:[%s5598_s30 + $0x2e90] sm:$0xff]  ;;  %v1795_v9 = vld [vmem:[%s5598_s30 + $0x2e80] sm:$0xff] }
 0x1b9   : > { %3236 = vmatpush.msrb.mxu0 %v1743_v47  ;;  %3255 = vmatpush.msrb.mxu1 %v1777_v48  ;;  %v1765_v8 = vld [vmem:[%s5598_s30 + $0x2d90] sm:$0xff]  ;;  %v1763_v12 = vld [vmem:[%s5598_s30 + $0x2d80] sm:$0xff] }
 0x1ba   : > { %3276 = vmatpush.msrb.mxu2 %v1807_v49  ;;  %3295 = vmatpush.msrb.mxu3 %v1841_v50  ;;  %v1829_v10 = vld [vmem:[%s5598_s30 + $0x2f90] sm:$0xff]  ;;  %v1827_v14 = vld [vmem:[%s5598_s30 + $0x2f80] sm:$0xff]  ;;  %v288_v49 = vld [vmem:[%s5592_s8 + $0x168] sm:$0xff] }
 0x1bb   : > { %3237 = vmatpush.msrb.mxu0 %v1741_v51  ;;  %3256 = vmatpush.msrb.mxu1 %v1775_v52  ;;  %v1729_v11 = vld [vmem:[%s5598_s30 + $0x2c70] sm:$0xff]  ;;  %v1727_v15 = vld [vmem:[%s5598_s30 + $0x2c60] sm:$0xff]  ;;  %v290_v50 = vld [vmem:[%s5592_s8 + $0x178] sm:$0xff] }
 0x1bc   : > { %3277 = vmatpush.msrb.mxu2 %v1805_v53  ;;  %3296 = vmatpush.msrb.mxu3 %v1839_v54  ;;  %v1793_v13 = vld [vmem:[%s5598_s30 + $0x2e70] sm:$0xff]  ;;  %v1791_v17 = vld [vmem:[%s5598_s30 + $0x2e60] sm:$0xff] }
 0x1bd   : > { %3238 = vmatpush.msrb.mxu0 %v1739_v55  ;;  %3257 = vmatpush.msrb.mxu1 %v1773_v56  ;;  %v1761_v16 = vld [vmem:[%s5598_s30 + $0x2d70] sm:$0xff]  ;;  %v1759_v20 = vld [vmem:[%s5598_s30 + $0x2d60] sm:$0xff] }
 0x1be   : > { %3278 = vmatpush.msrb.mxu2 %v1803_v57  ;;  %3297 = vmatpush.msrb.mxu3 %v1837_v58  ;;  %v1825_v18 = vld [vmem:[%s5598_s30 + $0x2f70] sm:$0xff]  ;;  %v1823_v22 = vld [vmem:[%s5598_s30 + $0x2f60] sm:$0xff] }
 0x1bf   : > { %3239 = vmatpush.msrb.mxu0 %v1737_v59  ;;  %3258 = vmatpush.msrb.mxu1 %v1771_v60  ;;  %v1725_v19 = vld [vmem:[%s5598_s30 + $0x2c50] sm:$0xff]  ;;  %v1723_v23 = vld [vmem:[%s5598_s30 + $0x2c40] sm:$0xff] }
 0x1c0   : > { %3279 = vmatpush.msrb.mxu2 %v1801_v61  ;;  %3298 = vmatpush.msrb.mxu3 %v1835_v62  ;;  %v1789_v21 = vld [vmem:[%s5598_s30 + $0x2e50] sm:$0xff]  ;;  %v1787_v25 = vld [vmem:[%s5598_s30 + $0x2e40] sm:$0xff] }
 0x1c1   : > { %3240 = vmatpush.msrb.mxu0 %v1735_v63  ;;  %3259 = vmatpush.msrb.mxu1 %v1769_v0  ;;  %v1757_v24 = vld [vmem:[%s5598_s30 + $0x2d50] sm:$0xff]  ;;  %v1755_v28 = vld [vmem:[%s5598_s30 + $0x2d40] sm:$0xff] }
 0x1c2   : > { %3280 = vmatpush.msrb.mxu2 %v1799_v1  ;;  %3299 = vmatpush.msrb.mxu3 %v1833_v2  ;;  %v1821_v26 = vld [vmem:[%s5598_s30 + $0x2f50] sm:$0xff]  ;;  %v1819_v30 = vld [vmem:[%s5598_s30 + $0x2f40] sm:$0xff] }
 0x1c3   : > { %3241 = vmatpush.msrb.mxu0 %v1733_v3  ;;  %3260 = vmatpush.msrb.mxu1 %v1767_v4  ;;  %v1721_v27 = vld [vmem:[%s5598_s30 + $0x2c30] sm:$0xff]  ;;  %v1719_v31 = vld [vmem:[%s5598_s30 + $0x2c20] sm:$0xff] }
 0x1c4   : > { %3281 = vmatpush.msrb.mxu2 %v1797_v5  ;;  %3300 = vmatpush.msrb.mxu3 %v1831_v6  ;;  %v1785_v29 = vld [vmem:[%s5598_s30 + $0x2e30] sm:$0xff]  ;;  %v1783_v33 = vld [vmem:[%s5598_s30 + $0x2e20] sm:$0xff] }
 0x1c5   : > { %3242 = vmatpush.msrb.mxu0 %v1731_v7  ;;  %3261 = vmatpush.msrb.mxu1 %v1765_v8  ;;  %v1753_v32 = vld [vmem:[%s5598_s30 + $0x2d30] sm:$0xff]  ;;  %v1751_v36 = vld [vmem:[%s5598_s30 + $0x2d20] sm:$0xff] }
 0x1c6   : > { %3282 = vmatpush.msrb.mxu2 %v1795_v9  ;;  %3301 = vmatpush.msrb.mxu3 %v1829_v10  ;;  %v1817_v34 = vld [vmem:[%s5598_s30 + $0x2f30] sm:$0xff]  ;;  %v1815_v38 = vld [vmem:[%s5598_s30 + $0x2f20] sm:$0xff] }
 0x1c7   : > { %3243 = vmatpush.msrb.mxu0 %v1729_v11  ;;  %3262 = vmatpush.msrb.mxu1 %v1763_v12  ;;  %v1717_v35 = vld [vmem:[%s5598_s30 + $0x2c10] sm:$0xff]  ;;  %v1715_v39 = vld [vmem:[%s5598_s30 + $0x2c00] sm:$0xff] }
 0x1c8   : > { %3283 = vmatpush.msrb.mxu2 %v1793_v13  ;;  %3302 = vmatpush.msrb.mxu3 %v1827_v14  ;;  %v1781_v37 = vld [vmem:[%s5598_s30 + $0x2e10] sm:$0xff]  ;;  %v1779_v41 = vld [vmem:[%s5598_s30 + $0x2e00] sm:$0xff] }
 0x1c9   : > { %3244 = vmatpush.msrb.mxu0 %v1727_v15  ;;  %3263 = vmatpush.msrb.mxu1 %v1761_v16  ;;  %v1749_v40 = vld [vmem:[%s5598_s30 + $0x2d10] sm:$0xff]  ;;  %v287_v43 = vld [vmem:[%s5592_s8 + $0x160] sm:$0xff] }
 0x1ca   : > { %3284 = vmatpush.msrb.mxu2 %v1791_v17  ;;  %3303 = vmatpush.msrb.mxu3 %v1825_v18  ;;  %v1813_v42 = vld [vmem:[%s5598_s30 + $0x2f10] sm:$0xff]  ;;  %v1747_v47 = vld [vmem:[%s5598_s30 + $0x2d00] sm:$0xff] }
 0x1cb   : > { %3245 = vmatpush.msrb.mxu0 %v1725_v19  ;;  %3264 = vmatpush.msrb.mxu1 %v1759_v20  ;;  %v289_v44 = vld [vmem:[%s5592_s8 + $0x170] sm:$0xff]  ;;  %v1811_v48 = vld [vmem:[%s5598_s30 + $0x2f00] sm:$0xff] }
 0x1cc   : > { %3285 = vmatpush.msrb.mxu2 %v1789_v21  ;;  %3304 = vmatpush.msrb.mxu3 %v1823_v22  ;;  %v1873_v45 = vld [vmem:[%s5598_s30 + $0x30f0] sm:$0xff]  ;;  %v1871_v51 = vld [vmem:[%s5598_s30 + $0x30e0] sm:$0xff] }
 0x1cd   : > { %3246 = vmatpush.msrb.mxu0 %v1723_v23  ;;  %3265 = vmatpush.msrb.mxu1 %v1757_v24  ;;  %v1937_v46 = vld [vmem:[%s5598_s30 + $0x32f0] sm:$0xff]  ;;  %v1935_v53 = vld [vmem:[%s5598_s30 + $0x32e0] sm:$0xff] }
 0x1ce   : > { %3286 = vmatpush.msrb.mxu2 %v1787_v25  ;;  %3305 = vmatpush.msrb.mxu3 %v1821_v26  ;;  %v1905_v52 = vld [vmem:[%s5598_s30 + $0x31f0] sm:$0xff]  ;;  %v1903_v56 = vld [vmem:[%s5598_s30 + $0x31e0] sm:$0xff] }
 0x1cf   : > { %3247 = vmatpush.msrb.mxu0 %v1721_v27  ;;  %3266 = vmatpush.msrb.mxu1 %v1755_v28  ;;  %v1969_v54 = vld [vmem:[%s5598_s30 + $0x33f0] sm:$0xff]  ;;  %v1967_v58 = vld [vmem:[%s5598_s30 + $0x33e0] sm:$0xff] }
 0x1d0   : > { %3287 = vmatpush.msrb.mxu2 %v1785_v29  ;;  %3306 = vmatpush.msrb.mxu3 %v1819_v30  ;;  %v1869_v55 = vld [vmem:[%s5598_s30 + $0x30d0] sm:$0xff]  ;;  %v1867_v59 = vld [vmem:[%s5598_s30 + $0x30c0] sm:$0xff] }
 0x1d1   : > { %3248 = vmatpush.msrb.mxu0 %v1719_v31  ;;  %3267 = vmatpush.msrb.mxu1 %v1753_v32  ;;  %v1933_v57 = vld [vmem:[%s5598_s30 + $0x32d0] sm:$0xff]  ;;  %v1931_v61 = vld [vmem:[%s5598_s30 + $0x32c0] sm:$0xff] }
 0x1d2   : > { %3288 = vmatpush.msrb.mxu2 %v1783_v33  ;;  %3307 = vmatpush.msrb.mxu3 %v1817_v34  ;;  %v1901_v60 = vld [vmem:[%s5598_s30 + $0x31d0] sm:$0xff]  ;;  %v1899_v0 = vld [vmem:[%s5598_s30 + $0x31c0] sm:$0xff] }
 0x1d3   : > { %3249 = vmatpush.msrb.mxu0 %v1717_v35  ;;  %3268 = vmatpush.msrb.mxu1 %v1751_v36  ;;  %v1965_v62 = vld [vmem:[%s5598_s30 + $0x33d0] sm:$0xff]  ;;  %v1963_v2 = vld [vmem:[%s5598_s30 + $0x33c0] sm:$0xff] }
 0x1d4   : > { %3289 = vmatpush.msrb.mxu2 %v1781_v37  ;;  %3308 = vmatpush.msrb.mxu3 %v1815_v38  ;;  %v1865_v63 = vld [vmem:[%s5598_s30 + $0x30b0] sm:$0xff]  ;;  %v1863_v3 = vld [vmem:[%s5598_s30 + $0x30a0] sm:$0xff] }
 0x1d5   : > { %3250 = vmatpush.msrb.mxu0 %v1715_v39  ;;  %3269 = vmatpush.msrb.mxu1 %v1749_v40  ;;  %v1929_v1 = vld [vmem:[%s5598_s30 + $0x32b0] sm:$0xff]  ;;  %v1927_v5 = vld [vmem:[%s5598_s30 + $0x32a0] sm:$0xff] }
 0x1d6   : > { %3290 = vmatpush.msrb.mxu2 %v1779_v41  ;;  %3309 = vmatpush.msrb.mxu3 %v1813_v42  ;;  %v1897_v4 = vld [vmem:[%s5598_s30 + $0x31b0] sm:$0xff]  ;;  %v1895_v8 = vld [vmem:[%s5598_s30 + $0x31a0] sm:$0xff] }
 0x1d7   : > { %3251 = vmatmul.f32.vlgmr.msrb.gmra.mxu0 %v287_v43  ;;  %3291 = vmatmul.f32.vlgmr.msrb.gmra.mxu2 %v289_v44  ;;  %v1961_v6 = vld [vmem:[%s5598_s30 + $0x33b0] sm:$0xff]  ;;  %v1959_v10 = vld [vmem:[%s5598_s30 + $0x33a0] sm:$0xff] }
 0x1d8   : > { %3315 = vmatpush.msra.mxu0 %v1873_v45  ;;  %3355 = vmatpush.msra.mxu2 %v1937_v46  ;;  %v1861_v7 = vld [vmem:[%s5598_s30 + $0x3090] sm:$0xff]  ;;  %v1859_v11 = vld [vmem:[%s5598_s30 + $0x3080] sm:$0xff] }
 0x1d9   : > { %3270 = vmatpush.msrb.mxu1 %v1747_v47  ;;  %3310 = vmatpush.msrb.mxu3 %v1811_v48  ;;  %v1925_v9 = vld [vmem:[%s5598_s30 + $0x3290] sm:$0xff]  ;;  %v1923_v13 = vld [vmem:[%s5598_s30 + $0x3280] sm:$0xff] }
 0x1da   : > { %3271 = vmatmul.f32.vlgmr.msrb.gmra.mxu1 %v288_v49  ;;  %3311 = vmatmul.f32.vlgmr.msrb.gmra.mxu3 %v290_v50  ;;  %v1893_v12 = vld [vmem:[%s5598_s30 + $0x3190] sm:$0xff]  ;;  %v1891_v16 = vld [vmem:[%s5598_s30 + $0x3180] sm:$0xff] }
 0x1db   : > { %3316 = vmatpush.msra.mxu0 %v1871_v51  ;;  %3335 = vmatpush.msra.mxu1 %v1905_v52  ;;  %v1957_v14 = vld [vmem:[%s5598_s30 + $0x3390] sm:$0xff]  ;;  %v1955_v18 = vld [vmem:[%s5598_s30 + $0x3380] sm:$0xff] }
 0x1dc   : > { %3356 = vmatpush.msra.mxu2 %v1935_v53  ;;  %3375 = vmatpush.msra.mxu3 %v1969_v54  ;;  %v1857_v15 = vld [vmem:[%s5598_s30 + $0x3070] sm:$0xff]  ;;  %v1855_v19 = vld [vmem:[%s5598_s30 + $0x3060] sm:$0xff]  ;;  %v292_v53 = vld [vmem:[%s5592_s8 + $0x188] sm:$0xff] }
 0x1dd   : > { %3317 = vmatpush.msra.mxu0 %v1869_v55  ;;  %3336 = vmatpush.msra.mxu1 %v1903_v56  ;;  %v1921_v17 = vld [vmem:[%s5598_s30 + $0x3270] sm:$0xff]  ;;  %v1919_v21 = vld [vmem:[%s5598_s30 + $0x3260] sm:$0xff]  ;;  %v294_v54 = vld [vmem:[%s5592_s8 + $0x198] sm:$0xff] }
 0x1de   : > { %3357 = vmatpush.msra.mxu2 %v1933_v57  ;;  %3376 = vmatpush.msra.mxu3 %v1967_v58  ;;  %v1889_v20 = vld [vmem:[%s5598_s30 + $0x3170] sm:$0xff]  ;;  %v1887_v24 = vld [vmem:[%s5598_s30 + $0x3160] sm:$0xff] }
 0x1df   : > { %3318 = vmatpush.msra.mxu0 %v1867_v59  ;;  %3337 = vmatpush.msra.mxu1 %v1901_v60  ;;  %v1953_v22 = vld [vmem:[%s5598_s30 + $0x3370] sm:$0xff]  ;;  %v1951_v26 = vld [vmem:[%s5598_s30 + $0x3360] sm:$0xff] }
 0x1e0   : > { %3358 = vmatpush.msra.mxu2 %v1931_v61  ;;  %3377 = vmatpush.msra.mxu3 %v1965_v62  ;;  %v1853_v23 = vld [vmem:[%s5598_s30 + $0x3050] sm:$0xff]  ;;  %v1851_v27 = vld [vmem:[%s5598_s30 + $0x3040] sm:$0xff] }
 0x1e1   : > { %3319 = vmatpush.msra.mxu0 %v1865_v63  ;;  %3338 = vmatpush.msra.mxu1 %v1899_v0  ;;  %v1917_v25 = vld [vmem:[%s5598_s30 + $0x3250] sm:$0xff]  ;;  %v1915_v29 = vld [vmem:[%s5598_s30 + $0x3240] sm:$0xff] }
 0x1e2   : > { %3359 = vmatpush.msra.mxu2 %v1929_v1  ;;  %3378 = vmatpush.msra.mxu3 %v1963_v2  ;;  %v1885_v28 = vld [vmem:[%s5598_s30 + $0x3150] sm:$0xff]  ;;  %v1883_v32 = vld [vmem:[%s5598_s30 + $0x3140] sm:$0xff] }
 0x1e3   : > { %3320 = vmatpush.msra.mxu0 %v1863_v3  ;;  %3339 = vmatpush.msra.mxu1 %v1897_v4  ;;  %v1949_v30 = vld [vmem:[%s5598_s30 + $0x3350] sm:$0xff]  ;;  %v1947_v34 = vld [vmem:[%s5598_s30 + $0x3340] sm:$0xff] }
 0x1e4   : > { %3360 = vmatpush.msra.mxu2 %v1927_v5  ;;  %3379 = vmatpush.msra.mxu3 %v1961_v6  ;;  %v1849_v31 = vld [vmem:[%s5598_s30 + $0x3030] sm:$0xff]  ;;  %v1847_v35 = vld [vmem:[%s5598_s30 + $0x3020] sm:$0xff] }
 0x1e5   : > { %3321 = vmatpush.msra.mxu0 %v1861_v7  ;;  %3340 = vmatpush.msra.mxu1 %v1895_v8  ;;  %v1913_v33 = vld [vmem:[%s5598_s30 + $0x3230] sm:$0xff]  ;;  %v1911_v37 = vld [vmem:[%s5598_s30 + $0x3220] sm:$0xff] }
 0x1e6   : > { %3361 = vmatpush.msra.mxu2 %v1925_v9  ;;  %3380 = vmatpush.msra.mxu3 %v1959_v10  ;;  %v1881_v36 = vld [vmem:[%s5598_s30 + $0x3130] sm:$0xff]  ;;  %v1879_v40 = vld [vmem:[%s5598_s30 + $0x3120] sm:$0xff] }
 0x1e7   : > { %3322 = vmatpush.msra.mxu0 %v1859_v11  ;;  %3341 = vmatpush.msra.mxu1 %v1893_v12  ;;  %v1945_v38 = vld [vmem:[%s5598_s30 + $0x3330] sm:$0xff]  ;;  %v1943_v42 = vld [vmem:[%s5598_s30 + $0x3320] sm:$0xff] }
 0x1e8   : > { %3362 = vmatpush.msra.mxu2 %v1923_v13  ;;  %3381 = vmatpush.msra.mxu3 %v1957_v14  ;;  %v1845_v39 = vld [vmem:[%s5598_s30 + $0x3010] sm:$0xff]  ;;  %v1843_v43 = vld [vmem:[%s5598_s30 + $0x3000] sm:$0xff] }
 0x1e9   : > { %3323 = vmatpush.msra.mxu0 %v1857_v15  ;;  %3342 = vmatpush.msra.mxu1 %v1891_v16  ;;  %v1909_v41 = vld [vmem:[%s5598_s30 + $0x3210] sm:$0xff]  ;;  %v1907_v45 = vld [vmem:[%s5598_s30 + $0x3200] sm:$0xff] }
 0x1ea   : > { %3363 = vmatpush.msra.mxu2 %v1921_v17  ;;  %3382 = vmatpush.msra.mxu3 %v1955_v18  ;;  %v1877_v44 = vld [vmem:[%s5598_s30 + $0x3110] sm:$0xff]  ;;  %v291_v47 = vld [vmem:[%s5592_s8 + $0x180] sm:$0xff] }
 0x1eb   : > { %3324 = vmatpush.msra.mxu0 %v1855_v19  ;;  %3343 = vmatpush.msra.mxu1 %v1889_v20  ;;  %v1941_v46 = vld [vmem:[%s5598_s30 + $0x3310] sm:$0xff]  ;;  %v1875_v51 = vld [vmem:[%s5598_s30 + $0x3100] sm:$0xff] }
 0x1ec   : > { %3364 = vmatpush.msra.mxu2 %v1919_v21  ;;  %3383 = vmatpush.msra.mxu3 %v1953_v22  ;;  %v293_v48 = vld [vmem:[%s5592_s8 + $0x190] sm:$0xff]  ;;  %v1939_v52 = vld [vmem:[%s5598_s30 + $0x3300] sm:$0xff] }
 0x1ed   : > { %3325 = vmatpush.msra.mxu0 %v1853_v23  ;;  %3344 = vmatpush.msra.mxu1 %v1887_v24  ;;  %v2001_v49 = vld [vmem:[%s5598_s30 + $0x34f0] sm:$0xff]  ;;  %v1999_v55 = vld [vmem:[%s5598_s30 + $0x34e0] sm:$0xff] }
 0x1ee   : > { %3365 = vmatpush.msra.mxu2 %v1917_v25  ;;  %3384 = vmatpush.msra.mxu3 %v1951_v26  ;;  %v2065_v50 = vld [vmem:[%s5598_s30 + $0x36f0] sm:$0xff]  ;;  %v2063_v57 = vld [vmem:[%s5598_s30 + $0x36e0] sm:$0xff] }
 0x1ef   : > { %3326 = vmatpush.msra.mxu0 %v1851_v27  ;;  %3345 = vmatpush.msra.mxu1 %v1885_v28  ;;  %v2033_v56 = vld [vmem:[%s5598_s30 + $0x35f0] sm:$0xff]  ;;  %v2031_v60 = vld [vmem:[%s5598_s30 + $0x35e0] sm:$0xff] }
 0x1f0   : > { %3366 = vmatpush.msra.mxu2 %v1915_v29  ;;  %3385 = vmatpush.msra.mxu3 %v1949_v30  ;;  %v2097_v58 = vld [vmem:[%s5598_s30 + $0x37f0] sm:$0xff]  ;;  %v2095_v62 = vld [vmem:[%s5598_s30 + $0x37e0] sm:$0xff] }
 0x1f1   : > { %3327 = vmatpush.msra.mxu0 %v1849_v31  ;;  %3346 = vmatpush.msra.mxu1 %v1883_v32  ;;  %v1997_v59 = vld [vmem:[%s5598_s30 + $0x34d0] sm:$0xff]  ;;  %v1995_v63 = vld [vmem:[%s5598_s30 + $0x34c0] sm:$0xff] }
 0x1f2   : > { %3367 = vmatpush.msra.mxu2 %v1913_v33  ;;  %3386 = vmatpush.msra.mxu3 %v1947_v34  ;;  %v2061_v61 = vld [vmem:[%s5598_s30 + $0x36d0] sm:$0xff]  ;;  %v2059_v1 = vld [vmem:[%s5598_s30 + $0x36c0] sm:$0xff] }
 0x1f3   : > { %3328 = vmatpush.msra.mxu0 %v1847_v35  ;;  %3347 = vmatpush.msra.mxu1 %v1881_v36  ;;  %v2029_v0 = vld [vmem:[%s5598_s30 + $0x35d0] sm:$0xff]  ;;  %v2027_v4 = vld [vmem:[%s5598_s30 + $0x35c0] sm:$0xff] }
 0x1f4   : > { %3368 = vmatpush.msra.mxu2 %v1911_v37  ;;  %3387 = vmatpush.msra.mxu3 %v1945_v38  ;;  %v2093_v2 = vld [vmem:[%s5598_s30 + $0x37d0] sm:$0xff]  ;;  %v2091_v6 = vld [vmem:[%s5598_s30 + $0x37c0] sm:$0xff] }
 0x1f5   : > { %3329 = vmatpush.msra.mxu0 %v1845_v39  ;;  %3348 = vmatpush.msra.mxu1 %v1879_v40  ;;  %v1993_v3 = vld [vmem:[%s5598_s30 + $0x34b0] sm:$0xff]  ;;  %v1991_v7 = vld [vmem:[%s5598_s30 + $0x34a0] sm:$0xff] }
 0x1f6   : > { %3369 = vmatpush.msra.mxu2 %v1909_v41  ;;  %3388 = vmatpush.msra.mxu3 %v1943_v42  ;;  %v2057_v5 = vld [vmem:[%s5598_s30 + $0x36b0] sm:$0xff]  ;;  %v2055_v9 = vld [vmem:[%s5598_s30 + $0x36a0] sm:$0xff] }
 0x1f7   : > { %3330 = vmatpush.msra.mxu0 %v1843_v43  ;;  %3349 = vmatpush.msra.mxu1 %v1877_v44  ;;  %v2025_v8 = vld [vmem:[%s5598_s30 + $0x35b0] sm:$0xff]  ;;  %v2023_v12 = vld [vmem:[%s5598_s30 + $0x35a0] sm:$0xff] }
 0x1f8   : > { %3370 = vmatpush.msra.mxu2 %v1907_v45  ;;  %3389 = vmatpush.msra.mxu3 %v1941_v46  ;;  %v2089_v10 = vld [vmem:[%s5598_s30 + $0x37b0] sm:$0xff]  ;;  %v2087_v14 = vld [vmem:[%s5598_s30 + $0x37a0] sm:$0xff] }
 0x1f9   : > { %3331 = vmatmul.f32.vlgmr.msra.gmra.mxu0 %v291_v47  ;;  %3371 = vmatmul.f32.vlgmr.msra.gmra.mxu2 %v293_v48  ;;  %v1989_v11 = vld [vmem:[%s5598_s30 + $0x3490] sm:$0xff]  ;;  %v1987_v15 = vld [vmem:[%s5598_s30 + $0x3480] sm:$0xff] }
 0x1fa   : > { %3395 = vmatpush.msrb.mxu0 %v2001_v49  ;;  %3435 = vmatpush.msrb.mxu2 %v2065_v50  ;;  %v2053_v13 = vld [vmem:[%s5598_s30 + $0x3690] sm:$0xff]  ;;  %v2051_v17 = vld [vmem:[%s5598_s30 + $0x3680] sm:$0xff] }
 0x1fb   : > { %3350 = vmatpush.msra.mxu1 %v1875_v51  ;;  %3390 = vmatpush.msra.mxu3 %v1939_v52  ;;  %v2021_v16 = vld [vmem:[%s5598_s30 + $0x3590] sm:$0xff]  ;;  %v2019_v20 = vld [vmem:[%s5598_s30 + $0x3580] sm:$0xff] }
 0x1fc   : > { %3351 = vmatmul.f32.vlgmr.msra.gmra.mxu1 %v292_v53  ;;  %3391 = vmatmul.f32.vlgmr.msra.gmra.mxu3 %v294_v54  ;;  %v2085_v18 = vld [vmem:[%s5598_s30 + $0x3790] sm:$0xff]  ;;  %v2083_v22 = vld [vmem:[%s5598_s30 + $0x3780] sm:$0xff] }
 0x1fd   : > { %3396 = vmatpush.msrb.mxu0 %v1999_v55  ;;  %3415 = vmatpush.msrb.mxu1 %v2033_v56  ;;  %v1985_v19 = vld [vmem:[%s5598_s30 + $0x3470] sm:$0xff]  ;;  %v1983_v23 = vld [vmem:[%s5598_s30 + $0x3460] sm:$0xff] }
 0x1fe   : > { %3436 = vmatpush.msrb.mxu2 %v2063_v57  ;;  %3455 = vmatpush.msrb.mxu3 %v2097_v58  ;;  %v2049_v21 = vld [vmem:[%s5598_s30 + $0x3670] sm:$0xff]  ;;  %v2047_v25 = vld [vmem:[%s5598_s30 + $0x3660] sm:$0xff]  ;;  %v296_v57 = vld [vmem:[%s5592_s8 + $0x1a8] sm:$0xff] }
 0x1ff   : > { %3397 = vmatpush.msrb.mxu0 %v1997_v59  ;;  %3416 = vmatpush.msrb.mxu1 %v2031_v60  ;;  %v2017_v24 = vld [vmem:[%s5598_s30 + $0x3570] sm:$0xff]  ;;  %v2015_v28 = vld [vmem:[%s5598_s30 + $0x3560] sm:$0xff]  ;;  %v298_v58 = vld [vmem:[%s5592_s8 + $0x1b8] sm:$0xff] }
 0x200   : > { %3437 = vmatpush.msrb.mxu2 %v2061_v61  ;;  %3456 = vmatpush.msrb.mxu3 %v2095_v62  ;;  %v2081_v26 = vld [vmem:[%s5598_s30 + $0x3770] sm:$0xff]  ;;  %v2079_v30 = vld [vmem:[%s5598_s30 + $0x3760] sm:$0xff] }
 0x201   : > { %3398 = vmatpush.msrb.mxu0 %v1995_v63  ;;  %3417 = vmatpush.msrb.mxu1 %v2029_v0  ;;  %v1981_v27 = vld [vmem:[%s5598_s30 + $0x3450] sm:$0xff]  ;;  %v1979_v31 = vld [vmem:[%s5598_s30 + $0x3440] sm:$0xff] }
 0x202   : > { %3438 = vmatpush.msrb.mxu2 %v2059_v1  ;;  %3457 = vmatpush.msrb.mxu3 %v2093_v2  ;;  %v2045_v29 = vld [vmem:[%s5598_s30 + $0x3650] sm:$0xff]  ;;  %v2043_v33 = vld [vmem:[%s5598_s30 + $0x3640] sm:$0xff] }
 0x203   : > { %3399 = vmatpush.msrb.mxu0 %v1993_v3  ;;  %3418 = vmatpush.msrb.mxu1 %v2027_v4  ;;  %v2013_v32 = vld [vmem:[%s5598_s30 + $0x3550] sm:$0xff]  ;;  %v2011_v36 = vld [vmem:[%s5598_s30 + $0x3540] sm:$0xff] }
 0x204   : > { %3439 = vmatpush.msrb.mxu2 %v2057_v5  ;;  %3458 = vmatpush.msrb.mxu3 %v2091_v6  ;;  %v2077_v34 = vld [vmem:[%s5598_s30 + $0x3750] sm:$0xff]  ;;  %v2075_v38 = vld [vmem:[%s5598_s30 + $0x3740] sm:$0xff] }
 0x205   : > { %3400 = vmatpush.msrb.mxu0 %v1991_v7  ;;  %3419 = vmatpush.msrb.mxu1 %v2025_v8  ;;  %v1977_v35 = vld [vmem:[%s5598_s30 + $0x3430] sm:$0xff]  ;;  %v1975_v39 = vld [vmem:[%s5598_s30 + $0x3420] sm:$0xff] }
 0x206   : > { %3440 = vmatpush.msrb.mxu2 %v2055_v9  ;;  %3459 = vmatpush.msrb.mxu3 %v2089_v10  ;;  %v2041_v37 = vld [vmem:[%s5598_s30 + $0x3630] sm:$0xff]  ;;  %v2039_v41 = vld [vmem:[%s5598_s30 + $0x3620] sm:$0xff] }
 0x207   : > { %3401 = vmatpush.msrb.mxu0 %v1989_v11  ;;  %3420 = vmatpush.msrb.mxu1 %v2023_v12  ;;  %v2009_v40 = vld [vmem:[%s5598_s30 + $0x3530] sm:$0xff]  ;;  %v2007_v44 = vld [vmem:[%s5598_s30 + $0x3520] sm:$0xff]  ;;  %v2392_v11 = vpop.f32.mrf.mxu1 }
 0x208   : > { %3441 = vmatpush.msrb.mxu2 %v2053_v13  ;;  %3460 = vmatpush.msrb.mxu3 %v2087_v14  ;;  %v2073_v42 = vld [vmem:[%s5598_s30 + $0x3730] sm:$0xff]  ;;  %v2071_v46 = vld [vmem:[%s5598_s30 + $0x3720] sm:$0xff] }
 0x209   : > { %3402 = vmatpush.msrb.mxu0 %v1987_v15  ;;  %3421 = vmatpush.msrb.mxu1 %v2021_v16  ;;  %v1973_v43 = vld [vmem:[%s5598_s30 + $0x3410] sm:$0xff]  ;;  %v1971_v47 = vld [vmem:[%s5598_s30 + $0x3400] sm:$0xff]  ;;  %v2372_v16 = vpop.f32.mrf.mxu0 }
 0x20a   : > { %3442 = vmatpush.msrb.mxu2 %v2051_v17  ;;  %3461 = vmatpush.msrb.mxu3 %v2085_v18  ;;  %v2037_v45 = vld [vmem:[%s5598_s30 + $0x3610] sm:$0xff]  ;;  %v2035_v49 = vld [vmem:[%s5598_s30 + $0x3600] sm:$0xff] }
 0x20b   : > { %3403 = vmatpush.msrb.mxu0 %v1985_v19  ;;  %3422 = vmatpush.msrb.mxu1 %v2019_v20  ;;  %v2005_v48 = vld [vmem:[%s5598_s30 + $0x3510] sm:$0xff]  ;;  %v295_v51 = vld [vmem:[%s5592_s8 + $0x1a0] sm:$0xff]  ;;  %v2393_v19 = vadd.f32 %v2392_v11, %v2372_v16  ;;  %v300_v11 = vld [vmem:[%s5592_s8 + $0x1c8] sm:$0xff] }
 0x20c   : > { %3443 = vmatpush.msrb.mxu2 %v2049_v21  ;;  %3462 = vmatpush.msrb.mxu3 %v2083_v22  ;;  %v2069_v50 = vld [vmem:[%s5598_s30 + $0x3710] sm:$0xff]  ;;  %v2003_v55 = vld [vmem:[%s5598_s30 + $0x3500] sm:$0xff]  ;;  %v2412_v22 = vpop.f32.mrf.mxu2 }
 0x20d   : > { %3404 = vmatpush.msrb.mxu0 %v1983_v23  ;;  %3423 = vmatpush.msrb.mxu1 %v2017_v24  ;;  %v297_v52 = vld [vmem:[%s5592_s8 + $0x1b0] sm:$0xff]  ;;  %v2067_v56 = vld [vmem:[%s5598_s30 + $0x3700] sm:$0xff] }
 0x20e   : > { %3444 = vmatpush.msrb.mxu2 %v2047_v25  ;;  %3463 = vmatpush.msrb.mxu3 %v2081_v26  ;;  %v2129_v53 = vld [vmem:[%s5598_s30 + $0x38f0] sm:$0xff]  ;;  %v2127_v59 = vld [vmem:[%s5598_s30 + $0x38e0] sm:$0xff] }
 0x20f   : > { %3405 = vmatpush.msrb.mxu0 %v1981_v27  ;;  %3424 = vmatpush.msrb.mxu1 %v2015_v28  ;;  %v2193_v54 = vld [vmem:[%s5598_s30 + $0x3af0] sm:$0xff]  ;;  %v2191_v61 = vld [vmem:[%s5598_s30 + $0x3ae0] sm:$0xff] }
 0x210   : > { %3445 = vmatpush.msrb.mxu2 %v2045_v29  ;;  %3464 = vmatpush.msrb.mxu3 %v2079_v30  ;;  %v2161_v60 = vld [vmem:[%s5598_s30 + $0x39f0] sm:$0xff]  ;;  %v2159_v0 = vld [vmem:[%s5598_s30 + $0x39e0] sm:$0xff]  ;;  %v2413_v29 = vadd.f32 %v2412_v22, %v2393_v19 }
 0x211   : > { %3406 = vmatpush.msrb.mxu0 %v1979_v31  ;;  %3425 = vmatpush.msrb.mxu1 %v2013_v32  ;;  %v2225_v62 = vld [vmem:[%s5598_s30 + $0x3bf0] sm:$0xff]  ;;  %v2223_v2 = vld [vmem:[%s5598_s30 + $0x3be0] sm:$0xff]  ;;  %v2432_v32 = vpop.f32.mrf.mxu3 }
 0x212   : > { %3446 = vmatpush.msrb.mxu2 %v2043_v33  ;;  %3465 = vmatpush.msrb.mxu3 %v2077_v34  ;;  %v2125_v63 = vld [vmem:[%s5598_s30 + $0x38d0] sm:$0xff]  ;;  %v2123_v3 = vld [vmem:[%s5598_s30 + $0x38c0] sm:$0xff] }
 0x213   : > { %3407 = vmatpush.msrb.mxu0 %v1977_v35  ;;  %3426 = vmatpush.msrb.mxu1 %v2011_v36  ;;  %v2189_v1 = vld [vmem:[%s5598_s30 + $0x3ad0] sm:$0xff]  ;;  %v2187_v5 = vld [vmem:[%s5598_s30 + $0x3ac0] sm:$0xff] }
 0x214   : > { %3447 = vmatpush.msrb.mxu2 %v2041_v37  ;;  %3466 = vmatpush.msrb.mxu3 %v2075_v38  ;;  %v2157_v4 = vld [vmem:[%s5598_s30 + $0x39d0] sm:$0xff]  ;;  %v2155_v8 = vld [vmem:[%s5598_s30 + $0x39c0] sm:$0xff] }
 0x215   : > { %3408 = vmatpush.msrb.mxu0 %v1975_v39  ;;  %3427 = vmatpush.msrb.mxu1 %v2009_v40  ;;  %v2221_v6 = vld [vmem:[%s5598_s30 + $0x3bd0] sm:$0xff]  ;;  %v2219_v10 = vld [vmem:[%s5598_s30 + $0x3bc0] sm:$0xff]  ;;  %v2433_v39 = vadd.f32 %v2432_v32, %v2413_v29 }
 0x216   : > { %3448 = vmatpush.msrb.mxu2 %v2039_v41  ;;  %3467 = vmatpush.msrb.mxu3 %v2073_v42  ;;  %v2121_v7 = vld [vmem:[%s5598_s30 + $0x38b0] sm:$0xff]  ;;  %v2119_v12 = vld [vmem:[%s5598_s30 + $0x38a0] sm:$0xff]  ;;  %v2452_v42 = vpop.f32.mrf.mxu0 }
 0x217   : > { %3409 = vmatpush.msrb.mxu0 %v1973_v43  ;;  %3428 = vmatpush.msrb.mxu1 %v2007_v44  ;;  %v2185_v9 = vld [vmem:[%s5598_s30 + $0x3ab0] sm:$0xff]  ;;  %v2183_v14 = vld [vmem:[%s5598_s30 + $0x3aa0] sm:$0xff] }
 0x218   : > { %3449 = vmatpush.msrb.mxu2 %v2037_v45  ;;  %3468 = vmatpush.msrb.mxu3 %v2071_v46  ;;  %v2153_v13 = vld [vmem:[%s5598_s30 + $0x39b0] sm:$0xff]  ;;  %v2151_v18 = vld [vmem:[%s5598_s30 + $0x39a0] sm:$0xff] }
 0x219   : > { %3410 = vmatpush.msrb.mxu0 %v1971_v47  ;;  %3429 = vmatpush.msrb.mxu1 %v2005_v48  ;;  %v2217_v15 = vld [vmem:[%s5598_s30 + $0x3bb0] sm:$0xff]  ;;  %v2215_v21 = vld [vmem:[%s5598_s30 + $0x3ba0] sm:$0xff] }
 0x21a   : > { %3450 = vmatpush.msrb.mxu2 %v2035_v49  ;;  %3469 = vmatpush.msrb.mxu3 %v2069_v50  ;;  %v2117_v17 = vld [vmem:[%s5598_s30 + $0x3890] sm:$0xff]  ;;  %v2115_v23 = vld [vmem:[%s5598_s30 + $0x3880] sm:$0xff]  ;;  %v2453_v49 = vadd.f32 %v2452_v42, %v2433_v39 }
 0x21b   : > { %3411 = vmatmul.f32.vlgmr.msrb.gmra.mxu0 %v295_v51  ;;  %3451 = vmatmul.f32.vlgmr.msrb.gmra.mxu2 %v297_v52  ;;  %v2181_v20 = vld [vmem:[%s5598_s30 + $0x3a90] sm:$0xff]  ;;  %v2179_v25 = vld [vmem:[%s5598_s30 + $0x3a80] sm:$0xff]  ;;  %v2472_v52 = vpop.f32.mrf.mxu1 }
 0x21c   : > { %3475 = vmatpush.msra.mxu0 %v2129_v53  ;;  %3515 = vmatpush.msra.mxu2 %v2193_v54  ;;  %v2149_v24 = vld [vmem:[%s5598_s30 + $0x3990] sm:$0xff]  ;;  %v2147_v28 = vld [vmem:[%s5598_s30 + $0x3980] sm:$0xff] }
 0x21d   : > { %3430 = vmatpush.msrb.mxu1 %v2003_v55  ;;  %3470 = vmatpush.msrb.mxu3 %v2067_v56  ;;  %v2213_v26 = vld [vmem:[%s5598_s30 + $0x3b90] sm:$0xff]  ;;  %v2211_v31 = vld [vmem:[%s5598_s30 + $0x3b80] sm:$0xff] }
 0x21e   : > { %3431 = vmatmul.f32.vlgmr.msrb.gmra.mxu1 %v296_v57  ;;  %3471 = vmatmul.f32.vlgmr.msrb.gmra.mxu3 %v298_v58  ;;  %v2113_v27 = vld [vmem:[%s5598_s30 + $0x3870] sm:$0xff]  ;;  %v2111_v33 = vld [vmem:[%s5598_s30 + $0x3860] sm:$0xff] }
 0x21f   : > { %3476 = vmatpush.msra.mxu0 %v2127_v59  ;;  %3495 = vmatpush.msra.mxu1 %v2161_v60  ;;  %v2177_v30 = vld [vmem:[%s5598_s30 + $0x3a70] sm:$0xff]  ;;  %v2175_v35 = vld [vmem:[%s5598_s30 + $0x3a60] sm:$0xff]  ;;  %v2473_v59 = vadd.f32 %v2472_v52, %v2453_v49 }
 0x220   : > { %3516 = vmatpush.msra.mxu2 %v2191_v61  ;;  %3535 = vmatpush.msra.mxu3 %v2225_v62  ;;  %v2145_v34 = vld [vmem:[%s5598_s30 + $0x3970] sm:$0xff]  ;;  %v2143_v38 = vld [vmem:[%s5598_s30 + $0x3960] sm:$0xff]  ;;  %v2492_v62 = vpop.f32.mrf.mxu2 }
 0x221   : > { %3477 = vmatpush.msra.mxu0 %v2125_v63  ;;  %3496 = vmatpush.msra.mxu1 %v2159_v0  ;;  %v2209_v36 = vld [vmem:[%s5598_s30 + $0x3b70] sm:$0xff]  ;;  %v2207_v41 = vld [vmem:[%s5598_s30 + $0x3b60] sm:$0xff] }
 0x222   : > { %3517 = vmatpush.msra.mxu2 %v2189_v1  ;;  %3536 = vmatpush.msra.mxu3 %v2223_v2  ;;  %v2109_v37 = vld [vmem:[%s5598_s30 + $0x3850] sm:$0xff]  ;;  %v2107_v43 = vld [vmem:[%s5598_s30 + $0x3840] sm:$0xff] }
 0x223   : > { %3478 = vmatpush.msra.mxu0 %v2123_v3  ;;  %3497 = vmatpush.msra.mxu1 %v2157_v4  ;;  %v2173_v40 = vld [vmem:[%s5598_s30 + $0x3a50] sm:$0xff]  ;;  %v2171_v45 = vld [vmem:[%s5598_s30 + $0x3a40] sm:$0xff] }
 0x224   : > { %3518 = vmatpush.msra.mxu2 %v2187_v5  ;;  %3537 = vmatpush.msra.mxu3 %v2221_v6  ;;  %v2141_v44 = vld [vmem:[%s5598_s30 + $0x3950] sm:$0xff]  ;;  %v2139_v48 = vld [vmem:[%s5598_s30 + $0x3940] sm:$0xff]  ;;  %v2493_v5 = vadd.f32 %v2492_v62, %v2473_v59 }
 0x225   : > { %3479 = vmatpush.msra.mxu0 %v2121_v7  ;;  %3498 = vmatpush.msra.mxu1 %v2155_v8  ;;  %v2205_v46 = vld [vmem:[%s5598_s30 + $0x3b50] sm:$0xff]  ;;  %v2203_v51 = vld [vmem:[%s5598_s30 + $0x3b40] sm:$0xff]  ;;  %v2512_v8 = vpop.f32.mrf.mxu3 }
 0x226   : > { %3519 = vmatpush.msra.mxu2 %v2185_v9  ;;  %3538 = vmatpush.msra.mxu3 %v2219_v10  ;;  %v2105_v47 = vld [vmem:[%s5598_s30 + $0x3830] sm:$0xff]  ;;  %v2103_v53 = vld [vmem:[%s5598_s30 + $0x3820] sm:$0xff]  ;;  %v2513_v16 = vadd.f32 %v2512_v8, %v2493_v5 }
 0x227   : > { %3480 = vmatpush.msra.mxu0 %v2119_v12  ;;  %3499 = vmatpush.msra.mxu1 %v2153_v13  ;;  %v2169_v50 = vld [vmem:[%s5598_s30 + $0x3a30] sm:$0xff]  ;;  %v2167_v55 = vld [vmem:[%s5598_s30 + $0x3a20] sm:$0xff]  ;;  %v302_v12 = vld [vmem:[%s5592_s8 + $0x1d8] sm:$0xff]  ;;  %v2532_v13 = vpop.f32.mrf.mxu0 }
 0x228   : > { %3520 = vmatpush.msra.mxu2 %v2183_v14  ;;  %3539 = vmatpush.msra.mxu3 %v2217_v15  ;;  %v2137_v54 = vld [vmem:[%s5598_s30 + $0x3930] sm:$0xff]  ;;  %v2135_v58 = vld [vmem:[%s5598_s30 + $0x3920] sm:$0xff]  ;;  %v2572_v29 = vpop.f32.mrf.mxu2 }
 0x229   : > { %3481 = vmatpush.msra.mxu0 %v2117_v17  ;;  %3500 = vmatpush.msra.mxu1 %v2151_v18  ;;  %v2201_v56 = vld [vmem:[%s5598_s30 + $0x3b30] sm:$0xff]  ;;  %v2199_v61 = vld [vmem:[%s5598_s30 + $0x3b20] sm:$0xff] }
 0x22a   : > { %3521 = vmatpush.msra.mxu2 %v2181_v20  ;;  %3540 = vmatpush.msra.mxu3 %v2215_v21  ;;  %v2101_v57 = vld [vmem:[%s5598_s30 + $0x3810] sm:$0xff]  ;;  %v2099_v63 = vld [vmem:[%s5598_s30 + $0x3800] sm:$0xff]  ;;  %v2533_v21 = vadd.f32 %v2532_v13, %v2513_v16 }
 0x22b   : > { %3482 = vmatpush.msra.mxu0 %v2115_v23  ;;  %3501 = vmatpush.msra.mxu1 %v2149_v24  ;;  %v2165_v60 = vld [vmem:[%s5598_s30 + $0x3a10] sm:$0xff]  ;;  %v2163_v1 = vld [vmem:[%s5598_s30 + $0x3a00] sm:$0xff]  ;;  %v2552_v24 = vpop.f32.mrf.mxu1 }
 0x22c   : > { %3522 = vmatpush.msra.mxu2 %v2179_v25  ;;  %3541 = vmatpush.msra.mxu3 %v2213_v26  ;;  %v2133_v0 = vld [vmem:[%s5598_s30 + $0x3910] sm:$0xff]  ;;  %v299_v3 = vld [vmem:[%s5592_s8 + $0x1c0] sm:$0xff]  ;;  %v2553_v32 = vadd.f32 %v2552_v24, %v2533_v21 }
 0x22d   : > { %3483 = vmatpush.msra.mxu0 %v2113_v27  ;;  %3502 = vmatpush.msra.mxu1 %v2147_v28  ;;  %v2197_v2 = vld [vmem:[%s5598_s30 + $0x3b10] sm:$0xff]  ;;  %v2131_v9 = vld [vmem:[%s5598_s30 + $0x3900] sm:$0xff] }
 0x22e   : > { %3523 = vmatpush.msra.mxu2 %v2177_v30  ;;  %3542 = vmatpush.msra.mxu3 %v2211_v31  ;;  %v301_v4 = vld [vmem:[%s5592_s8 + $0x1d0] sm:$0xff]  ;;  %v2195_v10 = vld [vmem:[%s5598_s30 + $0x3b00] sm:$0xff] }
 0x22f   : > { %3484 = vmatpush.msra.mxu0 %v2111_v33  ;;  %3503 = vmatpush.msra.mxu1 %v2145_v34  ;;  %v2257_v6 = vld [vmem:[%s5598_s30 + $0x3cf0] sm:$0xff]  ;;  %v2255_v14 = vld [vmem:[%s5598_s30 + $0x3ce0] sm:$0xff] }
 0x230   : > { %3524 = vmatpush.msra.mxu2 %v2175_v35  ;;  %3543 = vmatpush.msra.mxu3 %v2209_v36  ;;  %v2321_v7 = vld [vmem:[%s5598_s30 + $0x3ef0] sm:$0xff]  ;;  %v2319_v17 = vld [vmem:[%s5598_s30 + $0x3ee0] sm:$0xff] }
 0x231   : > { %3485 = vmatpush.msra.mxu0 %v2109_v37  ;;  %3504 = vmatpush.msra.mxu1 %v2143_v38  ;;  %v2289_v15 = vld [vmem:[%s5598_s30 + $0x3df0] sm:$0xff]  ;;  %v2287_v20 = vld [vmem:[%s5598_s30 + $0x3de0] sm:$0xff]  ;;  %v2573_v37 = vadd.f32 %v2572_v29, %v2553_v32 }
 0x232   : > { %3525 = vmatpush.msra.mxu2 %v2173_v40  ;;  %3544 = vmatpush.msra.mxu3 %v2207_v41  ;;  %v2353_v18 = vld [vmem:[%s5598_s30 + $0x3ff0] sm:$0xff]  ;;  %v2351_v23 = vld [vmem:[%s5598_s30 + $0x3fe0] sm:$0xff]  ;;  %v2592_v40 = vpop.f32.mrf.mxu3 }
 0x233   : > { %3486 = vmatpush.msra.mxu0 %v2107_v43  ;;  %3505 = vmatpush.msra.mxu1 %v2141_v44  ;;  %v2253_v19 = vld [vmem:[%s5598_s30 + $0x3cd0] sm:$0xff]  ;;  %v2251_v25 = vld [vmem:[%s5598_s30 + $0x3cc0] sm:$0xff] }
 0x234   : > { %3526 = vmatpush.msra.mxu2 %v2171_v45  ;;  %3545 = vmatpush.msra.mxu3 %v2205_v46  ;;  %v2317_v22 = vld [vmem:[%s5598_s30 + $0x3ed0] sm:$0xff]  ;;  %v2315_v27 = vld [vmem:[%s5598_s30 + $0x3ec0] sm:$0xff]  ;;  %v2612_v45 = vpop.f32.mrf.mxu0 }
 0x235   : > { %3487 = vmatpush.msra.mxu0 %v2105_v47  ;;  %3506 = vmatpush.msra.mxu1 %v2139_v48  ;;  %v2285_v26 = vld [vmem:[%s5598_s30 + $0x3dd0] sm:$0xff]  ;;  %v2283_v31 = vld [vmem:[%s5598_s30 + $0x3dc0] sm:$0xff]  ;;  %v2593_v48 = vadd.f32 %v2592_v40, %v2573_v37 }
 0x236   : > { %3527 = vmatpush.msra.mxu2 %v2169_v50  ;;  %3546 = vmatpush.msra.mxu3 %v2203_v51  ;;  %v2349_v28 = vld [vmem:[%s5598_s30 + $0x3fd0] sm:$0xff]  ;;  %v2347_v34 = vld [vmem:[%s5598_s30 + $0x3fc0] sm:$0xff] }
 0x237   : > { %3488 = vmatpush.msra.mxu0 %v2103_v53  ;;  %3507 = vmatpush.msra.mxu1 %v2137_v54  ;;  %v2249_v30 = vld [vmem:[%s5598_s30 + $0x3cb0] sm:$0xff]  ;;  %v2247_v35 = vld [vmem:[%s5598_s30 + $0x3ca0] sm:$0xff]  ;;  %v2613_v53 = vadd.f32 %v2612_v45, %v2593_v48 }
 0x238   : > { %3528 = vmatpush.msra.mxu2 %v2167_v55  ;;  %3547 = vmatpush.msra.mxu3 %v2201_v56  ;;  %v2313_v33 = vld [vmem:[%s5598_s30 + $0x3eb0] sm:$0xff]  ;;  %v2311_v38 = vld [vmem:[%s5598_s30 + $0x3ea0] sm:$0xff]  ;;  %v2632_v56 = vpop.f32.mrf.mxu1 }
 0x239   : > { %3489 = vmatpush.msra.mxu0 %v2101_v57  ;;  %3508 = vmatpush.msra.mxu1 %v2135_v58  ;;  %v2281_v36 = vld [vmem:[%s5598_s30 + $0x3db0] sm:$0xff]  ;;  %v2279_v42 = vld [vmem:[%s5598_s30 + $0x3da0] sm:$0xff] }
 0x23a   : > { %3529 = vmatpush.msra.mxu2 %v2165_v60  ;;  %3548 = vmatpush.msra.mxu3 %v2199_v61  ;;  %v2345_v39 = vld [vmem:[%s5598_s30 + $0x3fb0] sm:$0xff]  ;;  %v2343_v44 = vld [vmem:[%s5598_s30 + $0x3fa0] sm:$0xff]  ;;  %v2652_v61 = vpop.f32.mrf.mxu2  ;;  %v2672_v8 = vpop.f32.mrf.mxu3 }
 0x23b   : > { %3490 = vmatpush.msra.mxu0 %v2099_v63  ;;  %3509 = vmatpush.msra.mxu1 %v2133_v0  ;;  %v2245_v41 = vld [vmem:[%s5598_s30 + $0x3c90] sm:$0xff]  ;;  %v2243_v46 = vld [vmem:[%s5598_s30 + $0x3c80] sm:$0xff]  ;;  %v2633_v0 = vadd.f32 %v2632_v56, %v2613_v53 }
 0x23c   : > { %3530 = vmatpush.msra.mxu2 %v2163_v1  ;;  %3549 = vmatpush.msra.mxu3 %v2197_v2  ;;  %v2309_v43 = vld [vmem:[%s5598_s30 + $0x3e90] sm:$0xff]  ;;  %v2307_v49 = vld [vmem:[%s5598_s30 + $0x3e80] sm:$0xff]  ;;  %v2692_v13 = vpop.f32.mrf.mxu0 }
 0x23d   : > { %3491 = vmatmul.f32.vlgmr.msra.gmra.mxu0 %v299_v3  ;;  %3531 = vmatmul.f32.vlgmr.msra.gmra.mxu2 %v301_v4  ;;  %v2277_v47 = vld [vmem:[%s5598_s30 + $0x3d90] sm:$0xff]  ;;  %v2275_v52 = vld [vmem:[%s5598_s30 + $0x3d80] sm:$0xff]  ;;  %v2653_v5 = vadd.f32 %v2652_v61, %v2633_v0 }
 0x23e   : > { %3555 = vmatpush.msrb.mxu0 %v2257_v6  ;;  %3595 = vmatpush.msrb.mxu2 %v2321_v7  ;;  %v2341_v50 = vld [vmem:[%s5598_s30 + $0x3f90] sm:$0xff]  ;;  %v2339_v55 = vld [vmem:[%s5598_s30 + $0x3f80] sm:$0xff] }
 0x23f   : > { %3510 = vmatpush.msra.mxu1 %v2131_v9  ;;  %3550 = vmatpush.msra.mxu3 %v2195_v10  ;;  %v2241_v51 = vld [vmem:[%s5598_s30 + $0x3c70] sm:$0xff]  ;;  %v2239_v57 = vld [vmem:[%s5598_s30 + $0x3c60] sm:$0xff]  ;;  %v2673_v16 = vadd.f32 %v2672_v8, %v2653_v5 }
 0x240   : > { %3511 = vmatmul.f32.vlgmr.msra.gmra.mxu1 %v300_v11  ;;  %3551 = vmatmul.f32.vlgmr.msra.gmra.mxu3 %v302_v12  ;;  %v2305_v54 = vld [vmem:[%s5598_s30 + $0x3e70] sm:$0xff]  ;;  %v2303_v59 = vld [vmem:[%s5598_s30 + $0x3e60] sm:$0xff]  ;;  %v2712_v24 = vpop.f32.mrf.mxu1 }
 0x241   : > { %3556 = vmatpush.msrb.mxu0 %v2255_v14  ;;  %3575 = vmatpush.msrb.mxu1 %v2289_v15  ;;  %v2273_v58 = vld [vmem:[%s5598_s30 + $0x3d70] sm:$0xff]  ;;  %v2271_v63 = vld [vmem:[%s5598_s30 + $0x3d60] sm:$0xff]  ;;  %v2693_v21 = vadd.f32 %v2692_v13, %v2673_v16 }
 0x242   : > { %3596 = vmatpush.msrb.mxu2 %v2319_v17  ;;  %3615 = vmatpush.msrb.mxu3 %v2353_v18  ;;  %v2337_v60 = vld [vmem:[%s5598_s30 + $0x3f70] sm:$0xff]  ;;  %v2335_v2 = vld [vmem:[%s5598_s30 + $0x3f60] sm:$0xff]  ;;  %v2732_v29 = vpop.f32.mrf.mxu2  ;;  %v2752_v40 = vpop.f32.mrf.mxu3 }
 0x243   : > { %3557 = vmatpush.msrb.mxu0 %v2253_v19  ;;  %3576 = vmatpush.msrb.mxu1 %v2287_v20  ;;  %v2237_v62 = vld [vmem:[%s5598_s30 + $0x3c50] sm:$0xff]  ;;  %v2235_v3 = vld [vmem:[%s5598_s30 + $0x3c40] sm:$0xff]  ;;  %v2713_v32 = vadd.f32 %v2712_v24, %v2693_v21 }
 0x244   : > { %3597 = vmatpush.msrb.mxu2 %v2317_v22  ;;  %3616 = vmatpush.msrb.mxu3 %v2351_v23  ;;  %v2301_v1 = vld [vmem:[%s5598_s30 + $0x3e50] sm:$0xff]  ;;  %v2299_v6 = vld [vmem:[%s5598_s30 + $0x3e40] sm:$0xff]  ;;  %v2772_v45 = vpop.f32.mrf.mxu0 }
 0x245   : > { %3558 = vmatpush.msrb.mxu0 %v2251_v25  ;;  %3577 = vmatpush.msrb.mxu1 %v2285_v26  ;;  %v2269_v4 = vld [vmem:[%s5598_s30 + $0x3d50] sm:$0xff]  ;;  %v2267_v10 = vld [vmem:[%s5598_s30 + $0x3d40] sm:$0xff]  ;;  %v2733_v37 = vadd.f32 %v2732_v29, %v2713_v32 }
 0x246   : > { %3598 = vmatpush.msrb.mxu2 %v2315_v27  ;;  %3617 = vmatpush.msrb.mxu3 %v2349_v28  ;;  %v2333_v7 = vld [vmem:[%s5598_s30 + $0x3f50] sm:$0xff]  ;;  %v2331_v12 = vld [vmem:[%s5598_s30 + $0x3f40] sm:$0xff] }
 0x247   : > { %3559 = vmatpush.msrb.mxu0 %v2249_v30  ;;  %3578 = vmatpush.msrb.mxu1 %v2283_v31  ;;  %v2233_v9 = vld [vmem:[%s5598_s30 + $0x3c30] sm:$0xff]  ;;  %v2231_v14 = vld [vmem:[%s5598_s30 + $0x3c20] sm:$0xff]  ;;  %v2753_v48 = vadd.f32 %v2752_v40, %v2733_v37 }
 0x248   : > { %3599 = vmatpush.msrb.mxu2 %v2313_v33  ;;  %3618 = vmatpush.msrb.mxu3 %v2347_v34  ;;  %v2297_v11 = vld [vmem:[%s5598_s30 + $0x3e30] sm:$0xff]  ;;  %v2295_v17 = vld [vmem:[%s5598_s30 + $0x3e20] sm:$0xff]  ;;  %v338_v33 = vld [vmem:[%s5598_s30 + $0xf8] sm:$0xff]  ;;  %v2792_v56 = vpop.f32.mrf.mxu1 }
 0x249   : > { %3560 = vmatpush.msrb.mxu0 %v2247_v35  ;;  %3579 = vmatpush.msrb.mxu1 %v2281_v36  ;;  %v2265_v15 = vld [vmem:[%s5598_s30 + $0x3d30] sm:$0xff]  ;;  %v2263_v20 = vld [vmem:[%s5598_s30 + $0x3d20] sm:$0xff]  ;;  %v402_v34 = vld [vmem:[%s5598_s30 + $0x2f8] sm:$0xff]  ;;  %v2773_v53 = vadd.f32 %v2772_v45, %v2753_v48 }
 0x24a   : > { %3600 = vmatpush.msrb.mxu2 %v2311_v38  ;;  %3619 = vmatpush.msrb.mxu3 %v2345_v39  ;;  %v2329_v18 = vld [vmem:[%s5598_s30 + $0x3f30] sm:$0xff]  ;;  %v2327_v23 = vld [vmem:[%s5598_s30 + $0x3f20] sm:$0xff]  ;;  %v304_v38 = vld [vmem:[%s5592_s8 + $0x1e8] sm:$0xff]  ;;  %v2812_v61 = vpop.f32.mrf.mxu2  ;;  %v2832_v8 = vpop.f32.mrf.mxu3 }
 0x24b   : > { %3561 = vmatpush.msrb.mxu0 %v2245_v41  ;;  %3580 = vmatpush.msrb.mxu1 %v2279_v42  ;;  %v2229_v19 = vld [vmem:[%s5598_s30 + $0x3c10] sm:$0xff]  ;;  %v2227_v25 = vld [vmem:[%s5598_s30 + $0x3c00] sm:$0xff]  ;;  %v306_v39 = vld [vmem:[%s5592_s8 + $0x1f8] sm:$0xff]  ;;  %v2793_v0 = vadd.f32 %v2792_v56, %v2773_v53 }
 0x24c   : > { %3601 = vmatpush.msrb.mxu2 %v2309_v43  ;;  %3620 = vmatpush.msrb.mxu3 %v2343_v44  ;;  %v2293_v22 = vld [vmem:[%s5598_s30 + $0x3e10] sm:$0xff]  ;;  %v2291_v27 = vld [vmem:[%s5598_s30 + $0x3e00] sm:$0xff]  ;;  %v336_v41 = vld [vmem:[%s5598_s30 + $0xe8] sm:$0xff]  ;;  %v2852_v13 = vpop.f32.mrf.mxu0 }
 0x24d   : > { %3562 = vmatpush.msrb.mxu0 %v2243_v46  ;;  %3581 = vmatpush.msrb.mxu1 %v2277_v47  ;;  %v2261_v26 = vld [vmem:[%s5598_s30 + $0x3d10] sm:$0xff]  ;;  %v303_v30 = vld [vmem:[%s5592_s8 + $0x1e0] sm:$0xff]  ;;  %v370_v42 = vld [vmem:[%s5598_s30 + $0x1f8] sm:$0xff]  ;;  %v2813_v5 = vadd.f32 %v2812_v61, %v2793_v0 }
 0x24e   : > { %3602 = vmatpush.msrb.mxu2 %v2307_v49  ;;  %3621 = vmatpush.msrb.mxu3 %v2341_v50  ;;  %v2325_v28 = vld [vmem:[%s5598_s30 + $0x3f10] sm:$0xff]  ;;  %v2259_v35 = vld [vmem:[%s5598_s30 + $0x3d00] sm:$0xff]  ;;  %v400_v43 = vld [vmem:[%s5598_s30 + $0x2e8] sm:$0xff] }
 0x24f   : > { %3563 = vmatpush.msrb.mxu0 %v2241_v51  ;;  %3582 = vmatpush.msrb.mxu1 %v2275_v52  ;;  %v305_v31 = vld [vmem:[%s5592_s8 + $0x1f0] sm:$0xff]  ;;  %v2323_v36 = vld [vmem:[%s5598_s30 + $0x3f00] sm:$0xff]  ;;  %v434_v44 = vld [vmem:[%s5598_s30 + $0x3f8] sm:$0xff]  ;;  %v2833_v16 = vadd.f32 %v2832_v8, %v2813_v5 }
 0x250   : > { %3603 = vmatpush.msrb.mxu2 %v2305_v54  ;;  %3622 = vmatpush.msrb.mxu3 %v2339_v55  ;;  %v334_v46 = vld [vmem:[%s5598_s30 + $0xd8] sm:$0xff]  ;;  %v368_v47 = vld [vmem:[%s5598_s30 + $0x1e8] sm:$0xff]  ;;  %v2872_v24 = vpop.f32.mrf.mxu1 }
 0x251   : > { %3564 = vmatpush.msrb.mxu0 %v2239_v57  ;;  %3583 = vmatpush.msrb.mxu1 %v2273_v58  ;;  %v398_v49 = vld [vmem:[%s5598_s30 + $0x2d8] sm:$0xff]  ;;  %v432_v50 = vld [vmem:[%s5598_s30 + $0x3e8] sm:$0xff]  ;;  %v2853_v21 = vadd.f32 %v2852_v13, %v2833_v16 }
 0x252   : > { %3604 = vmatpush.msrb.mxu2 %v2303_v59  ;;  %3623 = vmatpush.msrb.mxu3 %v2337_v60  ;;  %v332_v51 = vld [vmem:[%s5598_s30 + $0xc8] sm:$0xff]  ;;  %v366_v52 = vld [vmem:[%s5598_s30 + $0x1d8] sm:$0xff]  ;;  %v2892_v29 = vpop.f32.mrf.mxu2  ;;  %v2912_v40 = vpop.f32.mrf.mxu3 }
 0x253   : > { %3565 = vmatpush.msrb.mxu0 %v2237_v62  ;;  %3584 = vmatpush.msrb.mxu1 %v2271_v63  ;;  %v396_v54 = vld [vmem:[%s5598_s30 + $0x2c8] sm:$0xff]  ;;  %v430_v55 = vld [vmem:[%s5598_s30 + $0x3d8] sm:$0xff]  ;;  %v2873_v32 = vadd.f32 %v2872_v24, %v2853_v21 }
 0x254   : > { %3605 = vmatpush.msrb.mxu2 %v2301_v1  ;;  %3624 = vmatpush.msrb.mxu3 %v2335_v2  ;;  %v330_v57 = vld [vmem:[%s5598_s30 + $0xb8] sm:$0xff]  ;;  %v364_v58 = vld [vmem:[%s5598_s30 + $0x1c8] sm:$0xff]  ;;  %v2932_v45 = vpop.f32.mrf.mxu0 }
 0x255   : > { %3566 = vmatpush.msrb.mxu0 %v2235_v3  ;;  %3585 = vmatpush.msrb.mxu1 %v2269_v4  ;;  %v394_v59 = vld [vmem:[%s5598_s30 + $0x2b8] sm:$0xff]  ;;  %v428_v60 = vld [vmem:[%s5598_s30 + $0x3c8] sm:$0xff]  ;;  %v2893_v37 = vadd.f32 %v2892_v29, %v2873_v32 }
 0x256   : > { %3606 = vmatpush.msrb.mxu2 %v2299_v6  ;;  %3625 = vmatpush.msrb.mxu3 %v2333_v7  ;;  %v328_v62 = vld [vmem:[%s5598_s30 + $0xa8] sm:$0xff]  ;;  %v362_v63 = vld [vmem:[%s5598_s30 + $0x1b8] sm:$0xff] }
 0x257   : > { %3567 = vmatpush.msrb.mxu0 %v2233_v9  ;;  %3586 = vmatpush.msrb.mxu1 %v2267_v10  ;;  %v392_v1 = vld [vmem:[%s5598_s30 + $0x2a8] sm:$0xff]  ;;  %v426_v2 = vld [vmem:[%s5598_s30 + $0x3b8] sm:$0xff]  ;;  %v2913_v48 = vadd.f32 %v2912_v40, %v2893_v37 }
 0x258   : > { %3607 = vmatpush.msrb.mxu2 %v2297_v11  ;;  %3626 = vmatpush.msrb.mxu3 %v2331_v12  ;;  %v326_v3 = vld [vmem:[%s5598_s30 + $0x98] sm:$0xff]  ;;  %v360_v4 = vld [vmem:[%s5598_s30 + $0x1a8] sm:$0xff]  ;;  %v2952_v56 = vpop.f32.mrf.mxu1 }
 0x259   : > { %3568 = vmatpush.msrb.mxu0 %v2231_v14  ;;  %3587 = vmatpush.msrb.mxu1 %v2265_v15  ;;  %v390_v6 = vld [vmem:[%s5598_s30 + $0x298] sm:$0xff]  ;;  %v424_v7 = vld [vmem:[%s5598_s30 + $0x3a8] sm:$0xff]  ;;  %v2933_v53 = vadd.f32 %v2932_v45, %v2913_v48 }
 0x25a   : > { %3608 = vmatpush.msrb.mxu2 %v2295_v17  ;;  %3627 = vmatpush.msrb.mxu3 %v2329_v18  ;;  %v324_v9 = vld [vmem:[%s5598_s30 + $0x88] sm:$0xff]  ;;  %v358_v10 = vld [vmem:[%s5598_s30 + $0x198] sm:$0xff]  ;;  %v2972_v61 = vpop.f32.mrf.mxu2  ;;  %v2992_v8 = vpop.f32.mrf.mxu3 }
 0x25b   : > { %3569 = vmatpush.msrb.mxu0 %v2229_v19  ;;  %3588 = vmatpush.msrb.mxu1 %v2263_v20  ;;  %v388_v11 = vld [vmem:[%s5598_s30 + $0x288] sm:$0xff]  ;;  %v422_v12 = vld [vmem:[%s5598_s30 + $0x398] sm:$0xff]  ;;  %v2953_v0 = vadd.f32 %v2952_v56, %v2933_v53 }
 0x25c   : > { %3609 = vmatpush.msrb.mxu2 %v2293_v22  ;;  %3628 = vmatpush.msrb.mxu3 %v2327_v23  ;;  %v322_v14 = vld [vmem:[%s5598_s30 + $0x78] sm:$0xff]  ;;  %v356_v15 = vld [vmem:[%s5598_s30 + $0x188] sm:$0xff]  ;;  %v3012_v13 = vpop.f32.mrf.mxu0 }
 0x25d   : > { %3570 = vmatpush.msrb.mxu0 %v2227_v25  ;;  %3589 = vmatpush.msrb.mxu1 %v2261_v26  ;;  %v386_v17 = vld [vmem:[%s5598_s30 + $0x278] sm:$0xff]  ;;  %v420_v18 = vld [vmem:[%s5598_s30 + $0x388] sm:$0xff]  ;;  %v2973_v5 = vadd.f32 %v2972_v61, %v2953_v0 }
 0x25e   : > { %3610 = vmatpush.msrb.mxu2 %v2291_v27  ;;  %3629 = vmatpush.msrb.mxu3 %v2325_v28  ;;  %v320_v19 = vld [vmem:[%s5598_s30 + $0x68] sm:$0xff]  ;;  %v354_v20 = vld [vmem:[%s5598_s30 + $0x178] sm:$0xff] }
 0x25f   : > { %3571 = vmatmul.f32.vlgmr.msrb.gmra.mxu0 %v303_v30  ;;  %3611 = vmatmul.f32.vlgmr.msrb.gmra.mxu2 %v305_v31  ;;  %v384_v22 = vld [vmem:[%s5598_s30 + $0x268] sm:$0xff]  ;;  %v418_v23 = vld [vmem:[%s5598_s30 + $0x378] sm:$0xff]  ;;  %v2993_v16 = vadd.f32 %v2992_v8, %v2973_v5 }
 0x260   : > { %3635 = vmatpush.msra.mxu0 %v338_v33  ;;  %3675 = vmatpush.msra.mxu2 %v402_v34  ;;  %v318_v25 = vld [vmem:[%s5598_s30 + $0x58] sm:$0xff]  ;;  %v352_v26 = vld [vmem:[%s5598_s30 + $0x168] sm:$0xff]  ;;  %v3032_v24 = vpop.f32.mrf.mxu1 }
 0x261   : > { %3590 = vmatpush.msrb.mxu1 %v2259_v35  ;;  %3630 = vmatpush.msrb.mxu3 %v2323_v36  ;;  %v382_v27 = vld [vmem:[%s5598_s30 + $0x258] sm:$0xff]  ;;  %v416_v28 = vld [vmem:[%s5598_s30 + $0x368] sm:$0xff]  ;;  %v3013_v21 = vadd.f32 %v3012_v13, %v2993_v16 }
 0x262   : > { %3591 = vmatmul.f32.vlgmr.msrb.gmra.mxu1 %v304_v38  ;;  %3631 = vmatmul.f32.vlgmr.msrb.gmra.mxu3 %v306_v39  ;;  %v316_v30 = vld [vmem:[%s5598_s30 + $0x48] sm:$0xff]  ;;  %v350_v31 = vld [vmem:[%s5598_s30 + $0x158] sm:$0xff]  ;;  %v3052_v29 = vpop.f32.mrf.mxu2  ;;  %v3072_v40 = vpop.f32.mrf.mxu3 }
 0x263   : > { %3636 = vmatpush.msra.mxu0 %v336_v41  ;;  %3655 = vmatpush.msra.mxu1 %v370_v42  ;;  %v380_v33 = vld [vmem:[%s5598_s30 + $0x248] sm:$0xff]  ;;  %v414_v34 = vld [vmem:[%s5598_s30 + $0x358] sm:$0xff]  ;;  %v3033_v32 = vadd.f32 %v3032_v24, %v3013_v21 }
 0x264   : > { %3676 = vmatpush.msra.mxu2 %v400_v43  ;;  %3695 = vmatpush.msra.mxu3 %v434_v44  ;;  %v314_v35 = vld [vmem:[%s5598_s30 + $0x38] sm:$0xff]  ;;  %v348_v36 = vld [vmem:[%s5598_s30 + $0x148] sm:$0xff]  ;;  %v3092_v45 = vpop.f32.mrf.mxu0 }
 0x265   : > { %3637 = vmatpush.msra.mxu0 %v334_v46  ;;  %3656 = vmatpush.msra.mxu1 %v368_v47  ;;  %v378_v38 = vld [vmem:[%s5598_s30 + $0x238] sm:$0xff]  ;;  %v412_v39 = vld [vmem:[%s5598_s30 + $0x348] sm:$0xff]  ;;  %v3053_v37 = vadd.f32 %v3052_v29, %v3033_v32 }
 0x266   : > { %3677 = vmatpush.msra.mxu2 %v398_v49  ;;  %3696 = vmatpush.msra.mxu3 %v432_v50  ;;  %v312_v41 = vld [vmem:[%s5598_s30 + $0x28] sm:$0xff]  ;;  %v346_v42 = vld [vmem:[%s5598_s30 + $0x138] sm:$0xff] }
 0x267   : > { %3638 = vmatpush.msra.mxu0 %v332_v51  ;;  %3657 = vmatpush.msra.mxu1 %v366_v52  ;;  %v376_v43 = vld [vmem:[%s5598_s30 + $0x228] sm:$0xff]  ;;  %v410_v44 = vld [vmem:[%s5598_s30 + $0x338] sm:$0xff]  ;;  %v3073_v48 = vadd.f32 %v3072_v40, %v3053_v37 }
 0x268   : > { %3678 = vmatpush.msra.mxu2 %v396_v54  ;;  %3697 = vmatpush.msra.mxu3 %v430_v55  ;;  %v310_v46 = vld [vmem:[%s5598_s30 + $0x18] sm:$0xff]  ;;  %v344_v47 = vld [vmem:[%s5598_s30 + $0x128] sm:$0xff]  ;;  %v3112_v56 = vpop.f32.mrf.mxu1 }
 0x269   : > { %3639 = vmatpush.msra.mxu0 %v330_v57  ;;  %3658 = vmatpush.msra.mxu1 %v364_v58  ;;  %v374_v49 = vld [vmem:[%s5598_s30 + $0x218] sm:$0xff]  ;;  %v408_v50 = vld [vmem:[%s5598_s30 + $0x328] sm:$0xff]  ;;  %v3093_v53 = vadd.f32 %v3092_v45, %v3073_v48 }
 0x26a   : > { %3679 = vmatpush.msra.mxu2 %v394_v59  ;;  %3698 = vmatpush.msra.mxu3 %v428_v60  ;;  %v308_v51 = vld [vmem:[%s5598_s30 + $0x8] sm:$0xff]  ;;  %v342_v52 = vld [vmem:[%s5598_s30 + $0x118] sm:$0xff]  ;;  %v3132_v61 = vpop.f32.mrf.mxu2  ;;  %v3152_v8 = vpop.f32.mrf.mxu3 }
 0x26b   : > { %3640 = vmatpush.msra.mxu0 %v328_v62  ;;  %3659 = vmatpush.msra.mxu1 %v362_v63  ;;  %v372_v54 = vld [vmem:[%s5598_s30 + $0x208] sm:$0xff]  ;;  %v406_v55 = vld [vmem:[%s5598_s30 + $0x318] sm:$0xff]  ;;  %v3113_v0 = vadd.f32 %v3112_v56, %v3093_v53 }
 0x26c   : > { %3680 = vmatpush.msra.mxu2 %v392_v1  ;;  %3699 = vmatpush.msra.mxu3 %v426_v2  ;;  %v466_v57 = vld [vmem:[%s5598_s30 + $0x4f8] sm:$0xff]  ;;  %v340_v59 = vld [vmem:[%s5598_s30 + $0x108] sm:$0xff] }
 0x26d   : > { %3641 = vmatpush.msra.mxu0 %v326_v3  ;;  %3660 = vmatpush.msra.mxu1 %v360_v4  ;;  %v530_v58 = vld [vmem:[%s5598_s30 + $0x6f8] sm:$0xff]  ;;  %v404_v60 = vld [vmem:[%s5598_s30 + $0x308] sm:$0xff]  ;;  %v3133_v5 = vadd.f32 %v3132_v61, %v3113_v0 }
 0x26e   : > { %3681 = vmatpush.msra.mxu2 %v390_v6  ;;  %3700 = vmatpush.msra.mxu3 %v424_v7  ;;  %v464_v62 = vld [vmem:[%s5598_s30 + $0x4e8] sm:$0xff]  ;;  %v498_v63 = vld [vmem:[%s5598_s30 + $0x5f8] sm:$0xff] }
 0x26f   : > { %3642 = vmatpush.msra.mxu0 %v324_v9  ;;  %3661 = vmatpush.msra.mxu1 %v358_v10  ;;  %v528_v1 = vld [vmem:[%s5598_s30 + $0x6e8] sm:$0xff]  ;;  %v562_v2 = vld [vmem:[%s5598_s30 + $0x7f8] sm:$0xff] }
 0x270   : > { %3682 = vmatpush.msra.mxu2 %v388_v11  ;;  %3701 = vmatpush.msra.mxu3 %v422_v12  ;;  %v462_v3 = vld [vmem:[%s5598_s30 + $0x4d8] sm:$0xff]  ;;  %v496_v4 = vld [vmem:[%s5598_s30 + $0x5e8] sm:$0xff] }
 0x271   : > { %3643 = vmatpush.msra.mxu0 %v322_v14  ;;  %3662 = vmatpush.msra.mxu1 %v356_v15  ;;  %v526_v6 = vld [vmem:[%s5598_s30 + $0x6d8] sm:$0xff]  ;;  %v560_v7 = vld [vmem:[%s5598_s30 + $0x7e8] sm:$0xff] }
 0x272   : > { %3683 = vmatpush.msra.mxu2 %v386_v17  ;;  %3702 = vmatpush.msra.mxu3 %v420_v18  ;;  %v460_v9 = vld [vmem:[%s5598_s30 + $0x4c8] sm:$0xff]  ;;  %v494_v10 = vld [vmem:[%s5598_s30 + $0x5d8] sm:$0xff] }
 0x273   : > { %3644 = vmatpush.msra.mxu0 %v320_v19  ;;  %3663 = vmatpush.msra.mxu1 %v354_v20  ;;  %v524_v11 = vld [vmem:[%s5598_s30 + $0x6c8] sm:$0xff]  ;;  %v558_v12 = vld [vmem:[%s5598_s30 + $0x7d8] sm:$0xff] }
 0x274   : > { %3684 = vmatpush.msra.mxu2 %v384_v22  ;;  %3703 = vmatpush.msra.mxu3 %v418_v23  ;;  %v458_v14 = vld [vmem:[%s5598_s30 + $0x4b8] sm:$0xff]  ;;  %v492_v15 = vld [vmem:[%s5598_s30 + $0x5c8] sm:$0xff] }
 0x275   : > { %3645 = vmatpush.msra.mxu0 %v318_v25  ;;  %3664 = vmatpush.msra.mxu1 %v352_v26  ;;  %v522_v17 = vld [vmem:[%s5598_s30 + $0x6b8] sm:$0xff]  ;;  %v556_v18 = vld [vmem:[%s5598_s30 + $0x7c8] sm:$0xff] }
 0x276   : > { %3685 = vmatpush.msra.mxu2 %v382_v27  ;;  %3704 = vmatpush.msra.mxu3 %v416_v28  ;;  %v456_v19 = vld [vmem:[%s5598_s30 + $0x4a8] sm:$0xff]  ;;  %v490_v20 = vld [vmem:[%s5598_s30 + $0x5b8] sm:$0xff] }
 0x277   : > { %3646 = vmatpush.msra.mxu0 %v316_v30  ;;  %3665 = vmatpush.msra.mxu1 %v350_v31  ;;  %v520_v22 = vld [vmem:[%s5598_s30 + $0x6a8] sm:$0xff]  ;;  %v554_v23 = vld [vmem:[%s5598_s30 + $0x7b8] sm:$0xff] }
 0x278   : > { %3686 = vmatpush.msra.mxu2 %v380_v33  ;;  %3705 = vmatpush.msra.mxu3 %v414_v34  ;;  %v454_v25 = vld [vmem:[%s5598_s30 + $0x498] sm:$0xff]  ;;  %v488_v26 = vld [vmem:[%s5598_s30 + $0x5a8] sm:$0xff] }
 0x279   : > { %3647 = vmatpush.msra.mxu0 %v314_v35  ;;  %3666 = vmatpush.msra.mxu1 %v348_v36  ;;  %v518_v27 = vld [vmem:[%s5598_s30 + $0x698] sm:$0xff]  ;;  %v552_v28 = vld [vmem:[%s5598_s30 + $0x7a8] sm:$0xff] }
 0x27a   : > { %3687 = vmatpush.msra.mxu2 %v378_v38  ;;  %3706 = vmatpush.msra.mxu3 %v412_v39  ;;  %v452_v30 = vld [vmem:[%s5598_s30 + $0x488] sm:$0xff]  ;;  %v486_v31 = vld [vmem:[%s5598_s30 + $0x598] sm:$0xff] }
 0x27b   : > { %3648 = vmatpush.msra.mxu0 %v312_v41  ;;  %3667 = vmatpush.msra.mxu1 %v346_v42  ;;  %v516_v33 = vld [vmem:[%s5598_s30 + $0x688] sm:$0xff]  ;;  %v550_v34 = vld [vmem:[%s5598_s30 + $0x798] sm:$0xff] }
 0x27c   : > { %3688 = vmatpush.msra.mxu2 %v376_v43  ;;  %3707 = vmatpush.msra.mxu3 %v410_v44  ;;  %v450_v35 = vld [vmem:[%s5598_s30 + $0x478] sm:$0xff]  ;;  %v484_v36 = vld [vmem:[%s5598_s30 + $0x588] sm:$0xff] }
 0x27d   : > { %3649 = vmatpush.msra.mxu0 %v310_v46  ;;  %3668 = vmatpush.msra.mxu1 %v344_v47  ;;  %v514_v38 = vld [vmem:[%s5598_s30 + $0x678] sm:$0xff]  ;;  %v548_v39 = vld [vmem:[%s5598_s30 + $0x788] sm:$0xff] }
 0x27e   : > { %3689 = vmatpush.msra.mxu2 %v374_v49  ;;  %3708 = vmatpush.msra.mxu3 %v408_v50  ;;  %v448_v41 = vld [vmem:[%s5598_s30 + $0x468] sm:$0xff]  ;;  %v482_v42 = vld [vmem:[%s5598_s30 + $0x578] sm:$0xff] }
 0x27f   : > { %3650 = vmatpush.msra.mxu0 %v308_v51  ;;  %3669 = vmatpush.msra.mxu1 %v342_v52  ;;  %v512_v43 = vld [vmem:[%s5598_s30 + $0x668] sm:$0xff]  ;;  %v546_v44 = vld [vmem:[%s5598_s30 + $0x778] sm:$0xff] }
 0x280   : > { %3690 = vmatpush.msra.mxu2 %v372_v54  ;;  %3709 = vmatpush.msra.mxu3 %v406_v55  ;;  %v446_v46 = vld [vmem:[%s5598_s30 + $0x458] sm:$0xff]  ;;  %v480_v47 = vld [vmem:[%s5598_s30 + $0x568] sm:$0xff] }
 0x281   : > { %3715 = vmatpush.msrb.mxu0 %v466_v57  ;;  %3670 = vmatpush.msra.mxu1 %v340_v59  ;;  %v510_v49 = vld [vmem:[%s5598_s30 + $0x658] sm:$0xff]  ;;  %v544_v50 = vld [vmem:[%s5598_s30 + $0x768] sm:$0xff] }
 0x282   : > { %3755 = vmatpush.msrb.mxu2 %v530_v58  ;;  %3710 = vmatpush.msra.mxu3 %v404_v60  ;;  %v444_v51 = vld [vmem:[%s5598_s30 + $0x448] sm:$0xff]  ;;  %v478_v52 = vld [vmem:[%s5598_s30 + $0x558] sm:$0xff] }
 0x283   : > { %3716 = vmatpush.msrb.mxu0 %v464_v62  ;;  %3735 = vmatpush.msrb.mxu1 %v498_v63  ;;  %v508_v54 = vld [vmem:[%s5598_s30 + $0x648] sm:$0xff]  ;;  %v542_v55 = vld [vmem:[%s5598_s30 + $0x758] sm:$0xff] }
 0x284   : > { %3756 = vmatpush.msrb.mxu2 %v528_v1  ;;  %3775 = vmatpush.msrb.mxu3 %v562_v2  ;;  %v442_v57 = vld [vmem:[%s5598_s30 + $0x438] sm:$0xff]  ;;  %v476_v58 = vld [vmem:[%s5598_s30 + $0x548] sm:$0xff] }
 0x285   : > { %3717 = vmatpush.msrb.mxu0 %v462_v3  ;;  %3736 = vmatpush.msrb.mxu1 %v496_v4  ;;  %v506_v59 = vld [vmem:[%s5598_s30 + $0x638] sm:$0xff]  ;;  %v540_v60 = vld [vmem:[%s5598_s30 + $0x748] sm:$0xff] }
 0x286   : > { %3757 = vmatpush.msrb.mxu2 %v526_v6  ;;  %3776 = vmatpush.msrb.mxu3 %v560_v7  ;;  %v440_v62 = vld [vmem:[%s5598_s30 + $0x428] sm:$0xff]  ;;  %v474_v63 = vld [vmem:[%s5598_s30 + $0x538] sm:$0xff] }
 0x287   : > { %3718 = vmatpush.msrb.mxu0 %v460_v9  ;;  %3737 = vmatpush.msrb.mxu1 %v494_v10  ;;  %v504_v1 = vld [vmem:[%s5598_s30 + $0x628] sm:$0xff]  ;;  %v538_v2 = vld [vmem:[%s5598_s30 + $0x738] sm:$0xff] }
 0x288   : > { %3758 = vmatpush.msrb.mxu2 %v524_v11  ;;  %3777 = vmatpush.msrb.mxu3 %v558_v12  ;;  %v438_v3 = vld [vmem:[%s5598_s30 + $0x418] sm:$0xff]  ;;  %v472_v4 = vld [vmem:[%s5598_s30 + $0x528] sm:$0xff]  ;;  %v3172_v12 = vpop.f32.mrf.mxu0 }
 0x289   : > { %3719 = vmatpush.msrb.mxu0 %v458_v14  ;;  %3738 = vmatpush.msrb.mxu1 %v492_v15  ;;  %v502_v6 = vld [vmem:[%s5598_s30 + $0x618] sm:$0xff]  ;;  %v536_v7 = vld [vmem:[%s5598_s30 + $0x728] sm:$0xff]  ;;  %v3153_v14 = vadd.f32 %v3152_v8, %v3133_v5  ;;  %v5188_v15 = vld [vmem:[%s5592_s8 + $0x10] sm:$0xff] }
 0x28a   : > { %3759 = vmatpush.msrb.mxu2 %v522_v17  ;;  %3778 = vmatpush.msrb.mxu3 %v556_v18  ;;  %v436_v9 = vld [vmem:[%s5598_s30 + $0x408] sm:$0xff]  ;;  %v470_v10 = vld [vmem:[%s5598_s30 + $0x518] sm:$0xff] }
 0x28b   : > { %3720 = vmatpush.msrb.mxu0 %v456_v19  ;;  %3739 = vmatpush.msrb.mxu1 %v490_v20  ;;  %v500_v11 = vld [vmem:[%s5598_s30 + $0x608] sm:$0xff]  ;;  %v534_v13 = vld [vmem:[%s5598_s30 + $0x718] sm:$0xff]  ;;  %v3173_v19 = vadd.f32 %v3172_v12, %v3153_v14  ;;  %v5189_v20 = vld [vmem:[%s5592_s8] sm:$0xff] }
 0x28c   : > { %3760 = vmatpush.msrb.mxu2 %v520_v22  ;;  %3779 = vmatpush.msrb.mxu3 %v554_v23  ;;  %v594_v16 = vld [vmem:[%s5598_s30 + $0x8f8] sm:$0xff]  ;;  %v468_v18 = vld [vmem:[%s5598_s30 + $0x508] sm:$0xff]  ;;  %v3192_v22 = vpop.f32.mrf.mxu1 }
 0x28d   : > { %3721 = vmatpush.msrb.mxu0 %v454_v25  ;;  %3740 = vmatpush.msrb.mxu1 %v488_v26  ;;  %v658_v17 = vld [vmem:[%s5598_s30 + $0xaf8] sm:$0xff]  ;;  %v532_v21 = vld [vmem:[%s5598_s30 + $0x708] sm:$0xff]  ;;  %v3193_v32 = vadd.f32 %v3192_v22, %v3173_v19 }
 0x28e   : > { %3761 = vmatpush.msrb.mxu2 %v518_v27  ;;  %3780 = vmatpush.msrb.mxu3 %v552_v28  ;;  %v5190_v23 = vld [vmem:[%s5592_s8 + $0x18] sm:$0xff]  ;;  %v592_v24 = vld [vmem:[%s5598_s30 + $0x8e8] sm:$0xff]  ;;  %v3212_v28 = vpop.f32.mrf.mxu2 }
 0x28f   : > { %3722 = vmatpush.msrb.mxu0 %v452_v30  ;;  %3741 = vmatpush.msrb.mxu1 %v486_v31  ;;  %v626_v25 = vld [vmem:[%s5598_s30 + $0x9f8] sm:$0xff]  ;;  %v656_v26 = vld [vmem:[%s5598_s30 + $0xae8] sm:$0xff] }
 0x290   : > { %3762 = vmatpush.msrb.mxu2 %v516_v33  ;;  %3781 = vmatpush.msrb.mxu3 %v550_v34  ;;  %v690_v27 = vld [vmem:[%s5598_s30 + $0xbf8] sm:$0xff]  ;;  %v5191_v29 = vld [vmem:[%s5592_s8 + $0x8] sm:$0xff] }
 0x291   : > { %3723 = vmatpush.msrb.mxu0 %v450_v35  ;;  %3742 = vmatpush.msrb.mxu1 %v484_v36  ;;  %v590_v30 = vld [vmem:[%s5598_s30 + $0x8d8] sm:$0xff]  ;;  %v624_v31 = vld [vmem:[%s5598_s30 + $0x9e8] sm:$0xff]  ;;  %v3213_v36 = vadd.f32 %v3212_v28, %v3193_v32 }
 0x292   : > { %3763 = vmatpush.msrb.mxu2 %v514_v38  ;;  %3782 = vmatpush.msrb.mxu3 %v548_v39  ;;  %v654_v33 = vld [vmem:[%s5598_s30 + $0xad8] sm:$0xff]  ;;  %v688_v34 = vld [vmem:[%s5598_s30 + $0xbe8] sm:$0xff]  ;;  %v3232_v39 = vpop.f32.mrf.mxu3 }
 0x293   : > { %3724 = vmatpush.msrb.mxu0 %v448_v41  ;;  %3743 = vmatpush.msrb.mxu1 %v482_v42  ;;  %v588_v35 = vld [vmem:[%s5598_s30 + $0x8c8] sm:$0xff]  ;;  %v622_v37 = vld [vmem:[%s5598_s30 + $0x9d8] sm:$0xff]  ;;  %v5192_v41 = vld [vmem:[%s5592_s8 + $0x30] sm:$0xff] }
 0x294   : > { %3764 = vmatpush.msrb.mxu2 %v512_v43  ;;  %3783 = vmatpush.msrb.mxu3 %v546_v44  ;;  %v652_v38 = vld [vmem:[%s5598_s30 + $0xac8] sm:$0xff]  ;;  %v686_v40 = vld [vmem:[%s5598_s30 + $0xbd8] sm:$0xff]  ;;  %v3252_v43 = vpop.f32.mrf.mxu0 }
 0x295   : > { %3725 = vmatpush.msrb.mxu0 %v446_v46  ;;  %3744 = vmatpush.msrb.mxu1 %v480_v47  ;;  %v586_v42 = vld [vmem:[%s5598_s30 + $0x8b8] sm:$0xff]  ;;  %v620_v44 = vld [vmem:[%s5598_s30 + $0x9c8] sm:$0xff]  ;;  %v3233_v46 = vadd.f32 %v3232_v39, %v3213_v36  ;;  %v5193_v47 = vld [vmem:[%s5592_s8 + $0x20] sm:$0xff] }
 0x296   : > { %3765 = vmatpush.msrb.mxu2 %v510_v49  ;;  %3784 = vmatpush.msrb.mxu3 %v544_v50  ;;  %v650_v45 = vld [vmem:[%s5598_s30 + $0xab8] sm:$0xff]  ;;  %v684_v48 = vld [vmem:[%s5598_s30 + $0xbc8] sm:$0xff]  ;;  %v3292_v61 = vpop.f32.mrf.mxu2 }
 0x297   : > { %3726 = vmatpush.msrb.mxu0 %v444_v51  ;;  %3745 = vmatpush.msrb.mxu1 %v478_v52  ;;  %v5194_v49 = vld [vmem:[%s5592_s8 + $0x38] sm:$0xff]  ;;  %v584_v50 = vld [vmem:[%s5598_s30 + $0x8a8] sm:$0xff]  ;;  %v3253_v52 = vadd.f32 %v3252_v43, %v3233_v46 }
 0x298   : > { %3766 = vmatpush.msrb.mxu2 %v508_v54  ;;  %3785 = vmatpush.msrb.mxu3 %v542_v55  ;;  %v618_v51 = vld [vmem:[%s5598_s30 + $0x9b8] sm:$0xff]  ;;  %v648_v53 = vld [vmem:[%s5598_s30 + $0xaa8] sm:$0xff]  ;;  %v3272_v55 = vpop.f32.mrf.mxu1 }
 0x299   : > { %3727 = vmatpush.msrb.mxu0 %v442_v57  ;;  %3746 = vmatpush.msrb.mxu1 %v476_v58  ;;  %v682_v54 = vld [vmem:[%s5598_s30 + $0xbb8] sm:$0xff]  ;;  %v5195_v56 = vld [vmem:[%s5592_s8 + $0x28] sm:$0xff]  ;;  %v3273_v0 = vadd.f32 %v3272_v55, %v3253_v52  ;;  %v5196_v52 = vld [vmem:[%s5592_s8 + $0x40] sm:$0xff] }
 0x29a   : > { %3767 = vmatpush.msrb.mxu2 %v506_v59  ;;  %3786 = vmatpush.msrb.mxu3 %v540_v60  ;;  %v582_v57 = vld [vmem:[%s5598_s30 + $0x898] sm:$0xff]  ;;  %v616_v58 = vld [vmem:[%s5598_s30 + $0x9a8] sm:$0xff]  ;;  %v3312_v8 = vpop.f32.mrf.mxu3 }
 0x29b   : > { %3728 = vmatpush.msrb.mxu0 %v440_v62  ;;  %3747 = vmatpush.msrb.mxu1 %v474_v63  ;;  %v646_v59 = vld [vmem:[%s5598_s30 + $0xa98] sm:$0xff]  ;;  %v680_v60 = vld [vmem:[%s5598_s30 + $0xba8] sm:$0xff]  ;;  %v3293_v5 = vadd.f32 %v3292_v61, %v3273_v0 }
 0x29c   : > { %3768 = vmatpush.msrb.mxu2 %v504_v1  ;;  %3787 = vmatpush.msrb.mxu3 %v538_v2  ;;  %v580_v62 = vld [vmem:[%s5598_s30 + $0x888] sm:$0xff]  ;;  %v614_v63 = vld [vmem:[%s5598_s30 + $0x998] sm:$0xff] }
 0x29d   : > { %3729 = vmatpush.msrb.mxu0 %v438_v3  ;;  %3748 = vmatpush.msrb.mxu1 %v472_v4  ;;  %v644_v1 = vld [vmem:[%s5598_s30 + $0xa88] sm:$0xff]  ;;  %v678_v2 = vld [vmem:[%s5598_s30 + $0xb98] sm:$0xff] }
 0x29e   : > { %3769 = vmatpush.msrb.mxu2 %v502_v6  ;;  %3788 = vmatpush.msrb.mxu3 %v536_v7  ;;  %v578_v3 = vld [vmem:[%s5598_s30 + $0x878] sm:$0xff]  ;;  %v612_v4 = vld [vmem:[%s5598_s30 + $0x988] sm:$0xff] }
 0x29f   : > { %3691 = vmatmul.f32.vlgmr.msra.gmra.mxu2 %v5188_v15  ;;  %3730 = vmatpush.msrb.mxu0 %v436_v9  ;;  %v642_v6 = vld [vmem:[%s5598_s30 + $0xa78] sm:$0xff]  ;;  %v676_v7 = vld [vmem:[%s5598_s30 + $0xb88] sm:$0xff] }
 0x2a0   : > { %3749 = vmatpush.msrb.mxu1 %v470_v10  ;;  %3770 = vmatpush.msrb.mxu2 %v500_v11  ;;  %v576_v9 = vld [vmem:[%s5598_s30 + $0x868] sm:$0xff]  ;;  %v610_v10 = vld [vmem:[%s5598_s30 + $0x978] sm:$0xff] }
 0x2a1   : > { %3789 = vmatpush.msrb.mxu3 %v534_v13  ;;  %3651 = vmatmul.f32.vlgmr.msra.gmra.mxu0 %v5189_v20  ;;  %v640_v11 = vld [vmem:[%s5598_s30 + $0xa68] sm:$0xff]  ;;  %v674_v12 = vld [vmem:[%s5598_s30 + $0xb78] sm:$0xff]  ;;  %v3332_v13 = vpop.f32.mrf.mxu0 }
 0x2a2   : > { %3711 = vmatmul.f32.vlgmr.msra.gmra.mxu3 %v5190_v23  ;;  %3795 = vmatpush.msra.mxu0 %v594_v16  ;;  %v574_v14 = vld [vmem:[%s5598_s30 + $0x858] sm:$0xff]  ;;  %v608_v15 = vld [vmem:[%s5598_s30 + $0x968] sm:$0xff]  ;;  %v3313_v16 = vadd.f32 %v3312_v8, %v3293_v5 }
 0x2a3   : > { %3835 = vmatpush.msra.mxu2 %v658_v17  ;;  %3750 = vmatpush.msrb.mxu1 %v468_v18  ;;  %v638_v17 = vld [vmem:[%s5598_s30 + $0xa58] sm:$0xff]  ;;  %v672_v18 = vld [vmem:[%s5598_s30 + $0xb68] sm:$0xff] }
 0x2a4   : > { %3790 = vmatpush.msrb.mxu3 %v532_v21  ;;  %3671 = vmatmul.f32.vlgmr.msra.gmra.mxu1 %v5191_v29  ;;  %v572_v19 = vld [vmem:[%s5598_s30 + $0x848] sm:$0xff]  ;;  %v606_v20 = vld [vmem:[%s5598_s30 + $0x958] sm:$0xff]  ;;  %v3333_v21 = vadd.f32 %v3332_v13, %v3313_v16  ;;  %v3372_v29 = vpop.f32.mrf.mxu2 }
 0x2a5   : > { %3796 = vmatpush.msra.mxu0 %v592_v24  ;;  %3815 = vmatpush.msra.mxu1 %v626_v25  ;;  %v636_v22 = vld [vmem:[%s5598_s30 + $0xa48] sm:$0xff]  ;;  %v670_v23 = vld [vmem:[%s5598_s30 + $0xb58] sm:$0xff]  ;;  %v3352_v24 = vpop.f32.mrf.mxu1 }
 0x2a6   : > { %3836 = vmatpush.msra.mxu2 %v656_v26  ;;  %3855 = vmatpush.msra.mxu3 %v690_v27  ;;  %v570_v25 = vld [vmem:[%s5598_s30 + $0x838] sm:$0xff]  ;;  %v604_v26 = vld [vmem:[%s5598_s30 + $0x948] sm:$0xff]  ;;  %v3353_v32 = vadd.f32 %v3352_v24, %v3333_v21 }
 0x2a7   : > { %3797 = vmatpush.msra.mxu0 %v590_v30  ;;  %3816 = vmatpush.msra.mxu1 %v624_v31  ;;  %v634_v27 = vld [vmem:[%s5598_s30 + $0xa38] sm:$0xff]  ;;  %v668_v28 = vld [vmem:[%s5598_s30 + $0xb48] sm:$0xff] }
 0x2a8   : > { %3837 = vmatpush.msra.mxu2 %v654_v33  ;;  %3856 = vmatpush.msra.mxu3 %v688_v34  ;;  %v568_v30 = vld [vmem:[%s5598_s30 + $0x828] sm:$0xff]  ;;  %v602_v31 = vld [vmem:[%s5598_s30 + $0x938] sm:$0xff] }
 0x2a9   : > { %3771 = vmatmul.f32.vlgmr.msrb.gmra.mxu2 %v5192_v41  ;;  %3798 = vmatpush.msra.mxu0 %v588_v35  ;;  %v632_v33 = vld [vmem:[%s5598_s30 + $0xa28] sm:$0xff]  ;;  %v666_v34 = vld [vmem:[%s5598_s30 + $0xb38] sm:$0xff] }
 0x2aa   : > { %3817 = vmatpush.msra.mxu1 %v622_v37  ;;  %3838 = vmatpush.msra.mxu2 %v652_v38  ;;  %v566_v35 = vld [vmem:[%s5598_s30 + $0x818] sm:$0xff]  ;;  %v600_v36 = vld [vmem:[%s5598_s30 + $0x928] sm:$0xff]  ;;  %v3373_v37 = vadd.f32 %v3372_v29, %v3353_v32 }
 0x2ab   : > { %3857 = vmatpush.msra.mxu3 %v686_v40  ;;  %3731 = vmatmul.f32.vlgmr.msrb.gmra.mxu0 %v5193_v47  ;;  %v630_v38 = vld [vmem:[%s5598_s30 + $0xa18] sm:$0xff]  ;;  %v664_v39 = vld [vmem:[%s5598_s30 + $0xb28] sm:$0xff]  ;;  %v3392_v40 = vpop.f32.mrf.mxu3 }
 0x2ac   : > { %3791 = vmatmul.f32.vlgmr.msrb.gmra.mxu3 %v5194_v49  ;;  %3799 = vmatpush.msra.mxu0 %v586_v42  ;;  %v564_v41 = vld [vmem:[%s5598_s30 + $0x808] sm:$0xff]  ;;  %v598_v42 = vld [vmem:[%s5598_s30 + $0x918] sm:$0xff]  ;;  %v3393_v46 = vadd.f32 %v3392_v40, %v3373_v37 }
 0x2ad   : > { %3818 = vmatpush.msra.mxu1 %v620_v44  ;;  %3839 = vmatpush.msra.mxu2 %v650_v45  ;;  %v628_v43 = vld [vmem:[%s5598_s30 + $0xa08] sm:$0xff]  ;;  %v662_v44 = vld [vmem:[%s5598_s30 + $0xb18] sm:$0xff]  ;;  %v3412_v45 = vpop.f32.mrf.mxu0 }
 0x2ae   : > { %3858 = vmatpush.msra.mxu3 %v684_v48  ;;  %3751 = vmatmul.f32.vlgmr.msrb.gmra.mxu1 %v5195_v56  ;;  %v722_v47 = vld [vmem:[%s5598_s30 + $0xcf8] sm:$0xff]  ;;  %v596_v49 = vld [vmem:[%s5598_s30 + $0x908] sm:$0xff] }
 0x2af   : > { %3800 = vmatpush.msra.mxu0 %v584_v50  ;;  %3819 = vmatpush.msra.mxu1 %v618_v51  ;;  %v786_v48 = vld [vmem:[%s5598_s30 + $0xef8] sm:$0xff]  ;;  %v660_v50 = vld [vmem:[%s5598_s30 + $0xb08] sm:$0xff]  ;;  %v3413_v51 = vadd.f32 %v3412_v45, %v3393_v46 }
 0x2b0   : > { %3840 = vmatpush.msra.mxu2 %v648_v53  ;;  %3859 = vmatpush.msra.mxu3 %v682_v54  ;;  %v5197_v53 = vld [vmem:[%s5592_s8 + $0x50] sm:$0xff]  ;;  %v3432_v54 = vpop.f32.mrf.mxu1  ;;  %v720_v55 = vld [vmem:[%s5598_s30 + $0xce8] sm:$0xff]  ;;  %v754_v56 = vld [vmem:[%s5598_s30 + $0xdf8] sm:$0xff] }
 0x2b1   : > { %3801 = vmatpush.msra.mxu0 %v582_v57  ;;  %3820 = vmatpush.msra.mxu1 %v616_v58  ;;  %v784_v57 = vld [vmem:[%s5598_s30 + $0xee8] sm:$0xff]  ;;  %v818_v58 = vld [vmem:[%s5598_s30 + $0xff8] sm:$0xff]  ;;  %v3433_v0 = vadd.f32 %v3432_v54, %v3413_v51 }
 0x2b2   : > { %3841 = vmatpush.msra.mxu2 %v646_v59  ;;  %3860 = vmatpush.msra.mxu3 %v680_v60  ;;  %v3452_v59 = vpop.f32.mrf.mxu2  ;;  %v5198_v60 = vld [vmem:[%s5592_s8 + $0x48] sm:$0xff]  ;;  %v5199_v61 = vld [vmem:[%s5592_s8 + $0x58] sm:$0xff] }
 0x2b3   : > { %3802 = vmatpush.msra.mxu0 %v580_v62  ;;  %3821 = vmatpush.msra.mxu1 %v614_v63  ;;  %v718_v62 = vld [vmem:[%s5598_s30 + $0xcd8] sm:$0xff]  ;;  %v752_v63 = vld [vmem:[%s5598_s30 + $0xde8] sm:$0xff]  ;;  %v3453_v5 = vadd.f32 %v3452_v59, %v3433_v0  ;;  %v3472_v8 = vpop.f32.mrf.mxu3 }
 0x2b4   : > { %3842 = vmatpush.msra.mxu2 %v644_v1  ;;  %3861 = vmatpush.msra.mxu3 %v678_v2  ;;  %v782_v1 = vld [vmem:[%s5598_s30 + $0xed8] sm:$0xff]  ;;  %v816_v2 = vld [vmem:[%s5598_s30 + $0xfe8] sm:$0xff] }
 0x2b5   : > { %3803 = vmatpush.msra.mxu0 %v578_v3  ;;  %3822 = vmatpush.msra.mxu1 %v612_v4  ;;  %v716_v3 = vld [vmem:[%s5598_s30 + $0xcc8] sm:$0xff]  ;;  %v750_v4 = vld [vmem:[%s5598_s30 + $0xdd8] sm:$0xff]  ;;  %v3473_v16 = vadd.f32 %v3472_v8, %v3453_v5 }
 0x2b6   : > { %3843 = vmatpush.msra.mxu2 %v642_v6  ;;  %3862 = vmatpush.msra.mxu3 %v676_v7  ;;  %v780_v6 = vld [vmem:[%s5598_s30 + $0xec8] sm:$0xff]  ;;  %v814_v7 = vld [vmem:[%s5598_s30 + $0xfd8] sm:$0xff] }
 0x2b7   : > { %3804 = vmatpush.msra.mxu0 %v576_v9  ;;  %3823 = vmatpush.msra.mxu1 %v610_v10  ;;  %v714_v9 = vld [vmem:[%s5598_s30 + $0xcb8] sm:$0xff]  ;;  %v748_v10 = vld [vmem:[%s5598_s30 + $0xdc8] sm:$0xff] }
 0x2b8   : > { %3844 = vmatpush.msra.mxu2 %v640_v11  ;;  %3863 = vmatpush.msra.mxu3 %v674_v12  ;;  %v778_v11 = vld [vmem:[%s5598_s30 + $0xeb8] sm:$0xff]  ;;  %v812_v12 = vld [vmem:[%s5598_s30 + $0xfc8] sm:$0xff] }
 0x2b9   : > { %3805 = vmatpush.msra.mxu0 %v574_v14  ;;  %3824 = vmatpush.msra.mxu1 %v608_v15  ;;  %v712_v14 = vld [vmem:[%s5598_s30 + $0xca8] sm:$0xff]  ;;  %v746_v15 = vld [vmem:[%s5598_s30 + $0xdb8] sm:$0xff] }
 0x2ba   : > { %3845 = vmatpush.msra.mxu2 %v638_v17  ;;  %3864 = vmatpush.msra.mxu3 %v672_v18  ;;  %v3492_v13 = vpop.f32.mrf.mxu0  ;;  %v776_v17 = vld [vmem:[%s5598_s30 + $0xea8] sm:$0xff]  ;;  %v810_v18 = vld [vmem:[%s5598_s30 + $0xfb8] sm:$0xff] }
 0x2bb   : > { %3806 = vmatpush.msra.mxu0 %v572_v19  ;;  %3825 = vmatpush.msra.mxu1 %v606_v20  ;;  %v710_v19 = vld [vmem:[%s5598_s30 + $0xc98] sm:$0xff]  ;;  %v744_v20 = vld [vmem:[%s5598_s30 + $0xda8] sm:$0xff]  ;;  %v3493_v21 = vadd.f32 %v3492_v13, %v3473_v16  ;;  %v5201_v16 = vld [vmem:[%s5592_s8 + $0x70] sm:$0xff] }
 0x2bc   : > { %3846 = vmatpush.msra.mxu2 %v636_v22  ;;  %3865 = vmatpush.msra.mxu3 %v670_v23  ;;  %v774_v22 = vld [vmem:[%s5598_s30 + $0xe98] sm:$0xff]  ;;  %v808_v23 = vld [vmem:[%s5598_s30 + $0xfa8] sm:$0xff] }
 0x2bd   : > { %3807 = vmatpush.msra.mxu0 %v570_v25  ;;  %3826 = vmatpush.msra.mxu1 %v604_v26  ;;  %v3512_v24 = vpop.f32.mrf.mxu1  ;;  %v708_v25 = vld [vmem:[%s5598_s30 + $0xc88] sm:$0xff]  ;;  %v742_v26 = vld [vmem:[%s5598_s30 + $0xd98] sm:$0xff] }
 0x2be   : > { %3847 = vmatpush.msra.mxu2 %v634_v27  ;;  %3866 = vmatpush.msra.mxu3 %v668_v28  ;;  %v772_v27 = vld [vmem:[%s5598_s30 + $0xe88] sm:$0xff]  ;;  %v806_v28 = vld [vmem:[%s5598_s30 + $0xf98] sm:$0xff]  ;;  %v3513_v32 = vadd.f32 %v3512_v24, %v3493_v21 }
 0x2bf   : > { %3808 = vmatpush.msra.mxu0 %v568_v30  ;;  %3827 = vmatpush.msra.mxu1 %v602_v31  ;;  %v706_v30 = vld [vmem:[%s5598_s30 + $0xc78] sm:$0xff]  ;;  %v740_v31 = vld [vmem:[%s5598_s30 + $0xd88] sm:$0xff] }
 0x2c0   : > { %3848 = vmatpush.msra.mxu2 %v632_v33  ;;  %3867 = vmatpush.msra.mxu3 %v666_v34  ;;  %v3532_v29 = vpop.f32.mrf.mxu2  ;;  %v770_v33 = vld [vmem:[%s5598_s30 + $0xe78] sm:$0xff]  ;;  %v804_v34 = vld [vmem:[%s5598_s30 + $0xf88] sm:$0xff] }
 0x2c1   : > { %3809 = vmatpush.msra.mxu0 %v566_v35  ;;  %3828 = vmatpush.msra.mxu1 %v600_v36  ;;  %v704_v35 = vld [vmem:[%s5598_s30 + $0xc68] sm:$0xff]  ;;  %v738_v36 = vld [vmem:[%s5598_s30 + $0xd78] sm:$0xff]  ;;  %v3533_v37 = vadd.f32 %v3532_v29, %v3513_v32 }
 0x2c2   : > { %3849 = vmatpush.msra.mxu2 %v630_v38  ;;  %3868 = vmatpush.msra.mxu3 %v664_v39  ;;  %v768_v38 = vld [vmem:[%s5598_s30 + $0xe68] sm:$0xff]  ;;  %v802_v39 = vld [vmem:[%s5598_s30 + $0xf78] sm:$0xff] }
 0x2c3   : > { %3810 = vmatpush.msra.mxu0 %v564_v41  ;;  %3829 = vmatpush.msra.mxu1 %v598_v42  ;;  %v3552_v40 = vpop.f32.mrf.mxu3  ;;  %v702_v41 = vld [vmem:[%s5598_s30 + $0xc58] sm:$0xff]  ;;  %v736_v42 = vld [vmem:[%s5598_s30 + $0xd68] sm:$0xff] }
 0x2c4   : > { %3850 = vmatpush.msra.mxu2 %v628_v43  ;;  %3869 = vmatpush.msra.mxu3 %v662_v44  ;;  %v766_v43 = vld [vmem:[%s5598_s30 + $0xe58] sm:$0xff]  ;;  %v800_v44 = vld [vmem:[%s5598_s30 + $0xf68] sm:$0xff] }
 0x2c5   : > { %3811 = vmatmul.f32.vlgmr.msra.gmra.mxu0 %v5196_v52  ;;  %3851 = vmatmul.f32.vlgmr.msra.gmra.mxu2 %v5197_v53  ;;  %v700_v45 = vld [vmem:[%s5598_s30 + $0xc48] sm:$0xff]  ;;  %v734_v46 = vld [vmem:[%s5598_s30 + $0xd58] sm:$0xff] }
 0x2c6   : > { %3875 = vmatpush.msrb.mxu0 %v722_v47  ;;  %3915 = vmatpush.msrb.mxu2 %v786_v48  ;;  %v3553_v47 = vadd.f32 %v3552_v40, %v3533_v37  ;;  %v764_v48 = vld [vmem:[%s5598_s30 + $0xe48] sm:$0xff]  ;;  %v762_v53 = vld [vmem:[%s5598_s30 + $0xe38] sm:$0xff] }
 0x2c7   : > { %3830 = vmatpush.msra.mxu1 %v596_v49  ;;  %3870 = vmatpush.msra.mxu3 %v660_v50  ;;  %v798_v49 = vld [vmem:[%s5598_s30 + $0xf58] sm:$0xff]  ;;  %v732_v51 = vld [vmem:[%s5598_s30 + $0xd48] sm:$0xff] }
 0x2c8   : > { %3831 = vmatmul.f32.vlgmr.msra.gmra.mxu1 %v5198_v60  ;;  %3871 = vmatmul.f32.vlgmr.msra.gmra.mxu3 %v5199_v61  ;;  %v698_v50 = vld [vmem:[%s5598_s30 + $0xc38] sm:$0xff]  ;;  %v796_v54 = vld [vmem:[%s5598_s30 + $0xf48] sm:$0xff] }
 0x2c9   : > { %3876 = vmatpush.msrb.mxu0 %v720_v55  ;;  %3895 = vmatpush.msrb.mxu1 %v754_v56  ;;  %v696_v56 = vld [vmem:[%s5598_s30 + $0xc28] sm:$0xff]  ;;  %v794_v59 = vld [vmem:[%s5598_s30 + $0xf38] sm:$0xff] }
 0x2ca   : > { %3916 = vmatpush.msrb.mxu2 %v784_v57  ;;  %3935 = vmatpush.msrb.mxu3 %v818_v58  ;;  %v730_v57 = vld [vmem:[%s5598_s30 + $0xd38] sm:$0xff]  ;;  %v760_v58 = vld [vmem:[%s5598_s30 + $0xe28] sm:$0xff] }
 0x2cb   : > { %3877 = vmatpush.msrb.mxu0 %v718_v62  ;;  %3896 = vmatpush.msrb.mxu1 %v752_v63  ;;  %v694_v61 = vld [vmem:[%s5598_s30 + $0xc18] sm:$0xff]  ;;  %v728_v62 = vld [vmem:[%s5598_s30 + $0xd28] sm:$0xff] }
 0x2cc   : > { %3917 = vmatpush.msrb.mxu2 %v782_v1  ;;  %3936 = vmatpush.msrb.mxu3 %v816_v2  ;;  %v758_v63 = vld [vmem:[%s5598_s30 + $0xe18] sm:$0xff]  ;;  %v792_v0 = vld [vmem:[%s5598_s30 + $0xf28] sm:$0xff] }
 0x2cd   : > { %3878 = vmatpush.msrb.mxu0 %v716_v3  ;;  %3897 = vmatpush.msrb.mxu1 %v750_v4  ;;  %v692_v2 = vld [vmem:[%s5598_s30 + $0xc08] sm:$0xff]  ;;  %v726_v3 = vld [vmem:[%s5598_s30 + $0xd18] sm:$0xff] }
 0x2ce   : > { %3918 = vmatpush.msrb.mxu2 %v780_v6  ;;  %3937 = vmatpush.msrb.mxu3 %v814_v7  ;;  %v756_v5 = vld [vmem:[%s5598_s30 + $0xe08] sm:$0xff]  ;;  %v790_v6 = vld [vmem:[%s5598_s30 + $0xf18] sm:$0xff] }
 0x2cf   : > { %3879 = vmatpush.msrb.mxu0 %v714_v9  ;;  %3898 = vmatpush.msrb.mxu1 %v748_v10  ;;  %v850_v8 = vld [vmem:[%s5598_s30 + $0x10f8] sm:$0xff]  ;;  %v241_v10 = vld [vmem:[#allocation2] sm:$0xff]  ;;  %v788_v13 = vld [vmem:[%s5598_s30 + $0xf08] sm:$0xff] }
 0x2d0   : > { %3919 = vmatpush.msrb.mxu2 %v778_v11  ;;  %3938 = vmatpush.msrb.mxu3 %v812_v12  ;;  %v914_v9 = vld [vmem:[%s5598_s30 + $0x12f8] sm:$0xff]  ;;  %v724_v12 = vld [vmem:[%s5598_s30 + $0xd08] sm:$0xff] }
 0x2d1   : > { %3880 = vmatpush.msrb.mxu0 %v712_v14  ;;  %3899 = vmatpush.msrb.mxu1 %v746_v15  ;;  %v5200_v15 = vld [vmem:[%s5592_s8 + $0x60] sm:$0xff]  ;;  %v946_v21 = vld [vmem:[%s5598_s30 + $0x13f8] sm:$0xff] }
 0x2d2   : > { %3920 = vmatpush.msrb.mxu2 %v776_v17  ;;  %3939 = vmatpush.msrb.mxu3 %v810_v18  ;;  %v848_v17 = vld [vmem:[%s5598_s30 + $0x10e8] sm:$0xff]  ;;  %v882_v18 = vld [vmem:[%s5598_s30 + $0x11f8] sm:$0xff] }
 0x2d3   : > { %3881 = vmatpush.msrb.mxu0 %v710_v19  ;;  %3900 = vmatpush.msrb.mxu1 %v744_v20  ;;  %v912_v20 = vld [vmem:[%s5598_s30 + $0x12e8] sm:$0xff]  ;;  %v846_v24 = vld [vmem:[%s5598_s30 + $0x10d8] sm:$0xff] }
 0x2d4   : > { %3921 = vmatpush.msrb.mxu2 %v774_v22  ;;  %3940 = vmatpush.msrb.mxu3 %v808_v23  ;;  %v5202_v22 = vld [vmem:[%s5592_s8 + $0x68] sm:$0xff]  ;;  %v5203_v23 = vld [vmem:[%s5592_s8 + $0x78] sm:$0xff] }
 0x2d5   : > { %3882 = vmatpush.msrb.mxu0 %v708_v25  ;;  %3901 = vmatpush.msrb.mxu1 %v742_v26  ;;  %v880_v25 = vld [vmem:[%s5598_s30 + $0x11e8] sm:$0xff]  ;;  %v910_v26 = vld [vmem:[%s5598_s30 + $0x12d8] sm:$0xff] }
 0x2d6   : > { %3922 = vmatpush.msrb.mxu2 %v772_v27  ;;  %3941 = vmatpush.msrb.mxu3 %v806_v28  ;;  %v944_v27 = vld [vmem:[%s5598_s30 + $0x13e8] sm:$0xff]  ;;  %v878_v29 = vld [vmem:[%s5598_s30 + $0x11d8] sm:$0xff] }
 0x2d7   : > { %3883 = vmatpush.msrb.mxu0 %v706_v30  ;;  %3902 = vmatpush.msrb.mxu1 %v740_v31  ;;  %v844_v28 = vld [vmem:[%s5598_s30 + $0x10c8] sm:$0xff]  ;;  %v942_v31 = vld [vmem:[%s5598_s30 + $0x13d8] sm:$0xff] }
 0x2d8   : > { %3923 = vmatpush.msrb.mxu2 %v770_v33  ;;  %3942 = vmatpush.msrb.mxu3 %v804_v34  ;;  %v908_v30 = vld [vmem:[%s5598_s30 + $0x12c8] sm:$0xff]  ;;  %v842_v32 = vld [vmem:[%s5598_s30 + $0x10b8] sm:$0xff] }
 0x2d9   : > { %3884 = vmatpush.msrb.mxu0 %v704_v35  ;;  %3903 = vmatpush.msrb.mxu1 %v738_v36  ;;  %v876_v33 = vld [vmem:[%s5598_s30 + $0x11c8] sm:$0xff]  ;;  %v906_v34 = vld [vmem:[%s5598_s30 + $0x12b8] sm:$0xff] }
 0x2da   : > { %3924 = vmatpush.msrb.mxu2 %v768_v38  ;;  %3943 = vmatpush.msrb.mxu3 %v802_v39  ;;  %v940_v35 = vld [vmem:[%s5598_s30 + $0x13c8] sm:$0xff]  ;;  %v874_v37 = vld [vmem:[%s5598_s30 + $0x11b8] sm:$0xff] }
 0x2db   : > { %3885 = vmatpush.msrb.mxu0 %v702_v41  ;;  %3904 = vmatpush.msrb.mxu1 %v736_v42  ;;  %v840_v36 = vld [vmem:[%s5598_s30 + $0x10a8] sm:$0xff]  ;;  %v938_v39 = vld [vmem:[%s5598_s30 + $0x13b8] sm:$0xff] }
 0x2dc   : > { %3925 = vmatpush.msrb.mxu2 %v766_v43  ;;  %3944 = vmatpush.msrb.mxu3 %v800_v44  ;;  %v3572_v52 = vpop.f32.mrf.mxu0  ;;  %v904_v38 = vld [vmem:[%s5598_s30 + $0x12a8] sm:$0xff]  ;;  %v838_v40 = vld [vmem:[%s5598_s30 + $0x1098] sm:$0xff] }
 0x2dd   : > { %3886 = vmatpush.msrb.mxu0 %v700_v45  ;;  %3905 = vmatpush.msrb.mxu1 %v734_v46  ;;  %v3573_v55 = vadd.f32 %v3572_v52, %v3553_v47  ;;  %v872_v41 = vld [vmem:[%s5598_s30 + $0x11a8] sm:$0xff]  ;;  %v902_v42 = vld [vmem:[%s5598_s30 + $0x1298] sm:$0xff] }
 0x2de   : > { %3926 = vmatpush.msrb.mxu2 %v764_v48  ;;  %3945 = vmatpush.msrb.mxu3 %v798_v49  ;;  %v936_v43 = vld [vmem:[%s5598_s30 + $0x13a8] sm:$0xff]  ;;  %v870_v45 = vld [vmem:[%s5598_s30 + $0x1198] sm:$0xff] }
 0x2df   : > { %3887 = vmatpush.msrb.mxu0 %v698_v50  ;;  %3906 = vmatpush.msrb.mxu1 %v732_v51  ;;  %v3592_v60 = vpop.f32.mrf.mxu1  ;;  %v836_v44 = vld [vmem:[%s5598_s30 + $0x1088] sm:$0xff]  ;;  %v934_v47 = vld [vmem:[%s5598_s30 + $0x1398] sm:$0xff] }
 0x2e0   : > { %3927 = vmatpush.msrb.mxu2 %v762_v53  ;;  %3946 = vmatpush.msrb.mxu3 %v796_v54  ;;  %v3593_v1 = vadd.f32 %v3592_v60, %v3573_v55  ;;  %v900_v46 = vld [vmem:[%s5598_s30 + $0x1288] sm:$0xff]  ;;  %v834_v48 = vld [vmem:[%s5598_s30 + $0x1078] sm:$0xff] }
 0x2e1   : > { %3888 = vmatpush.msrb.mxu0 %v696_v56  ;;  %3907 = vmatpush.msrb.mxu1 %v730_v57  ;;  %v868_v49 = vld [vmem:[%s5598_s30 + $0x1188] sm:$0xff]  ;;  %v898_v50 = vld [vmem:[%s5598_s30 + $0x1278] sm:$0xff] }
 0x2e2   : > { %3928 = vmatpush.msrb.mxu2 %v760_v58  ;;  %3947 = vmatpush.msrb.mxu3 %v794_v59  ;;  %v3612_v4 = vpop.f32.mrf.mxu2  ;;  %v932_v51 = vld [vmem:[%s5598_s30 + $0x1388] sm:$0xff]  ;;  %v866_v53 = vld [vmem:[%s5598_s30 + $0x1178] sm:$0xff] }
 0x2e3   : > { %3889 = vmatpush.msrb.mxu0 %v694_v61  ;;  %3908 = vmatpush.msrb.mxu1 %v728_v62  ;;  %v3613_v7 = vadd.f32 %v3612_v4, %v3593_v1  ;;  %v832_v52 = vld [vmem:[%s5598_s30 + $0x1068] sm:$0xff]  ;;  %v930_v55 = vld [vmem:[%s5598_s30 + $0x1378] sm:$0xff] }
 0x2e4   : > { %3929 = vmatpush.msrb.mxu2 %v758_v63  ;;  %3948 = vmatpush.msrb.mxu3 %v792_v0  ;;  %v896_v54 = vld [vmem:[%s5598_s30 + $0x1268] sm:$0xff]  ;;  %v830_v56 = vld [vmem:[%s5598_s30 + $0x1058] sm:$0xff] }
 0x2e5   : > { %3890 = vmatpush.msrb.mxu0 %v692_v2  ;;  %3909 = vmatpush.msrb.mxu1 %v726_v3  ;;  %v3632_v11 = vpop.f32.mrf.mxu3  ;;  %v864_v57 = vld [vmem:[%s5598_s30 + $0x1168] sm:$0xff]  ;;  %v894_v58 = vld [vmem:[%s5598_s30 + $0x1258] sm:$0xff] }
 0x2e6   : > { %3930 = vmatpush.msrb.mxu2 %v756_v5  ;;  %3949 = vmatpush.msrb.mxu3 %v790_v6  ;;  %v3633_v14 = vadd.f32 %v3632_v11, %v3613_v7  ;;  %v928_v59 = vld [vmem:[%s5598_s30 + $0x1368] sm:$0xff]  ;;  %v862_v61 = vld [vmem:[%s5598_s30 + $0x1158] sm:$0xff] }
 0x2e7   : > { %3891 = vmatmul.f32.vlgmr.msrb.gmra.mxu0 %v5200_v15  ;;  %3931 = vmatmul.f32.vlgmr.msrb.gmra.mxu2 %v5201_v16  ;;  %v828_v60 = vld [vmem:[%s5598_s30 + $0x1048] sm:$0xff]  ;;  %v926_v63 = vld [vmem:[%s5598_s30 + $0x1358] sm:$0xff] }
 0x2e8   : > { %3955 = vmatpush.msra.mxu0 %v850_v8  ;;  %3995 = vmatpush.msra.mxu2 %v914_v9  ;;  %v4915_v19 = vadd.f32 %v3633_v14, %v241_v10  ;;  %v892_v62 = vld [vmem:[%s5598_s30 + $0x1248] sm:$0xff]  ;;  %v826_v0 = vld [vmem:[%s5598_s30 + $0x1038] sm:$0xff] }
 0x2e9   : > { %3910 = vmatpush.msrb.mxu1 %v724_v12  ;;  %3950 = vmatpush.msrb.mxu3 %v788_v13  ;;  %v860_v1 = vld [vmem:[%s5598_s30 + $0x1148] sm:$0xff]  ;;  %v890_v2 = vld [vmem:[%s5598_s30 + $0x1238] sm:$0xff] }
 0x2ea   : > { %3911 = vmatmul.f32.vlgmr.msrb.gmra.mxu1 %v5202_v22  ;;  %3951 = vmatmul.f32.vlgmr.msrb.gmra.mxu3 %v5203_v23  ;;  %4917 = vst [vmem:[#allocation2] sm:$0xff] %v4915_v19  ;;  %v924_v3 = vld [vmem:[%s5598_s30 + $0x1348] sm:$0xff]  ;;  %v858_v5 = vld [vmem:[%s5598_s30 + $0x1138] sm:$0xff] }
 0x2eb   : > { %3956 = vmatpush.msra.mxu0 %v848_v17  ;;  %3975 = vmatpush.msra.mxu1 %v882_v18  ;;  %v824_v4 = vld [vmem:[%s5598_s30 + $0x1028] sm:$0xff]  ;;  %v922_v7 = vld [vmem:[%s5598_s30 + $0x1338] sm:$0xff] }
 0x2ec   : > { %3996 = vmatpush.msra.mxu2 %v912_v20  ;;  %4015 = vmatpush.msra.mxu3 %v946_v21  ;;  %v888_v6 = vld [vmem:[%s5598_s30 + $0x1228] sm:$0xff]  ;;  %v822_v8 = vld [vmem:[%s5598_s30 + $0x1018] sm:$0xff]  ;;  %v5204_v20 = vld [vmem:[%s5592_s8 + $0x80] sm:$0xff] }
 0x2ed   : > { %3957 = vmatpush.msra.mxu0 %v846_v24  ;;  %3976 = vmatpush.msra.mxu1 %v880_v25  ;;  %v856_v9 = vld [vmem:[%s5598_s30 + $0x1128] sm:$0xff]  ;;  %v886_v10 = vld [vmem:[%s5598_s30 + $0x1218] sm:$0xff]  ;;  %v5205_v21 = vld [vmem:[%s5592_s8 + $0x90] sm:$0xff] }
 0x2ee   : > { %3997 = vmatpush.msra.mxu2 %v910_v26  ;;  %4016 = vmatpush.msra.mxu3 %v944_v27  ;;  %v920_v11 = vld [vmem:[%s5598_s30 + $0x1328] sm:$0xff]  ;;  %v854_v13 = vld [vmem:[%s5598_s30 + $0x1118] sm:$0xff] }
 0x2ef   : > { %3958 = vmatpush.msra.mxu0 %v844_v28  ;;  %3977 = vmatpush.msra.mxu1 %v878_v29  ;;  %v820_v12 = vld [vmem:[%s5598_s30 + $0x1008] sm:$0xff]  ;;  %v918_v15 = vld [vmem:[%s5598_s30 + $0x1318] sm:$0xff] }
 0x2f0   : > { %3998 = vmatpush.msra.mxu2 %v908_v30  ;;  %4017 = vmatpush.msra.mxu3 %v942_v31  ;;  %v884_v14 = vld [vmem:[%s5598_s30 + $0x1208] sm:$0xff]  ;;  %v978_v16 = vld [vmem:[%s5598_s30 + $0x14f8] sm:$0xff] }
 0x2f1   : > { %3959 = vmatpush.msra.mxu0 %v842_v32  ;;  %3978 = vmatpush.msra.mxu1 %v876_v33  ;;  %v1042_v17 = vld [vmem:[%s5598_s30 + $0x16f8] sm:$0xff]  ;;  %v852_v18 = vld [vmem:[%s5598_s30 + $0x1108] sm:$0xff] }
 0x2f2   : > { %3999 = vmatpush.msra.mxu2 %v906_v34  ;;  %4018 = vmatpush.msra.mxu3 %v940_v35  ;;  %v916_v19 = vld [vmem:[%s5598_s30 + $0x1308] sm:$0xff]  ;;  %v1010_v23 = vld [vmem:[%s5598_s30 + $0x15f8] sm:$0xff] }
 0x2f3   : > { %3960 = vmatpush.msra.mxu0 %v840_v36  ;;  %3979 = vmatpush.msra.mxu1 %v874_v37  ;;  %v976_v22 = vld [vmem:[%s5598_s30 + $0x14e8] sm:$0xff]  ;;  %v1074_v25 = vld [vmem:[%s5598_s30 + $0x17f8] sm:$0xff] }
 0x2f4   : > { %4000 = vmatpush.msra.mxu2 %v904_v38  ;;  %4019 = vmatpush.msra.mxu3 %v938_v39  ;;  %v1040_v24 = vld [vmem:[%s5598_s30 + $0x16e8] sm:$0xff]  ;;  %v5207_v27 = vld [vmem:[%s5592_s8 + $0x98] sm:$0xff] }
 0x2f5   : > { %3961 = vmatpush.msra.mxu0 %v838_v40  ;;  %3980 = vmatpush.msra.mxu1 %v872_v41  ;;  %v5206_v26 = vld [vmem:[%s5592_s8 + $0x88] sm:$0xff]  ;;  %v974_v28 = vld [vmem:[%s5598_s30 + $0x14d8] sm:$0xff] }
 0x2f6   : > { %4001 = vmatpush.msra.mxu2 %v902_v42  ;;  %4020 = vmatpush.msra.mxu3 %v936_v43  ;;  %v1008_v29 = vld [vmem:[%s5598_s30 + $0x15e8] sm:$0xff]  ;;  %v1038_v30 = vld [vmem:[%s5598_s30 + $0x16d8] sm:$0xff] }
 0x2f7   : > { %3962 = vmatpush.msra.mxu0 %v836_v44  ;;  %3981 = vmatpush.msra.mxu1 %v870_v45  ;;  %v1072_v31 = vld [vmem:[%s5598_s30 + $0x17e8] sm:$0xff]  ;;  %v1006_v33 = vld [vmem:[%s5598_s30 + $0x15d8] sm:$0xff] }
 0x2f8   : > { %4002 = vmatpush.msra.mxu2 %v900_v46  ;;  %4021 = vmatpush.msra.mxu3 %v934_v47  ;;  %v972_v32 = vld [vmem:[%s5598_s30 + $0x14c8] sm:$0xff]  ;;  %v1070_v35 = vld [vmem:[%s5598_s30 + $0x17d8] sm:$0xff] }
 0x2f9   : > { %3963 = vmatpush.msra.mxu0 %v834_v48  ;;  %3982 = vmatpush.msra.mxu1 %v868_v49  ;;  %v1036_v34 = vld [vmem:[%s5598_s30 + $0x16c8] sm:$0xff]  ;;  %v970_v36 = vld [vmem:[%s5598_s30 + $0x14b8] sm:$0xff] }
 0x2fa   : > { %4003 = vmatpush.msra.mxu2 %v898_v50  ;;  %4022 = vmatpush.msra.mxu3 %v932_v51  ;;  %v1004_v37 = vld [vmem:[%s5598_s30 + $0x15c8] sm:$0xff]  ;;  %v1034_v38 = vld [vmem:[%s5598_s30 + $0x16b8] sm:$0xff] }
 0x2fb   : > { %3964 = vmatpush.msra.mxu0 %v832_v52  ;;  %3983 = vmatpush.msra.mxu1 %v866_v53  ;;  %v1068_v39 = vld [vmem:[%s5598_s30 + $0x17c8] sm:$0xff]  ;;  %v1002_v41 = vld [vmem:[%s5598_s30 + $0x15b8] sm:$0xff] }
 0x2fc   : > { %4004 = vmatpush.msra.mxu2 %v896_v54  ;;  %4023 = vmatpush.msra.mxu3 %v930_v55  ;;  %v968_v40 = vld [vmem:[%s5598_s30 + $0x14a8] sm:$0xff]  ;;  %v1066_v43 = vld [vmem:[%s5598_s30 + $0x17b8] sm:$0xff] }
 0x2fd   : > { %3965 = vmatpush.msra.mxu0 %v830_v56  ;;  %3984 = vmatpush.msra.mxu1 %v864_v57  ;;  %v1032_v42 = vld [vmem:[%s5598_s30 + $0x16a8] sm:$0xff]  ;;  %v966_v44 = vld [vmem:[%s5598_s30 + $0x1498] sm:$0xff] }
 0x2fe   : > { %4005 = vmatpush.msra.mxu2 %v894_v58  ;;  %4024 = vmatpush.msra.mxu3 %v928_v59  ;;  %v1000_v45 = vld [vmem:[%s5598_s30 + $0x15a8] sm:$0xff]  ;;  %v1030_v46 = vld [vmem:[%s5598_s30 + $0x1698] sm:$0xff] }
 0x2ff   : > { %3966 = vmatpush.msra.mxu0 %v828_v60  ;;  %3985 = vmatpush.msra.mxu1 %v862_v61  ;;  %v1064_v47 = vld [vmem:[%s5598_s30 + $0x17a8] sm:$0xff]  ;;  %v998_v49 = vld [vmem:[%s5598_s30 + $0x1598] sm:$0xff] }
 0x300   : > { %4006 = vmatpush.msra.mxu2 %v892_v62  ;;  %4025 = vmatpush.msra.mxu3 %v926_v63  ;;  %v964_v48 = vld [vmem:[%s5598_s30 + $0x1488] sm:$0xff]  ;;  %v1062_v51 = vld [vmem:[%s5598_s30 + $0x1798] sm:$0xff] }
 0x301   : > { %3967 = vmatpush.msra.mxu0 %v826_v0  ;;  %3986 = vmatpush.msra.mxu1 %v860_v1  ;;  %v1028_v50 = vld [vmem:[%s5598_s30 + $0x1688] sm:$0xff]  ;;  %v962_v52 = vld [vmem:[%s5598_s30 + $0x1478] sm:$0xff] }
 0x302   : > { %4007 = vmatpush.msra.mxu2 %v890_v2  ;;  %4026 = vmatpush.msra.mxu3 %v924_v3  ;;  %v996_v53 = vld [vmem:[%s5598_s30 + $0x1588] sm:$0xff]  ;;  %v1026_v54 = vld [vmem:[%s5598_s30 + $0x1678] sm:$0xff] }
 0x303   : > { %3968 = vmatpush.msra.mxu0 %v824_v4  ;;  %3987 = vmatpush.msra.mxu1 %v858_v5  ;;  %v1060_v55 = vld [vmem:[%s5598_s30 + $0x1788] sm:$0xff]  ;;  %v994_v57 = vld [vmem:[%s5598_s30 + $0x1578] sm:$0xff] }
 0x304   : > { %4008 = vmatpush.msra.mxu2 %v888_v6  ;;  %4027 = vmatpush.msra.mxu3 %v922_v7  ;;  %v960_v56 = vld [vmem:[%s5598_s30 + $0x1468] sm:$0xff]  ;;  %v1058_v59 = vld [vmem:[%s5598_s30 + $0x1778] sm:$0xff] }
 0x305   : > { %3969 = vmatpush.msra.mxu0 %v822_v8  ;;  %3988 = vmatpush.msra.mxu1 %v856_v9  ;;  %v1024_v58 = vld [vmem:[%s5598_s30 + $0x1668] sm:$0xff]  ;;  %v958_v60 = vld [vmem:[%s5598_s30 + $0x1458] sm:$0xff] }
 0x306   : > { %4009 = vmatpush.msra.mxu2 %v886_v10  ;;  %4028 = vmatpush.msra.mxu3 %v920_v11  ;;  %v992_v61 = vld [vmem:[%s5598_s30 + $0x1568] sm:$0xff]  ;;  %v1022_v62 = vld [vmem:[%s5598_s30 + $0x1658] sm:$0xff] }
 0x307   : > { %3970 = vmatpush.msra.mxu0 %v820_v12  ;;  %3989 = vmatpush.msra.mxu1 %v854_v13  ;;  %v1056_v63 = vld [vmem:[%s5598_s30 + $0x1768] sm:$0xff]  ;;  %v990_v1 = vld [vmem:[%s5598_s30 + $0x1558] sm:$0xff] }
 0x308   : > { %4010 = vmatpush.msra.mxu2 %v884_v14  ;;  %4029 = vmatpush.msra.mxu3 %v918_v15  ;;  %v956_v0 = vld [vmem:[%s5598_s30 + $0x1448] sm:$0xff]  ;;  %v1054_v3 = vld [vmem:[%s5598_s30 + $0x1758] sm:$0xff] }
 0x309   : > { %3971 = vmatmul.f32.vlgmr.msra.gmra.mxu0 %v5204_v20  ;;  %4011 = vmatmul.f32.vlgmr.msra.gmra.mxu2 %v5205_v21  ;;  %v1020_v2 = vld [vmem:[%s5598_s30 + $0x1648] sm:$0xff]  ;;  %v954_v4 = vld [vmem:[%s5598_s30 + $0x1438] sm:$0xff] }
 0x30a   : > { %4035 = vmatpush.msrb.mxu0 %v978_v16  ;;  %4075 = vmatpush.msrb.mxu2 %v1042_v17  ;;  %v988_v5 = vld [vmem:[%s5598_s30 + $0x1548] sm:$0xff]  ;;  %v1018_v6 = vld [vmem:[%s5598_s30 + $0x1638] sm:$0xff] }
 0x30b   : > { %3990 = vmatpush.msra.mxu1 %v852_v18  ;;  %4030 = vmatpush.msra.mxu3 %v916_v19  ;;  %v1052_v7 = vld [vmem:[%s5598_s30 + $0x1748] sm:$0xff]  ;;  %v986_v9 = vld [vmem:[%s5598_s30 + $0x1538] sm:$0xff] }
 0x30c   : > { %3991 = vmatmul.f32.vlgmr.msra.gmra.mxu1 %v5206_v26  ;;  %4031 = vmatmul.f32.vlgmr.msra.gmra.mxu3 %v5207_v27  ;;  %v952_v8 = vld [vmem:[%s5598_s30 + $0x1428] sm:$0xff]  ;;  %v1050_v11 = vld [vmem:[%s5598_s30 + $0x1738] sm:$0xff] }
 0x30d   : > { %4036 = vmatpush.msrb.mxu0 %v976_v22  ;;  %4055 = vmatpush.msrb.mxu1 %v1010_v23  ;;  %v1016_v10 = vld [vmem:[%s5598_s30 + $0x1628] sm:$0xff]  ;;  %v950_v12 = vld [vmem:[%s5598_s30 + $0x1418] sm:$0xff] }
 0x30e   : > { %4076 = vmatpush.msrb.mxu2 %v1040_v24  ;;  %4095 = vmatpush.msrb.mxu3 %v1074_v25  ;;  %v984_v13 = vld [vmem:[%s5598_s30 + $0x1528] sm:$0xff]  ;;  %v1014_v14 = vld [vmem:[%s5598_s30 + $0x1618] sm:$0xff]  ;;  %v5208_v24 = vld [vmem:[%s5592_s8 + $0xa0] sm:$0xff] }
 0x30f   : > { %4037 = vmatpush.msrb.mxu0 %v974_v28  ;;  %4056 = vmatpush.msrb.mxu1 %v1008_v29  ;;  %v1048_v15 = vld [vmem:[%s5598_s30 + $0x1728] sm:$0xff]  ;;  %v982_v17 = vld [vmem:[%s5598_s30 + $0x1518] sm:$0xff]  ;;  %v5209_v25 = vld [vmem:[%s5592_s8 + $0xb0] sm:$0xff] }
 0x310   : > { %4077 = vmatpush.msrb.mxu2 %v1038_v30  ;;  %4096 = vmatpush.msrb.mxu3 %v1072_v31  ;;  %v948_v16 = vld [vmem:[%s5598_s30 + $0x1408] sm:$0xff]  ;;  %v1046_v19 = vld [vmem:[%s5598_s30 + $0x1718] sm:$0xff] }
 0x311   : > { %4038 = vmatpush.msrb.mxu0 %v972_v32  ;;  %4057 = vmatpush.msrb.mxu1 %v1006_v33  ;;  %v1012_v18 = vld [vmem:[%s5598_s30 + $0x1608] sm:$0xff]  ;;  %v1106_v20 = vld [vmem:[%s5598_s30 + $0x18f8] sm:$0xff] }
 0x312   : > { %4078 = vmatpush.msrb.mxu2 %v1036_v34  ;;  %4097 = vmatpush.msrb.mxu3 %v1070_v35  ;;  %v1170_v21 = vld [vmem:[%s5598_s30 + $0x1af8] sm:$0xff]  ;;  %v980_v22 = vld [vmem:[%s5598_s30 + $0x1508] sm:$0xff] }
 0x313   : > { %4039 = vmatpush.msrb.mxu0 %v970_v36  ;;  %4058 = vmatpush.msrb.mxu1 %v1004_v37  ;;  %v1044_v23 = vld [vmem:[%s5598_s30 + $0x1708] sm:$0xff]  ;;  %v1138_v27 = vld [vmem:[%s5598_s30 + $0x19f8] sm:$0xff] }
 0x314   : > { %4079 = vmatpush.msrb.mxu2 %v1034_v38  ;;  %4098 = vmatpush.msrb.mxu3 %v1068_v39  ;;  %v1104_v26 = vld [vmem:[%s5598_s30 + $0x18e8] sm:$0xff]  ;;  %v1202_v29 = vld [vmem:[%s5598_s30 + $0x1bf8] sm:$0xff] }
 0x315   : > { %4040 = vmatpush.msrb.mxu0 %v968_v40  ;;  %4059 = vmatpush.msrb.mxu1 %v1002_v41  ;;  %v1168_v28 = vld [vmem:[%s5598_s30 + $0x1ae8] sm:$0xff]  ;;  %v5211_v31 = vld [vmem:[%s5592_s8 + $0xb8] sm:$0xff] }
 0x316   : > { %4080 = vmatpush.msrb.mxu2 %v1032_v42  ;;  %4099 = vmatpush.msrb.mxu3 %v1066_v43  ;;  %v5210_v30 = vld [vmem:[%s5592_s8 + $0xa8] sm:$0xff]  ;;  %v1102_v32 = vld [vmem:[%s5598_s30 + $0x18d8] sm:$0xff] }
 0x317   : > { %4041 = vmatpush.msrb.mxu0 %v966_v44  ;;  %4060 = vmatpush.msrb.mxu1 %v1000_v45  ;;  %v1136_v33 = vld [vmem:[%s5598_s30 + $0x19e8] sm:$0xff]  ;;  %v1166_v34 = vld [vmem:[%s5598_s30 + $0x1ad8] sm:$0xff] }
 0x318   : > { %4081 = vmatpush.msrb.mxu2 %v1030_v46  ;;  %4100 = vmatpush.msrb.mxu3 %v1064_v47  ;;  %v1200_v35 = vld [vmem:[%s5598_s30 + $0x1be8] sm:$0xff]  ;;  %v1134_v37 = vld [vmem:[%s5598_s30 + $0x19d8] sm:$0xff] }
 0x319   : > { %4042 = vmatpush.msrb.mxu0 %v964_v48  ;;  %4061 = vmatpush.msrb.mxu1 %v998_v49  ;;  %v1100_v36 = vld [vmem:[%s5598_s30 + $0x18c8] sm:$0xff]  ;;  %v1198_v39 = vld [vmem:[%s5598_s30 + $0x1bd8] sm:$0xff] }
 0x31a   : > { %4082 = vmatpush.msrb.mxu2 %v1028_v50  ;;  %4101 = vmatpush.msrb.mxu3 %v1062_v51  ;;  %v1164_v38 = vld [vmem:[%s5598_s30 + $0x1ac8] sm:$0xff]  ;;  %v1098_v40 = vld [vmem:[%s5598_s30 + $0x18b8] sm:$0xff] }
 0x31b   : > { %4043 = vmatpush.msrb.mxu0 %v962_v52  ;;  %4062 = vmatpush.msrb.mxu1 %v996_v53  ;;  %v1132_v41 = vld [vmem:[%s5598_s30 + $0x19c8] sm:$0xff]  ;;  %v1162_v42 = vld [vmem:[%s5598_s30 + $0x1ab8] sm:$0xff] }
 0x31c   : > { %4083 = vmatpush.msrb.mxu2 %v1026_v54  ;;  %4102 = vmatpush.msrb.mxu3 %v1060_v55  ;;  %v1196_v43 = vld [vmem:[%s5598_s30 + $0x1bc8] sm:$0xff]  ;;  %v1130_v45 = vld [vmem:[%s5598_s30 + $0x19b8] sm:$0xff] }
 0x31d   : > { %4044 = vmatpush.msrb.mxu0 %v960_v56  ;;  %4063 = vmatpush.msrb.mxu1 %v994_v57  ;;  %v1096_v44 = vld [vmem:[%s5598_s30 + $0x18a8] sm:$0xff]  ;;  %v1194_v47 = vld [vmem:[%s5598_s30 + $0x1bb8] sm:$0xff] }
 0x31e   : > { %4084 = vmatpush.msrb.mxu2 %v1024_v58  ;;  %4103 = vmatpush.msrb.mxu3 %v1058_v59  ;;  %v1160_v46 = vld [vmem:[%s5598_s30 + $0x1aa8] sm:$0xff]  ;;  %v1094_v48 = vld [vmem:[%s5598_s30 + $0x1898] sm:$0xff] }
 0x31f   : > { %4045 = vmatpush.msrb.mxu0 %v958_v60  ;;  %4064 = vmatpush.msrb.mxu1 %v992_v61  ;;  %v1128_v49 = vld [vmem:[%s5598_s30 + $0x19a8] sm:$0xff]  ;;  %v1158_v50 = vld [vmem:[%s5598_s30 + $0x1a98] sm:$0xff] }
 0x320   : > { %4085 = vmatpush.msrb.mxu2 %v1022_v62  ;;  %4104 = vmatpush.msrb.mxu3 %v1056_v63  ;;  %v1192_v51 = vld [vmem:[%s5598_s30 + $0x1ba8] sm:$0xff]  ;;  %v1126_v53 = vld [vmem:[%s5598_s30 + $0x1998] sm:$0xff] }
 0x321   : > { %4046 = vmatpush.msrb.mxu0 %v956_v0  ;;  %4065 = vmatpush.msrb.mxu1 %v990_v1  ;;  %v1092_v52 = vld [vmem:[%s5598_s30 + $0x1888] sm:$0xff]  ;;  %v1190_v55 = vld [vmem:[%s5598_s30 + $0x1b98] sm:$0xff] }
 0x322   : > { %4086 = vmatpush.msrb.mxu2 %v1020_v2  ;;  %4105 = vmatpush.msrb.mxu3 %v1054_v3  ;;  %v1156_v54 = vld [vmem:[%s5598_s30 + $0x1a88] sm:$0xff]  ;;  %v1090_v56 = vld [vmem:[%s5598_s30 + $0x1878] sm:$0xff] }
 0x323   : > { %4047 = vmatpush.msrb.mxu0 %v954_v4  ;;  %4066 = vmatpush.msrb.mxu1 %v988_v5  ;;  %v1124_v57 = vld [vmem:[%s5598_s30 + $0x1988] sm:$0xff]  ;;  %v1154_v58 = vld [vmem:[%s5598_s30 + $0x1a78] sm:$0xff] }
 0x324   : > { %4087 = vmatpush.msrb.mxu2 %v1018_v6  ;;  %4106 = vmatpush.msrb.mxu3 %v1052_v7  ;;  %v1188_v59 = vld [vmem:[%s5598_s30 + $0x1b88] sm:$0xff]  ;;  %v1122_v61 = vld [vmem:[%s5598_s30 + $0x1978] sm:$0xff] }
 0x325   : > { %4048 = vmatpush.msrb.mxu0 %v952_v8  ;;  %4067 = vmatpush.msrb.mxu1 %v986_v9  ;;  %v1088_v60 = vld [vmem:[%s5598_s30 + $0x1868] sm:$0xff]  ;;  %v1186_v63 = vld [vmem:[%s5598_s30 + $0x1b78] sm:$0xff] }
 0x326   : > { %4088 = vmatpush.msrb.mxu2 %v1016_v10  ;;  %4107 = vmatpush.msrb.mxu3 %v1050_v11  ;;  %v1152_v62 = vld [vmem:[%s5598_s30 + $0x1a68] sm:$0xff]  ;;  %v1086_v0 = vld [vmem:[%s5598_s30 + $0x1858] sm:$0xff] }
 0x327   : > { %4049 = vmatpush.msrb.mxu0 %v950_v12  ;;  %4068 = vmatpush.msrb.mxu1 %v984_v13  ;;  %v1120_v1 = vld [vmem:[%s5598_s30 + $0x1968] sm:$0xff]  ;;  %v1150_v2 = vld [vmem:[%s5598_s30 + $0x1a58] sm:$0xff] }
 0x328   : > { %4089 = vmatpush.msrb.mxu2 %v1014_v14  ;;  %4108 = vmatpush.msrb.mxu3 %v1048_v15  ;;  %v1184_v3 = vld [vmem:[%s5598_s30 + $0x1b68] sm:$0xff]  ;;  %v1118_v5 = vld [vmem:[%s5598_s30 + $0x1958] sm:$0xff] }
 0x329   : > { %4050 = vmatpush.msrb.mxu0 %v948_v16  ;;  %4069 = vmatpush.msrb.mxu1 %v982_v17  ;;  %v1084_v4 = vld [vmem:[%s5598_s30 + $0x1848] sm:$0xff]  ;;  %v1182_v7 = vld [vmem:[%s5598_s30 + $0x1b58] sm:$0xff] }
 0x32a   : > { %4090 = vmatpush.msrb.mxu2 %v1012_v18  ;;  %4109 = vmatpush.msrb.mxu3 %v1046_v19  ;;  %v1148_v6 = vld [vmem:[%s5598_s30 + $0x1a48] sm:$0xff]  ;;  %v1082_v8 = vld [vmem:[%s5598_s30 + $0x1838] sm:$0xff] }
 0x32b   : > { %4051 = vmatmul.f32.vlgmr.msrb.gmra.mxu0 %v5208_v24  ;;  %4091 = vmatmul.f32.vlgmr.msrb.gmra.mxu2 %v5209_v25  ;;  %v1116_v9 = vld [vmem:[%s5598_s30 + $0x1948] sm:$0xff]  ;;  %v1146_v10 = vld [vmem:[%s5598_s30 + $0x1a38] sm:$0xff] }
 0x32c   : > { %4115 = vmatpush.msra.mxu0 %v1106_v20  ;;  %4155 = vmatpush.msra.mxu2 %v1170_v21  ;;  %v1180_v11 = vld [vmem:[%s5598_s30 + $0x1b48] sm:$0xff]  ;;  %v1114_v13 = vld [vmem:[%s5598_s30 + $0x1938] sm:$0xff] }
 0x32d   : > { %4070 = vmatpush.msrb.mxu1 %v980_v22  ;;  %4110 = vmatpush.msrb.mxu3 %v1044_v23  ;;  %v1080_v12 = vld [vmem:[%s5598_s30 + $0x1828] sm:$0xff]  ;;  %v1178_v15 = vld [vmem:[%s5598_s30 + $0x1b38] sm:$0xff] }
 0x32e   : > { %4071 = vmatmul.f32.vlgmr.msrb.gmra.mxu1 %v5210_v30  ;;  %4111 = vmatmul.f32.vlgmr.msrb.gmra.mxu3 %v5211_v31  ;;  %v1144_v14 = vld [vmem:[%s5598_s30 + $0x1a28] sm:$0xff]  ;;  %v1078_v16 = vld [vmem:[%s5598_s30 + $0x1818] sm:$0xff] }
 0x32f   : > { %4116 = vmatpush.msra.mxu0 %v1104_v26  ;;  %4135 = vmatpush.msra.mxu1 %v1138_v27  ;;  %v1112_v17 = vld [vmem:[%s5598_s30 + $0x1928] sm:$0xff]  ;;  %v1142_v18 = vld [vmem:[%s5598_s30 + $0x1a18] sm:$0xff] }
 0x330   : > { %4156 = vmatpush.msra.mxu2 %v1168_v28  ;;  %4175 = vmatpush.msra.mxu3 %v1202_v29  ;;  %v1176_v19 = vld [vmem:[%s5598_s30 + $0x1b28] sm:$0xff]  ;;  %v1110_v21 = vld [vmem:[%s5598_s30 + $0x1918] sm:$0xff]  ;;  %v5212_v28 = vld [vmem:[%s5592_s8 + $0xc0] sm:$0xff] }
 0x331   : > { %4117 = vmatpush.msra.mxu0 %v1102_v32  ;;  %4136 = vmatpush.msra.mxu1 %v1136_v33  ;;  %v1076_v20 = vld [vmem:[%s5598_s30 + $0x1808] sm:$0xff]  ;;  %v1174_v23 = vld [vmem:[%s5598_s30 + $0x1b18] sm:$0xff]  ;;  %v5213_v29 = vld [vmem:[%s5592_s8 + $0xd0] sm:$0xff] }
 0x332   : > { %4157 = vmatpush.msra.mxu2 %v1166_v34  ;;  %4176 = vmatpush.msra.mxu3 %v1200_v35  ;;  %v1140_v22 = vld [vmem:[%s5598_s30 + $0x1a08] sm:$0xff]  ;;  %v1234_v24 = vld [vmem:[%s5598_s30 + $0x1cf8] sm:$0xff] }
 0x333   : > { %4118 = vmatpush.msra.mxu0 %v1100_v36  ;;  %4137 = vmatpush.msra.mxu1 %v1134_v37  ;;  %v1298_v25 = vld [vmem:[%s5598_s30 + $0x1ef8] sm:$0xff]  ;;  %v1108_v26 = vld [vmem:[%s5598_s30 + $0x1908] sm:$0xff] }
 0x334   : > { %4158 = vmatpush.msra.mxu2 %v1164_v38  ;;  %4177 = vmatpush.msra.mxu3 %v1198_v39  ;;  %v1172_v27 = vld [vmem:[%s5598_s30 + $0x1b08] sm:$0xff]  ;;  %v1266_v31 = vld [vmem:[%s5598_s30 + $0x1df8] sm:$0xff] }
 0x335   : > { %4119 = vmatpush.msra.mxu0 %v1098_v40  ;;  %4138 = vmatpush.msra.mxu1 %v1132_v41  ;;  %v1232_v30 = vld [vmem:[%s5598_s30 + $0x1ce8] sm:$0xff]  ;;  %v1330_v33 = vld [vmem:[%s5598_s30 + $0x1ff8] sm:$0xff] }
 0x336   : > { %4159 = vmatpush.msra.mxu2 %v1162_v42  ;;  %4178 = vmatpush.msra.mxu3 %v1196_v43  ;;  %v1296_v32 = vld [vmem:[%s5598_s30 + $0x1ee8] sm:$0xff]  ;;  %v5215_v35 = vld [vmem:[%s5592_s8 + $0xd8] sm:$0xff] }
 0x337   : > { %4120 = vmatpush.msra.mxu0 %v1096_v44  ;;  %4139 = vmatpush.msra.mxu1 %v1130_v45  ;;  %v5214_v34 = vld [vmem:[%s5592_s8 + $0xc8] sm:$0xff]  ;;  %v1230_v36 = vld [vmem:[%s5598_s30 + $0x1cd8] sm:$0xff] }
 0x338   : > { %4160 = vmatpush.msra.mxu2 %v1160_v46  ;;  %4179 = vmatpush.msra.mxu3 %v1194_v47  ;;  %v1264_v37 = vld [vmem:[%s5598_s30 + $0x1de8] sm:$0xff]  ;;  %v1294_v38 = vld [vmem:[%s5598_s30 + $0x1ed8] sm:$0xff] }
 0x339   : > { %4121 = vmatpush.msra.mxu0 %v1094_v48  ;;  %4140 = vmatpush.msra.mxu1 %v1128_v49  ;;  %v1328_v39 = vld [vmem:[%s5598_s30 + $0x1fe8] sm:$0xff]  ;;  %v1262_v41 = vld [vmem:[%s5598_s30 + $0x1dd8] sm:$0xff] }
 0x33a   : > { %4161 = vmatpush.msra.mxu2 %v1158_v50  ;;  %4180 = vmatpush.msra.mxu3 %v1192_v51  ;;  %v1228_v40 = vld [vmem:[%s5598_s30 + $0x1cc8] sm:$0xff]  ;;  %v1326_v43 = vld [vmem:[%s5598_s30 + $0x1fd8] sm:$0xff] }
 0x33b   : > { %4122 = vmatpush.msra.mxu0 %v1092_v52  ;;  %4141 = vmatpush.msra.mxu1 %v1126_v53  ;;  %v1292_v42 = vld [vmem:[%s5598_s30 + $0x1ec8] sm:$0xff]  ;;  %v1226_v44 = vld [vmem:[%s5598_s30 + $0x1cb8] sm:$0xff] }
 0x33c   : > { %4162 = vmatpush.msra.mxu2 %v1156_v54  ;;  %4181 = vmatpush.msra.mxu3 %v1190_v55  ;;  %v1260_v45 = vld [vmem:[%s5598_s30 + $0x1dc8] sm:$0xff]  ;;  %v1290_v46 = vld [vmem:[%s5598_s30 + $0x1eb8] sm:$0xff] }
 0x33d   : > { %4123 = vmatpush.msra.mxu0 %v1090_v56  ;;  %4142 = vmatpush.msra.mxu1 %v1124_v57  ;;  %v1324_v47 = vld [vmem:[%s5598_s30 + $0x1fc8] sm:$0xff]  ;;  %v1258_v49 = vld [vmem:[%s5598_s30 + $0x1db8] sm:$0xff] }
 0x33e   : > { %4163 = vmatpush.msra.mxu2 %v1154_v58  ;;  %4182 = vmatpush.msra.mxu3 %v1188_v59  ;;  %v1224_v48 = vld [vmem:[%s5598_s30 + $0x1ca8] sm:$0xff]  ;;  %v1322_v51 = vld [vmem:[%s5598_s30 + $0x1fb8] sm:$0xff] }
 0x33f   : > { %4124 = vmatpush.msra.mxu0 %v1088_v60  ;;  %4143 = vmatpush.msra.mxu1 %v1122_v61  ;;  %v1288_v50 = vld [vmem:[%s5598_s30 + $0x1ea8] sm:$0xff]  ;;  %v1222_v52 = vld [vmem:[%s5598_s30 + $0x1c98] sm:$0xff] }
 0x340   : > { %4164 = vmatpush.msra.mxu2 %v1152_v62  ;;  %4183 = vmatpush.msra.mxu3 %v1186_v63  ;;  %v1256_v53 = vld [vmem:[%s5598_s30 + $0x1da8] sm:$0xff]  ;;  %v1286_v54 = vld [vmem:[%s5598_s30 + $0x1e98] sm:$0xff] }
 0x341   : > { %4125 = vmatpush.msra.mxu0 %v1086_v0  ;;  %4144 = vmatpush.msra.mxu1 %v1120_v1  ;;  %v1320_v55 = vld [vmem:[%s5598_s30 + $0x1fa8] sm:$0xff]  ;;  %v1254_v57 = vld [vmem:[%s5598_s30 + $0x1d98] sm:$0xff] }
 0x342   : > { %4165 = vmatpush.msra.mxu2 %v1150_v2  ;;  %4184 = vmatpush.msra.mxu3 %v1184_v3  ;;  %v1220_v56 = vld [vmem:[%s5598_s30 + $0x1c88] sm:$0xff]  ;;  %v1318_v59 = vld [vmem:[%s5598_s30 + $0x1f98] sm:$0xff] }
 0x343   : > { %4126 = vmatpush.msra.mxu0 %v1084_v4  ;;  %4145 = vmatpush.msra.mxu1 %v1118_v5  ;;  %v1284_v58 = vld [vmem:[%s5598_s30 + $0x1e88] sm:$0xff]  ;;  %v1218_v60 = vld [vmem:[%s5598_s30 + $0x1c78] sm:$0xff] }
 0x344   : > { %4166 = vmatpush.msra.mxu2 %v1148_v6  ;;  %4185 = vmatpush.msra.mxu3 %v1182_v7  ;;  %v1252_v61 = vld [vmem:[%s5598_s30 + $0x1d88] sm:$0xff]  ;;  %v1282_v62 = vld [vmem:[%s5598_s30 + $0x1e78] sm:$0xff] }
 0x345   : > { %4127 = vmatpush.msra.mxu0 %v1082_v8  ;;  %4146 = vmatpush.msra.mxu1 %v1116_v9  ;;  %v1316_v63 = vld [vmem:[%s5598_s30 + $0x1f88] sm:$0xff]  ;;  %v1250_v1 = vld [vmem:[%s5598_s30 + $0x1d78] sm:$0xff] }
 0x346   : > { %4167 = vmatpush.msra.mxu2 %v1146_v10  ;;  %4186 = vmatpush.msra.mxu3 %v1180_v11  ;;  %v1216_v0 = vld [vmem:[%s5598_s30 + $0x1c68] sm:$0xff]  ;;  %v1314_v3 = vld [vmem:[%s5598_s30 + $0x1f78] sm:$0xff] }
 0x347   : > { %4128 = vmatpush.msra.mxu0 %v1080_v12  ;;  %4147 = vmatpush.msra.mxu1 %v1114_v13  ;;  %v1280_v2 = vld [vmem:[%s5598_s30 + $0x1e68] sm:$0xff]  ;;  %v1214_v4 = vld [vmem:[%s5598_s30 + $0x1c58] sm:$0xff] }
 0x348   : > { %4168 = vmatpush.msra.mxu2 %v1144_v14  ;;  %4187 = vmatpush.msra.mxu3 %v1178_v15  ;;  %v1248_v5 = vld [vmem:[%s5598_s30 + $0x1d68] sm:$0xff]  ;;  %v1278_v6 = vld [vmem:[%s5598_s30 + $0x1e58] sm:$0xff] }
 0x349   : > { %4129 = vmatpush.msra.mxu0 %v1078_v16  ;;  %4148 = vmatpush.msra.mxu1 %v1112_v17  ;;  %v1312_v7 = vld [vmem:[%s5598_s30 + $0x1f68] sm:$0xff]  ;;  %v1246_v9 = vld [vmem:[%s5598_s30 + $0x1d58] sm:$0xff] }
 0x34a   : > { %4169 = vmatpush.msra.mxu2 %v1142_v18  ;;  %4188 = vmatpush.msra.mxu3 %v1176_v19  ;;  %v1212_v8 = vld [vmem:[%s5598_s30 + $0x1c48] sm:$0xff]  ;;  %v1310_v11 = vld [vmem:[%s5598_s30 + $0x1f58] sm:$0xff] }
 0x34b   : > { %4130 = vmatpush.msra.mxu0 %v1076_v20  ;;  %4149 = vmatpush.msra.mxu1 %v1110_v21  ;;  %v1276_v10 = vld [vmem:[%s5598_s30 + $0x1e48] sm:$0xff]  ;;  %v1210_v12 = vld [vmem:[%s5598_s30 + $0x1c38] sm:$0xff] }
 0x34c   : > { %4170 = vmatpush.msra.mxu2 %v1140_v22  ;;  %4189 = vmatpush.msra.mxu3 %v1174_v23  ;;  %v1244_v13 = vld [vmem:[%s5598_s30 + $0x1d48] sm:$0xff]  ;;  %v1274_v14 = vld [vmem:[%s5598_s30 + $0x1e38] sm:$0xff] }
 0x34d   : > { %4131 = vmatmul.f32.vlgmr.msra.gmra.mxu0 %v5212_v28  ;;  %4171 = vmatmul.f32.vlgmr.msra.gmra.mxu2 %v5213_v29  ;;  %v1308_v15 = vld [vmem:[%s5598_s30 + $0x1f48] sm:$0xff]  ;;  %v1242_v17 = vld [vmem:[%s5598_s30 + $0x1d38] sm:$0xff] }
 0x34e   : > { %4195 = vmatpush.msrb.mxu0 %v1234_v24  ;;  %4235 = vmatpush.msrb.mxu2 %v1298_v25  ;;  %v1208_v16 = vld [vmem:[%s5598_s30 + $0x1c28] sm:$0xff]  ;;  %v1306_v19 = vld [vmem:[%s5598_s30 + $0x1f38] sm:$0xff] }
 0x34f   : > { %4150 = vmatpush.msra.mxu1 %v1108_v26  ;;  %4190 = vmatpush.msra.mxu3 %v1172_v27  ;;  %v1272_v18 = vld [vmem:[%s5598_s30 + $0x1e28] sm:$0xff]  ;;  %v1206_v20 = vld [vmem:[%s5598_s30 + $0x1c18] sm:$0xff] }
 0x350   : > { %4151 = vmatmul.f32.vlgmr.msra.gmra.mxu1 %v5214_v34  ;;  %4191 = vmatmul.f32.vlgmr.msra.gmra.mxu3 %v5215_v35  ;;  %v1240_v21 = vld [vmem:[%s5598_s30 + $0x1d28] sm:$0xff]  ;;  %v1270_v22 = vld [vmem:[%s5598_s30 + $0x1e18] sm:$0xff] }
 0x351   : > { %4196 = vmatpush.msrb.mxu0 %v1232_v30  ;;  %4215 = vmatpush.msrb.mxu1 %v1266_v31  ;;  %v1304_v23 = vld [vmem:[%s5598_s30 + $0x1f28] sm:$0xff]  ;;  %v1238_v25 = vld [vmem:[%s5598_s30 + $0x1d18] sm:$0xff] }
 0x352   : > { %4236 = vmatpush.msrb.mxu2 %v1296_v32  ;;  %4255 = vmatpush.msrb.mxu3 %v1330_v33  ;;  %v1204_v24 = vld [vmem:[%s5598_s30 + $0x1c08] sm:$0xff]  ;;  %v1302_v27 = vld [vmem:[%s5598_s30 + $0x1f18] sm:$0xff]  ;;  %v5216_v32 = vld [vmem:[%s5592_s8 + $0xe0] sm:$0xff] }
 0x353   : > { %4197 = vmatpush.msrb.mxu0 %v1230_v36  ;;  %4216 = vmatpush.msrb.mxu1 %v1264_v37  ;;  %v1268_v26 = vld [vmem:[%s5598_s30 + $0x1e08] sm:$0xff]  ;;  %v1362_v28 = vld [vmem:[%s5598_s30 + $0x20f8] sm:$0xff]  ;;  %v5217_v33 = vld [vmem:[%s5592_s8 + $0xf0] sm:$0xff] }
 0x354   : > { %4237 = vmatpush.msrb.mxu2 %v1294_v38  ;;  %4256 = vmatpush.msrb.mxu3 %v1328_v39  ;;  %v1426_v29 = vld [vmem:[%s5598_s30 + $0x22f8] sm:$0xff]  ;;  %v1236_v30 = vld [vmem:[%s5598_s30 + $0x1d08] sm:$0xff] }
 0x355   : > { %4198 = vmatpush.msrb.mxu0 %v1228_v40  ;;  %4217 = vmatpush.msrb.mxu1 %v1262_v41  ;;  %v1300_v31 = vld [vmem:[%s5598_s30 + $0x1f08] sm:$0xff]  ;;  %v1394_v35 = vld [vmem:[%s5598_s30 + $0x21f8] sm:$0xff] }
 0x356   : > { %4238 = vmatpush.msrb.mxu2 %v1292_v42  ;;  %4257 = vmatpush.msrb.mxu3 %v1326_v43  ;;  %v1360_v34 = vld [vmem:[%s5598_s30 + $0x20e8] sm:$0xff]  ;;  %v1458_v37 = vld [vmem:[%s5598_s30 + $0x23f8] sm:$0xff] }
 0x357   : > { %4199 = vmatpush.msrb.mxu0 %v1226_v44  ;;  %4218 = vmatpush.msrb.mxu1 %v1260_v45  ;;  %v1424_v36 = vld [vmem:[%s5598_s30 + $0x22e8] sm:$0xff]  ;;  %v5219_v39 = vld [vmem:[%s5592_s8 + $0xf8] sm:$0xff] }
 0x358   : > { %4239 = vmatpush.msrb.mxu2 %v1290_v46  ;;  %4258 = vmatpush.msrb.mxu3 %v1324_v47  ;;  %v5218_v38 = vld [vmem:[%s5592_s8 + $0xe8] sm:$0xff]  ;;  %v1358_v40 = vld [vmem:[%s5598_s30 + $0x20d8] sm:$0xff] }
 0x359   : > { %4200 = vmatpush.msrb.mxu0 %v1224_v48  ;;  %4219 = vmatpush.msrb.mxu1 %v1258_v49  ;;  %v1392_v41 = vld [vmem:[%s5598_s30 + $0x21e8] sm:$0xff]  ;;  %v1422_v42 = vld [vmem:[%s5598_s30 + $0x22d8] sm:$0xff] }
 0x35a   : > { %4240 = vmatpush.msrb.mxu2 %v1288_v50  ;;  %4259 = vmatpush.msrb.mxu3 %v1322_v51  ;;  %v1456_v43 = vld [vmem:[%s5598_s30 + $0x23e8] sm:$0xff]  ;;  %v1390_v45 = vld [vmem:[%s5598_s30 + $0x21d8] sm:$0xff] }
 0x35b   : > { %4201 = vmatpush.msrb.mxu0 %v1222_v52  ;;  %4220 = vmatpush.msrb.mxu1 %v1256_v53  ;;  %v1356_v44 = vld [vmem:[%s5598_s30 + $0x20c8] sm:$0xff]  ;;  %v1454_v47 = vld [vmem:[%s5598_s30 + $0x23d8] sm:$0xff] }
 0x35c   : > { %4241 = vmatpush.msrb.mxu2 %v1286_v54  ;;  %4260 = vmatpush.msrb.mxu3 %v1320_v55  ;;  %v1420_v46 = vld [vmem:[%s5598_s30 + $0x22c8] sm:$0xff]  ;;  %v1354_v48 = vld [vmem:[%s5598_s30 + $0x20b8] sm:$0xff] }
 0x35d   : > { %4202 = vmatpush.msrb.mxu0 %v1220_v56  ;;  %4221 = vmatpush.msrb.mxu1 %v1254_v57  ;;  %v1388_v49 = vld [vmem:[%s5598_s30 + $0x21c8] sm:$0xff]  ;;  %v1418_v50 = vld [vmem:[%s5598_s30 + $0x22b8] sm:$0xff] }
 0x35e   : > { %4242 = vmatpush.msrb.mxu2 %v1284_v58  ;;  %4261 = vmatpush.msrb.mxu3 %v1318_v59  ;;  %v1452_v51 = vld [vmem:[%s5598_s30 + $0x23c8] sm:$0xff]  ;;  %v1386_v53 = vld [vmem:[%s5598_s30 + $0x21b8] sm:$0xff] }
 0x35f   : > { %4203 = vmatpush.msrb.mxu0 %v1218_v60  ;;  %4222 = vmatpush.msrb.mxu1 %v1252_v61  ;;  %v1352_v52 = vld [vmem:[%s5598_s30 + $0x20a8] sm:$0xff]  ;;  %v1450_v55 = vld [vmem:[%s5598_s30 + $0x23b8] sm:$0xff] }
 0x360   : > { %4243 = vmatpush.msrb.mxu2 %v1282_v62  ;;  %4262 = vmatpush.msrb.mxu3 %v1316_v63  ;;  %v1416_v54 = vld [vmem:[%s5598_s30 + $0x22a8] sm:$0xff]  ;;  %v1350_v56 = vld [vmem:[%s5598_s30 + $0x2098] sm:$0xff] }
 0x361   : > { %4204 = vmatpush.msrb.mxu0 %v1216_v0  ;;  %4223 = vmatpush.msrb.mxu1 %v1250_v1  ;;  %v1384_v57 = vld [vmem:[%s5598_s30 + $0x21a8] sm:$0xff]  ;;  %v1414_v58 = vld [vmem:[%s5598_s30 + $0x2298] sm:$0xff] }
 0x362   : > { %4244 = vmatpush.msrb.mxu2 %v1280_v2  ;;  %4263 = vmatpush.msrb.mxu3 %v1314_v3  ;;  %v1448_v59 = vld [vmem:[%s5598_s30 + $0x23a8] sm:$0xff]  ;;  %v1382_v61 = vld [vmem:[%s5598_s30 + $0x2198] sm:$0xff] }
 0x363   : > { %4205 = vmatpush.msrb.mxu0 %v1214_v4  ;;  %4224 = vmatpush.msrb.mxu1 %v1248_v5  ;;  %v1348_v60 = vld [vmem:[%s5598_s30 + $0x2088] sm:$0xff]  ;;  %v1446_v63 = vld [vmem:[%s5598_s30 + $0x2398] sm:$0xff] }
 0x364   : > { %4245 = vmatpush.msrb.mxu2 %v1278_v6  ;;  %4264 = vmatpush.msrb.mxu3 %v1312_v7  ;;  %v1412_v62 = vld [vmem:[%s5598_s30 + $0x2288] sm:$0xff]  ;;  %v1346_v0 = vld [vmem:[%s5598_s30 + $0x2078] sm:$0xff] }
 0x365   : > { %4206 = vmatpush.msrb.mxu0 %v1212_v8  ;;  %4225 = vmatpush.msrb.mxu1 %v1246_v9  ;;  %v1380_v1 = vld [vmem:[%s5598_s30 + $0x2188] sm:$0xff]  ;;  %v1410_v2 = vld [vmem:[%s5598_s30 + $0x2278] sm:$0xff] }
 0x366   : > { %4246 = vmatpush.msrb.mxu2 %v1276_v10  ;;  %4265 = vmatpush.msrb.mxu3 %v1310_v11  ;;  %v1444_v3 = vld [vmem:[%s5598_s30 + $0x2388] sm:$0xff]  ;;  %v1378_v5 = vld [vmem:[%s5598_s30 + $0x2178] sm:$0xff] }
 0x367   : > { %4207 = vmatpush.msrb.mxu0 %v1210_v12  ;;  %4226 = vmatpush.msrb.mxu1 %v1244_v13  ;;  %v1344_v4 = vld [vmem:[%s5598_s30 + $0x2068] sm:$0xff]  ;;  %v1442_v7 = vld [vmem:[%s5598_s30 + $0x2378] sm:$0xff] }
 0x368   : > { %4247 = vmatpush.msrb.mxu2 %v1274_v14  ;;  %4266 = vmatpush.msrb.mxu3 %v1308_v15  ;;  %v1408_v6 = vld [vmem:[%s5598_s30 + $0x2268] sm:$0xff]  ;;  %v1342_v8 = vld [vmem:[%s5598_s30 + $0x2058] sm:$0xff] }
 0x369   : > { %4208 = vmatpush.msrb.mxu0 %v1208_v16  ;;  %4227 = vmatpush.msrb.mxu1 %v1242_v17  ;;  %v1376_v9 = vld [vmem:[%s5598_s30 + $0x2168] sm:$0xff]  ;;  %v1406_v10 = vld [vmem:[%s5598_s30 + $0x2258] sm:$0xff] }
 0x36a   : > { %4248 = vmatpush.msrb.mxu2 %v1272_v18  ;;  %4267 = vmatpush.msrb.mxu3 %v1306_v19  ;;  %v1440_v11 = vld [vmem:[%s5598_s30 + $0x2368] sm:$0xff]  ;;  %v1374_v13 = vld [vmem:[%s5598_s30 + $0x2158] sm:$0xff] }
 0x36b   : > { %4209 = vmatpush.msrb.mxu0 %v1206_v20  ;;  %4228 = vmatpush.msrb.mxu1 %v1240_v21  ;;  %v1340_v12 = vld [vmem:[%s5598_s30 + $0x2048] sm:$0xff]  ;;  %v1438_v15 = vld [vmem:[%s5598_s30 + $0x2358] sm:$0xff] }
 0x36c   : > { %4249 = vmatpush.msrb.mxu2 %v1270_v22  ;;  %4268 = vmatpush.msrb.mxu3 %v1304_v23  ;;  %v1404_v14 = vld [vmem:[%s5598_s30 + $0x2248] sm:$0xff]  ;;  %v1338_v16 = vld [vmem:[%s5598_s30 + $0x2038] sm:$0xff] }
 0x36d   : > { %4210 = vmatpush.msrb.mxu0 %v1204_v24  ;;  %4229 = vmatpush.msrb.mxu1 %v1238_v25  ;;  %v1372_v17 = vld [vmem:[%s5598_s30 + $0x2148] sm:$0xff]  ;;  %v1402_v18 = vld [vmem:[%s5598_s30 + $0x2238] sm:$0xff] }
 0x36e   : > { %4250 = vmatpush.msrb.mxu2 %v1268_v26  ;;  %4269 = vmatpush.msrb.mxu3 %v1302_v27  ;;  %v1436_v19 = vld [vmem:[%s5598_s30 + $0x2348] sm:$0xff]  ;;  %v1370_v21 = vld [vmem:[%s5598_s30 + $0x2138] sm:$0xff] }
 0x36f   : > { %4211 = vmatmul.f32.vlgmr.msrb.gmra.mxu0 %v5216_v32  ;;  %4251 = vmatmul.f32.vlgmr.msrb.gmra.mxu2 %v5217_v33  ;;  %v1336_v20 = vld [vmem:[%s5598_s30 + $0x2028] sm:$0xff]  ;;  %v1434_v23 = vld [vmem:[%s5598_s30 + $0x2338] sm:$0xff] }
 0x370   : > { %4275 = vmatpush.msra.mxu0 %v1362_v28  ;;  %4315 = vmatpush.msra.mxu2 %v1426_v29  ;;  %v1400_v22 = vld [vmem:[%s5598_s30 + $0x2228] sm:$0xff]  ;;  %v1334_v24 = vld [vmem:[%s5598_s30 + $0x2018] sm:$0xff] }
 0x371   : > { %4230 = vmatpush.msrb.mxu1 %v1236_v30  ;;  %4270 = vmatpush.msrb.mxu3 %v1300_v31  ;;  %v1368_v25 = vld [vmem:[%s5598_s30 + $0x2128] sm:$0xff]  ;;  %v1398_v26 = vld [vmem:[%s5598_s30 + $0x2218] sm:$0xff] }
 0x372   : > { %4231 = vmatmul.f32.vlgmr.msrb.gmra.mxu1 %v5218_v38  ;;  %4271 = vmatmul.f32.vlgmr.msrb.gmra.mxu3 %v5219_v39  ;;  %v1432_v27 = vld [vmem:[%s5598_s30 + $0x2328] sm:$0xff]  ;;  %v1366_v29 = vld [vmem:[%s5598_s30 + $0x2118] sm:$0xff] }
 0x373   : > { %4276 = vmatpush.msra.mxu0 %v1360_v34  ;;  %4295 = vmatpush.msra.mxu1 %v1394_v35  ;;  %v1332_v28 = vld [vmem:[%s5598_s30 + $0x2008] sm:$0xff]  ;;  %v1430_v31 = vld [vmem:[%s5598_s30 + $0x2318] sm:$0xff] }
 0x374   : > { %4316 = vmatpush.msra.mxu2 %v1424_v36  ;;  %4335 = vmatpush.msra.mxu3 %v1458_v37  ;;  %v1396_v30 = vld [vmem:[%s5598_s30 + $0x2208] sm:$0xff]  ;;  %v1490_v32 = vld [vmem:[%s5598_s30 + $0x24f8] sm:$0xff]  ;;  %v5220_v36 = vld [vmem:[%s5592_s8 + $0x100] sm:$0xff] }
 0x375   : > { %4277 = vmatpush.msra.mxu0 %v1358_v40  ;;  %4296 = vmatpush.msra.mxu1 %v1392_v41  ;;  %v1554_v33 = vld [vmem:[%s5598_s30 + $0x26f8] sm:$0xff]  ;;  %v1364_v34 = vld [vmem:[%s5598_s30 + $0x2108] sm:$0xff]  ;;  %v5221_v37 = vld [vmem:[%s5592_s8 + $0x110] sm:$0xff] }
 0x376   : > { %4317 = vmatpush.msra.mxu2 %v1422_v42  ;;  %4336 = vmatpush.msra.mxu3 %v1456_v43  ;;  %v1428_v35 = vld [vmem:[%s5598_s30 + $0x2308] sm:$0xff]  ;;  %v1522_v39 = vld [vmem:[%s5598_s30 + $0x25f8] sm:$0xff] }
 0x377   : > { %4278 = vmatpush.msra.mxu0 %v1356_v44  ;;  %4297 = vmatpush.msra.mxu1 %v1390_v45  ;;  %v1488_v38 = vld [vmem:[%s5598_s30 + $0x24e8] sm:$0xff]  ;;  %v1586_v41 = vld [vmem:[%s5598_s30 + $0x27f8] sm:$0xff] }
 0x378   : > { %4318 = vmatpush.msra.mxu2 %v1420_v46  ;;  %4337 = vmatpush.msra.mxu3 %v1454_v47  ;;  %v1552_v40 = vld [vmem:[%s5598_s30 + $0x26e8] sm:$0xff]  ;;  %v5223_v43 = vld [vmem:[%s5592_s8 + $0x118] sm:$0xff] }
 0x379   : > { %4279 = vmatpush.msra.mxu0 %v1354_v48  ;;  %4298 = vmatpush.msra.mxu1 %v1388_v49  ;;  %v5222_v42 = vld [vmem:[%s5592_s8 + $0x108] sm:$0xff]  ;;  %v1486_v44 = vld [vmem:[%s5598_s30 + $0x24d8] sm:$0xff] }
 0x37a   : > { %4319 = vmatpush.msra.mxu2 %v1418_v50  ;;  %4338 = vmatpush.msra.mxu3 %v1452_v51  ;;  %v1520_v45 = vld [vmem:[%s5598_s30 + $0x25e8] sm:$0xff]  ;;  %v1550_v46 = vld [vmem:[%s5598_s30 + $0x26d8] sm:$0xff] }
 0x37b   : > { %4280 = vmatpush.msra.mxu0 %v1352_v52  ;;  %4299 = vmatpush.msra.mxu1 %v1386_v53  ;;  %v1584_v47 = vld [vmem:[%s5598_s30 + $0x27e8] sm:$0xff]  ;;  %v1518_v49 = vld [vmem:[%s5598_s30 + $0x25d8] sm:$0xff] }
 0x37c   : > { %4320 = vmatpush.msra.mxu2 %v1416_v54  ;;  %4339 = vmatpush.msra.mxu3 %v1450_v55  ;;  %v1484_v48 = vld [vmem:[%s5598_s30 + $0x24c8] sm:$0xff]  ;;  %v1582_v51 = vld [vmem:[%s5598_s30 + $0x27d8] sm:$0xff] }
 0x37d   : > { %4281 = vmatpush.msra.mxu0 %v1350_v56  ;;  %4300 = vmatpush.msra.mxu1 %v1384_v57  ;;  %v1548_v50 = vld [vmem:[%s5598_s30 + $0x26c8] sm:$0xff]  ;;  %v1482_v52 = vld [vmem:[%s5598_s30 + $0x24b8] sm:$0xff] }
 0x37e   : > { %4321 = vmatpush.msra.mxu2 %v1414_v58  ;;  %4340 = vmatpush.msra.mxu3 %v1448_v59  ;;  %v1516_v53 = vld [vmem:[%s5598_s30 + $0x25c8] sm:$0xff]  ;;  %v1546_v54 = vld [vmem:[%s5598_s30 + $0x26b8] sm:$0xff] }
 0x37f   : > { %4282 = vmatpush.msra.mxu0 %v1348_v60  ;;  %4301 = vmatpush.msra.mxu1 %v1382_v61  ;;  %v1580_v55 = vld [vmem:[%s5598_s30 + $0x27c8] sm:$0xff]  ;;  %v1514_v57 = vld [vmem:[%s5598_s30 + $0x25b8] sm:$0xff] }
 0x380   : > { %4322 = vmatpush.msra.mxu2 %v1412_v62  ;;  %4341 = vmatpush.msra.mxu3 %v1446_v63  ;;  %v1480_v56 = vld [vmem:[%s5598_s30 + $0x24a8] sm:$0xff]  ;;  %v1578_v59 = vld [vmem:[%s5598_s30 + $0x27b8] sm:$0xff] }
 0x381   : > { %4283 = vmatpush.msra.mxu0 %v1346_v0  ;;  %4302 = vmatpush.msra.mxu1 %v1380_v1  ;;  %v1544_v58 = vld [vmem:[%s5598_s30 + $0x26a8] sm:$0xff]  ;;  %v1478_v60 = vld [vmem:[%s5598_s30 + $0x2498] sm:$0xff] }
 0x382   : > { %4323 = vmatpush.msra.mxu2 %v1410_v2  ;;  %4342 = vmatpush.msra.mxu3 %v1444_v3  ;;  %v1512_v61 = vld [vmem:[%s5598_s30 + $0x25a8] sm:$0xff]  ;;  %v1542_v62 = vld [vmem:[%s5598_s30 + $0x2698] sm:$0xff] }
 0x383   : > { %4284 = vmatpush.msra.mxu0 %v1344_v4  ;;  %4303 = vmatpush.msra.mxu1 %v1378_v5  ;;  %v1576_v63 = vld [vmem:[%s5598_s30 + $0x27a8] sm:$0xff]  ;;  %v1510_v1 = vld [vmem:[%s5598_s30 + $0x2598] sm:$0xff] }
 0x384   : > { %4324 = vmatpush.msra.mxu2 %v1408_v6  ;;  %4343 = vmatpush.msra.mxu3 %v1442_v7  ;;  %v1476_v0 = vld [vmem:[%s5598_s30 + $0x2488] sm:$0xff]  ;;  %v1574_v3 = vld [vmem:[%s5598_s30 + $0x2798] sm:$0xff] }
 0x385   : > { %4285 = vmatpush.msra.mxu0 %v1342_v8  ;;  %4304 = vmatpush.msra.mxu1 %v1376_v9  ;;  %v1540_v2 = vld [vmem:[%s5598_s30 + $0x2688] sm:$0xff]  ;;  %v1474_v4 = vld [vmem:[%s5598_s30 + $0x2478] sm:$0xff] }
 0x386   : > { %4325 = vmatpush.msra.mxu2 %v1406_v10  ;;  %4344 = vmatpush.msra.mxu3 %v1440_v11  ;;  %v1508_v5 = vld [vmem:[%s5598_s30 + $0x2588] sm:$0xff]  ;;  %v1538_v6 = vld [vmem:[%s5598_s30 + $0x2678] sm:$0xff] }
 0x387   : > { %4286 = vmatpush.msra.mxu0 %v1340_v12  ;;  %4305 = vmatpush.msra.mxu1 %v1374_v13  ;;  %v1572_v7 = vld [vmem:[%s5598_s30 + $0x2788] sm:$0xff]  ;;  %v1506_v9 = vld [vmem:[%s5598_s30 + $0x2578] sm:$0xff] }
 0x388   : > { %4326 = vmatpush.msra.mxu2 %v1404_v14  ;;  %4345 = vmatpush.msra.mxu3 %v1438_v15  ;;  %v1472_v8 = vld [vmem:[%s5598_s30 + $0x2468] sm:$0xff]  ;;  %v1570_v11 = vld [vmem:[%s5598_s30 + $0x2778] sm:$0xff] }
 0x389   : > { %4287 = vmatpush.msra.mxu0 %v1338_v16  ;;  %4306 = vmatpush.msra.mxu1 %v1372_v17  ;;  %v1536_v10 = vld [vmem:[%s5598_s30 + $0x2668] sm:$0xff]  ;;  %v1470_v12 = vld [vmem:[%s5598_s30 + $0x2458] sm:$0xff] }
 0x38a   : > { %4327 = vmatpush.msra.mxu2 %v1402_v18  ;;  %4346 = vmatpush.msra.mxu3 %v1436_v19  ;;  %v1504_v13 = vld [vmem:[%s5598_s30 + $0x2568] sm:$0xff]  ;;  %v1534_v14 = vld [vmem:[%s5598_s30 + $0x2658] sm:$0xff] }
 0x38b   : > { %4288 = vmatpush.msra.mxu0 %v1336_v20  ;;  %4307 = vmatpush.msra.mxu1 %v1370_v21  ;;  %v1568_v15 = vld [vmem:[%s5598_s30 + $0x2768] sm:$0xff]  ;;  %v1502_v17 = vld [vmem:[%s5598_s30 + $0x2558] sm:$0xff] }
 0x38c   : > { %4328 = vmatpush.msra.mxu2 %v1400_v22  ;;  %4347 = vmatpush.msra.mxu3 %v1434_v23  ;;  %v1468_v16 = vld [vmem:[%s5598_s30 + $0x2448] sm:$0xff]  ;;  %v1566_v19 = vld [vmem:[%s5598_s30 + $0x2758] sm:$0xff] }
 0x38d   : > { %4289 = vmatpush.msra.mxu0 %v1334_v24  ;;  %4308 = vmatpush.msra.mxu1 %v1368_v25  ;;  %v1532_v18 = vld [vmem:[%s5598_s30 + $0x2648] sm:$0xff]  ;;  %v1466_v20 = vld [vmem:[%s5598_s30 + $0x2438] sm:$0xff] }
 0x38e   : > { %4329 = vmatpush.msra.mxu2 %v1398_v26  ;;  %4348 = vmatpush.msra.mxu3 %v1432_v27  ;;  %v1500_v21 = vld [vmem:[%s5598_s30 + $0x2548] sm:$0xff]  ;;  %v1530_v22 = vld [vmem:[%s5598_s30 + $0x2638] sm:$0xff] }
 0x38f   : > { %4290 = vmatpush.msra.mxu0 %v1332_v28  ;;  %4309 = vmatpush.msra.mxu1 %v1366_v29  ;;  %v1564_v23 = vld [vmem:[%s5598_s30 + $0x2748] sm:$0xff]  ;;  %v1498_v25 = vld [vmem:[%s5598_s30 + $0x2538] sm:$0xff] }
 0x390   : > { %4330 = vmatpush.msra.mxu2 %v1396_v30  ;;  %4349 = vmatpush.msra.mxu3 %v1430_v31  ;;  %v1464_v24 = vld [vmem:[%s5598_s30 + $0x2428] sm:$0xff]  ;;  %v1562_v27 = vld [vmem:[%s5598_s30 + $0x2738] sm:$0xff] }
 0x391   : > { %4291 = vmatmul.f32.vlgmr.msra.gmra.mxu0 %v5220_v36  ;;  %4331 = vmatmul.f32.vlgmr.msra.gmra.mxu2 %v5221_v37  ;;  %v1528_v26 = vld [vmem:[%s5598_s30 + $0x2628] sm:$0xff]  ;;  %v1462_v28 = vld [vmem:[%s5598_s30 + $0x2418] sm:$0xff] }
 0x392   : > { %4355 = vmatpush.msrb.mxu0 %v1490_v32  ;;  %4395 = vmatpush.msrb.mxu2 %v1554_v33  ;;  %v1496_v29 = vld [vmem:[%s5598_s30 + $0x2528] sm:$0xff]  ;;  %v1526_v30 = vld [vmem:[%s5598_s30 + $0x2618] sm:$0xff] }
 0x393   : > { %4310 = vmatpush.msra.mxu1 %v1364_v34  ;;  %4350 = vmatpush.msra.mxu3 %v1428_v35  ;;  %v1560_v31 = vld [vmem:[%s5598_s30 + $0x2728] sm:$0xff]  ;;  %v1494_v33 = vld [vmem:[%s5598_s30 + $0x2518] sm:$0xff] }
 0x394   : > { %4311 = vmatmul.f32.vlgmr.msra.gmra.mxu1 %v5222_v42  ;;  %4351 = vmatmul.f32.vlgmr.msra.gmra.mxu3 %v5223_v43  ;;  %v1460_v32 = vld [vmem:[%s5598_s30 + $0x2408] sm:$0xff]  ;;  %v1558_v35 = vld [vmem:[%s5598_s30 + $0x2718] sm:$0xff] }
 0x395   : > { %4356 = vmatpush.msrb.mxu0 %v1488_v38  ;;  %4375 = vmatpush.msrb.mxu1 %v1522_v39  ;;  %v1524_v34 = vld [vmem:[%s5598_s30 + $0x2608] sm:$0xff]  ;;  %v1618_v36 = vld [vmem:[%s5598_s30 + $0x28f8] sm:$0xff] }
 0x396   : > { %4396 = vmatpush.msrb.mxu2 %v1552_v40  ;;  %4415 = vmatpush.msrb.mxu3 %v1586_v41  ;;  %v1682_v37 = vld [vmem:[%s5598_s30 + $0x2af8] sm:$0xff]  ;;  %v1492_v38 = vld [vmem:[%s5598_s30 + $0x2508] sm:$0xff]  ;;  %v5224_v40 = vld [vmem:[%s5592_s8 + $0x120] sm:$0xff] }
 0x397   : > { %4357 = vmatpush.msrb.mxu0 %v1486_v44  ;;  %4376 = vmatpush.msrb.mxu1 %v1520_v45  ;;  %v1556_v39 = vld [vmem:[%s5598_s30 + $0x2708] sm:$0xff]  ;;  %v5225_v41 = vld [vmem:[%s5592_s8 + $0x130] sm:$0xff]  ;;  %v1650_v43 = vld [vmem:[%s5598_s30 + $0x29f8] sm:$0xff] }
 0x398   : > { %4397 = vmatpush.msrb.mxu2 %v1550_v46  ;;  %4416 = vmatpush.msrb.mxu3 %v1584_v47  ;;  %v1616_v42 = vld [vmem:[%s5598_s30 + $0x28e8] sm:$0xff]  ;;  %v1714_v45 = vld [vmem:[%s5598_s30 + $0x2bf8] sm:$0xff] }
 0x399   : > { %4358 = vmatpush.msrb.mxu0 %v1484_v48  ;;  %4377 = vmatpush.msrb.mxu1 %v1518_v49  ;;  %v1680_v44 = vld [vmem:[%s5598_s30 + $0x2ae8] sm:$0xff]  ;;  %v5227_v47 = vld [vmem:[%s5592_s8 + $0x138] sm:$0xff] }
 0x39a   : > { %4398 = vmatpush.msrb.mxu2 %v1548_v50  ;;  %4417 = vmatpush.msrb.mxu3 %v1582_v51  ;;  %v5226_v46 = vld [vmem:[%s5592_s8 + $0x128] sm:$0xff]  ;;  %v1614_v48 = vld [vmem:[%s5598_s30 + $0x28d8] sm:$0xff] }
 0x39b   : > { %4359 = vmatpush.msrb.mxu0 %v1482_v52  ;;  %4378 = vmatpush.msrb.mxu1 %v1516_v53  ;;  %v1648_v49 = vld [vmem:[%s5598_s30 + $0x29e8] sm:$0xff]  ;;  %v1678_v50 = vld [vmem:[%s5598_s30 + $0x2ad8] sm:$0xff] }
 0x39c   : > { %4399 = vmatpush.msrb.mxu2 %v1546_v54  ;;  %4418 = vmatpush.msrb.mxu3 %v1580_v55  ;;  %v1712_v51 = vld [vmem:[%s5598_s30 + $0x2be8] sm:$0xff]  ;;  %v1646_v53 = vld [vmem:[%s5598_s30 + $0x29d8] sm:$0xff] }
 0x39d   : > { %4360 = vmatpush.msrb.mxu0 %v1480_v56  ;;  %4379 = vmatpush.msrb.mxu1 %v1514_v57  ;;  %v1612_v52 = vld [vmem:[%s5598_s30 + $0x28c8] sm:$0xff]  ;;  %v1710_v55 = vld [vmem:[%s5598_s30 + $0x2bd8] sm:$0xff] }
 0x39e   : > { %4400 = vmatpush.msrb.mxu2 %v1544_v58  ;;  %4419 = vmatpush.msrb.mxu3 %v1578_v59  ;;  %v1676_v54 = vld [vmem:[%s5598_s30 + $0x2ac8] sm:$0xff]  ;;  %v1610_v56 = vld [vmem:[%s5598_s30 + $0x28b8] sm:$0xff] }
 0x39f   : > { %4361 = vmatpush.msrb.mxu0 %v1478_v60  ;;  %4380 = vmatpush.msrb.mxu1 %v1512_v61  ;;  %v1644_v57 = vld [vmem:[%s5598_s30 + $0x29c8] sm:$0xff]  ;;  %v1674_v58 = vld [vmem:[%s5598_s30 + $0x2ab8] sm:$0xff] }
 0x3a0   : > { %4401 = vmatpush.msrb.mxu2 %v1542_v62  ;;  %4420 = vmatpush.msrb.mxu3 %v1576_v63  ;;  %v1708_v59 = vld [vmem:[%s5598_s30 + $0x2bc8] sm:$0xff]  ;;  %v1642_v61 = vld [vmem:[%s5598_s30 + $0x29b8] sm:$0xff] }
 0x3a1   : > { %4362 = vmatpush.msrb.mxu0 %v1476_v0  ;;  %4381 = vmatpush.msrb.mxu1 %v1510_v1  ;;  %v1608_v60 = vld [vmem:[%s5598_s30 + $0x28a8] sm:$0xff]  ;;  %v1706_v63 = vld [vmem:[%s5598_s30 + $0x2bb8] sm:$0xff] }
 0x3a2   : > { %4402 = vmatpush.msrb.mxu2 %v1540_v2  ;;  %4421 = vmatpush.msrb.mxu3 %v1574_v3  ;;  %v1672_v62 = vld [vmem:[%s5598_s30 + $0x2aa8] sm:$0xff]  ;;  %v1606_v0 = vld [vmem:[%s5598_s30 + $0x2898] sm:$0xff] }
 0x3a3   : > { %4363 = vmatpush.msrb.mxu0 %v1474_v4  ;;  %4382 = vmatpush.msrb.mxu1 %v1508_v5  ;;  %v1640_v1 = vld [vmem:[%s5598_s30 + $0x29a8] sm:$0xff]  ;;  %v1670_v2 = vld [vmem:[%s5598_s30 + $0x2a98] sm:$0xff] }
 0x3a4   : > { %4403 = vmatpush.msrb.mxu2 %v1538_v6  ;;  %4422 = vmatpush.msrb.mxu3 %v1572_v7  ;;  %v1704_v3 = vld [vmem:[%s5598_s30 + $0x2ba8] sm:$0xff]  ;;  %v1638_v5 = vld [vmem:[%s5598_s30 + $0x2998] sm:$0xff] }
 0x3a5   : > { %4364 = vmatpush.msrb.mxu0 %v1472_v8  ;;  %4383 = vmatpush.msrb.mxu1 %v1506_v9  ;;  %v1604_v4 = vld [vmem:[%s5598_s30 + $0x2888] sm:$0xff]  ;;  %v1702_v7 = vld [vmem:[%s5598_s30 + $0x2b98] sm:$0xff] }
 0x3a6   : > { %4404 = vmatpush.msrb.mxu2 %v1536_v10  ;;  %4423 = vmatpush.msrb.mxu3 %v1570_v11  ;;  %v1668_v6 = vld [vmem:[%s5598_s30 + $0x2a88] sm:$0xff]  ;;  %v1602_v8 = vld [vmem:[%s5598_s30 + $0x2878] sm:$0xff] }
 0x3a7   : > { %4365 = vmatpush.msrb.mxu0 %v1470_v12  ;;  %4384 = vmatpush.msrb.mxu1 %v1504_v13  ;;  %v1636_v9 = vld [vmem:[%s5598_s30 + $0x2988] sm:$0xff]  ;;  %v1666_v10 = vld [vmem:[%s5598_s30 + $0x2a78] sm:$0xff] }
 0x3a8   : > { %4405 = vmatpush.msrb.mxu2 %v1534_v14  ;;  %4424 = vmatpush.msrb.mxu3 %v1568_v15  ;;  %v1700_v11 = vld [vmem:[%s5598_s30 + $0x2b88] sm:$0xff]  ;;  %v1634_v13 = vld [vmem:[%s5598_s30 + $0x2978] sm:$0xff] }
 0x3a9   : > { %4366 = vmatpush.msrb.mxu0 %v1468_v16  ;;  %4385 = vmatpush.msrb.mxu1 %v1502_v17  ;;  %v1600_v12 = vld [vmem:[%s5598_s30 + $0x2868] sm:$0xff]  ;;  %v1698_v15 = vld [vmem:[%s5598_s30 + $0x2b78] sm:$0xff] }
 0x3aa   : > { %4406 = vmatpush.msrb.mxu2 %v1532_v18  ;;  %4425 = vmatpush.msrb.mxu3 %v1566_v19  ;;  %v1664_v14 = vld [vmem:[%s5598_s30 + $0x2a68] sm:$0xff]  ;;  %v1598_v16 = vld [vmem:[%s5598_s30 + $0x2858] sm:$0xff] }
 0x3ab   : > { %4367 = vmatpush.msrb.mxu0 %v1466_v20  ;;  %4386 = vmatpush.msrb.mxu1 %v1500_v21  ;;  %v1632_v17 = vld [vmem:[%s5598_s30 + $0x2968] sm:$0xff]  ;;  %v1662_v18 = vld [vmem:[%s5598_s30 + $0x2a58] sm:$0xff] }
 0x3ac   : > { %4407 = vmatpush.msrb.mxu2 %v1530_v22  ;;  %4426 = vmatpush.msrb.mxu3 %v1564_v23  ;;  %v1696_v19 = vld [vmem:[%s5598_s30 + $0x2b68] sm:$0xff]  ;;  %v1630_v21 = vld [vmem:[%s5598_s30 + $0x2958] sm:$0xff] }
 0x3ad   : > { %4368 = vmatpush.msrb.mxu0 %v1464_v24  ;;  %4387 = vmatpush.msrb.mxu1 %v1498_v25  ;;  %v1596_v20 = vld [vmem:[%s5598_s30 + $0x2848] sm:$0xff]  ;;  %v1694_v23 = vld [vmem:[%s5598_s30 + $0x2b58] sm:$0xff] }
 0x3ae   : > { %4408 = vmatpush.msrb.mxu2 %v1528_v26  ;;  %4427 = vmatpush.msrb.mxu3 %v1562_v27  ;;  %v1660_v22 = vld [vmem:[%s5598_s30 + $0x2a48] sm:$0xff]  ;;  %v1594_v24 = vld [vmem:[%s5598_s30 + $0x2838] sm:$0xff] }
 0x3af   : > { %4369 = vmatpush.msrb.mxu0 %v1462_v28  ;;  %4388 = vmatpush.msrb.mxu1 %v1496_v29  ;;  %v1628_v25 = vld [vmem:[%s5598_s30 + $0x2948] sm:$0xff]  ;;  %v1658_v26 = vld [vmem:[%s5598_s30 + $0x2a38] sm:$0xff] }
 0x3b0   : > { %4409 = vmatpush.msrb.mxu2 %v1526_v30  ;;  %4428 = vmatpush.msrb.mxu3 %v1560_v31  ;;  %v1692_v27 = vld [vmem:[%s5598_s30 + $0x2b48] sm:$0xff]  ;;  %v1626_v29 = vld [vmem:[%s5598_s30 + $0x2938] sm:$0xff] }
 0x3b1   : > { %4370 = vmatpush.msrb.mxu0 %v1460_v32  ;;  %4389 = vmatpush.msrb.mxu1 %v1494_v33  ;;  %v1592_v28 = vld [vmem:[%s5598_s30 + $0x2828] sm:$0xff]  ;;  %v1690_v31 = vld [vmem:[%s5598_s30 + $0x2b38] sm:$0xff] }
 0x3b2   : > { %4410 = vmatpush.msrb.mxu2 %v1524_v34  ;;  %4429 = vmatpush.msrb.mxu3 %v1558_v35  ;;  %v1656_v30 = vld [vmem:[%s5598_s30 + $0x2a28] sm:$0xff]  ;;  %v1590_v32 = vld [vmem:[%s5598_s30 + $0x2818] sm:$0xff] }
 0x3b3   : > { %4371 = vmatmul.f32.vlgmr.msrb.gmra.mxu0 %v5224_v40  ;;  %4411 = vmatmul.f32.vlgmr.msrb.gmra.mxu2 %v5225_v41  ;;  %v1624_v33 = vld [vmem:[%s5598_s30 + $0x2928] sm:$0xff]  ;;  %v1654_v34 = vld [vmem:[%s5598_s30 + $0x2a18] sm:$0xff] }
 0x3b4   : > { %4435 = vmatpush.msra.mxu0 %v1618_v36  ;;  %4475 = vmatpush.msra.mxu2 %v1682_v37  ;;  %v1688_v35 = vld [vmem:[%s5598_s30 + $0x2b28] sm:$0xff]  ;;  %v1622_v37 = vld [vmem:[%s5598_s30 + $0x2918] sm:$0xff] }
 0x3b5   : > { %4390 = vmatpush.msrb.mxu1 %v1492_v38  ;;  %4430 = vmatpush.msrb.mxu3 %v1556_v39  ;;  %v1588_v36 = vld [vmem:[%s5598_s30 + $0x2808] sm:$0xff]  ;;  %v1686_v39 = vld [vmem:[%s5598_s30 + $0x2b18] sm:$0xff] }
 0x3b6   : > { %4391 = vmatmul.f32.vlgmr.msrb.gmra.mxu1 %v5226_v46  ;;  %4431 = vmatmul.f32.vlgmr.msrb.gmra.mxu3 %v5227_v47  ;;  %v1652_v38 = vld [vmem:[%s5598_s30 + $0x2a08] sm:$0xff]  ;;  %v1746_v40 = vld [vmem:[%s5598_s30 + $0x2cf8] sm:$0xff] }
 0x3b7   : > { %4436 = vmatpush.msra.mxu0 %v1616_v42  ;;  %4455 = vmatpush.msra.mxu1 %v1650_v43  ;;  %v1810_v41 = vld [vmem:[%s5598_s30 + $0x2ef8] sm:$0xff]  ;;  %v1620_v42 = vld [vmem:[%s5598_s30 + $0x2908] sm:$0xff] }
 0x3b8   : > { %4476 = vmatpush.msra.mxu2 %v1680_v44  ;;  %4495 = vmatpush.msra.mxu3 %v1714_v45  ;;  %v1684_v43 = vld [vmem:[%s5598_s30 + $0x2b08] sm:$0xff]  ;;  %v5228_v44 = vld [vmem:[%s5592_s8 + $0x140] sm:$0xff]  ;;  %v5229_v45 = vld [vmem:[%s5592_s8 + $0x150] sm:$0xff] }
 0x3b9   : > { %4437 = vmatpush.msra.mxu0 %v1614_v48  ;;  %4456 = vmatpush.msra.mxu1 %v1648_v49  ;;  %v1744_v46 = vld [vmem:[%s5598_s30 + $0x2ce8] sm:$0xff]  ;;  %v1778_v47 = vld [vmem:[%s5598_s30 + $0x2df8] sm:$0xff] }
 0x3ba   : > { %4477 = vmatpush.msra.mxu2 %v1678_v50  ;;  %4496 = vmatpush.msra.mxu3 %v1712_v51  ;;  %v1808_v48 = vld [vmem:[%s5598_s30 + $0x2ee8] sm:$0xff]  ;;  %v1842_v49 = vld [vmem:[%s5598_s30 + $0x2ff8] sm:$0xff] }
 0x3bb   : > { %4438 = vmatpush.msra.mxu0 %v1612_v52  ;;  %4457 = vmatpush.msra.mxu1 %v1646_v53  ;;  %v5230_v50 = vld [vmem:[%s5592_s8 + $0x148] sm:$0xff]  ;;  %v5231_v51 = vld [vmem:[%s5592_s8 + $0x158] sm:$0xff] }
 0x3bc   : > { %4478 = vmatpush.msra.mxu2 %v1676_v54  ;;  %4497 = vmatpush.msra.mxu3 %v1710_v55  ;;  %v1742_v52 = vld [vmem:[%s5598_s30 + $0x2cd8] sm:$0xff]  ;;  %v1776_v53 = vld [vmem:[%s5598_s30 + $0x2de8] sm:$0xff] }
 0x3bd   : > { %4439 = vmatpush.msra.mxu0 %v1610_v56  ;;  %4458 = vmatpush.msra.mxu1 %v1644_v57  ;;  %v1806_v54 = vld [vmem:[%s5598_s30 + $0x2ed8] sm:$0xff]  ;;  %v1840_v55 = vld [vmem:[%s5598_s30 + $0x2fe8] sm:$0xff] }
 0x3be   : > { %4479 = vmatpush.msra.mxu2 %v1674_v58  ;;  %4498 = vmatpush.msra.mxu3 %v1708_v59  ;;  %v1740_v56 = vld [vmem:[%s5598_s30 + $0x2cc8] sm:$0xff]  ;;  %v1774_v57 = vld [vmem:[%s5598_s30 + $0x2dd8] sm:$0xff] }
 0x3bf   : > { %4440 = vmatpush.msra.mxu0 %v1608_v60  ;;  %4459 = vmatpush.msra.mxu1 %v1642_v61  ;;  %v1804_v58 = vld [vmem:[%s5598_s30 + $0x2ec8] sm:$0xff]  ;;  %v1838_v59 = vld [vmem:[%s5598_s30 + $0x2fd8] sm:$0xff] }
 0x3c0   : > { %4480 = vmatpush.msra.mxu2 %v1672_v62  ;;  %4499 = vmatpush.msra.mxu3 %v1706_v63  ;;  %v1738_v60 = vld [vmem:[%s5598_s30 + $0x2cb8] sm:$0xff]  ;;  %v1772_v61 = vld [vmem:[%s5598_s30 + $0x2dc8] sm:$0xff] }
 0x3c1   : > { %4441 = vmatpush.msra.mxu0 %v1606_v0  ;;  %4460 = vmatpush.msra.mxu1 %v1640_v1  ;;  %v1802_v62 = vld [vmem:[%s5598_s30 + $0x2eb8] sm:$0xff]  ;;  %v1836_v63 = vld [vmem:[%s5598_s30 + $0x2fc8] sm:$0xff] }
 0x3c2   : > { %4481 = vmatpush.msra.mxu2 %v1670_v2  ;;  %4500 = vmatpush.msra.mxu3 %v1704_v3  ;;  %v1736_v0 = vld [vmem:[%s5598_s30 + $0x2ca8] sm:$0xff]  ;;  %v1770_v1 = vld [vmem:[%s5598_s30 + $0x2db8] sm:$0xff] }
 0x3c3   : > { %4442 = vmatpush.msra.mxu0 %v1604_v4  ;;  %4461 = vmatpush.msra.mxu1 %v1638_v5  ;;  %v1800_v2 = vld [vmem:[%s5598_s30 + $0x2ea8] sm:$0xff]  ;;  %v1834_v3 = vld [vmem:[%s5598_s30 + $0x2fb8] sm:$0xff] }
 0x3c4   : > { %4482 = vmatpush.msra.mxu2 %v1668_v6  ;;  %4501 = vmatpush.msra.mxu3 %v1702_v7  ;;  %v1734_v4 = vld [vmem:[%s5598_s30 + $0x2c98] sm:$0xff]  ;;  %v1768_v5 = vld [vmem:[%s5598_s30 + $0x2da8] sm:$0xff] }
 0x3c5   : > { %4443 = vmatpush.msra.mxu0 %v1602_v8  ;;  %4462 = vmatpush.msra.mxu1 %v1636_v9  ;;  %v1798_v6 = vld [vmem:[%s5598_s30 + $0x2e98] sm:$0xff]  ;;  %v1832_v7 = vld [vmem:[%s5598_s30 + $0x2fa8] sm:$0xff] }
 0x3c6   : > { %4483 = vmatpush.msra.mxu2 %v1666_v10  ;;  %4502 = vmatpush.msra.mxu3 %v1700_v11  ;;  %v1732_v8 = vld [vmem:[%s5598_s30 + $0x2c88] sm:$0xff]  ;;  %v1766_v9 = vld [vmem:[%s5598_s30 + $0x2d98] sm:$0xff] }
 0x3c7   : > { %4444 = vmatpush.msra.mxu0 %v1600_v12  ;;  %4463 = vmatpush.msra.mxu1 %v1634_v13  ;;  %v1796_v10 = vld [vmem:[%s5598_s30 + $0x2e88] sm:$0xff]  ;;  %v1830_v11 = vld [vmem:[%s5598_s30 + $0x2f98] sm:$0xff] }
 0x3c8   : > { %4484 = vmatpush.msra.mxu2 %v1664_v14  ;;  %4503 = vmatpush.msra.mxu3 %v1698_v15  ;;  %v1730_v12 = vld [vmem:[%s5598_s30 + $0x2c78] sm:$0xff]  ;;  %v1764_v13 = vld [vmem:[%s5598_s30 + $0x2d88] sm:$0xff] }
 0x3c9   : > { %4445 = vmatpush.msra.mxu0 %v1598_v16  ;;  %4464 = vmatpush.msra.mxu1 %v1632_v17  ;;  %v1794_v14 = vld [vmem:[%s5598_s30 + $0x2e78] sm:$0xff]  ;;  %v1828_v15 = vld [vmem:[%s5598_s30 + $0x2f88] sm:$0xff] }
 0x3ca   : > { %4485 = vmatpush.msra.mxu2 %v1662_v18  ;;  %4504 = vmatpush.msra.mxu3 %v1696_v19  ;;  %v1728_v16 = vld [vmem:[%s5598_s30 + $0x2c68] sm:$0xff]  ;;  %v1762_v17 = vld [vmem:[%s5598_s30 + $0x2d78] sm:$0xff] }
 0x3cb   : > { %4446 = vmatpush.msra.mxu0 %v1596_v20  ;;  %4465 = vmatpush.msra.mxu1 %v1630_v21  ;;  %v1792_v18 = vld [vmem:[%s5598_s30 + $0x2e68] sm:$0xff]  ;;  %v1826_v19 = vld [vmem:[%s5598_s30 + $0x2f78] sm:$0xff] }
 0x3cc   : > { %4486 = vmatpush.msra.mxu2 %v1660_v22  ;;  %4505 = vmatpush.msra.mxu3 %v1694_v23  ;;  %v1726_v20 = vld [vmem:[%s5598_s30 + $0x2c58] sm:$0xff]  ;;  %v1760_v21 = vld [vmem:[%s5598_s30 + $0x2d68] sm:$0xff] }
 0x3cd   : > { %4447 = vmatpush.msra.mxu0 %v1594_v24  ;;  %4466 = vmatpush.msra.mxu1 %v1628_v25  ;;  %v1790_v22 = vld [vmem:[%s5598_s30 + $0x2e58] sm:$0xff]  ;;  %v1824_v23 = vld [vmem:[%s5598_s30 + $0x2f68] sm:$0xff] }
 0x3ce   : > { %4487 = vmatpush.msra.mxu2 %v1658_v26  ;;  %4506 = vmatpush.msra.mxu3 %v1692_v27  ;;  %v1724_v24 = vld [vmem:[%s5598_s30 + $0x2c48] sm:$0xff]  ;;  %v1758_v25 = vld [vmem:[%s5598_s30 + $0x2d58] sm:$0xff] }
 0x3cf   : > { %4448 = vmatpush.msra.mxu0 %v1592_v28  ;;  %4467 = vmatpush.msra.mxu1 %v1626_v29  ;;  %v1788_v26 = vld [vmem:[%s5598_s30 + $0x2e48] sm:$0xff]  ;;  %v1822_v27 = vld [vmem:[%s5598_s30 + $0x2f58] sm:$0xff] }
 0x3d0   : > { %4488 = vmatpush.msra.mxu2 %v1656_v30  ;;  %4507 = vmatpush.msra.mxu3 %v1690_v31  ;;  %v1722_v28 = vld [vmem:[%s5598_s30 + $0x2c38] sm:$0xff]  ;;  %v1756_v29 = vld [vmem:[%s5598_s30 + $0x2d48] sm:$0xff] }
 0x3d1   : > { %4449 = vmatpush.msra.mxu0 %v1590_v32  ;;  %4468 = vmatpush.msra.mxu1 %v1624_v33  ;;  %v1786_v30 = vld [vmem:[%s5598_s30 + $0x2e38] sm:$0xff]  ;;  %v1820_v31 = vld [vmem:[%s5598_s30 + $0x2f48] sm:$0xff] }
 0x3d2   : > { %4489 = vmatpush.msra.mxu2 %v1654_v34  ;;  %4508 = vmatpush.msra.mxu3 %v1688_v35  ;;  %v1720_v32 = vld [vmem:[%s5598_s30 + $0x2c28] sm:$0xff]  ;;  %v1754_v33 = vld [vmem:[%s5598_s30 + $0x2d38] sm:$0xff] }
 0x3d3   : > { %4450 = vmatpush.msra.mxu0 %v1588_v36  ;;  %4469 = vmatpush.msra.mxu1 %v1622_v37  ;;  %v1784_v34 = vld [vmem:[%s5598_s30 + $0x2e28] sm:$0xff]  ;;  %v1818_v35 = vld [vmem:[%s5598_s30 + $0x2f38] sm:$0xff] }
 0x3d4   : > { %4490 = vmatpush.msra.mxu2 %v1652_v38  ;;  %4509 = vmatpush.msra.mxu3 %v1686_v39  ;;  %v1718_v36 = vld [vmem:[%s5598_s30 + $0x2c18] sm:$0xff]  ;;  %v1752_v37 = vld [vmem:[%s5598_s30 + $0x2d28] sm:$0xff] }
 0x3d5   : > { %4451 = vmatmul.f32.vlgmr.msra.gmra.mxu0 %v5228_v44  ;;  %4491 = vmatmul.f32.vlgmr.msra.gmra.mxu2 %v5229_v45  ;;  %v1782_v38 = vld [vmem:[%s5598_s30 + $0x2e18] sm:$0xff]  ;;  %v1816_v39 = vld [vmem:[%s5598_s30 + $0x2f28] sm:$0xff] }
 0x3d6   : > { %4515 = vmatpush.msrb.mxu0 %v1746_v40  ;;  %4555 = vmatpush.msrb.mxu2 %v1810_v41  ;;  %v1716_v40 = vld [vmem:[%s5598_s30 + $0x2c08] sm:$0xff]  ;;  %v1750_v41 = vld [vmem:[%s5598_s30 + $0x2d18] sm:$0xff] }
 0x3d7   : > { %4470 = vmatpush.msra.mxu1 %v1620_v42  ;;  %4510 = vmatpush.msra.mxu3 %v1684_v43  ;;  %v1780_v42 = vld [vmem:[%s5598_s30 + $0x2e08] sm:$0xff]  ;;  %v1814_v43 = vld [vmem:[%s5598_s30 + $0x2f18] sm:$0xff] }
 0x3d8   : > { %4471 = vmatmul.f32.vlgmr.msra.gmra.mxu1 %v5230_v50  ;;  %4511 = vmatmul.f32.vlgmr.msra.gmra.mxu3 %v5231_v51  ;;  %v1874_v44 = vld [vmem:[%s5598_s30 + $0x30f8] sm:$0xff]  ;;  %v1872_v50 = vld [vmem:[%s5598_s30 + $0x30e8] sm:$0xff] }
 0x3d9   : > { %4516 = vmatpush.msrb.mxu0 %v1744_v46  ;;  %4535 = vmatpush.msrb.mxu1 %v1778_v47  ;;  %v1938_v45 = vld [vmem:[%s5598_s30 + $0x32f8] sm:$0xff]  ;;  %v1748_v46 = vld [vmem:[%s5598_s30 + $0x2d08] sm:$0xff] }
 0x3da   : > { %4556 = vmatpush.msrb.mxu2 %v1808_v48  ;;  %4575 = vmatpush.msrb.mxu3 %v1842_v49  ;;  %v1812_v47 = vld [vmem:[%s5598_s30 + $0x2f08] sm:$0xff]  ;;  %v5232_v48 = vld [vmem:[%s5592_s8 + $0x160] sm:$0xff]  ;;  %v5233_v49 = vld [vmem:[%s5592_s8 + $0x170] sm:$0xff] }
 0x3db   : > { %4517 = vmatpush.msrb.mxu0 %v1742_v52  ;;  %4536 = vmatpush.msrb.mxu1 %v1776_v53  ;;  %v1906_v51 = vld [vmem:[%s5598_s30 + $0x31f8] sm:$0xff]  ;;  %v1936_v52 = vld [vmem:[%s5598_s30 + $0x32e8] sm:$0xff] }
 0x3dc   : > { %4557 = vmatpush.msrb.mxu2 %v1806_v54  ;;  %4576 = vmatpush.msrb.mxu3 %v1840_v55  ;;  %v1970_v53 = vld [vmem:[%s5598_s30 + $0x33f8] sm:$0xff]  ;;  %v5234_v54 = vld [vmem:[%s5592_s8 + $0x168] sm:$0xff] }
 0x3dd   : > { %4518 = vmatpush.msrb.mxu0 %v1740_v56  ;;  %4537 = vmatpush.msrb.mxu1 %v1774_v57  ;;  %v5235_v55 = vld [vmem:[%s5592_s8 + $0x178] sm:$0xff]  ;;  %v1904_v57 = vld [vmem:[%s5598_s30 + $0x31e8] sm:$0xff] }
 0x3de   : > { %4558 = vmatpush.msrb.mxu2 %v1804_v58  ;;  %4577 = vmatpush.msrb.mxu3 %v1838_v59  ;;  %v1870_v56 = vld [vmem:[%s5598_s30 + $0x30d8] sm:$0xff]  ;;  %v1968_v59 = vld [vmem:[%s5598_s30 + $0x33e8] sm:$0xff] }
 0x3df   : > { %4519 = vmatpush.msrb.mxu0 %v1738_v60  ;;  %4538 = vmatpush.msrb.mxu1 %v1772_v61  ;;  %v1934_v58 = vld [vmem:[%s5598_s30 + $0x32d8] sm:$0xff]  ;;  %v1868_v60 = vld [vmem:[%s5598_s30 + $0x30c8] sm:$0xff] }
 0x3e0   : > { %4559 = vmatpush.msrb.mxu2 %v1802_v62  ;;  %4578 = vmatpush.msrb.mxu3 %v1836_v63  ;;  %v1902_v61 = vld [vmem:[%s5598_s30 + $0x31d8] sm:$0xff]  ;;  %v1932_v62 = vld [vmem:[%s5598_s30 + $0x32c8] sm:$0xff] }
 0x3e1   : > { %4520 = vmatpush.msrb.mxu0 %v1736_v0  ;;  %4539 = vmatpush.msrb.mxu1 %v1770_v1  ;;  %v1966_v63 = vld [vmem:[%s5598_s30 + $0x33d8] sm:$0xff]  ;;  %v1900_v1 = vld [vmem:[%s5598_s30 + $0x31c8] sm:$0xff] }
 0x3e2   : > { %4560 = vmatpush.msrb.mxu2 %v1800_v2  ;;  %4579 = vmatpush.msrb.mxu3 %v1834_v3  ;;  %v1866_v0 = vld [vmem:[%s5598_s30 + $0x30b8] sm:$0xff]  ;;  %v1964_v3 = vld [vmem:[%s5598_s30 + $0x33c8] sm:$0xff] }
 0x3e3   : > { %4521 = vmatpush.msrb.mxu0 %v1734_v4  ;;  %4540 = vmatpush.msrb.mxu1 %v1768_v5  ;;  %v1930_v2 = vld [vmem:[%s5598_s30 + $0x32b8] sm:$0xff]  ;;  %v1864_v4 = vld [vmem:[%s5598_s30 + $0x30a8] sm:$0xff] }
 0x3e4   : > { %4561 = vmatpush.msrb.mxu2 %v1798_v6  ;;  %4580 = vmatpush.msrb.mxu3 %v1832_v7  ;;  %v1898_v5 = vld [vmem:[%s5598_s30 + $0x31b8] sm:$0xff]  ;;  %v1928_v6 = vld [vmem:[%s5598_s30 + $0x32a8] sm:$0xff] }
 0x3e5   : > { %4522 = vmatpush.msrb.mxu0 %v1732_v8  ;;  %4541 = vmatpush.msrb.mxu1 %v1766_v9  ;;  %v1962_v7 = vld [vmem:[%s5598_s30 + $0x33b8] sm:$0xff]  ;;  %v1896_v9 = vld [vmem:[%s5598_s30 + $0x31a8] sm:$0xff] }
 0x3e6   : > { %4562 = vmatpush.msrb.mxu2 %v1796_v10  ;;  %4581 = vmatpush.msrb.mxu3 %v1830_v11  ;;  %v1862_v8 = vld [vmem:[%s5598_s30 + $0x3098] sm:$0xff]  ;;  %v1960_v11 = vld [vmem:[%s5598_s30 + $0x33a8] sm:$0xff] }
 0x3e7   : > { %4523 = vmatpush.msrb.mxu0 %v1730_v12  ;;  %4542 = vmatpush.msrb.mxu1 %v1764_v13  ;;  %v1926_v10 = vld [vmem:[%s5598_s30 + $0x3298] sm:$0xff]  ;;  %v1860_v12 = vld [vmem:[%s5598_s30 + $0x3088] sm:$0xff] }
 0x3e8   : > { %4563 = vmatpush.msrb.mxu2 %v1794_v14  ;;  %4582 = vmatpush.msrb.mxu3 %v1828_v15  ;;  %v1894_v13 = vld [vmem:[%s5598_s30 + $0x3198] sm:$0xff]  ;;  %v1924_v14 = vld [vmem:[%s5598_s30 + $0x3288] sm:$0xff] }
 0x3e9   : > { %4524 = vmatpush.msrb.mxu0 %v1728_v16  ;;  %4543 = vmatpush.msrb.mxu1 %v1762_v17  ;;  %v1958_v15 = vld [vmem:[%s5598_s30 + $0x3398] sm:$0xff]  ;;  %v1892_v17 = vld [vmem:[%s5598_s30 + $0x3188] sm:$0xff] }
 0x3ea   : > { %4564 = vmatpush.msrb.mxu2 %v1792_v18  ;;  %4583 = vmatpush.msrb.mxu3 %v1826_v19  ;;  %v1858_v16 = vld [vmem:[%s5598_s30 + $0x3078] sm:$0xff]  ;;  %v1956_v19 = vld [vmem:[%s5598_s30 + $0x3388] sm:$0xff] }
 0x3eb   : > { %4525 = vmatpush.msrb.mxu0 %v1726_v20  ;;  %4544 = vmatpush.msrb.mxu1 %v1760_v21  ;;  %v1922_v18 = vld [vmem:[%s5598_s30 + $0x3278] sm:$0xff]  ;;  %v1856_v20 = vld [vmem:[%s5598_s30 + $0x3068] sm:$0xff] }
 0x3ec   : > { %4565 = vmatpush.msrb.mxu2 %v1790_v22  ;;  %4584 = vmatpush.msrb.mxu3 %v1824_v23  ;;  %v1890_v21 = vld [vmem:[%s5598_s30 + $0x3178] sm:$0xff]  ;;  %v1920_v22 = vld [vmem:[%s5598_s30 + $0x3268] sm:$0xff] }
 0x3ed   : > { %4526 = vmatpush.msrb.mxu0 %v1724_v24  ;;  %4545 = vmatpush.msrb.mxu1 %v1758_v25  ;;  %v1954_v23 = vld [vmem:[%s5598_s30 + $0x3378] sm:$0xff]  ;;  %v1888_v25 = vld [vmem:[%s5598_s30 + $0x3168] sm:$0xff] }
 0x3ee   : > { %4566 = vmatpush.msrb.mxu2 %v1788_v26  ;;  %4585 = vmatpush.msrb.mxu3 %v1822_v27  ;;  %v1854_v24 = vld [vmem:[%s5598_s30 + $0x3058] sm:$0xff]  ;;  %v1952_v27 = vld [vmem:[%s5598_s30 + $0x3368] sm:$0xff] }
 0x3ef   : > { %4527 = vmatpush.msrb.mxu0 %v1722_v28  ;;  %4546 = vmatpush.msrb.mxu1 %v1756_v29  ;;  %v1918_v26 = vld [vmem:[%s5598_s30 + $0x3258] sm:$0xff]  ;;  %v1852_v28 = vld [vmem:[%s5598_s30 + $0x3048] sm:$0xff] }
 0x3f0   : > { %4567 = vmatpush.msrb.mxu2 %v1786_v30  ;;  %4586 = vmatpush.msrb.mxu3 %v1820_v31  ;;  %v1886_v29 = vld [vmem:[%s5598_s30 + $0x3158] sm:$0xff]  ;;  %v1916_v30 = vld [vmem:[%s5598_s30 + $0x3248] sm:$0xff] }
 0x3f1   : > { %4528 = vmatpush.msrb.mxu0 %v1720_v32  ;;  %4547 = vmatpush.msrb.mxu1 %v1754_v33  ;;  %v1950_v31 = vld [vmem:[%s5598_s30 + $0x3358] sm:$0xff]  ;;  %v1884_v33 = vld [vmem:[%s5598_s30 + $0x3148] sm:$0xff] }
 0x3f2   : > { %4568 = vmatpush.msrb.mxu2 %v1784_v34  ;;  %4587 = vmatpush.msrb.mxu3 %v1818_v35  ;;  %v1850_v32 = vld [vmem:[%s5598_s30 + $0x3038] sm:$0xff]  ;;  %v1948_v35 = vld [vmem:[%s5598_s30 + $0x3348] sm:$0xff] }
 0x3f3   : > { %4529 = vmatpush.msrb.mxu0 %v1718_v36  ;;  %4548 = vmatpush.msrb.mxu1 %v1752_v37  ;;  %v1914_v34 = vld [vmem:[%s5598_s30 + $0x3238] sm:$0xff]  ;;  %v1848_v36 = vld [vmem:[%s5598_s30 + $0x3028] sm:$0xff] }
 0x3f4   : > { %4569 = vmatpush.msrb.mxu2 %v1782_v38  ;;  %4588 = vmatpush.msrb.mxu3 %v1816_v39  ;;  %v1882_v37 = vld [vmem:[%s5598_s30 + $0x3138] sm:$0xff]  ;;  %v1912_v38 = vld [vmem:[%s5598_s30 + $0x3228] sm:$0xff] }
 0x3f5   : > { %4530 = vmatpush.msrb.mxu0 %v1716_v40  ;;  %4549 = vmatpush.msrb.mxu1 %v1750_v41  ;;  %v1946_v39 = vld [vmem:[%s5598_s30 + $0x3338] sm:$0xff]  ;;  %v1880_v41 = vld [vmem:[%s5598_s30 + $0x3128] sm:$0xff] }
 0x3f6   : > { %4570 = vmatpush.msrb.mxu2 %v1780_v42  ;;  %4589 = vmatpush.msrb.mxu3 %v1814_v43  ;;  %v1846_v40 = vld [vmem:[%s5598_s30 + $0x3018] sm:$0xff]  ;;  %v1944_v43 = vld [vmem:[%s5598_s30 + $0x3328] sm:$0xff] }
 0x3f7   : > { %4531 = vmatmul.f32.vlgmr.msrb.gmra.mxu0 %v5232_v48  ;;  %4571 = vmatmul.f32.vlgmr.msrb.gmra.mxu2 %v5233_v49  ;;  %v1910_v42 = vld [vmem:[%s5598_s30 + $0x3218] sm:$0xff] }
 0x3f8   : > { %4595 = vmatpush.msra.mxu0 %v1874_v44  ;;  %4635 = vmatpush.msra.mxu2 %v1938_v45  ;;  %v1844_v44 = vld [vmem:[%s5598_s30 + $0x3008] sm:$0xff]  ;;  %v1878_v45 = vld [vmem:[%s5598_s30 + $0x3118] sm:$0xff] }
 0x3f9   : > { %4550 = vmatpush.msrb.mxu1 %v1748_v46  ;;  %4590 = vmatpush.msrb.mxu3 %v1812_v47  ;;  %v1908_v46 = vld [vmem:[%s5598_s30 + $0x3208] sm:$0xff]  ;;  %v1942_v47 = vld [vmem:[%s5598_s30 + $0x3318] sm:$0xff] }
 0x3fa   : > { %4551 = vmatmul.f32.vlgmr.msrb.gmra.mxu1 %v5234_v54  ;;  %4591 = vmatmul.f32.vlgmr.msrb.gmra.mxu3 %v5235_v55  ;;  %v2002_v48 = vld [vmem:[%s5598_s30 + $0x34f8] sm:$0xff]  ;;  %v2000_v54 = vld [vmem:[%s5598_s30 + $0x34e8] sm:$0xff] }
 0x3fb   : > { %4596 = vmatpush.msra.mxu0 %v1872_v50  ;;  %4615 = vmatpush.msra.mxu1 %v1906_v51  ;;  %v2066_v49 = vld [vmem:[%s5598_s30 + $0x36f8] sm:$0xff]  ;;  %v1876_v50 = vld [vmem:[%s5598_s30 + $0x3108] sm:$0xff] }
 0x3fc   : > { %4636 = vmatpush.msra.mxu2 %v1936_v52  ;;  %4655 = vmatpush.msra.mxu3 %v1970_v53  ;;  %v1940_v51 = vld [vmem:[%s5598_s30 + $0x3308] sm:$0xff]  ;;  %v5236_v52 = vld [vmem:[%s5592_s8 + $0x180] sm:$0xff]  ;;  %v5237_v53 = vld [vmem:[%s5592_s8 + $0x190] sm:$0xff] }
 0x3fd   : > { %4597 = vmatpush.msra.mxu0 %v1870_v56  ;;  %4616 = vmatpush.msra.mxu1 %v1904_v57  ;;  %v2034_v55 = vld [vmem:[%s5598_s30 + $0x35f8] sm:$0xff]  ;;  %v2064_v56 = vld [vmem:[%s5598_s30 + $0x36e8] sm:$0xff] }
 0x3fe   : > { %4637 = vmatpush.msra.mxu2 %v1934_v58  ;;  %4656 = vmatpush.msra.mxu3 %v1968_v59  ;;  %v2098_v57 = vld [vmem:[%s5598_s30 + $0x37f8] sm:$0xff]  ;;  %v5238_v58 = vld [vmem:[%s5592_s8 + $0x188] sm:$0xff] }
 0x3ff   : > { %4598 = vmatpush.msra.mxu0 %v1868_v60  ;;  %4617 = vmatpush.msra.mxu1 %v1902_v61  ;;  %v5239_v59 = vld [vmem:[%s5592_s8 + $0x198] sm:$0xff]  ;;  %v2032_v61 = vld [vmem:[%s5598_s30 + $0x35e8] sm:$0xff] }
 0x400   : > { %4638 = vmatpush.msra.mxu2 %v1932_v62  ;;  %4657 = vmatpush.msra.mxu3 %v1966_v63  ;;  %v1998_v60 = vld [vmem:[%s5598_s30 + $0x34d8] sm:$0xff]  ;;  %v2096_v63 = vld [vmem:[%s5598_s30 + $0x37e8] sm:$0xff] }
 0x401   : > { %4599 = vmatpush.msra.mxu0 %v1866_v0  ;;  %4618 = vmatpush.msra.mxu1 %v1900_v1  ;;  %v2062_v62 = vld [vmem:[%s5598_s30 + $0x36d8] sm:$0xff]  ;;  %v1996_v0 = vld [vmem:[%s5598_s30 + $0x34c8] sm:$0xff] }
 0x402   : > { %4639 = vmatpush.msra.mxu2 %v1930_v2  ;;  %4658 = vmatpush.msra.mxu3 %v1964_v3  ;;  %v2030_v1 = vld [vmem:[%s5598_s30 + $0x35d8] sm:$0xff]  ;;  %v2060_v2 = vld [vmem:[%s5598_s30 + $0x36c8] sm:$0xff] }
 0x403   : > { %4600 = vmatpush.msra.mxu0 %v1864_v4  ;;  %4619 = vmatpush.msra.mxu1 %v1898_v5  ;;  %v2094_v3 = vld [vmem:[%s5598_s30 + $0x37d8] sm:$0xff]  ;;  %v2028_v5 = vld [vmem:[%s5598_s30 + $0x35c8] sm:$0xff] }
 0x404   : > { %4640 = vmatpush.msra.mxu2 %v1928_v6  ;;  %4659 = vmatpush.msra.mxu3 %v1962_v7  ;;  %v1994_v4 = vld [vmem:[%s5598_s30 + $0x34b8] sm:$0xff]  ;;  %v2092_v7 = vld [vmem:[%s5598_s30 + $0x37c8] sm:$0xff] }
 0x405   : > { %4601 = vmatpush.msra.mxu0 %v1862_v8  ;;  %4620 = vmatpush.msra.mxu1 %v1896_v9  ;;  %v2058_v6 = vld [vmem:[%s5598_s30 + $0x36b8] sm:$0xff]  ;;  %v1992_v8 = vld [vmem:[%s5598_s30 + $0x34a8] sm:$0xff] }
 0x406   : > { %4641 = vmatpush.msra.mxu2 %v1926_v10  ;;  %4660 = vmatpush.msra.mxu3 %v1960_v11  ;;  %v2026_v9 = vld [vmem:[%s5598_s30 + $0x35b8] sm:$0xff]  ;;  %v2056_v10 = vld [vmem:[%s5598_s30 + $0x36a8] sm:$0xff] }
 0x407   : > { %4602 = vmatpush.msra.mxu0 %v1860_v12  ;;  %4621 = vmatpush.msra.mxu1 %v1894_v13  ;;  %v2090_v11 = vld [vmem:[%s5598_s30 + $0x37b8] sm:$0xff]  ;;  %v2024_v13 = vld [vmem:[%s5598_s30 + $0x35a8] sm:$0xff] }
 0x408   : > { %4642 = vmatpush.msra.mxu2 %v1924_v14  ;;  %4661 = vmatpush.msra.mxu3 %v1958_v15  ;;  %v1990_v12 = vld [vmem:[%s5598_s30 + $0x3498] sm:$0xff]  ;;  %v2088_v15 = vld [vmem:[%s5598_s30 + $0x37a8] sm:$0xff] }
 0x409   : > { %4603 = vmatpush.msra.mxu0 %v1858_v16  ;;  %4622 = vmatpush.msra.mxu1 %v1892_v17  ;;  %v2054_v14 = vld [vmem:[%s5598_s30 + $0x3698] sm:$0xff]  ;;  %v1988_v16 = vld [vmem:[%s5598_s30 + $0x3488] sm:$0xff] }
 0x40a   : > { %4643 = vmatpush.msra.mxu2 %v1922_v18  ;;  %4662 = vmatpush.msra.mxu3 %v1956_v19  ;;  %v2022_v17 = vld [vmem:[%s5598_s30 + $0x3598] sm:$0xff]  ;;  %v2052_v18 = vld [vmem:[%s5598_s30 + $0x3688] sm:$0xff] }
 0x40b   : > { %4604 = vmatpush.msra.mxu0 %v1856_v20  ;;  %4623 = vmatpush.msra.mxu1 %v1890_v21  ;;  %v2086_v19 = vld [vmem:[%s5598_s30 + $0x3798] sm:$0xff]  ;;  %v2020_v21 = vld [vmem:[%s5598_s30 + $0x3588] sm:$0xff] }
 0x40c   : > { %4644 = vmatpush.msra.mxu2 %v1920_v22  ;;  %4663 = vmatpush.msra.mxu3 %v1954_v23  ;;  %v1986_v20 = vld [vmem:[%s5598_s30 + $0x3478] sm:$0xff]  ;;  %v2084_v23 = vld [vmem:[%s5598_s30 + $0x3788] sm:$0xff] }
 0x40d   : > { %4605 = vmatpush.msra.mxu0 %v1854_v24  ;;  %4624 = vmatpush.msra.mxu1 %v1888_v25  ;;  %v2050_v22 = vld [vmem:[%s5598_s30 + $0x3678] sm:$0xff]  ;;  %v1984_v24 = vld [vmem:[%s5598_s30 + $0x3468] sm:$0xff] }
 0x40e   : > { %4645 = vmatpush.msra.mxu2 %v1918_v26  ;;  %4664 = vmatpush.msra.mxu3 %v1952_v27  ;;  %v2018_v25 = vld [vmem:[%s5598_s30 + $0x3578] sm:$0xff]  ;;  %v2048_v26 = vld [vmem:[%s5598_s30 + $0x3668] sm:$0xff] }
 0x40f   : > { %4606 = vmatpush.msra.mxu0 %v1852_v28  ;;  %4625 = vmatpush.msra.mxu1 %v1886_v29  ;;  %v2082_v27 = vld [vmem:[%s5598_s30 + $0x3778] sm:$0xff]  ;;  %v2016_v29 = vld [vmem:[%s5598_s30 + $0x3568] sm:$0xff] }
 0x410   : > { %4646 = vmatpush.msra.mxu2 %v1916_v30  ;;  %4665 = vmatpush.msra.mxu3 %v1950_v31  ;;  %v1982_v28 = vld [vmem:[%s5598_s30 + $0x3458] sm:$0xff]  ;;  %v2080_v31 = vld [vmem:[%s5598_s30 + $0x3768] sm:$0xff] }
 0x411   : > { %4607 = vmatpush.msra.mxu0 %v1850_v32  ;;  %4626 = vmatpush.msra.mxu1 %v1884_v33  ;;  %v2046_v30 = vld [vmem:[%s5598_s30 + $0x3658] sm:$0xff]  ;;  %v1980_v32 = vld [vmem:[%s5598_s30 + $0x3448] sm:$0xff] }
 0x412   : > { %4647 = vmatpush.msra.mxu2 %v1914_v34  ;;  %4666 = vmatpush.msra.mxu3 %v1948_v35  ;;  %v2014_v33 = vld [vmem:[%s5598_s30 + $0x3558] sm:$0xff]  ;;  %v2044_v34 = vld [vmem:[%s5598_s30 + $0x3648] sm:$0xff] }
 0x413   : > { %4608 = vmatpush.msra.mxu0 %v1848_v36  ;;  %4627 = vmatpush.msra.mxu1 %v1882_v37  ;;  %v2078_v35 = vld [vmem:[%s5598_s30 + $0x3758] sm:$0xff]  ;;  %v2012_v37 = vld [vmem:[%s5598_s30 + $0x3548] sm:$0xff] }
 0x414   : > { %4648 = vmatpush.msra.mxu2 %v1912_v38  ;;  %4667 = vmatpush.msra.mxu3 %v1946_v39  ;;  %v1978_v36 = vld [vmem:[%s5598_s30 + $0x3438] sm:$0xff]  ;;  %v2076_v39 = vld [vmem:[%s5598_s30 + $0x3748] sm:$0xff] }
 0x415   : > { %4609 = vmatpush.msra.mxu0 %v1846_v40  ;;  %4628 = vmatpush.msra.mxu1 %v1880_v41  ;;  %v2042_v38 = vld [vmem:[%s5598_s30 + $0x3638] sm:$0xff]  ;;  %v1976_v40 = vld [vmem:[%s5598_s30 + $0x3428] sm:$0xff] }
 0x416   : > { %4649 = vmatpush.msra.mxu2 %v1910_v42  ;;  %4668 = vmatpush.msra.mxu3 %v1944_v43  ;;  %v2010_v41 = vld [vmem:[%s5598_s30 + $0x3538] sm:$0xff]  ;;  %v2040_v42 = vld [vmem:[%s5598_s30 + $0x3628] sm:$0xff] }
 0x417   : > { %4610 = vmatpush.msra.mxu0 %v1844_v44  ;;  %4629 = vmatpush.msra.mxu1 %v1878_v45  ;;  %v2074_v43 = vld [vmem:[%s5598_s30 + $0x3738] sm:$0xff]  ;;  %v2008_v45 = vld [vmem:[%s5598_s30 + $0x3528] sm:$0xff] }
 0x418   : > { %4650 = vmatpush.msra.mxu2 %v1908_v46  ;;  %4669 = vmatpush.msra.mxu3 %v1942_v47  ;;  %v1974_v44 = vld [vmem:[%s5598_s30 + $0x3418] sm:$0xff]  ;;  %v2072_v47 = vld [vmem:[%s5598_s30 + $0x3728] sm:$0xff] }
 0x419   : > { %4611 = vmatmul.f32.vlgmr.msra.gmra.mxu0 %v5236_v52  ;;  %4651 = vmatmul.f32.vlgmr.msra.gmra.mxu2 %v5237_v53  ;;  %v2038_v46 = vld [vmem:[%s5598_s30 + $0x3618] sm:$0xff] }
 0x41a   : > { %4675 = vmatpush.msrb.mxu0 %v2002_v48  ;;  %4715 = vmatpush.msrb.mxu2 %v2066_v49  ;;  %v1972_v48 = vld [vmem:[%s5598_s30 + $0x3408] sm:$0xff]  ;;  %v2006_v49 = vld [vmem:[%s5598_s30 + $0x3518] sm:$0xff] }
 0x41b   : > { %4630 = vmatpush.msra.mxu1 %v1876_v50  ;;  %4670 = vmatpush.msra.mxu3 %v1940_v51  ;;  %v2036_v50 = vld [vmem:[%s5598_s30 + $0x3608] sm:$0xff]  ;;  %v2070_v51 = vld [vmem:[%s5598_s30 + $0x3718] sm:$0xff] }
 0x41c   : > { %4631 = vmatmul.f32.vlgmr.msra.gmra.mxu1 %v5238_v58  ;;  %4671 = vmatmul.f32.vlgmr.msra.gmra.mxu3 %v5239_v59  ;;  %v2130_v52 = vld [vmem:[%s5598_s30 + $0x38f8] sm:$0xff]  ;;  %v2128_v58 = vld [vmem:[%s5598_s30 + $0x38e8] sm:$0xff] }
 0x41d   : > { %4676 = vmatpush.msrb.mxu0 %v2000_v54  ;;  %4695 = vmatpush.msrb.mxu1 %v2034_v55  ;;  %v2194_v53 = vld [vmem:[%s5598_s30 + $0x3af8] sm:$0xff]  ;;  %v2004_v54 = vld [vmem:[%s5598_s30 + $0x3508] sm:$0xff] }
 0x41e   : > { %4716 = vmatpush.msrb.mxu2 %v2064_v56  ;;  %4735 = vmatpush.msrb.mxu3 %v2098_v57  ;;  %v2068_v55 = vld [vmem:[%s5598_s30 + $0x3708] sm:$0xff]  ;;  %v5240_v56 = vld [vmem:[%s5592_s8 + $0x1a0] sm:$0xff]  ;;  %v5241_v57 = vld [vmem:[%s5592_s8 + $0x1b0] sm:$0xff] }
 0x41f   : > { %4677 = vmatpush.msrb.mxu0 %v1998_v60  ;;  %4696 = vmatpush.msrb.mxu1 %v2032_v61  ;;  %v2162_v59 = vld [vmem:[%s5598_s30 + $0x39f8] sm:$0xff]  ;;  %v2192_v60 = vld [vmem:[%s5598_s30 + $0x3ae8] sm:$0xff] }
 0x420   : > { %4717 = vmatpush.msrb.mxu2 %v2062_v62  ;;  %4736 = vmatpush.msrb.mxu3 %v2096_v63  ;;  %v2226_v61 = vld [vmem:[%s5598_s30 + $0x3bf8] sm:$0xff]  ;;  %v5242_v62 = vld [vmem:[%s5592_s8 + $0x1a8] sm:$0xff] }
 0x421   : > { %4678 = vmatpush.msrb.mxu0 %v1996_v0  ;;  %4697 = vmatpush.msrb.mxu1 %v2030_v1  ;;  %v5243_v63 = vld [vmem:[%s5592_s8 + $0x1b8] sm:$0xff]  ;;  %v2160_v1 = vld [vmem:[%s5598_s30 + $0x39e8] sm:$0xff] }
 0x422   : > { %4718 = vmatpush.msrb.mxu2 %v2060_v2  ;;  %4737 = vmatpush.msrb.mxu3 %v2094_v3  ;;  %v2126_v0 = vld [vmem:[%s5598_s30 + $0x38d8] sm:$0xff]  ;;  %v2224_v3 = vld [vmem:[%s5598_s30 + $0x3be8] sm:$0xff] }
 0x423   : > { %4679 = vmatpush.msrb.mxu0 %v1994_v4  ;;  %4698 = vmatpush.msrb.mxu1 %v2028_v5  ;;  %v2190_v2 = vld [vmem:[%s5598_s30 + $0x3ad8] sm:$0xff]  ;;  %v2124_v4 = vld [vmem:[%s5598_s30 + $0x38c8] sm:$0xff] }
 0x424   : > { %4719 = vmatpush.msrb.mxu2 %v2058_v6  ;;  %4738 = vmatpush.msrb.mxu3 %v2092_v7  ;;  %v2158_v5 = vld [vmem:[%s5598_s30 + $0x39d8] sm:$0xff]  ;;  %v2188_v6 = vld [vmem:[%s5598_s30 + $0x3ac8] sm:$0xff] }
 0x425   : > { %4680 = vmatpush.msrb.mxu0 %v1992_v8  ;;  %4699 = vmatpush.msrb.mxu1 %v2026_v9  ;;  %v2222_v7 = vld [vmem:[%s5598_s30 + $0x3bd8] sm:$0xff]  ;;  %v2156_v9 = vld [vmem:[%s5598_s30 + $0x39c8] sm:$0xff] }
 0x426   : > { %4720 = vmatpush.msrb.mxu2 %v2056_v10  ;;  %4739 = vmatpush.msrb.mxu3 %v2090_v11  ;;  %v2122_v8 = vld [vmem:[%s5598_s30 + $0x38b8] sm:$0xff]  ;;  %v2220_v11 = vld [vmem:[%s5598_s30 + $0x3bc8] sm:$0xff] }
 0x427   : > { %4681 = vmatpush.msrb.mxu0 %v1990_v12  ;;  %4700 = vmatpush.msrb.mxu1 %v2024_v13  ;;  %v2186_v10 = vld [vmem:[%s5598_s30 + $0x3ab8] sm:$0xff]  ;;  %v3672_v12 = vpop.f32.mrf.mxu1  ;;  %v2120_v13 = vld [vmem:[%s5598_s30 + $0x38a8] sm:$0xff] }
 0x428   : > { %4721 = vmatpush.msrb.mxu2 %v2054_v14  ;;  %4740 = vmatpush.msrb.mxu3 %v2088_v15  ;;  %v2154_v14 = vld [vmem:[%s5598_s30 + $0x39b8] sm:$0xff]  ;;  %v2184_v15 = vld [vmem:[%s5598_s30 + $0x3aa8] sm:$0xff] }
 0x429   : > { %4682 = vmatpush.msrb.mxu0 %v1988_v16  ;;  %4701 = vmatpush.msrb.mxu1 %v2022_v17  ;;  %v2218_v16 = vld [vmem:[%s5598_s30 + $0x3bb8] sm:$0xff]  ;;  %v3652_v17 = vpop.f32.mrf.mxu0 }
 0x42a   : > { %4722 = vmatpush.msrb.mxu2 %v2052_v18  ;;  %4741 = vmatpush.msrb.mxu3 %v2086_v19  ;;  %v2118_v18 = vld [vmem:[%s5598_s30 + $0x3898] sm:$0xff]  ;;  %v2152_v19 = vld [vmem:[%s5598_s30 + $0x39a8] sm:$0xff] }
 0x42b   : > { %4683 = vmatpush.msrb.mxu0 %v1986_v20  ;;  %4702 = vmatpush.msrb.mxu1 %v2020_v21  ;;  %v3673_v20 = vadd.f32 %v3672_v12, %v3652_v17  ;;  %v2182_v21 = vld [vmem:[%s5598_s30 + $0x3a98] sm:$0xff] }
 0x42c   : > { %4723 = vmatpush.msrb.mxu2 %v2050_v22  ;;  %4742 = vmatpush.msrb.mxu3 %v2084_v23  ;;  %v2216_v22 = vld [vmem:[%s5598_s30 + $0x3ba8] sm:$0xff]  ;;  %v3692_v23 = vpop.f32.mrf.mxu2  ;;  %v2354_v17 = vld [vmem:[%s5598_s30 + $0x3ff8] sm:$0xff] }
 0x42d   : > { %4684 = vmatpush.msrb.mxu0 %v1984_v24  ;;  %4703 = vmatpush.msrb.mxu1 %v2018_v25  ;;  %v2116_v24 = vld [vmem:[%s5598_s30 + $0x3888] sm:$0xff]  ;;  %v2150_v25 = vld [vmem:[%s5598_s30 + $0x3998] sm:$0xff] }
 0x42e   : > { %4724 = vmatpush.msrb.mxu2 %v2048_v26  ;;  %4743 = vmatpush.msrb.mxu3 %v2082_v27  ;;  %v2180_v26 = vld [vmem:[%s5598_s30 + $0x3a88] sm:$0xff]  ;;  %v2214_v27 = vld [vmem:[%s5598_s30 + $0x3b98] sm:$0xff] }
 0x42f   : > { %4685 = vmatpush.msrb.mxu0 %v1982_v28  ;;  %4704 = vmatpush.msrb.mxu1 %v2016_v29  ;;  %v2114_v28 = vld [vmem:[%s5598_s30 + $0x3878] sm:$0xff]  ;;  %v2148_v29 = vld [vmem:[%s5598_s30 + $0x3988] sm:$0xff] }
 0x430   : > { %4725 = vmatpush.msrb.mxu2 %v2046_v30  ;;  %4744 = vmatpush.msrb.mxu3 %v2080_v31  ;;  %v3693_v30 = vadd.f32 %v3692_v23, %v3673_v20  ;;  %v2178_v31 = vld [vmem:[%s5598_s30 + $0x3a78] sm:$0xff] }
 0x431   : > { %4686 = vmatpush.msrb.mxu0 %v1980_v32  ;;  %4705 = vmatpush.msrb.mxu1 %v2014_v33  ;;  %v2212_v32 = vld [vmem:[%s5598_s30 + $0x3b88] sm:$0xff]  ;;  %v3712_v33 = vpop.f32.mrf.mxu3  ;;  %v2254_v20 = vld [vmem:[%s5598_s30 + $0x3cd8] sm:$0xff] }
 0x432   : > { %4726 = vmatpush.msrb.mxu2 %v2044_v34  ;;  %4745 = vmatpush.msrb.mxu3 %v2078_v35  ;;  %v2112_v34 = vld [vmem:[%s5598_s30 + $0x3868] sm:$0xff]  ;;  %v2146_v35 = vld [vmem:[%s5598_s30 + $0x3978] sm:$0xff] }
 0x433   : > { %4687 = vmatpush.msrb.mxu0 %v1978_v36  ;;  %4706 = vmatpush.msrb.mxu1 %v2012_v37  ;;  %v2176_v36 = vld [vmem:[%s5598_s30 + $0x3a68] sm:$0xff]  ;;  %v2210_v37 = vld [vmem:[%s5598_s30 + $0x3b78] sm:$0xff] }
 0x434   : > { %4727 = vmatpush.msrb.mxu2 %v2042_v38  ;;  %4746 = vmatpush.msrb.mxu3 %v2076_v39  ;;  %v2110_v38 = vld [vmem:[%s5598_s30 + $0x3858] sm:$0xff]  ;;  %v2144_v39 = vld [vmem:[%s5598_s30 + $0x3968] sm:$0xff] }
 0x435   : > { %4688 = vmatpush.msrb.mxu0 %v1976_v40  ;;  %4707 = vmatpush.msrb.mxu1 %v2010_v41  ;;  %v3713_v40 = vadd.f32 %v3712_v33, %v3693_v30  ;;  %v2174_v41 = vld [vmem:[%s5598_s30 + $0x3a58] sm:$0xff] }
 0x436   : > { %4728 = vmatpush.msrb.mxu2 %v2040_v42  ;;  %4747 = vmatpush.msrb.mxu3 %v2074_v43  ;;  %v2208_v42 = vld [vmem:[%s5598_s30 + $0x3b68] sm:$0xff]  ;;  %v3732_v43 = vpop.f32.mrf.mxu0  ;;  %v2318_v23 = vld [vmem:[%s5598_s30 + $0x3ed8] sm:$0xff] }
 0x437   : > { %4689 = vmatpush.msrb.mxu0 %v1974_v44  ;;  %4708 = vmatpush.msrb.mxu1 %v2008_v45  ;;  %v2108_v44 = vld [vmem:[%s5598_s30 + $0x3848] sm:$0xff]  ;;  %v2142_v45 = vld [vmem:[%s5598_s30 + $0x3958] sm:$0xff] }
 0x438   : > { %4729 = vmatpush.msrb.mxu2 %v2038_v46  ;;  %4748 = vmatpush.msrb.mxu3 %v2072_v47  ;;  %v2172_v46 = vld [vmem:[%s5598_s30 + $0x3a48] sm:$0xff]  ;;  %v2206_v47 = vld [vmem:[%s5598_s30 + $0x3b58] sm:$0xff] }
 0x439   : > { %4690 = vmatpush.msrb.mxu0 %v1972_v48  ;;  %4709 = vmatpush.msrb.mxu1 %v2006_v49  ;;  %v2106_v48 = vld [vmem:[%s5598_s30 + $0x3838] sm:$0xff]  ;;  %v2140_v49 = vld [vmem:[%s5598_s30 + $0x3948] sm:$0xff] }
 0x43a   : > { %4730 = vmatpush.msrb.mxu2 %v2036_v50  ;;  %4749 = vmatpush.msrb.mxu3 %v2070_v51  ;;  %v3733_v50 = vadd.f32 %v3732_v43, %v3713_v40  ;;  %v2170_v51 = vld [vmem:[%s5598_s30 + $0x3a38] sm:$0xff]  ;;  %v2280_v43 = vld [vmem:[%s5598_s30 + $0x3da8] sm:$0xff] }
 0x43b   : > { %4691 = vmatmul.f32.vlgmr.msrb.gmra.mxu0 %v5240_v56  ;;  %4731 = vmatmul.f32.vlgmr.msrb.gmra.mxu2 %v5241_v57  ;;  %v2168_v56 = vld [vmem:[%s5598_s30 + $0x3a28] sm:$0xff]  ;;  %v2202_v57 = vld [vmem:[%s5598_s30 + $0x3b38] sm:$0xff] }
 0x43c   : > { %4755 = vmatpush.msra.mxu0 %v2130_v52  ;;  %4795 = vmatpush.msra.mxu2 %v2194_v53  ;;  %v2204_v52 = vld [vmem:[%s5598_s30 + $0x3b48] sm:$0xff]  ;;  %v3752_v53 = vpop.f32.mrf.mxu1  ;;  %v2346_v40 = vld [vmem:[%s5598_s30 + $0x3fb8] sm:$0xff] }
 0x43d   : > { %4710 = vmatpush.msrb.mxu1 %v2004_v54  ;;  %4750 = vmatpush.msrb.mxu3 %v2068_v55  ;;  %v2104_v54 = vld [vmem:[%s5598_s30 + $0x3828] sm:$0xff]  ;;  %v2138_v55 = vld [vmem:[%s5598_s30 + $0x3938] sm:$0xff] }
 0x43e   : > { %4711 = vmatmul.f32.vlgmr.msrb.gmra.mxu1 %v5242_v62  ;;  %4751 = vmatmul.f32.vlgmr.msrb.gmra.mxu3 %v5243_v63  ;;  %v2200_v62 = vld [vmem:[%s5598_s30 + $0x3b28] sm:$0xff]  ;;  %v3772_v63 = vpop.f32.mrf.mxu2  ;;  %v3812_v12 = vpop.f32.mrf.mxu0 }
 0x43f   : > { %4756 = vmatpush.msra.mxu0 %v2128_v58  ;;  %4775 = vmatpush.msra.mxu1 %v2162_v59  ;;  %v2102_v58 = vld [vmem:[%s5598_s30 + $0x3818] sm:$0xff]  ;;  %v2136_v59 = vld [vmem:[%s5598_s30 + $0x3928] sm:$0xff] }
 0x440   : > { %4796 = vmatpush.msra.mxu2 %v2192_v60  ;;  %4815 = vmatpush.msra.mxu3 %v2226_v61  ;;  %v3753_v60 = vadd.f32 %v3752_v53, %v3733_v50  ;;  %v2166_v61 = vld [vmem:[%s5598_s30 + $0x3a18] sm:$0xff]  ;;  %v2308_v50 = vld [vmem:[%s5598_s30 + $0x3e88] sm:$0xff] }
 0x441   : > { %4757 = vmatpush.msra.mxu0 %v2126_v0  ;;  %4776 = vmatpush.msra.mxu1 %v2160_v1  ;;  %v2100_v0 = vld [vmem:[%s5598_s30 + $0x3808] sm:$0xff]  ;;  %v2134_v1 = vld [vmem:[%s5598_s30 + $0x3918] sm:$0xff] }
 0x442   : > { %4797 = vmatpush.msra.mxu2 %v2190_v2  ;;  %4816 = vmatpush.msra.mxu3 %v2224_v3  ;;  %v2164_v2 = vld [vmem:[%s5598_s30 + $0x3a08] sm:$0xff]  ;;  %v2198_v3 = vld [vmem:[%s5598_s30 + $0x3b18] sm:$0xff] }
 0x443   : > { %4758 = vmatpush.msra.mxu0 %v2124_v4  ;;  %4777 = vmatpush.msra.mxu1 %v2158_v5  ;;  %v3773_v4 = vadd.f32 %v3772_v63, %v3753_v60  ;;  %v2258_v5 = vld [vmem:[%s5598_s30 + $0x3cf8] sm:$0xff]  ;;  %v2276_v53 = vld [vmem:[%s5598_s30 + $0x3d88] sm:$0xff] }
 0x444   : > { %4798 = vmatpush.msra.mxu2 %v2188_v6  ;;  %4817 = vmatpush.msra.mxu3 %v2222_v7  ;;  %v2322_v6 = vld [vmem:[%s5598_s30 + $0x3ef8] sm:$0xff]  ;;  %v3792_v7 = vpop.f32.mrf.mxu3  ;;  %v2304_v60 = vld [vmem:[%s5598_s30 + $0x3e68] sm:$0xff] }
 0x445   : > { %4759 = vmatpush.msra.mxu0 %v2122_v8  ;;  %4778 = vmatpush.msra.mxu1 %v2156_v9  ;;  %v2132_v8 = vld [vmem:[%s5598_s30 + $0x3908] sm:$0xff]  ;;  %v2238_v63 = vld [vmem:[%s5598_s30 + $0x3c58] sm:$0xff] }
 0x446   : > { %4799 = vmatpush.msra.mxu2 %v2186_v10  ;;  %4818 = vmatpush.msra.mxu3 %v2220_v11  ;;  %v2196_v9 = vld [vmem:[%s5598_s30 + $0x3b08] sm:$0xff]  ;;  %v5244_v10 = vld [vmem:[%s5592_s8 + $0x1c0] sm:$0xff]  ;;  %v5245_v11 = vld [vmem:[%s5592_s8 + $0x1d0] sm:$0xff]  ;;  %v3852_v30 = vpop.f32.mrf.mxu2 }
 0x447   : > { %4760 = vmatpush.msra.mxu0 %v2120_v13  ;;  %4779 = vmatpush.msra.mxu1 %v2154_v14  ;;  %v2256_v13 = vld [vmem:[%s5598_s30 + $0x3ce8] sm:$0xff]  ;;  %v2290_v14 = vld [vmem:[%s5598_s30 + $0x3df8] sm:$0xff] }
 0x448   : > { %4800 = vmatpush.msra.mxu2 %v2184_v15  ;;  %4819 = vmatpush.msra.mxu3 %v2218_v16  ;;  %v3793_v15 = vadd.f32 %v3792_v7, %v3773_v4  ;;  %v2320_v16 = vld [vmem:[%s5598_s30 + $0x3ee8] sm:$0xff] }
 0x449   : > { %4761 = vmatpush.msra.mxu0 %v2118_v18  ;;  %4780 = vmatpush.msra.mxu1 %v2152_v19  ;;  %v5246_v18 = vld [vmem:[%s5592_s8 + $0x1c8] sm:$0xff]  ;;  %v5247_v19 = vld [vmem:[%s5592_s8 + $0x1d8] sm:$0xff] }
 0x44a   : > { %4801 = vmatpush.msra.mxu2 %v2182_v21  ;;  %4820 = vmatpush.msra.mxu3 %v2216_v22  ;;  %v2288_v21 = vld [vmem:[%s5598_s30 + $0x3de8] sm:$0xff]  ;;  %v3813_v22 = vadd.f32 %v3812_v12, %v3793_v15  ;;  %v2298_v12 = vld [vmem:[%s5598_s30 + $0x3e38] sm:$0xff] }
 0x44b   : > { %4762 = vmatpush.msra.mxu0 %v2116_v24  ;;  %4781 = vmatpush.msra.mxu1 %v2150_v25  ;;  %v2352_v24 = vld [vmem:[%s5598_s30 + $0x3fe8] sm:$0xff]  ;;  %v3832_v25 = vpop.f32.mrf.mxu1 }
 0x44c   : > { %4802 = vmatpush.msra.mxu2 %v2180_v26  ;;  %4821 = vmatpush.msra.mxu3 %v2214_v27  ;;  %v2252_v26 = vld [vmem:[%s5598_s30 + $0x3cc8] sm:$0xff]  ;;  %v2286_v27 = vld [vmem:[%s5598_s30 + $0x3dd8] sm:$0xff]  ;;  %v3833_v33 = vadd.f32 %v3832_v25, %v3813_v22 }
 0x44d   : > { %4763 = vmatpush.msra.mxu0 %v2114_v28  ;;  %4782 = vmatpush.msra.mxu1 %v2148_v29  ;;  %v2316_v28 = vld [vmem:[%s5598_s30 + $0x3ec8] sm:$0xff]  ;;  %v2350_v29 = vld [vmem:[%s5598_s30 + $0x3fd8] sm:$0xff] }
 0x44e   : > { %4803 = vmatpush.msra.mxu2 %v2178_v31  ;;  %4822 = vmatpush.msra.mxu3 %v2212_v32  ;;  %v2250_v31 = vld [vmem:[%s5598_s30 + $0x3cb8] sm:$0xff]  ;;  %v2284_v32 = vld [vmem:[%s5598_s30 + $0x3dc8] sm:$0xff] }
 0x44f   : > { %4764 = vmatpush.msra.mxu0 %v2112_v34  ;;  %4783 = vmatpush.msra.mxu1 %v2146_v35  ;;  %v2314_v34 = vld [vmem:[%s5598_s30 + $0x3eb8] sm:$0xff]  ;;  %v2348_v35 = vld [vmem:[%s5598_s30 + $0x3fc8] sm:$0xff] }
 0x450   : > { %4804 = vmatpush.msra.mxu2 %v2176_v36  ;;  %4823 = vmatpush.msra.mxu3 %v2210_v37  ;;  %v2248_v36 = vld [vmem:[%s5598_s30 + $0x3ca8] sm:$0xff]  ;;  %v2282_v37 = vld [vmem:[%s5598_s30 + $0x3db8] sm:$0xff] }
 0x451   : > { %4765 = vmatpush.msra.mxu0 %v2110_v38  ;;  %4784 = vmatpush.msra.mxu1 %v2144_v39  ;;  %v3853_v38 = vadd.f32 %v3852_v30, %v3833_v33  ;;  %v2312_v39 = vld [vmem:[%s5598_s30 + $0x3ea8] sm:$0xff] }
 0x452   : > { %4805 = vmatpush.msra.mxu2 %v2174_v41  ;;  %4824 = vmatpush.msra.mxu3 %v2208_v42  ;;  %v3872_v41 = vpop.f32.mrf.mxu3  ;;  %v2246_v42 = vld [vmem:[%s5598_s30 + $0x3c98] sm:$0xff]  ;;  %v2236_v4 = vld [vmem:[%s5598_s30 + $0x3c48] sm:$0xff] }
 0x453   : > { %4766 = vmatpush.msra.mxu0 %v2108_v44  ;;  %4785 = vmatpush.msra.mxu1 %v2142_v45  ;;  %v2310_v44 = vld [vmem:[%s5598_s30 + $0x3e98] sm:$0xff]  ;;  %v2344_v45 = vld [vmem:[%s5598_s30 + $0x3fa8] sm:$0xff] }
 0x454   : > { %4806 = vmatpush.msra.mxu2 %v2172_v46  ;;  %4825 = vmatpush.msra.mxu3 %v2206_v47  ;;  %v3892_v46 = vpop.f32.mrf.mxu0  ;;  %v2244_v47 = vld [vmem:[%s5598_s30 + $0x3c88] sm:$0xff] }
 0x455   : > { %4767 = vmatpush.msra.mxu0 %v2106_v48  ;;  %4786 = vmatpush.msra.mxu1 %v2140_v49  ;;  %v2278_v48 = vld [vmem:[%s5598_s30 + $0x3d98] sm:$0xff]  ;;  %v3873_v49 = vadd.f32 %v3872_v41, %v3853_v38  ;;  %v2300_v7 = vld [vmem:[%s5598_s30 + $0x3e48] sm:$0xff] }
 0x456   : > { %4807 = vmatpush.msra.mxu2 %v2170_v51  ;;  %4826 = vmatpush.msra.mxu3 %v2204_v52  ;;  %v2342_v51 = vld [vmem:[%s5598_s30 + $0x3f98] sm:$0xff]  ;;  %v2232_v15 = vld [vmem:[%s5598_s30 + $0x3c28] sm:$0xff] }
 0x457   : > { %4768 = vmatpush.msra.mxu0 %v2104_v54  ;;  %4787 = vmatpush.msra.mxu1 %v2138_v55  ;;  %v2242_v52 = vld [vmem:[%s5598_s30 + $0x3c78] sm:$0xff]  ;;  %v3893_v54 = vadd.f32 %v3892_v46, %v3873_v49  ;;  %v2324_v33 = vld [vmem:[%s5598_s30 + $0x3f08] sm:$0xff] }
 0x458   : > { %4808 = vmatpush.msra.mxu2 %v2168_v56  ;;  %4827 = vmatpush.msra.mxu3 %v2202_v57  ;;  %v2306_v55 = vld [vmem:[%s5598_s30 + $0x3e78] sm:$0xff]  ;;  %v2340_v56 = vld [vmem:[%s5598_s30 + $0x3f88] sm:$0xff]  ;;  %v3912_v57 = vpop.f32.mrf.mxu1 }
 0x459   : > { %4769 = vmatpush.msra.mxu0 %v2102_v58  ;;  %4788 = vmatpush.msra.mxu1 %v2136_v59  ;;  %v2240_v58 = vld [vmem:[%s5598_s30 + $0x3c68] sm:$0xff]  ;;  %v2274_v59 = vld [vmem:[%s5598_s30 + $0x3d78] sm:$0xff] }
 0x45a   : > { %4809 = vmatpush.msra.mxu2 %v2166_v61  ;;  %4828 = vmatpush.msra.mxu3 %v2200_v62  ;;  %v2338_v61 = vld [vmem:[%s5598_s30 + $0x3f78] sm:$0xff]  ;;  %v3932_v62 = vpop.f32.mrf.mxu2  ;;  %v5250_v38 = vld [vmem:[%s5592_s8 + $0x1e8] sm:$0xff] }
 0x45b   : > { %4770 = vmatpush.msra.mxu0 %v2100_v0  ;;  %4789 = vmatpush.msra.mxu1 %v2134_v1  ;;  %v2272_v0 = vld [vmem:[%s5598_s30 + $0x3d68] sm:$0xff]  ;;  %v3913_v1 = vadd.f32 %v3912_v57, %v3893_v54 }
 0x45c   : > { %4810 = vmatpush.msra.mxu2 %v2164_v2  ;;  %4829 = vmatpush.msra.mxu3 %v2198_v3  ;;  %v2302_v2 = vld [vmem:[%s5598_s30 + $0x3e58] sm:$0xff]  ;;  %v2336_v3 = vld [vmem:[%s5598_s30 + $0x3f68] sm:$0xff] }
 0x45d   : > { %4771 = vmatmul.f32.vlgmr.msra.gmra.mxu0 %v5244_v10  ;;  %4811 = vmatmul.f32.vlgmr.msra.gmra.mxu2 %v5245_v11  ;;  %v2234_v10 = vld [vmem:[%s5598_s30 + $0x3c38] sm:$0xff]  ;;  %v2268_v11 = vld [vmem:[%s5598_s30 + $0x3d48] sm:$0xff] }
 0x45e   : > { %4835 = vmatpush.msrb.mxu0 %v2258_v5  ;;  %4875 = vmatpush.msrb.mxu2 %v2322_v6  ;;  %v2270_v5 = vld [vmem:[%s5598_s30 + $0x3d58] sm:$0xff]  ;;  %v3933_v6 = vadd.f32 %v3932_v62, %v3913_v1 }
 0x45f   : > { %4790 = vmatpush.msra.mxu1 %v2132_v8  ;;  %4830 = vmatpush.msra.mxu3 %v2196_v9  ;;  %v2334_v8 = vld [vmem:[%s5598_s30 + $0x3f58] sm:$0xff]  ;;  %v3952_v9 = vpop.f32.mrf.mxu3 }
 0x460   : > { %4791 = vmatmul.f32.vlgmr.msra.gmra.mxu1 %v5246_v18  ;;  %4831 = vmatmul.f32.vlgmr.msra.gmra.mxu3 %v5247_v19  ;;  %v2296_v18 = vld [vmem:[%s5598_s30 + $0x3e28] sm:$0xff]  ;;  %v2330_v19 = vld [vmem:[%s5598_s30 + $0x3f38] sm:$0xff]  ;;  %v3992_v25 = vpop.f32.mrf.mxu1 }
 0x461   : > { %4836 = vmatpush.msrb.mxu0 %v2256_v13  ;;  %4855 = vmatpush.msrb.mxu1 %v2290_v14  ;;  %v2332_v13 = vld [vmem:[%s5598_s30 + $0x3f48] sm:$0xff]  ;;  %v3972_v14 = vpop.f32.mrf.mxu0 }
 0x462   : > { %4876 = vmatpush.msrb.mxu2 %v2320_v16  ;;  %4895 = vmatpush.msrb.mxu3 %v2354_v17  ;;  %v2266_v16 = vld [vmem:[%s5598_s30 + $0x3d38] sm:$0xff]  ;;  %v3953_v17 = vadd.f32 %v3952_v9, %v3933_v6  ;;  %v4012_v30 = vpop.f32.mrf.mxu2 }
 0x463   : > { %4837 = vmatpush.msrb.mxu0 %v2254_v20  ;;  %4856 = vmatpush.msrb.mxu1 %v2288_v21  ;;  %v2230_v20 = vld [vmem:[%s5598_s30 + $0x3c18] sm:$0xff]  ;;  %v2264_v21 = vld [vmem:[%s5598_s30 + $0x3d28] sm:$0xff] }
 0x464   : > { %4877 = vmatpush.msrb.mxu2 %v2318_v23  ;;  %4896 = vmatpush.msrb.mxu3 %v2352_v24  ;;  %v3973_v22 = vadd.f32 %v3972_v14, %v3953_v17  ;;  %v2294_v23 = vld [vmem:[%s5598_s30 + $0x3e18] sm:$0xff]  ;;  %v2328_v24 = vld [vmem:[%s5598_s30 + $0x3f28] sm:$0xff] }
 0x465   : > { %4838 = vmatpush.msrb.mxu0 %v2252_v26  ;;  %4857 = vmatpush.msrb.mxu1 %v2286_v27  ;;  %v2228_v26 = vld [vmem:[%s5598_s30 + $0x3c08] sm:$0xff]  ;;  %v2262_v27 = vld [vmem:[%s5598_s30 + $0x3d18] sm:$0xff] }
 0x466   : > { %4878 = vmatpush.msrb.mxu2 %v2316_v28  ;;  %4897 = vmatpush.msrb.mxu3 %v2350_v29  ;;  %v2292_v28 = vld [vmem:[%s5598_s30 + $0x3e08] sm:$0xff]  ;;  %v2326_v29 = vld [vmem:[%s5598_s30 + $0x3f18] sm:$0xff] }
 0x467   : > { %4839 = vmatpush.msrb.mxu0 %v2250_v31  ;;  %4858 = vmatpush.msrb.mxu1 %v2284_v32  ;;  %v3993_v31 = vadd.f32 %v3992_v25, %v3973_v22  ;;  %v2260_v32 = vld [vmem:[%s5598_s30 + $0x3d08] sm:$0xff] }
 0x468   : > { %4879 = vmatpush.msrb.mxu2 %v2314_v34  ;;  %4898 = vmatpush.msrb.mxu3 %v2348_v35  ;;  %v5248_v35 = vld [vmem:[%s5592_s8 + $0x1e0] sm:$0xff] }
 0x469   : > { %4840 = vmatpush.msrb.mxu0 %v2248_v36  ;;  %4859 = vmatpush.msrb.mxu1 %v2282_v37  ;;  %v4013_v34 = vadd.f32 %v4012_v30, %v3993_v31  ;;  %v5249_v36 = vld [vmem:[%s5592_s8 + $0x1f0] sm:$0xff]  ;;  %v4032_v37 = vpop.f32.mrf.mxu3 }
 0x46a   : > { %4880 = vmatpush.msrb.mxu2 %v2312_v39  ;;  %4899 = vmatpush.msrb.mxu3 %v2346_v40  ;;  %v5251_v39 = vld [vmem:[%s5592_s8 + $0x1f8] sm:$0xff]  ;;  %v4052_v40 = vpop.f32.mrf.mxu0 }
 0x46b   : > { %4841 = vmatpush.msrb.mxu0 %v2246_v42  ;;  %4860 = vmatpush.msrb.mxu1 %v2280_v43  ;;  %v4033_v41 = vadd.f32 %v4032_v37, %v4013_v34  ;;  %v4072_v43 = vpop.f32.mrf.mxu1 }
 0x46c   : > { %4881 = vmatpush.msrb.mxu2 %v2310_v44  ;;  %4900 = vmatpush.msrb.mxu3 %v2344_v45  ;;  %v4092_v44 = vpop.f32.mrf.mxu2 }
 0x46d   : > { %4842 = vmatpush.msrb.mxu0 %v2244_v47  ;;  %4861 = vmatpush.msrb.mxu1 %v2278_v48  ;;  %v4053_v42 = vadd.f32 %v4052_v40, %v4033_v41 }
 0x46e   : > { %4882 = vmatpush.msrb.mxu2 %v2308_v50  ;;  %4901 = vmatpush.msrb.mxu3 %v2342_v51 }
 0x46f   : > { %4843 = vmatpush.msrb.mxu0 %v2242_v52  ;;  %4862 = vmatpush.msrb.mxu1 %v2276_v53  ;;  %v4073_v45 = vadd.f32 %v4072_v43, %v4053_v42 }
 0x470   : > { %4883 = vmatpush.msrb.mxu2 %v2306_v55  ;;  %4902 = vmatpush.msrb.mxu3 %v2340_v56 }
 0x471   : > { %4844 = vmatpush.msrb.mxu0 %v2240_v58  ;;  %4863 = vmatpush.msrb.mxu1 %v2274_v59  ;;  %v4093_v46 = vadd.f32 %v4092_v44, %v4073_v45  ;;  %v4112_v47 = vpop.f32.mrf.mxu3 }
 0x472   : > { %4884 = vmatpush.msrb.mxu2 %v2304_v60  ;;  %4903 = vmatpush.msrb.mxu3 %v2338_v61  ;;  %v4132_v48 = vpop.f32.mrf.mxu0 }
 0x473   : > { %4845 = vmatpush.msrb.mxu0 %v2238_v63  ;;  %4864 = vmatpush.msrb.mxu1 %v2272_v0  ;;  %v4113_v49 = vadd.f32 %v4112_v47, %v4093_v46  ;;  %v4152_v51 = vpop.f32.mrf.mxu1 }
 0x474   : > { %4885 = vmatpush.msrb.mxu2 %v2302_v2  ;;  %4904 = vmatpush.msrb.mxu3 %v2336_v3  ;;  %v4172_v52 = vpop.f32.mrf.mxu2 }
 0x475   : > { %4846 = vmatpush.msrb.mxu0 %v2236_v4  ;;  %4865 = vmatpush.msrb.mxu1 %v2270_v5  ;;  %v4133_v50 = vadd.f32 %v4132_v48, %v4113_v49 }
 0x476   : > { %4886 = vmatpush.msrb.mxu2 %v2300_v7  ;;  %4905 = vmatpush.msrb.mxu3 %v2334_v8 }
 0x477   : > { %4847 = vmatpush.msrb.mxu0 %v2234_v10  ;;  %4866 = vmatpush.msrb.mxu1 %v2268_v11  ;;  %v4153_v53 = vadd.f32 %v4152_v51, %v4133_v50 }
 0x478   : > { %4887 = vmatpush.msrb.mxu2 %v2298_v12  ;;  %4906 = vmatpush.msrb.mxu3 %v2332_v13 }
 0x479   : > { %4848 = vmatpush.msrb.mxu0 %v2232_v15  ;;  %4867 = vmatpush.msrb.mxu1 %v2266_v16  ;;  %v4173_v54 = vadd.f32 %v4172_v52, %v4153_v53  ;;  %v4192_v55 = vpop.f32.mrf.mxu3 }
 0x47a   : > { %4888 = vmatpush.msrb.mxu2 %v2296_v18  ;;  %4907 = vmatpush.msrb.mxu3 %v2330_v19  ;;  %v4212_v56 = vpop.f32.mrf.mxu0 }
 0x47b   : > { %4849 = vmatpush.msrb.mxu0 %v2230_v20  ;;  %4868 = vmatpush.msrb.mxu1 %v2264_v21  ;;  %v4193_v57 = vadd.f32 %v4192_v55, %v4173_v54  ;;  %v4232_v59 = vpop.f32.mrf.mxu1 }
 0x47c   : > { %4889 = vmatpush.msrb.mxu2 %v2294_v23  ;;  %4908 = vmatpush.msrb.mxu3 %v2328_v24  ;;  %v4252_v60 = vpop.f32.mrf.mxu2 }
 0x47d   : > { %4850 = vmatpush.msrb.mxu0 %v2228_v26  ;;  %4869 = vmatpush.msrb.mxu1 %v2262_v27  ;;  %v4213_v58 = vadd.f32 %v4212_v56, %v4193_v57 }
 0x47e   : > { %4890 = vmatpush.msrb.mxu2 %v2292_v28  ;;  %4909 = vmatpush.msrb.mxu3 %v2326_v29 }
 0x47f   : > { %4851 = vmatmul.f32.vlgmr.msrb.gmra.mxu0 %v5248_v35  ;;  %4891 = vmatmul.f32.vlgmr.msrb.gmra.mxu2 %v5249_v36  ;;  %v4233_v61 = vadd.f32 %v4232_v59, %v4213_v58 }
 0x480   : > { %4870 = vmatpush.msrb.mxu1 %v2260_v32  ;;  %4910 = vmatpush.msrb.mxu3 %v2324_v33 }
 0x481   : > { %4871 = vmatmul.f32.vlgmr.msrb.gmra.mxu1 %v5250_v38  ;;  %4911 = vmatmul.f32.vlgmr.msrb.gmra.mxu3 %v5251_v39  ;;  %v4253_v62 = vadd.f32 %v4252_v60, %v4233_v61  ;;  %v4272_v63 = vpop.f32.mrf.mxu3 }
 0x482   : > { %v4292_v0 = vpop.f32.mrf.mxu0 }
 0x483   : > { %v4273_v1 = vadd.f32 %v4272_v63, %v4253_v62  ;;  %v4312_v3 = vpop.f32.mrf.mxu1  ;;  %v242_v63 = vld [vmem:[#allocation2 + $0x8] sm:$0xff] }
 0x484   : > { %v4332_v4 = vpop.f32.mrf.mxu2 }
 0x485   : > { %v4293_v2 = vadd.f32 %v4292_v0, %v4273_v1 }
 0x487   : > { %v4313_v5 = vadd.f32 %v4312_v3, %v4293_v2 }
 0x489   : > { %v4333_v6 = vadd.f32 %v4332_v4, %v4313_v5  ;;  %v4352_v7 = vpop.f32.mrf.mxu3 }
 0x48a   : > { %v4372_v8 = vpop.f32.mrf.mxu0 }
 0x48b   : > { %v4353_v9 = vadd.f32 %v4352_v7, %v4333_v6  ;;  %v4392_v11 = vpop.f32.mrf.mxu1 }
 0x48c   : > { %v4412_v12 = vpop.f32.mrf.mxu2 }
 0x48d   : > { %v4373_v10 = vadd.f32 %v4372_v8, %v4353_v9 }
 0x48f   : > { %v4393_v13 = vadd.f32 %v4392_v11, %v4373_v10 }
 0x491   : > { %v4413_v14 = vadd.f32 %v4412_v12, %v4393_v13  ;;  %v4432_v15 = vpop.f32.mrf.mxu3 }
 0x492   : > { %v4452_v16 = vpop.f32.mrf.mxu0 }
 0x493   : > { %v4433_v17 = vadd.f32 %v4432_v15, %v4413_v14  ;;  %v4472_v19 = vpop.f32.mrf.mxu1 }
 0x494   : > { %v4492_v20 = vpop.f32.mrf.mxu2 }
 0x495   : > { %v4453_v18 = vadd.f32 %v4452_v16, %v4433_v17 }
 0x497   : > { %v4473_v21 = vadd.f32 %v4472_v19, %v4453_v18 }
 0x499   : > { %v4493_v22 = vadd.f32 %v4492_v20, %v4473_v21  ;;  %v4512_v23 = vpop.f32.mrf.mxu3 }
 0x49a   : > { %v4532_v24 = vpop.f32.mrf.mxu0 }
 0x49b   : > { %v4513_v25 = vadd.f32 %v4512_v23, %v4493_v22  ;;  %v4552_v27 = vpop.f32.mrf.mxu1 }
 0x49c   : > { %v4572_v28 = vpop.f32.mrf.mxu2 }
 0x49d   : > { %v4533_v26 = vadd.f32 %v4532_v24, %v4513_v25 }
 0x49f   : > { %v4553_v29 = vadd.f32 %v4552_v27, %v4533_v26 }
 0x4a1   : > { %v4573_v30 = vadd.f32 %v4572_v28, %v4553_v29  ;;  %v4592_v31 = vpop.f32.mrf.mxu3 }
 0x4a2   : > { %v4612_v32 = vpop.f32.mrf.mxu0 }
 0x4a3   : > { %v4593_v33 = vadd.f32 %v4592_v31, %v4573_v30  ;;  %v4632_v35 = vpop.f32.mrf.mxu1 }
 0x4a4   : > { %v4652_v36 = vpop.f32.mrf.mxu2 }
 0x4a5   : > { %v4613_v34 = vadd.f32 %v4612_v32, %v4593_v33 }
 0x4a7   : > { %v4633_v37 = vadd.f32 %v4632_v35, %v4613_v34 }
 0x4a9   : > { %v4653_v38 = vadd.f32 %v4652_v36, %v4633_v37  ;;  %v4672_v39 = vpop.f32.mrf.mxu3 }
 0x4ab   : > { %v4673_v41 = vadd.f32 %v4672_v39, %v4653_v38 }
 0x4b8   : > { %v4692_v40 = vpop.f32.mrf.mxu0 }
 0x4b9   : > { %v4693_v42 = vadd.f32 %v4692_v40, %v4673_v41 }
 0x4bb   : > { %v4712_v43 = vpop.f32.mrf.mxu1 }
 0x4bc   : > { %v4713_v45 = vadd.f32 %v4712_v43, %v4693_v42 }
 0x4be   : > { %v4732_v44 = vpop.f32.mrf.mxu2 }
 0x4bf   : > { %v4733_v46 = vadd.f32 %v4732_v44, %v4713_v45 }
 0x4c1   : > { %v4752_v47 = vpop.f32.mrf.mxu3 }
 0x4c2   : > { %v4753_v49 = vadd.f32 %v4752_v47, %v4733_v46 }
 0x4da   : > { %v4772_v48 = vpop.f32.mrf.mxu0 }
 0x4db   : > { %v4773_v50 = vadd.f32 %v4772_v48, %v4753_v49 }
 0x4dd   : > { %v4792_v51 = vpop.f32.mrf.mxu1 }
 0x4de   : > { %v4793_v53 = vadd.f32 %v4792_v51, %v4773_v50 }
 0x4e0   : > { %v4812_v52 = vpop.f32.mrf.mxu2 }
 0x4e1   : > { %v4813_v54 = vadd.f32 %v4812_v52, %v4793_v53 }
 0x4e3   : > { %v4832_v55 = vpop.f32.mrf.mxu3 }
 0x4e4   : > { %v4833_v56 = vadd.f32 %v4832_v55, %v4813_v54 }
 0x4fc   : > { %v4852_v57 = vpop.f32.mrf.mxu0 }
 0x4fd   : > { %v4853_v58 = vadd.f32 %v4852_v57, %v4833_v56 }
 0x4fe   : > { %v4872_v59 = vpop.f32.mrf.mxu1 }
 0x4ff   : > { %v4873_v60 = vadd.f32 %v4872_v59, %v4853_v58 }
 0x502   : > { %v4892_v61 = vpop.f32.mrf.mxu2 }
 0x503   : > { %v4893_v62 = vadd.f32 %v4892_v61, %v4873_v60 }
 0x504   : > { %v4912_v0 = vpop.f32.mrf.mxu3 }
 0x505   : > { %v4913_v1 = vadd.f32 %v4912_v0, %v4893_v62  ;;  %4922 = sbr.rel (%p5068_p7) target bundleno = 1298 (0x512), region = 44 }
 0x507   : > { %v4916_v2 = vadd.f32 %v4913_v1, %v242_v63 }
 0x509   : > { %4918 = vst [vmem:[#allocation2 + $0x8] sm:$0xff] %v4916_v2 }
 0x50a   : > { %v4923_v3 = vld [vmem:[#allocation2] sm:$0xff] }
 0x50b   : > { %4925 = vst [vmem:[%s5607_s21] sm:$0xff] %v4923_v3 }
 0x510   : > { %v4924_v4 = vld [vmem:[#allocation2 + $0x8] sm:$0xff] }
 0x511   : > { %4926 = vst [vmem:[%s5607_s21 + $0x8] sm:$0xff] %v4924_v4 }
 0x512 PF: > { %s5077_s28 = sshll.u32 %s5426_s16, 4  ;;  %s4941_s3 = sshll.u32 %s5607_s21, 4  ;;  %s4942_s3 = int_to_ptr.vmem [resolvable:$true] %s4941_s3 }
 0x513   : > { %s4939_s29 = scalar_lea.hbm %s7845_s2, %s5077_s28  ;;  %s4928_s25 = scalar_lea.sflag [#allocation5], %s226_s0 }
 0x514   : > { %s4943_s15 = sshll.u32 %s4939_s29, 4  ;;  %s5332_s16 = scalar_lea.hbm %s7845_s2, 32  ;;  %s4944_s15 = int_to_ptr.hbm [resolvable:$true] %s4943_s15 }
 0x515   : > { %s5326_s27 = sshra.s32 %s4944_s15, 4  ;;  %s5327_s27 = int_to_ptr.hbm [resolvable:$true] %s5326_s27 }
 0x516   : > { %s5328_s5 = scalar_lea.hbm %s5327_s27, 16  ;;  %p5333_p12 = scmp.lt.s32.totalorder %s5327_s27, %s7845_s2 }
 0x517   : > { %p5329_p9 = scmp.ne.s32.totalorder %s5327_s27, %s5328_s5  ;;  %p5334_p0 = scmp.lt.s32.totalorder %s5332_s16, %s5328_s5 }
 0x519   : > { %p5330_p10 = pnand %p5329_p9, %p5547_p13  ;;  %p5335_p1 = por %p5334_p0, %p5333_p12 }
 0x51b   : > { %p5331_p11 = pneg %p5330_p10 }
 0x51d   : > { %p5336_p3 = pnand %p5335_p1, %p5331_p11 }
 0x51f   : > { %5339 = shalt.err (!%p5336_p3)
}
 0x520   : > { %5082 = dma.vmem_to_hbm [thread:$0]  (%p5547_p13), %s4942_s3, 256, %s4944_s15, %s4928_s25  }
 0x521 PF: > { %p5096_p4 = scmp.ge.s32.totalorder %s5438_s19, 2  ;;  %s4955_s22 = sand.u32 1, %s5398_s9  }
 0x522   : > { %s4956_s12 = scalar_lea.sflag [#allocation5], %s4955_s22 }
 0x523   : > { %p5092_p6 = pnand %p5096_p4, %p5563_p2 }
 0x525   : > { %p5093_p8 = pneg %p5092_p6 }
 0x527   : > { %5393 = dma.done.wait (%p5093_p8), %s4956_s12, 256  }
 0x528   : > { %5395 = vsyncadd (%p5093_p8), %s4956_s12, 4294967040  ;;  %s21_s19 = sadd.s32 1, %s5438_s19   ;;  %s7862_s6 = sld [smem:[#allocation16_spill]] }
 0x529   : > { %p18_p5 = scmp.ge.s32.totalorder %s21_s19, 8   ;;  %s7863_s15 = sld [smem:[#allocation12_spill]] }
 0x52a   : > { %s7864_s16 = sld [smem:[#allocation13_spill]]  ;;  %s7867_s9 = smov %s5402_s10 }
 0x52b   : > { %s7865_s17 = sld [smem:[#allocation14_spill]]  ;;  %s7868_s10 = smov %s5406_s11 }
 0x52c   : > { %s7866_s18 = sld [smem:[#allocation15_spill]]  ;;  %s7869_s11 = smov %s5552_s7 }
 0x52d   : > { %s7870_s12 = smov %s5414_s13  ;;  %s7871_s13 = smov %s5418_s14 }
 0x52e   : > { %s7872_s14 = smov %s7862_s6  ;;  %20 = sbr.rel (!%p18_p5) target bundleno = 13 (0xd), region = 94 }
 0x533   :  { %4962 = vsyncpa [#allocation4], 1 }
 0x534   :  { %4964 = vsyncpa [#allocation4 + $0x1], 1 }
 0x535   :  { %4965 = vsyncpa [#allocation7], 1 }
 0x536   :  { %4967 = vsyncpa [#allocation7 + $0x1], 1 }
 0x537   :  { %4968 = vsyncpa [#allocation5], 1 }
 0x538   :  { %4970 = vsyncpa [#allocation5 + $0x1], 1 }

</bundles_post_ra>
